<compile_context>
chip_gen: v5e
topology: v5e:2x2
jax: 0.10.0
libtpu: 0.0.40
codegen_flags: <defaults>
</compile_context>

<pallas_src>
import functools

import jax
import jax.numpy as jnp
from jax.experimental import pallas as pl
from jax.experimental.pallas import tpu as pltpu

HID_DIM = 64
FEAT_DIM = 16
VOXEL_DIM = 8


def _softplus(x):
    # matches torch.nn.Softplus (beta=1, threshold=20)
    return jnp.where(x > 20.0, x, jnp.log1p(jnp.exp(jnp.minimum(x, 20.0))))


def _round_up(x, m):
    return -(-x // m) * m


def _nerf_kernel(
    # data (points on the lane axis)
    vox_ref,                       # (voxel_dim, T)   bf16
    rfrd_ref,                      # (V, DP, T)       bf16  (aligned per-view slab)
    # packed params: weights (out, in) bf16, biases (out, 1) f32
    vwp_ref, vb_ref,               # view_fc        (nf, DP), (nf, 1)
    gw0_ref, gw1_ref, gw2_ref, gb_ref,   # global_fc split  (32, nf) x3, (32, 1)
    aw_ref, ab_ref,                # agg_w_fc       (1, 32), (1, 1)
    fw_ref, fb_ref,                # fc             (16, 32), (16, 1)
    pvox_ref, pimg_ref, lb_ref,    # [lr0 ; weight0] vox/img parts (2h, vox)/(2h, 16), (h, 1)
    hdw_ref, hdb_ref,              # fused heads [feat_head; weight0_x; sigma] (v+h+1, h)
    w0fp_ref,                      # weight0 frd part padded over DP cols (h, DP)
    w1w_ref, w1b_ref,              # weight[2]      (1, h), (1, 1)
    # output
    out_ref,                       # (out_rows, T) f32
    *, feat_dim: int, hid_dim: int, voxel_dim: int, n_extra: int, rgb_row0: int,
):
    V = rfrd_ref.shape[0]
    nf = feat_dim + 3

    relu = lambda z: jnp.maximum(z, 0.0)
    bf = lambda z: z.astype(jnp.bfloat16)
    dotf = functools.partial(jnp.dot, preferred_element_type=jnp.float32)

    vwp = vwp_ref[...]
    vb = vb_ref[...]
    gw0, gw1, gw2, gb = gw0_ref[...], gw1_ref[...], gw2_ref[...], gb_ref[...]
    aw, ab = aw_ref[...], ab_ref[...]
    fw, fb = fw_ref[...], fb_ref[...]
    pvox, pimg, lb = pvox_ref[...], pimg_ref[...], lb_ref[...]
    hdw, hdb = hdw_ref[...], hdb_ref[...]
    w0fp = w0fp_ref[...]
    w1w, w1b = w1w_ref[...], w1b_ref[...]

    # ---- per-view viewdir aggregation (view_fc) ------------------------------
    # vwp has zero columns outside the dirs rows, so the MXU operand is the full
    # sublane-aligned per-view slab (no odd-offset sublane slices).
    imgs = []
    for v in range(V):                               # V small & static
        rv = rfrd_ref[v]                             # (DP, T) bf16, VMEM-resident
        view_v = relu(dotf(vwp, rv) + vb)            # (nf, T) f32
        imgs.append(rv[0:nf, :].astype(jnp.float32) + view_v)

    # ---- unbiased var/mean over views (matches torch.var_mean) --------------
    mean = sum(imgs) * (1.0 / V)
    var = sum((im - mean) ** 2 for im in imgs) * (1.0 / (V - 1))

    # ---- global_fc (column split), agg softmax, fc ---------------------------
    gvm = dotf(gw1, bf(var)) + dotf(gw2, bf(mean)) + gb          # view-invariant (32, T)
    gfs = [relu(dotf(gw0, bf(im)) + gvm) for im in imgs]         # (32, T) per view
    als = [relu(dotf(aw, bf(gf)) + ab) for gf in gfs]            # (1, T) per view
    amax = functools.reduce(jnp.maximum, als)
    aes = [jnp.exp(a - amax) for a in als]
    ainv = pl.reciprocal(sum(aes), approx=True)
    im_feat = sum(gf * (ae * ainv) for gf, ae in zip(gfs, aes))  # (32, T)
    img_feat = relu(dotf(fw, bf(im_feat)) + fb)                  # (16, T)

    # ---- trunk: fused lr0 + weight[0] vox/img projections --------------------
    vproj = dotf(pvox, vox_ref[...])                             # (2*hid, T)
    iproj = dotf(pimg, bf(img_feat))                             # (2*hid, T)
    x = relu(vproj[:hid_dim] + iproj[:hid_dim] + lb)             # (hid, T)
    w0_vif = vproj[hid_dim:] + iproj[hid_dim:]                   # (hid, T)

    # ---- fused heads: [feat_head ; weight0_x ; sigma] ------------------------
    head = dotf(hdw, bf(x)) + hdb                                # (voxel+hid+1, T)
    fh = relu(head[:voxel_dim])                                  # (voxel, T)
    h_inv = head[voxel_dim:voxel_dim + hid_dim] + w0_vif         # (hid, T) incl. w0 bias
    sig = _softplus(head[voxel_dim + hid_dim:])                  # (1, T)

    # ---- per-view blending logits (frd read straight from the resident ref) --
    wls = []
    for v in range(V):
        hv = relu(dotf(w0fp, rfrd_ref[v]) + h_inv)               # (hid, T)
        wls.append(relu(dotf(w1w, bf(hv)) + w1b))                # (1, T)
    wmax = functools.reduce(jnp.maximum, wls)
    wes = [jnp.exp(wl - wmax) for wl in wls]
    winv = pl.reciprocal(sum(wes), approx=True)
    wns = [we * winv for we in wes]

    # ---- weighted reductions over views (re-read from the ref; nothing kept) -
    fr = sum(rfrd_ref[v][0:nf, :].astype(jnp.float32) * wns[v] for v in range(V))
    if n_extra:
        rgbx = sum(rfrd_ref[v][rgb_row0:rgb_row0 + n_extra, :].astype(jnp.float32)
                   * wns[v] for v in range(V))

    # ---- sublane-aligned, lane-dense stores ----------------------------------
    r0 = voxel_dim
    r1 = r0 + nf
    r2 = r1 + n_extra
    out_ref[0:r0, :] = fh
    out_ref[r0:r1, :] = fr
    if n_extra:
        out_ref[r1:r2, :] = rgbx
    out_ref[r2:r2 + 1, :] = sig
    if r2 + 1 < out_ref.shape[0]:
        out_ref[r2 + 1:, :] = jnp.zeros(
            (out_ref.shape[0] - (r2 + 1), out_ref.shape[1]), out_ref.dtype)


def init_params(key, hid_dim=HID_DIM, feat_dim=FEAT_DIM, voxel_dim=VOXEL_DIM):
    """Deterministic synthetic parameters in torch-like layout:
    weights as [in, out], biases as [1, out]."""
    dims = [
        ('view',  4,                                           feat_dim + 3),
        ('glob',  (feat_dim + 3) * 3,                          32),
        ('aggw',  32,                                          1),
        ('fc',    32,                                          16),
        ('lr0',   voxel_dim + 16,                              hid_dim),
        ('sig',   hid_dim,                                     1),
        ('w0',    hid_dim + voxel_dim + 16 + feat_dim + 3 + 4, hid_dim),
        ('w1',    hid_dim,                                     1),
        ('head',  hid_dim,                                     voxel_dim),
    ]
    params = []
    keys = jax.random.split(key, len(dims))
    for k, (_, din, dout) in zip(keys, dims):
        kw, kb = jax.random.split(k)
        w = jax.random.normal(kw, (din, dout), jnp.float32) * (1.0 / jnp.sqrt(din))
        b = jax.random.normal(kb, (1, dout), jnp.float32) * 0.05
        params += [w, b]
    return params


def pack_params(params, feat_dim, hid_dim, voxel_dim, dp):
    """Repack torch-layout params into kernel-ready (out, in) bf16 weights (f32 biases),
    with the global_fc / lr0 / weight[0] splits and head fusion described above."""
    (vw, vb, gw, gb, aw, ab, fw, fb, lw, lb,
     sw, sb, w0w, w0b, w1w, w1b, hw, hb) = params
    nf = feat_dim + 3
    frd_dim = nf + 4
    img_dim = lw.shape[0] - voxel_dim                  # 16
    gwT = gw.T                                         # (32, 3*nf)
    lwT = lw.T                                         # (hid, vox+16)
    w0T = w0w.T                                        # (hid, hid+vox+16+frd) cols [x|vox|img|frd]

    # view_fc weight spread over the padded per-view slab (only dirs cols nonzero)
    vw_pad = jnp.zeros((nf, dp), jnp.float32).at[:, nf:frd_dim].set(vw.T)
    # weight[0] frd columns, likewise spread over the padded slab
    w0f_pad = jnp.zeros((hid_dim, dp), jnp.float32).at[:, :frd_dim].set(
        w0T[:, hid_dim + voxel_dim + img_dim:])

    pvox = jnp.concatenate([lwT[:, :voxel_dim],
                            w0T[:, hid_dim:hid_dim + voxel_dim]], axis=0)        # (2h, vox)
    pimg = jnp.concatenate([lwT[:, voxel_dim:],
                            w0T[:, hid_dim + voxel_dim:
                                   hid_dim + voxel_dim + img_dim]], axis=0)      # (2h, 16)
    hdw = jnp.concatenate([hw.T, w0T[:, :hid_dim], sw.T], axis=0)                # (v+h+1, h)
    hdb = jnp.concatenate([hb.T, w0b.T, sb.T], axis=0)                           # (v+h+1, 1)

    b16 = lambda a: jnp.asarray(a, jnp.bfloat16)
    f32 = lambda a: jnp.asarray(a, jnp.float32)
    return [
        b16(vw_pad), f32(vb.T),
        b16(gwT[:, :nf]), b16(gwT[:, nf:2 * nf]), b16(gwT[:, 2 * nf:3 * nf]), f32(gb.T),
        b16(aw.T), f32(ab.T),
        b16(fw.T), f32(fb.T),
        b16(pvox), b16(pimg), f32(lb.T),
        b16(hdw), f32(hdb),
        b16(w0f_pad),
        b16(w1w.T), f32(w1b.T),
    ]


def nerf_forward(vox_feat, rgbs_feat_rgb_dir, params,
                 feat_dim=FEAT_DIM, hid_dim=HID_DIM, tile_n=1024):
    """vox_feat: (N, voxel_dim); rgbs_feat_rgb_dir: (V, N, Dtot).
    Returns sigma (N,), feat (N, Dtot-4+voxel_dim)."""
    V, N, Dtot = rgbs_feat_rgb_dir.shape
    voxel_dim = vox_feat.shape[-1]
    nf = feat_dim + 3
    frd_dim = nf + 4
    n_extra = Dtot - 4 - nf                      # extra up-scaled rgb rows (3 for up_scale=1)
    assert V >= 2, "unbiased variance over views requires num_views >= 2"
    assert n_extra >= 0 and tile_n % 128 == 0

    rgb_row0 = _round_up(frd_dim, 8)             # 24: aligned start for the extra-rgb rows
    dp = _round_up(rgb_row0 + n_extra, 8)        # 32: padded per-view row count
    out_rows = _round_up(voxel_dim + nf + n_extra + 1, 8)   # 32

    kparams = pack_params(params, feat_dim=feat_dim, hid_dim=hid_dim,
                          voxel_dim=voxel_dim, dp=dp)

    # Host-side relayout: points on lanes, 8-aligned per-view row slabs, bf16 streaming.
    n_pad = ((N + tile_n - 1) // tile_n) * tile_n
    src = jnp.transpose(rgbs_feat_rgb_dir, (0, 2, 1)).astype(jnp.bfloat16)   # (V, Dtot, N)
    rfrd = jnp.zeros((V, dp, n_pad), jnp.bfloat16)
    rfrd = rfrd.at[:, :frd_dim, :N].set(src[:, n_extra:, :])                 # feat+rgb, dirs
    if n_extra:
        rfrd = rfrd.at[:, rgb_row0:rgb_row0 + n_extra, :N].set(src[:, :n_extra, :])
    vox_t = jnp.zeros((voxel_dim, n_pad), jnp.bfloat16)
    vox_t = vox_t.at[:, :N].set(vox_feat.T.astype(jnp.bfloat16))

    grid = (n_pad // tile_n,)
    data_specs = [
        pl.BlockSpec((voxel_dim, tile_n), lambda i: (0, i)),
        pl.BlockSpec((V, dp, tile_n), lambda i: (0, 0, i)),
    ]
    param_specs = [pl.BlockSpec(p.shape, lambda i: (0, 0)) for p in kparams]
    out_spec = pl.BlockSpec((out_rows, tile_n), lambda i: (0, i))

    kernel = functools.partial(_nerf_kernel, feat_dim=feat_dim, hid_dim=hid_dim,
                               voxel_dim=voxel_dim, n_extra=n_extra,
                               rgb_row0=rgb_row0)
    out = pl.pallas_call(
        kernel,
        out_shape=jax.ShapeDtypeStruct((out_rows, n_pad), jnp.float32),
        grid_spec=pltpu.PrefetchScalarGridSpec(
            num_scalar_prefetch=0,
            grid=grid,
            in_specs=data_specs + param_specs,
            out_specs=out_spec,
        ),
        compiler_params=pltpu.CompilerParams(
            dimension_semantics=("parallel",),
            vmem_limit_bytes=32 * 1024 * 1024),
    )(vox_t, rfrd, *kparams)

    # Reassemble torch ordering: feat = [extra rgbs | feat+rgb | feat_head].
    r0, r1 = voxel_dim, voxel_dim + nf
    r2 = r1 + n_extra
    sigma = out[r2, :N]
    feat = jnp.concatenate(
        [out[r1:r2, :N], out[r0:r1, :N], out[0:r0, :N]], axis=0).T
    return sigma, feat


def nerf_reference(vox_feat, rfrd, params, feat_dim=FEAT_DIM, mxu_dtype=jnp.float32):
    """Pure-JAX reference mirroring the PyTorch forward (only_geo=False).
    With mxu_dtype=bfloat16 it mirrors the kernel's matmul-operand precision policy
    (bf16 operands, f32 accumulation) so the structural correctness of the kernel
    can be checked at a tight tolerance."""
    (vw, vb, gw, gb, aw, ab, fw, fb, lw, lb, sw, sb,
     w0w, w0b, w1w, w1b, hw, hb) = params
    c = lambda a: a.astype(mxu_dtype)
    mm = lambda a, b: jnp.dot(c(a), c(b), preferred_element_type=jnp.float32)
    V = rfrd.shape[0]
    Dtot = rfrd.shape[-1]
    frd = rfrd[..., Dtot - (feat_dim + 7):]
    ifr = frd[..., : feat_dim + 3]
    dirs = frd[..., feat_dim + 3:]
    ifr = ifr + jnp.maximum(mm(dirs, vw) + vb, 0.0)
    mean = jnp.mean(ifr, axis=0, keepdims=True)
    var = jnp.sum((ifr - mean) ** 2, axis=0, keepdims=True) / (V - 1)
    cat = jnp.concatenate([ifr, jnp.broadcast_to(var, ifr.shape),
                           jnp.broadcast_to(mean, ifr.shape)], -1)
    gfeat = jnp.maximum(mm(cat, gw) + gb, 0.0)
    aw_logit = jnp.maximum(mm(gfeat, aw) + ab, 0.0)
    aggw = jax.nn.softmax(aw_logit, axis=0)
    im_feat = jnp.sum(gfeat * aggw, axis=0)
    img_feat = jnp.maximum(mm(im_feat, fw) + fb, 0.0)
    vif = jnp.concatenate([vox_feat, img_feat], -1)
    x = jnp.maximum(mm(vif, lw) + lb, 0.0)
    sigma = jax.nn.softplus(mm(x, sw) + sb)[:, 0]
    wf = jnp.concatenate([x, vif], -1)
    wf = jnp.broadcast_to(wf[None], (V,) + wf.shape)
    wf = jnp.concatenate([wf, frd], -1)
    h = jnp.maximum(mm(wf, w0w) + w0b, 0.0)
    wl = jnp.maximum(mm(h, w1w) + w1b, 0.0)
    weight = jax.nn.softmax(wl, axis=0)
    rgbs_feat_rgb = jnp.sum(rfrd[..., : Dtot - 4] * weight, axis=0)
    fh = jnp.maximum(mm(x, hw) + hb, 0.0)
    return sigma, jnp.concatenate([rgbs_feat_rgb, fh], -1)


if __name__ == "__main__":
    key = jax.random.PRNGKey(0)
    k_p, k_v, k_r = jax.random.split(key, 3)

    num_views, num_points = 3, 2048
    up_scale = 1
    d_total = 3 * up_scale ** 2 + FEAT_DIM + 3 + 4   # 26

    params = init_params(k_p)
    vox_feat = jax.random.normal(k_v, (num_points, VOXEL_DIM), jnp.float32)
    rgbs_feat_rgb_dir = jax.random.normal(
        k_r, (num_views, num_points, d_total), jnp.float32)

    sigma, feat = nerf_forward(vox_feat, rgbs_feat_rgb_dir, params)
    jax.block_until_ready((sigma, feat))

    assert sigma.shape == (num_points,)
    assert feat.shape == (num_points, d_total - 4 + VOXEL_DIM)

    # Strict check: reference with the SAME bf16 input quantization and bf16 matmul
    # operands (f32 accumulation) -> validates all structural transformations.
    q = lambda a: jnp.asarray(a, jnp.bfloat16).astype(jnp.float32)
    sigma_bf, feat_bf = nerf_reference(q(vox_feat), q(rgbs_feat_rgb_dir), params,
                                       mxu_dtype=jnp.bfloat16)
    assert jnp.allclose(sigma, sigma_bf, atol=1e-2, rtol=1e-2), \
        float(jnp.max(jnp.abs(sigma - sigma_bf)))
    assert jnp.allclose(feat, feat_bf, atol=1e-2, rtol=1e-2), \
        float(jnp.max(jnp.abs(feat - feat_bf)))

    # Loose sanity check against the full-f32 reference (bounds the end-to-end
    # bf16 quantization error of the whole pipeline).
    sigma_f32, feat_f32 = nerf_reference(vox_feat, rgbs_feat_rgb_dir, params,
                                         mxu_dtype=jnp.float32)
    assert jnp.allclose(sigma, sigma_f32, atol=2e-1, rtol=2e-1), \
        float(jnp.max(jnp.abs(sigma - sigma_f32)))
    assert jnp.allclose(feat, feat_f32, atol=2e-1, rtol=2e-1), \
        float(jnp.max(jnp.abs(feat - feat_f32)))

    print("KERNEL_OK")
</pallas_src>

<mosaic_0001>
module attributes {stable_mosaic.version = 11 : i64} {
  func.func @_nerf_kernel(%arg0: i32, %arg1: memref<8x1024xbf16, #tpu.memory_space<vmem>>, %arg2: memref<3x32x1024xbf16, #tpu.memory_space<vmem>>, %arg3: memref<19x32xbf16, #tpu.memory_space<vmem>>, %arg4: memref<19x1xf32, #tpu.memory_space<vmem>>, %arg5: memref<32x19xbf16, #tpu.memory_space<vmem>>, %arg6: memref<32x19xbf16, #tpu.memory_space<vmem>>, %arg7: memref<32x19xbf16, #tpu.memory_space<vmem>>, %arg8: memref<32x1xf32, #tpu.memory_space<vmem>>, %arg9: memref<1x32xbf16, #tpu.memory_space<vmem>>, %arg10: memref<1x1xf32, #tpu.memory_space<vmem>>, %arg11: memref<16x32xbf16, #tpu.memory_space<vmem>>, %arg12: memref<16x1xf32, #tpu.memory_space<vmem>>, %arg13: memref<128x8xbf16, #tpu.memory_space<vmem>>, %arg14: memref<128x16xbf16, #tpu.memory_space<vmem>>, %arg15: memref<64x1xf32, #tpu.memory_space<vmem>>, %arg16: memref<73x64xbf16, #tpu.memory_space<vmem>>, %arg17: memref<73x1xf32, #tpu.memory_space<vmem>>, %arg18: memref<64x32xbf16, #tpu.memory_space<vmem>>, %arg19: memref<1x64xbf16, #tpu.memory_space<vmem>>, %arg20: memref<1x1xf32, #tpu.memory_space<vmem>>, %arg21: memref<32x1024xf32, #tpu.memory_space<vmem>>) attributes {dimension_semantics = [#tpu.dimension_semantics<parallel>], iteration_bounds = array<i64: 2>, scalar_prefetch = 0 : i64, scratch_operands = 0 : i64, tpu.core_type = #tpu.core_type<tc>, window_params = [{transform_indices = @transform_0, window_bounds = array<i64: 8, 1024>}, {transform_indices = @transform_1, window_bounds = array<i64: 3, 32, 1024>}, {pipeline_mode = #tpu.pipeline_mode<synchronous>, transform_indices = @transform_2, window_bounds = array<i64: 19, 32>}, {pipeline_mode = #tpu.pipeline_mode<synchronous>, transform_indices = @transform_3, window_bounds = array<i64: 19, 1>}, {pipeline_mode = #tpu.pipeline_mode<synchronous>, transform_indices = @transform_4, window_bounds = array<i64: 32, 19>}, {pipeline_mode = #tpu.pipeline_mode<synchronous>, transform_indices = @transform_5, window_bounds = array<i64: 32, 19>}, {pipeline_mode = #tpu.pipeline_mode<synchronous>, transform_indices = @transform_6, window_bounds = array<i64: 32, 19>}, {pipeline_mode = #tpu.pipeline_mode<synchronous>, transform_indices = @transform_7, window_bounds = array<i64: 32, 1>}, {pipeline_mode = #tpu.pipeline_mode<synchronous>, transform_indices = @transform_8, window_bounds = array<i64: 1, 32>}, {pipeline_mode = #tpu.pipeline_mode<synchronous>, transform_indices = @transform_9, window_bounds = array<i64: 1, 1>}, {pipeline_mode = #tpu.pipeline_mode<synchronous>, transform_indices = @transform_10, window_bounds = array<i64: 16, 32>}, {pipeline_mode = #tpu.pipeline_mode<synchronous>, transform_indices = @transform_11, window_bounds = array<i64: 16, 1>}, {pipeline_mode = #tpu.pipeline_mode<synchronous>, transform_indices = @transform_12, window_bounds = array<i64: 128, 8>}, {pipeline_mode = #tpu.pipeline_mode<synchronous>, transform_indices = @transform_13, window_bounds = array<i64: 128, 16>}, {pipeline_mode = #tpu.pipeline_mode<synchronous>, transform_indices = @transform_14, window_bounds = array<i64: 64, 1>}, {pipeline_mode = #tpu.pipeline_mode<synchronous>, transform_indices = @transform_15, window_bounds = array<i64: 73, 64>}, {pipeline_mode = #tpu.pipeline_mode<synchronous>, transform_indices = @transform_16, window_bounds = array<i64: 73, 1>}, {pipeline_mode = #tpu.pipeline_mode<synchronous>, transform_indices = @transform_17, window_bounds = array<i64: 64, 32>}, {pipeline_mode = #tpu.pipeline_mode<synchronous>, transform_indices = @transform_18, window_bounds = array<i64: 1, 64>}, {pipeline_mode = #tpu.pipeline_mode<synchronous>, transform_indices = @transform_19, window_bounds = array<i64: 1, 1>}, {transform_indices = @transform_20, window_bounds = array<i64: 32, 1024>}]} {
    %c0 = arith.constant 0 : index
    %c0_0 = arith.constant 0 : index
    %0 = vector.load %arg3[%c0, %c0_0] : memref<19x32xbf16, #tpu.memory_space<vmem>>, vector<19x32xbf16>
    %c0_1 = arith.constant 0 : index
    %c0_2 = arith.constant 0 : index
    %1 = vector.load %arg4[%c0_1, %c0_2] : memref<19x1xf32, #tpu.memory_space<vmem>>, vector<19x1xf32>
    %c0_3 = arith.constant 0 : index
    %c0_4 = arith.constant 0 : index
    %2 = vector.load %arg5[%c0_3, %c0_4] : memref<32x19xbf16, #tpu.memory_space<vmem>>, vector<32x19xbf16>
    %c0_5 = arith.constant 0 : index
    %c0_6 = arith.constant 0 : index
    %3 = vector.load %arg6[%c0_5, %c0_6] : memref<32x19xbf16, #tpu.memory_space<vmem>>, vector<32x19xbf16>
    %c0_7 = arith.constant 0 : index
    %c0_8 = arith.constant 0 : index
    %4 = vector.load %arg7[%c0_7, %c0_8] : memref<32x19xbf16, #tpu.memory_space<vmem>>, vector<32x19xbf16>
    %c0_9 = arith.constant 0 : index
    %c0_10 = arith.constant 0 : index
    %5 = vector.load %arg8[%c0_9, %c0_10] : memref<32x1xf32, #tpu.memory_space<vmem>>, vector<32x1xf32>
    %c0_11 = arith.constant 0 : index
    %c0_12 = arith.constant 0 : index
    %6 = vector.load %arg9[%c0_11, %c0_12] : memref<1x32xbf16, #tpu.memory_space<vmem>>, vector<1x32xbf16>
    %c0_13 = arith.constant 0 : index
    %c0_14 = arith.constant 0 : index
    %7 = vector.load %arg10[%c0_13, %c0_14] : memref<1x1xf32, #tpu.memory_space<vmem>>, vector<1x1xf32>
    %c0_15 = arith.constant 0 : index
    %c0_16 = arith.constant 0 : index
    %8 = vector.load %arg11[%c0_15, %c0_16] : memref<16x32xbf16, #tpu.memory_space<vmem>>, vector<16x32xbf16>
    %c0_17 = arith.constant 0 : index
    %c0_18 = arith.constant 0 : index
    %9 = vector.load %arg12[%c0_17, %c0_18] : memref<16x1xf32, #tpu.memory_space<vmem>>, vector<16x1xf32>
    %c0_19 = arith.constant 0 : index
    %c0_20 = arith.constant 0 : index
    %10 = vector.load %arg13[%c0_19, %c0_20] : memref<128x8xbf16, #tpu.memory_space<vmem>>, vector<128x8xbf16>
    %c0_21 = arith.constant 0 : index
    %c0_22 = arith.constant 0 : index
    %11 = vector.load %arg14[%c0_21, %c0_22] : memref<128x16xbf16, #tpu.memory_space<vmem>>, vector<128x16xbf16>
    %c0_23 = arith.constant 0 : index
    %c0_24 = arith.constant 0 : index
    %12 = vector.load %arg15[%c0_23, %c0_24] : memref<64x1xf32, #tpu.memory_space<vmem>>, vector<64x1xf32>
    %c0_25 = arith.constant 0 : index
    %c0_26 = arith.constant 0 : index
    %13 = vector.load %arg16[%c0_25, %c0_26] : memref<73x64xbf16, #tpu.memory_space<vmem>>, vector<73x64xbf16>
    %c0_27 = arith.constant 0 : index
    %c0_28 = arith.constant 0 : index
    %14 = vector.load %arg17[%c0_27, %c0_28] : memref<73x1xf32, #tpu.memory_space<vmem>>, vector<73x1xf32>
    %c0_29 = arith.constant 0 : index
    %c0_30 = arith.constant 0 : index
    %15 = vector.load %arg18[%c0_29, %c0_30] : memref<64x32xbf16, #tpu.memory_space<vmem>>, vector<64x32xbf16>
    %c0_31 = arith.constant 0 : index
    %c0_32 = arith.constant 0 : index
    %16 = vector.load %arg19[%c0_31, %c0_32] : memref<1x64xbf16, #tpu.memory_space<vmem>>, vector<1x64xbf16>
    %c0_33 = arith.constant 0 : index
    %c0_34 = arith.constant 0 : index
    %17 = vector.load %arg20[%c0_33, %c0_34] : memref<1x1xf32, #tpu.memory_space<vmem>>, vector<1x1xf32>
    %c0_35 = arith.constant 0 : index
    %c0_36 = arith.constant 0 : index
    %c0_37 = arith.constant 0 : index
    %18 = vector.load %arg2[%c0_35, %c0_36, %c0_37] : memref<3x32x1024xbf16, #tpu.memory_space<vmem>>, vector<1x32x1024xbf16>
    %19 = vector.shape_cast %18 : vector<1x32x1024xbf16> to vector<32x1024xbf16>
    %cst = arith.constant dense<0.000000e+00> : vector<19x1024xf32>
    %20 = tpu.matmul %0, %19, %cst {dimension_numbers = #tpu.dot_dimension_numbers<[1], [0], [0], [1], [0, 0, 1, 1], [], []>} : vector<19x32xbf16>, vector<32x1024xbf16>, vector<19x1024xf32> -> vector<19x1024xf32>
    %21 = vector.broadcast %1 : vector<19x1xf32> to vector<19x1024xf32>
    %22 = arith.addf %20, %21 : vector<19x1024xf32>
    %cst_38 = arith.constant 0.000000e+00 : f32
    %23 = vector.broadcast %cst_38 : f32 to vector<19x1024xf32>
    %24 = arith.maximumf %22, %23 : vector<19x1024xf32>
    %25 = vector.extract_strided_slice %19 {offsets = [0, 0], sizes = [19, 1024], strides = [1, 1]} : vector<32x1024xbf16> to vector<19x1024xbf16>
    %26 = arith.extf %25 : vector<19x1024xbf16> to vector<19x1024xf32>
    %27 = arith.addf %26, %24 : vector<19x1024xf32>
    %c1 = arith.constant 1 : index
    %c0_39 = arith.constant 0 : index
    %c0_40 = arith.constant 0 : index
    %28 = vector.load %arg2[%c1, %c0_39, %c0_40] : memref<3x32x1024xbf16, #tpu.memory_space<vmem>>, vector<1x32x1024xbf16>
    %29 = vector.shape_cast %28 : vector<1x32x1024xbf16> to vector<32x1024xbf16>
    %cst_41 = arith.constant dense<0.000000e+00> : vector<19x1024xf32>
    %30 = tpu.matmul %0, %29, %cst_41 {dimension_numbers = #tpu.dot_dimension_numbers<[1], [0], [0], [1], [0, 0, 1, 1], [], []>} : vector<19x32xbf16>, vector<32x1024xbf16>, vector<19x1024xf32> -> vector<19x1024xf32>
    %31 = vector.broadcast %1 : vector<19x1xf32> to vector<19x1024xf32>
    %32 = arith.addf %30, %31 : vector<19x1024xf32>
    %cst_42 = arith.constant 0.000000e+00 : f32
    %33 = vector.broadcast %cst_42 : f32 to vector<19x1024xf32>
    %34 = arith.maximumf %32, %33 : vector<19x1024xf32>
    %35 = vector.extract_strided_slice %29 {offsets = [0, 0], sizes = [19, 1024], strides = [1, 1]} : vector<32x1024xbf16> to vector<19x1024xbf16>
    %36 = arith.extf %35 : vector<19x1024xbf16> to vector<19x1024xf32>
    %37 = arith.addf %36, %34 : vector<19x1024xf32>
    %c2 = arith.constant 2 : index
    %c0_43 = arith.constant 0 : index
    %c0_44 = arith.constant 0 : index
    %38 = vector.load %arg2[%c2, %c0_43, %c0_44] : memref<3x32x1024xbf16, #tpu.memory_space<vmem>>, vector<1x32x1024xbf16>
    %39 = vector.shape_cast %38 : vector<1x32x1024xbf16> to vector<32x1024xbf16>
    %cst_45 = arith.constant dense<0.000000e+00> : vector<19x1024xf32>
    %40 = tpu.matmul %0, %39, %cst_45 {dimension_numbers = #tpu.dot_dimension_numbers<[1], [0], [0], [1], [0, 0, 1, 1], [], []>} : vector<19x32xbf16>, vector<32x1024xbf16>, vector<19x1024xf32> -> vector<19x1024xf32>
    %41 = vector.broadcast %1 : vector<19x1xf32> to vector<19x1024xf32>
    %42 = arith.addf %40, %41 : vector<19x1024xf32>
    %cst_46 = arith.constant 0.000000e+00 : f32
    %43 = vector.broadcast %cst_46 : f32 to vector<19x1024xf32>
    %44 = arith.maximumf %42, %43 : vector<19x1024xf32>
    %45 = vector.extract_strided_slice %39 {offsets = [0, 0], sizes = [19, 1024], strides = [1, 1]} : vector<32x1024xbf16> to vector<19x1024xbf16>
    %46 = arith.extf %45 : vector<19x1024xbf16> to vector<19x1024xf32>
    %47 = arith.addf %46, %44 : vector<19x1024xf32>
    %cst_47 = arith.constant 0.000000e+00 : f32
    %48 = vector.broadcast %cst_47 : f32 to vector<19x1024xf32>
    %49 = arith.addf %48, %27 : vector<19x1024xf32>
    %50 = arith.addf %49, %37 : vector<19x1024xf32>
    %51 = arith.addf %50, %47 : vector<19x1024xf32>
    %cst_48 = arith.constant 0.333333343 : f32
    %52 = vector.broadcast %cst_48 : f32 to vector<19x1024xf32>
    %53 = arith.mulf %51, %52 : vector<19x1024xf32>
    %54 = arith.subf %27, %53 : vector<19x1024xf32>
    %55 = arith.mulf %54, %54 : vector<19x1024xf32>
    %cst_49 = arith.constant 0.000000e+00 : f32
    %56 = vector.broadcast %cst_49 : f32 to vector<19x1024xf32>
    %57 = arith.addf %56, %55 : vector<19x1024xf32>
    %58 = arith.subf %37, %53 : vector<19x1024xf32>
    %59 = arith.mulf %58, %58 : vector<19x1024xf32>
    %60 = arith.addf %57, %59 : vector<19x1024xf32>
    %61 = arith.subf %47, %53 : vector<19x1024xf32>
    %62 = arith.mulf %61, %61 : vector<19x1024xf32>
    %63 = arith.addf %60, %62 : vector<19x1024xf32>
    %cst_50 = arith.constant 5.000000e-01 : f32
    %64 = vector.broadcast %cst_50 : f32 to vector<19x1024xf32>
    %65 = arith.mulf %63, %64 : vector<19x1024xf32>
    %66 = arith.truncf %65 : vector<19x1024xf32> to vector<19x1024xbf16>
    %cst_51 = arith.constant dense<0.000000e+00> : vector<32x1024xf32>
    %67 = tpu.matmul %3, %66, %cst_51 {dimension_numbers = #tpu.dot_dimension_numbers<[1], [0], [0], [1], [0, 0, 1, 1], [], []>} : vector<32x19xbf16>, vector<19x1024xbf16>, vector<32x1024xf32> -> vector<32x1024xf32>
    %68 = arith.truncf %53 : vector<19x1024xf32> to vector<19x1024xbf16>
    %cst_52 = arith.constant dense<0.000000e+00> : vector<32x1024xf32>
    %69 = tpu.matmul %4, %68, %cst_52 {dimension_numbers = #tpu.dot_dimension_numbers<[1], [0], [0], [1], [0, 0, 1, 1], [], []>} : vector<32x19xbf16>, vector<19x1024xbf16>, vector<32x1024xf32> -> vector<32x1024xf32>
    %70 = arith.addf %67, %69 : vector<32x1024xf32>
    %71 = vector.broadcast %5 : vector<32x1xf32> to vector<32x1024xf32>
    %72 = arith.addf %70, %71 : vector<32x1024xf32>
    %73 = arith.truncf %27 : vector<19x1024xf32> to vector<19x1024xbf16>
    %cst_53 = arith.constant dense<0.000000e+00> : vector<32x1024xf32>
    %74 = tpu.matmul %2, %73, %cst_53 {dimension_numbers = #tpu.dot_dimension_numbers<[1], [0], [0], [1], [0, 0, 1, 1], [], []>} : vector<32x19xbf16>, vector<19x1024xbf16>, vector<32x1024xf32> -> vector<32x1024xf32>
    %75 = arith.addf %74, %72 : vector<32x1024xf32>
    %cst_54 = arith.constant 0.000000e+00 : f32
    %76 = vector.broadcast %cst_54 : f32 to vector<32x1024xf32>
    %77 = arith.maximumf %75, %76 : vector<32x1024xf32>
    %78 = arith.truncf %37 : vector<19x1024xf32> to vector<19x1024xbf16>
    %cst_55 = arith.constant dense<0.000000e+00> : vector<32x1024xf32>
    %79 = tpu.matmul %2, %78, %cst_55 {dimension_numbers = #tpu.dot_dimension_numbers<[1], [0], [0], [1], [0, 0, 1, 1], [], []>} : vector<32x19xbf16>, vector<19x1024xbf16>, vector<32x1024xf32> -> vector<32x1024xf32>
    %80 = arith.addf %79, %72 : vector<32x1024xf32>
    %cst_56 = arith.constant 0.000000e+00 : f32
    %81 = vector.broadcast %cst_56 : f32 to vector<32x1024xf32>
    %82 = arith.maximumf %80, %81 : vector<32x1024xf32>
    %83 = arith.truncf %47 : vector<19x1024xf32> to vector<19x1024xbf16>
    %cst_57 = arith.constant dense<0.000000e+00> : vector<32x1024xf32>
    %84 = tpu.matmul %2, %83, %cst_57 {dimension_numbers = #tpu.dot_dimension_numbers<[1], [0], [0], [1], [0, 0, 1, 1], [], []>} : vector<32x19xbf16>, vector<19x1024xbf16>, vector<32x1024xf32> -> vector<32x1024xf32>
    %85 = arith.addf %84, %72 : vector<32x1024xf32>
    %cst_58 = arith.constant 0.000000e+00 : f32
    %86 = vector.broadcast %cst_58 : f32 to vector<32x1024xf32>
    %87 = arith.maximumf %85, %86 : vector<32x1024xf32>
    %88 = arith.truncf %77 : vector<32x1024xf32> to vector<32x1024xbf16>
    %cst_59 = arith.constant dense<0.000000e+00> : vector<1x1024xf32>
    %89 = tpu.matmul %6, %88, %cst_59 {dimension_numbers = #tpu.dot_dimension_numbers<[1], [0], [0], [1], [0, 0, 1, 1], [], []>} : vector<1x32xbf16>, vector<32x1024xbf16>, vector<1x1024xf32> -> vector<1x1024xf32>
    %90 = vector.broadcast %7 : vector<1x1xf32> to vector<1x1024xf32>
    %91 = arith.addf %89, %90 : vector<1x1024xf32>
    %cst_60 = arith.constant 0.000000e+00 : f32
    %92 = vector.broadcast %cst_60 : f32 to vector<1x1024xf32>
    %93 = arith.maximumf %91, %92 : vector<1x1024xf32>
    %94 = arith.truncf %82 : vector<32x1024xf32> to vector<32x1024xbf16>
    %cst_61 = arith.constant dense<0.000000e+00> : vector<1x1024xf32>
    %95 = tpu.matmul %6, %94, %cst_61 {dimension_numbers = #tpu.dot_dimension_numbers<[1], [0], [0], [1], [0, 0, 1, 1], [], []>} : vector<1x32xbf16>, vector<32x1024xbf16>, vector<1x1024xf32> -> vector<1x1024xf32>
    %96 = vector.broadcast %7 : vector<1x1xf32> to vector<1x1024xf32>
    %97 = arith.addf %95, %96 : vector<1x1024xf32>
    %cst_62 = arith.constant 0.000000e+00 : f32
    %98 = vector.broadcast %cst_62 : f32 to vector<1x1024xf32>
    %99 = arith.maximumf %97, %98 : vector<1x1024xf32>
    %100 = arith.truncf %87 : vector<32x1024xf32> to vector<32x1024xbf16>
    %cst_63 = arith.constant dense<0.000000e+00> : vector<1x1024xf32>
    %101 = tpu.matmul %6, %100, %cst_63 {dimension_numbers = #tpu.dot_dimension_numbers<[1], [0], [0], [1], [0, 0, 1, 1], [], []>} : vector<1x32xbf16>, vector<32x1024xbf16>, vector<1x1024xf32> -> vector<1x1024xf32>
    %102 = vector.broadcast %7 : vector<1x1xf32> to vector<1x1024xf32>
    %103 = arith.addf %101, %102 : vector<1x1024xf32>
    %cst_64 = arith.constant 0.000000e+00 : f32
    %104 = vector.broadcast %cst_64 : f32 to vector<1x1024xf32>
    %105 = arith.maximumf %103, %104 : vector<1x1024xf32>
    %106 = arith.maximumf %93, %99 : vector<1x1024xf32>
    %107 = arith.maximumf %106, %105 : vector<1x1024xf32>
    %108 = arith.subf %93, %107 : vector<1x1024xf32>
    %109 = math.exp %108 : vector<1x1024xf32>
    %110 = arith.subf %99, %107 : vector<1x1024xf32>
    %111 = math.exp %110 : vector<1x1024xf32>
    %112 = arith.subf %105, %107 : vector<1x1024xf32>
    %113 = math.exp %112 : vector<1x1024xf32>
    %cst_65 = arith.constant 0.000000e+00 : f32
    %114 = vector.broadcast %cst_65 : f32 to vector<1x1024xf32>
    %115 = arith.addf %114, %109 : vector<1x1024xf32>
    %116 = arith.addf %115, %111 : vector<1x1024xf32>
    %117 = arith.addf %116, %113 : vector<1x1024xf32>
    %118 = tpu.reciprocal %117 {approx = true} : vector<1x1024xf32> -> vector<1x1024xf32>
    %119 = arith.mulf %109, %118 : vector<1x1024xf32>
    %120 = vector.broadcast %119 : vector<1x1024xf32> to vector<32x1024xf32>
    %121 = arith.mulf %77, %120 : vector<32x1024xf32>
    %cst_66 = arith.constant 0.000000e+00 : f32
    %122 = vector.broadcast %cst_66 : f32 to vector<32x1024xf32>
    %123 = arith.addf %122, %121 : vector<32x1024xf32>
    %124 = arith.mulf %111, %118 : vector<1x1024xf32>
    %125 = vector.broadcast %124 : vector<1x1024xf32> to vector<32x1024xf32>
    %126 = arith.mulf %82, %125 : vector<32x1024xf32>
    %127 = arith.addf %123, %126 : vector<32x1024xf32>
    %128 = arith.mulf %113, %118 : vector<1x1024xf32>
    %129 = vector.broadcast %128 : vector<1x1024xf32> to vector<32x1024xf32>
    %130 = arith.mulf %87, %129 : vector<32x1024xf32>
    %131 = arith.addf %127, %130 : vector<32x1024xf32>
    %132 = arith.truncf %131 : vector<32x1024xf32> to vector<32x1024xbf16>
    %cst_67 = arith.constant dense<0.000000e+00> : vector<16x1024xf32>
    %133 = tpu.matmul %8, %132, %cst_67 {dimension_numbers = #tpu.dot_dimension_numbers<[1], [0], [0], [1], [0, 0, 1, 1], [], []>} : vector<16x32xbf16>, vector<32x1024xbf16>, vector<16x1024xf32> -> vector<16x1024xf32>
    %134 = vector.broadcast %9 : vector<16x1xf32> to vector<16x1024xf32>
    %135 = arith.addf %133, %134 : vector<16x1024xf32>
    %cst_68 = arith.constant 0.000000e+00 : f32
    %136 = vector.broadcast %cst_68 : f32 to vector<16x1024xf32>
    %137 = arith.maximumf %135, %136 : vector<16x1024xf32>
    %c0_69 = arith.constant 0 : index
    %c0_70 = arith.constant 0 : index
    %138 = vector.load %arg1[%c0_69, %c0_70] : memref<8x1024xbf16, #tpu.memory_space<vmem>>, vector<8x1024xbf16>
    %cst_71 = arith.constant dense<0.000000e+00> : vector<128x1024xf32>
    %139 = tpu.matmul %10, %138, %cst_71 {dimension_numbers = #tpu.dot_dimension_numbers<[1], [0], [0], [1], [0, 0, 1, 1], [], []>} : vector<128x8xbf16>, vector<8x1024xbf16>, vector<128x1024xf32> -> vector<128x1024xf32>
    %140 = arith.truncf %137 : vector<16x1024xf32> to vector<16x1024xbf16>
    %cst_72 = arith.constant dense<0.000000e+00> : vector<128x1024xf32>
    %141 = tpu.matmul %11, %140, %cst_72 {dimension_numbers = #tpu.dot_dimension_numbers<[1], [0], [0], [1], [0, 0, 1, 1], [], []>} : vector<128x16xbf16>, vector<16x1024xbf16>, vector<128x1024xf32> -> vector<128x1024xf32>
    %142 = vector.extract_strided_slice %139 {offsets = [0, 0], sizes = [64, 1024], strides = [1, 1]} : vector<128x1024xf32> to vector<64x1024xf32>
    %143 = vector.extract_strided_slice %141 {offsets = [0, 0], sizes = [64, 1024], strides = [1, 1]} : vector<128x1024xf32> to vector<64x1024xf32>
    %144 = arith.addf %142, %143 : vector<64x1024xf32>
    %145 = vector.broadcast %12 : vector<64x1xf32> to vector<64x1024xf32>
    %146 = arith.addf %144, %145 : vector<64x1024xf32>
    %cst_73 = arith.constant 0.000000e+00 : f32
    %147 = vector.broadcast %cst_73 : f32 to vector<64x1024xf32>
    %148 = arith.maximumf %146, %147 : vector<64x1024xf32>
    %149 = vector.extract_strided_slice %139 {offsets = [64, 0], sizes = [64, 1024], strides = [1, 1]} : vector<128x1024xf32> to vector<64x1024xf32>
    %150 = vector.extract_strided_slice %141 {offsets = [64, 0], sizes = [64, 1024], strides = [1, 1]} : vector<128x1024xf32> to vector<64x1024xf32>
    %151 = arith.addf %149, %150 : vector<64x1024xf32>
    %152 = arith.truncf %148 : vector<64x1024xf32> to vector<64x1024xbf16>
    %cst_74 = arith.constant dense<0.000000e+00> : vector<73x1024xf32>
    %153 = tpu.matmul %13, %152, %cst_74 {dimension_numbers = #tpu.dot_dimension_numbers<[1], [0], [0], [1], [0, 0, 1, 1], [], []>} : vector<73x64xbf16>, vector<64x1024xbf16>, vector<73x1024xf32> -> vector<73x1024xf32>
    %154 = vector.broadcast %14 : vector<73x1xf32> to vector<73x1024xf32>
    %155 = arith.addf %153, %154 : vector<73x1024xf32>
    %156 = vector.extract_strided_slice %155 {offsets = [0, 0], sizes = [8, 1024], strides = [1, 1]} : vector<73x1024xf32> to vector<8x1024xf32>
    %cst_75 = arith.constant 0.000000e+00 : f32
    %157 = vector.broadcast %cst_75 : f32 to vector<8x1024xf32>
    %158 = arith.maximumf %156, %157 : vector<8x1024xf32>
    %159 = vector.extract_strided_slice %155 {offsets = [8, 0], sizes = [64, 1024], strides = [1, 1]} : vector<73x1024xf32> to vector<64x1024xf32>
    %160 = arith.addf %159, %151 : vector<64x1024xf32>
    %161 = vector.extract_strided_slice %155 {offsets = [72, 0], sizes = [1, 1024], strides = [1, 1]} : vector<73x1024xf32> to vector<1x1024xf32>
    %cst_76 = arith.constant 2.000000e+01 : f32
    %162 = vector.broadcast %cst_76 : f32 to vector<1x1024xf32>
    %163 = arith.cmpf ogt, %161, %162 : vector<1x1024xf32>
    %cst_77 = arith.constant 2.000000e+01 : f32
    %164 = vector.broadcast %cst_77 : f32 to vector<1x1024xf32>
    %165 = arith.minimumf %161, %164 : vector<1x1024xf32>
    %166 = math.exp %165 : vector<1x1024xf32>
    %167 = math.log1p %166 : vector<1x1024xf32>
    %168 = arith.select %163, %161, %167 : vector<1x1024xi1>, vector<1x1024xf32>
    %c0_78 = arith.constant 0 : index
    %c0_79 = arith.constant 0 : index
    %c0_80 = arith.constant 0 : index
    %169 = vector.load %arg2[%c0_78, %c0_79, %c0_80] : memref<3x32x1024xbf16, #tpu.memory_space<vmem>>, vector<1x32x1024xbf16>
    %170 = vector.shape_cast %169 : vector<1x32x1024xbf16> to vector<32x1024xbf16>
    %cst_81 = arith.constant dense<0.000000e+00> : vector<64x1024xf32>
    %171 = tpu.matmul %15, %170, %cst_81 {dimension_numbers = #tpu.dot_dimension_numbers<[1], [0], [0], [1], [0, 0, 1, 1], [], []>} : vector<64x32xbf16>, vector<32x1024xbf16>, vector<64x1024xf32> -> vector<64x1024xf32>
    %172 = arith.addf %171, %160 : vector<64x1024xf32>
    %cst_82 = arith.constant 0.000000e+00 : f32
    %173 = vector.broadcast %cst_82 : f32 to vector<64x1024xf32>
    %174 = arith.maximumf %172, %173 : vector<64x1024xf32>
    %175 = arith.truncf %174 : vector<64x1024xf32> to vector<64x1024xbf16>
    %cst_83 = arith.constant dense<0.000000e+00> : vector<1x1024xf32>
    %176 = tpu.matmul %16, %175, %cst_83 {dimension_numbers = #tpu.dot_dimension_numbers<[1], [0], [0], [1], [0, 0, 1, 1], [], []>} : vector<1x64xbf16>, vector<64x1024xbf16>, vector<1x1024xf32> -> vector<1x1024xf32>
    %177 = vector.broadcast %17 : vector<1x1xf32> to vector<1x1024xf32>
    %178 = arith.addf %176, %177 : vector<1x1024xf32>
    %cst_84 = arith.constant 0.000000e+00 : f32
    %179 = vector.broadcast %cst_84 : f32 to vector<1x1024xf32>
    %180 = arith.maximumf %178, %179 : vector<1x1024xf32>
    %c1_85 = arith.constant 1 : index
    %c0_86 = arith.constant 0 : index
    %c0_87 = arith.constant 0 : index
    %181 = vector.load %arg2[%c1_85, %c0_86, %c0_87] : memref<3x32x1024xbf16, #tpu.memory_space<vmem>>, vector<1x32x1024xbf16>
    %182 = vector.shape_cast %181 : vector<1x32x1024xbf16> to vector<32x1024xbf16>
    %cst_88 = arith.constant dense<0.000000e+00> : vector<64x1024xf32>
    %183 = tpu.matmul %15, %182, %cst_88 {dimension_numbers = #tpu.dot_dimension_numbers<[1], [0], [0], [1], [0, 0, 1, 1], [], []>} : vector<64x32xbf16>, vector<32x1024xbf16>, vector<64x1024xf32> -> vector<64x1024xf32>
    %184 = arith.addf %183, %160 : vector<64x1024xf32>
    %cst_89 = arith.constant 0.000000e+00 : f32
    %185 = vector.broadcast %cst_89 : f32 to vector<64x1024xf32>
    %186 = arith.maximumf %184, %185 : vector<64x1024xf32>
    %187 = arith.truncf %186 : vector<64x1024xf32> to vector<64x1024xbf16>
    %cst_90 = arith.constant dense<0.000000e+00> : vector<1x1024xf32>
    %188 = tpu.matmul %16, %187, %cst_90 {dimension_numbers = #tpu.dot_dimension_numbers<[1], [0], [0], [1], [0, 0, 1, 1], [], []>} : vector<1x64xbf16>, vector<64x1024xbf16>, vector<1x1024xf32> -> vector<1x1024xf32>
    %189 = vector.broadcast %17 : vector<1x1xf32> to vector<1x1024xf32>
    %190 = arith.addf %188, %189 : vector<1x1024xf32>
    %cst_91 = arith.constant 0.000000e+00 : f32
    %191 = vector.broadcast %cst_91 : f32 to vector<1x1024xf32>
    %192 = arith.maximumf %190, %191 : vector<1x1024xf32>
    %c2_92 = arith.constant 2 : index
    %c0_93 = arith.constant 0 : index
    %c0_94 = arith.constant 0 : index
    %193 = vector.load %arg2[%c2_92, %c0_93, %c0_94] : memref<3x32x1024xbf16, #tpu.memory_space<vmem>>, vector<1x32x1024xbf16>
    %194 = vector.shape_cast %193 : vector<1x32x1024xbf16> to vector<32x1024xbf16>
    %cst_95 = arith.constant dense<0.000000e+00> : vector<64x1024xf32>
    %195 = tpu.matmul %15, %194, %cst_95 {dimension_numbers = #tpu.dot_dimension_numbers<[1], [0], [0], [1], [0, 0, 1, 1], [], []>} : vector<64x32xbf16>, vector<32x1024xbf16>, vector<64x1024xf32> -> vector<64x1024xf32>
    %196 = arith.addf %195, %160 : vector<64x1024xf32>
    %cst_96 = arith.constant 0.000000e+00 : f32
    %197 = vector.broadcast %cst_96 : f32 to vector<64x1024xf32>
    %198 = arith.maximumf %196, %197 : vector<64x1024xf32>
    %199 = arith.truncf %198 : vector<64x1024xf32> to vector<64x1024xbf16>
    %cst_97 = arith.constant dense<0.000000e+00> : vector<1x1024xf32>
    %200 = tpu.matmul %16, %199, %cst_97 {dimension_numbers = #tpu.dot_dimension_numbers<[1], [0], [0], [1], [0, 0, 1, 1], [], []>} : vector<1x64xbf16>, vector<64x1024xbf16>, vector<1x1024xf32> -> vector<1x1024xf32>
    %201 = vector.broadcast %17 : vector<1x1xf32> to vector<1x1024xf32>
    %202 = arith.addf %200, %201 : vector<1x1024xf32>
    %cst_98 = arith.constant 0.000000e+00 : f32
    %203 = vector.broadcast %cst_98 : f32 to vector<1x1024xf32>
    %204 = arith.maximumf %202, %203 : vector<1x1024xf32>
    %205 = arith.maximumf %180, %192 : vector<1x1024xf32>
    %206 = arith.maximumf %205, %204 : vector<1x1024xf32>
    %207 = arith.subf %180, %206 : vector<1x1024xf32>
    %208 = math.exp %207 : vector<1x1024xf32>
    %209 = arith.subf %192, %206 : vector<1x1024xf32>
    %210 = math.exp %209 : vector<1x1024xf32>
    %211 = arith.subf %204, %206 : vector<1x1024xf32>
    %212 = math.exp %211 : vector<1x1024xf32>
    %cst_99 = arith.constant 0.000000e+00 : f32
    %213 = vector.broadcast %cst_99 : f32 to vector<1x1024xf32>
    %214 = arith.addf %213, %208 : vector<1x1024xf32>
    %215 = arith.addf %214, %210 : vector<1x1024xf32>
    %216 = arith.addf %215, %212 : vector<1x1024xf32>
    %217 = tpu.reciprocal %216 {approx = true} : vector<1x1024xf32> -> vector<1x1024xf32>
    %218 = arith.mulf %208, %217 : vector<1x1024xf32>
    %219 = arith.mulf %210, %217 : vector<1x1024xf32>
    %220 = arith.mulf %212, %217 : vector<1x1024xf32>
    %c0_100 = arith.constant 0 : index
    %c0_101 = arith.constant 0 : index
    %c0_102 = arith.constant 0 : index
    %221 = vector.load %arg2[%c0_100, %c0_101, %c0_102] : memref<3x32x1024xbf16, #tpu.memory_space<vmem>>, vector<1x32x1024xbf16>
    %222 = vector.shape_cast %221 : vector<1x32x1024xbf16> to vector<32x1024xbf16>
    %223 = vector.extract_strided_slice %222 {offsets = [0, 0], sizes = [19, 1024], strides = [1, 1]} : vector<32x1024xbf16> to vector<19x1024xbf16>
    %224 = arith.extf %223 : vector<19x1024xbf16> to vector<19x1024xf32>
    %225 = vector.broadcast %218 : vector<1x1024xf32> to vector<19x1024xf32>
    %226 = arith.mulf %224, %225 : vector<19x1024xf32>
    %cst_103 = arith.constant 0.000000e+00 : f32
    %227 = vector.broadcast %cst_103 : f32 to vector<19x1024xf32>
    %228 = arith.addf %227, %226 : vector<19x1024xf32>
    %c1_104 = arith.constant 1 : index
    %c0_105 = arith.constant 0 : index
    %c0_106 = arith.constant 0 : index
    %229 = vector.load %arg2[%c1_104, %c0_105, %c0_106] : memref<3x32x1024xbf16, #tpu.memory_space<vmem>>, vector<1x32x1024xbf16>
    %230 = vector.shape_cast %229 : vector<1x32x1024xbf16> to vector<32x1024xbf16>
    %231 = vector.extract_strided_slice %230 {offsets = [0, 0], sizes = [19, 1024], strides = [1, 1]} : vector<32x1024xbf16> to vector<19x1024xbf16>
    %232 = arith.extf %231 : vector<19x1024xbf16> to vector<19x1024xf32>
    %233 = vector.broadcast %219 : vector<1x1024xf32> to vector<19x1024xf32>
    %234 = arith.mulf %232, %233 : vector<19x1024xf32>
    %235 = arith.addf %228, %234 : vector<19x1024xf32>
    %c2_107 = arith.constant 2 : index
    %c0_108 = arith.constant 0 : index
    %c0_109 = arith.constant 0 : index
    %236 = vector.load %arg2[%c2_107, %c0_108, %c0_109] : memref<3x32x1024xbf16, #tpu.memory_space<vmem>>, vector<1x32x1024xbf16>
    %237 = vector.shape_cast %236 : vector<1x32x1024xbf16> to vector<32x1024xbf16>
    %238 = vector.extract_strided_slice %237 {offsets = [0, 0], sizes = [19, 1024], strides = [1, 1]} : vector<32x1024xbf16> to vector<19x1024xbf16>
    %239 = arith.extf %238 : vector<19x1024xbf16> to vector<19x1024xf32>
    %240 = vector.broadcast %220 : vector<1x1024xf32> to vector<19x1024xf32>
    %241 = arith.mulf %239, %240 : vector<19x1024xf32>
    %242 = arith.addf %235, %241 : vector<19x1024xf32>
    %c0_110 = arith.constant 0 : index
    %c0_111 = arith.constant 0 : index
    %c0_112 = arith.constant 0 : index
    %243 = vector.load %arg2[%c0_110, %c0_111, %c0_112] : memref<3x32x1024xbf16, #tpu.memory_space<vmem>>, vector<1x32x1024xbf16>
    %244 = vector.shape_cast %243 : vector<1x32x1024xbf16> to vector<32x1024xbf16>
    %245 = vector.extract_strided_slice %244 {offsets = [24, 0], sizes = [3, 1024], strides = [1, 1]} : vector<32x1024xbf16> to vector<3x1024xbf16>
    %246 = arith.extf %245 : vector<3x1024xbf16> to vector<3x1024xf32>
    %247 = vector.broadcast %218 : vector<1x1024xf32> to vector<3x1024xf32>
    %248 = arith.mulf %246, %247 : vector<3x1024xf32>
    %cst_113 = arith.constant 0.000000e+00 : f32
    %249 = vector.broadcast %cst_113 : f32 to vector<3x1024xf32>
    %250 = arith.addf %249, %248 : vector<3x1024xf32>
    %c1_114 = arith.constant 1 : index
    %c0_115 = arith.constant 0 : index
    %c0_116 = arith.constant 0 : index
    %251 = vector.load %arg2[%c1_114, %c0_115, %c0_116] : memref<3x32x1024xbf16, #tpu.memory_space<vmem>>, vector<1x32x1024xbf16>
    %252 = vector.shape_cast %251 : vector<1x32x1024xbf16> to vector<32x1024xbf16>
    %253 = vector.extract_strided_slice %252 {offsets = [24, 0], sizes = [3, 1024], strides = [1, 1]} : vector<32x1024xbf16> to vector<3x1024xbf16>
    %254 = arith.extf %253 : vector<3x1024xbf16> to vector<3x1024xf32>
    %255 = vector.broadcast %219 : vector<1x1024xf32> to vector<3x1024xf32>
    %256 = arith.mulf %254, %255 : vector<3x1024xf32>
    %257 = arith.addf %250, %256 : vector<3x1024xf32>
    %c2_117 = arith.constant 2 : index
    %c0_118 = arith.constant 0 : index
    %c0_119 = arith.constant 0 : index
    %258 = vector.load %arg2[%c2_117, %c0_118, %c0_119] : memref<3x32x1024xbf16, #tpu.memory_space<vmem>>, vector<1x32x1024xbf16>
    %259 = vector.shape_cast %258 : vector<1x32x1024xbf16> to vector<32x1024xbf16>
    %260 = vector.extract_strided_slice %259 {offsets = [24, 0], sizes = [3, 1024], strides = [1, 1]} : vector<32x1024xbf16> to vector<3x1024xbf16>
    %261 = arith.extf %260 : vector<3x1024xbf16> to vector<3x1024xf32>
    %262 = vector.broadcast %220 : vector<1x1024xf32> to vector<3x1024xf32>
    %263 = arith.mulf %261, %262 : vector<3x1024xf32>
    %264 = arith.addf %257, %263 : vector<3x1024xf32>
    %c0_120 = arith.constant 0 : index
    %c0_121 = arith.constant 0 : index
    %265 = vector.load %arg21[%c0_120, %c0_121] : memref<32x1024xf32, #tpu.memory_space<vmem>>, vector<8x1024xf32>
    tpu.vector_store %arg21[%c0_120, %c0_121], %158 {strides = array<i32>} : memref<32x1024xf32, #tpu.memory_space<vmem>>, vector<8x1024xf32>,
    %c8 = arith.constant 8 : index
    %c0_122 = arith.constant 0 : index
    %266 = vector.load %arg21[%c8, %c0_122] : memref<32x1024xf32, #tpu.memory_space<vmem>>, vector<19x1024xf32>
    tpu.vector_store %arg21[%c8, %c0_122], %242 {strides = array<i32>} : memref<32x1024xf32, #tpu.memory_space<vmem>>, vector<19x1024xf32>,
    %c27 = arith.constant 27 : index
    %c0_123 = arith.constant 0 : index
    %267 = vector.load %arg21[%c27, %c0_123] : memref<32x1024xf32, #tpu.memory_space<vmem>>, vector<3x1024xf32>
    tpu.vector_store %arg21[%c27, %c0_123], %264 {strides = array<i32>} : memref<32x1024xf32, #tpu.memory_space<vmem>>, vector<3x1024xf32>,
    %c30 = arith.constant 30 : index
    %c0_124 = arith.constant 0 : index
    %268 = vector.load %arg21[%c30, %c0_124] : memref<32x1024xf32, #tpu.memory_space<vmem>>, vector<1x1024xf32>
    tpu.vector_store %arg21[%c30, %c0_124], %168 {strides = array<i32>} : memref<32x1024xf32, #tpu.memory_space<vmem>>, vector<1x1024xf32>,
    %cst_125 = arith.constant 0.000000e+00 : f32
    %269 = vector.broadcast %cst_125 : f32 to vector<1x1024xf32>
    %c31 = arith.constant 31 : index
    %c0_126 = arith.constant 0 : index
    %270 = vector.load %arg21[%c31, %c0_126] : memref<32x1024xf32, #tpu.memory_space<vmem>>, vector<1x1024xf32>
    tpu.vector_store %arg21[%c31, %c0_126], %269 {strides = array<i32>} : memref<32x1024xf32, #tpu.memory_space<vmem>>, vector<1x1024xf32>,
    return
  }
  func.func @transform_0(%arg0: i32) -> (i32, i32) {
    %c0_i32 = arith.constant 0 : i32
    %c0_i32_0 = arith.constant 0 : i32
    return %c0_i32, %arg0 : i32, i32
  }
  func.func @transform_1(%arg0: i32) -> (i32, i32, i32) {
    %c0_i32 = arith.constant 0 : i32
    %c0_i32_0 = arith.constant 0 : i32
    %c0_i32_1 = arith.constant 0 : i32
    return %c0_i32, %c0_i32_0, %arg0 : i32, i32, i32
  }
  func.func @transform_2(%arg0: i32) -> (i32, i32) {
    %c0_i32 = arith.constant 0 : i32
    %c0_i32_0 = arith.constant 0 : i32
    %c0_i32_1 = arith.constant 0 : i32
    return %c0_i32, %c0_i32_0 : i32, i32
  }
  func.func @transform_3(%arg0: i32) -> (i32, i32) {
    %c0_i32 = arith.constant 0 : i32
    %c0_i32_0 = arith.constant 0 : i32
    %c0_i32_1 = arith.constant 0 : i32
    return %c0_i32, %c0_i32_0 : i32, i32
  }
  func.func @transform_4(%arg0: i32) -> (i32, i32) {
    %c0_i32 = arith.constant 0 : i32
    %c0_i32_0 = arith.constant 0 : i32
    %c0_i32_1 = arith.constant 0 : i32
    return %c0_i32, %c0_i32_0 : i32, i32
  }
  func.func @transform_5(%arg0: i32) -> (i32, i32) {
    %c0_i32 = arith.constant 0 : i32
    %c0_i32_0 = arith.constant 0 : i32
    %c0_i32_1 = arith.constant 0 : i32
    return %c0_i32, %c0_i32_0 : i32, i32
  }
  func.func @transform_6(%arg0: i32) -> (i32, i32) {
    %c0_i32 = arith.constant 0 : i32
    %c0_i32_0 = arith.constant 0 : i32
    %c0_i32_1 = arith.constant 0 : i32
    return %c0_i32, %c0_i32_0 : i32, i32
  }
  func.func @transform_7(%arg0: i32) -> (i32, i32) {
    %c0_i32 = arith.constant 0 : i32
    %c0_i32_0 = arith.constant 0 : i32
    %c0_i32_1 = arith.constant 0 : i32
    return %c0_i32, %c0_i32_0 : i32, i32
  }
  func.func @transform_8(%arg0: i32) -> (i32, i32) {
    %c0_i32 = arith.constant 0 : i32
    %c0_i32_0 = arith.constant 0 : i32
    %c0_i32_1 = arith.constant 0 : i32
    return %c0_i32, %c0_i32_0 : i32, i32
  }
  func.func @transform_9(%arg0: i32) -> (i32, i32) {
    %c0_i32 = arith.constant 0 : i32
    %c0_i32_0 = arith.constant 0 : i32
    %c0_i32_1 = arith.constant 0 : i32
    return %c0_i32, %c0_i32_0 : i32, i32
  }
  func.func @transform_10(%arg0: i32) -> (i32, i32) {
    %c0_i32 = arith.constant 0 : i32
    %c0_i32_0 = arith.constant 0 : i32
    %c0_i32_1 = arith.constant 0 : i32
    return %c0_i32, %c0_i32_0 : i32, i32
  }
  func.func @transform_11(%arg0: i32) -> (i32, i32) {
    %c0_i32 = arith.constant 0 : i32
    %c0_i32_0 = arith.constant 0 : i32
    %c0_i32_1 = arith.constant 0 : i32
    return %c0_i32, %c0_i32_0 : i32, i32
  }
  func.func @transform_12(%arg0: i32) -> (i32, i32) {
    %c0_i32 = arith.constant 0 : i32
    %c0_i32_0 = arith.constant 0 : i32
    %c0_i32_1 = arith.constant 0 : i32
    return %c0_i32, %c0_i32_0 : i32, i32
  }
  func.func @transform_13(%arg0: i32) -> (i32, i32) {
    %c0_i32 = arith.constant 0 : i32
    %c0_i32_0 = arith.constant 0 : i32
    %c0_i32_1 = arith.constant 0 : i32
    return %c0_i32, %c0_i32_0 : i32, i32
  }
  func.func @transform_14(%arg0: i32) -> (i32, i32) {
    %c0_i32 = arith.constant 0 : i32
    %c0_i32_0 = arith.constant 0 : i32
    %c0_i32_1 = arith.constant 0 : i32
    return %c0_i32, %c0_i32_0 : i32, i32
  }
  func.func @transform_15(%arg0: i32) -> (i32, i32) {
    %c0_i32 = arith.constant 0 : i32
    %c0_i32_0 = arith.constant 0 : i32
    %c0_i32_1 = arith.constant 0 : i32
    return %c0_i32, %c0_i32_0 : i32, i32
  }
  func.func @transform_16(%arg0: i32) -> (i32, i32) {
    %c0_i32 = arith.constant 0 : i32
    %c0_i32_0 = arith.constant 0 : i32
    %c0_i32_1 = arith.constant 0 : i32
    return %c0_i32, %c0_i32_0 : i32, i32
  }
  func.func @transform_17(%arg0: i32) -> (i32, i32) {
    %c0_i32 = arith.constant 0 : i32
    %c0_i32_0 = arith.constant 0 : i32
    %c0_i32_1 = arith.constant 0 : i32
    return %c0_i32, %c0_i32_0 : i32, i32
  }
  func.func @transform_18(%arg0: i32) -> (i32, i32) {
    %c0_i32 = arith.constant 0 : i32
    %c0_i32_0 = arith.constant 0 : i32
    %c0_i32_1 = arith.constant 0 : i32
    return %c0_i32, %c0_i32_0 : i32, i32
  }
  func.func @transform_19(%arg0: i32) -> (i32, i32) {
    %c0_i32 = arith.constant 0 : i32
    %c0_i32_0 = arith.constant 0 : i32
    %c0_i32_1 = arith.constant 0 : i32
    return %c0_i32, %c0_i32_0 : i32, i32
  }
  func.func @transform_20(%arg0: i32) -> (i32, i32) {
    %c0_i32 = arith.constant 0 : i32
    %c0_i32_0 = arith.constant 0 : i32
    return %c0_i32, %arg0 : i32, i32
  }
}

</mosaic_0001>

<bundles_post_ra>
// kernel: tpu_custom_call.1
= control target key start
LH: loop header
LB: loop body
LE: loop exit
PB: predicated region body
PF: predicated region fallthrough
CT: control target
= control target key end

     0   :  { %s15487_s0 = inlined_call_operand.vmem [shape: bf16[8,2048], index: 0, kind: input, shape index: {}]   ;;  %s15488_s1 = inlined_call_operand.hbm [shape: bf16[3,32,2048], index: 1, kind: input, shape index: {}]   ;;  %s15489_s2 = inlined_call_operand.vmem [shape: bf16[19,32], index: 2, kind: input, shape index: {}]   ;;  %s15490_s3 = inlined_call_operand.vmem [shape: f32[19,1], index: 3, kind: input, shape index: {}]   ;;  %s15491_s4 = inlined_call_operand.vmem [shape: bf16[32,19], index: 4, kind: input, shape index: {}]   ;;  %s15492_s5 = inlined_call_operand.vmem [shape: bf16[32,19], index: 5, kind: input, shape index: {}]   ;;  %s15493_s6 = inlined_call_operand.vmem [shape: bf16[32,19], index: 6, kind: input, shape index: {}]   ;;  %s15494_s7 = inlined_call_operand.vmem [shape: f32[32,1], index: 7, kind: input, shape index: {}]   ;;  %s15495_s8 = inlined_call_operand.vmem [shape: bf16[1,32], index: 8, kind: input, shape index: {}]   ;;  %s15496_s9 = inlined_call_operand.<no memory space> [shape: f32[1,1], index: 9, kind: input, shape index: {}]   ;;  %s15497_s10 = inlined_call_operand.vmem [shape: bf16[16,32], index: 10, kind: input, shape index: {}]   ;;  %s15498_s11 = inlined_call_operand.vmem [shape: f32[16,1], index: 11, kind: input, shape index: {}]   ;;  %s15499_s12 = inlined_call_operand.vmem [shape: bf16[128,8], index: 12, kind: input, shape index: {}]   ;;  %s15500_s13 = inlined_call_operand.vmem [shape: bf16[128,16], index: 13, kind: input, shape index: {}]   ;;  %s15501_s14 = inlined_call_operand.vmem [shape: f32[64,1], index: 14, kind: input, shape index: {}]   ;;  %s15502_s15 = inlined_call_operand.vmem [shape: bf16[73,64], index: 15, kind: input, shape index: {}]   ;;  %s15503_s16 = inlined_call_operand.vmem [shape: f32[73,1], index: 16, kind: input, shape index: {}]   ;;  %s15504_s17 = inlined_call_operand.vmem [shape: bf16[64,32], index: 17, kind: input, shape index: {}]   ;;  %s15505_s18 = inlined_call_operand.vmem [shape: bf16[1,64], index: 18, kind: input, shape index: {}]   ;;  %s15506_s20 = inlined_call_operand.hbm [shape: f32[32,2048], index: 20, kind: output, shape index: {}]   ;;  %s15507_s19 = inlined_call_operand.<no memory space> [shape: f32[1,1], index: 19, kind: input, shape index: {}]  }
   0x1   :  { %16051 = sst [smem:[#allocation222_spill]] %s15487_s0  ;;  %v25_v0 = vstv %s15496_s9  ;;  %v27_v1 = vstv %s15507_s19 }
   0x2   :  { %16052 = sst [smem:[#allocation223_spill]] %s15488_s1  ;;  %26 = vst [vmem:[#allocation2] sm:$0x1] %v25_v0 }
   0x3   :  { %16053 = sst [smem:[#allocation224_spill]] %s15489_s2  ;;  %28 = vst [vmem:[#allocation3] sm:$0x1] %v27_v1 }
   0x4   :  { %16054 = sst [smem:[#allocation225_spill]] %s15490_s3 }
   0x5   :  { %16055 = sst [smem:[#allocation226_spill]] %s15491_s4 }
   0x6   :  { %16056 = sst [smem:[#allocation227_spill]] %s15492_s5 }
   0x7   :  { %16057 = sst [smem:[#allocation228_spill]] %s15493_s6 }
   0x8   :  { %16058 = sst [smem:[#allocation229_spill]] %s15494_s7 }
   0x9   :  { %16059 = sst [smem:[#allocation230_spill]] %s15495_s8 }
   0xa   :  { %16060 = sst [smem:[#allocation231_spill]] %s15505_s18 }
   0xb   :  { %16061 = sst [smem:[#allocation232_spill]] %s15506_s20 }
   0xc   :  { %29 = vsyncpa [#allocation5], 0 }
   0xd   :  { %31 = vsyncpa [#allocation5 + $0x1], 0 }
   0xe   :  { %32 = vsyncpa [#allocation6], 0 }
   0xf   :  { %34 = vsyncpa [#allocation6 + $0x1], 0  ;;  %s9294_s2 = smov 0   ;;  %s9296_s25 = smov 0  }
  0x10   :  { %s9298_s3 = smov 0   ;;  %s9300_s26 = smov 0  }
  0x11 LB: > { %16062 = sst [smem:[#allocation10_spill]] %s9160_s2  ;;  %s9315_s9 = sadd.s32 4294967295, %s9172_s26   ;;  %s9172_s26 = sphi %s9300_s26, %s17408_s26   ;;  %s9168_s3 = sphi %s9298_s3, %s17410_s3   ;;  %s9164_s25 = sphi %s9296_s25, %s17412_s25   ;;  %s9160_s2 = sphi %s9294_s2, %s17411_s2  }
  0x12   : > { %16063 = sst [smem:[#allocation11_spill]] %s9168_s3  ;;  %s7946_s19 = sadd.s32 4294967294, %s9172_s26  }
  0x13   : > { %s9319_s27 = sadd.s32 1, %s9172_s26   ;;  %s73_s28 = sadd.s32 1, %s9168_s3 }
  0x14   : > { %16064 = sst [smem:[#allocation12_spill]] %s9319_s27  ;;  %s70_s4 = ssub.s32 %s9172_s26, %s9319_s27 }
  0x15   : > { %p80_p0 = scmp.ne.s32.totalorder %s9168_s3, %s9164_s25  ;;  %p71_p1 = scmp.eq.s32.totalorder %s70_s4, 0 }
  0x16   : > { %p81_p2 = scmp.eq.s32.totalorder %s9172_s26, 0  ;;  %p86_p3 = scmp.ne.s32.totalorder %s9164_s25, %s9160_s2 }
  0x17   : > { %p87_p4 = scmp.eq.s32.totalorder %s9315_s9, 0  ;;  %p488_p7 = scmp.eq.s32.totalorder %s9315_s9, 1 }
  0x18   : > { %s9331_s29 = scalar_select %p71_p1, %s9168_s3, %s73_s28  }
  0x19   : > { %p82_p5 = por %p81_p2, %p80_p0  ;;  %p9333_p6 = por %p87_p4, %p86_p3 }
  0x1a   : > { %16065 = sst [smem:[#allocation13_spill]] %s9331_s29  ;;  %p494_p8 = scmp.eq.s32.totalorder %s7946_s19, 1 }
  0x1b   : > { %p7948_p9 = scmp.ge.s32.totalorder %s9172_s26, 2  ;;  %p8865_p10 = scmp.lt.s32.totalorder %s9172_s26, 2 }
  0x1c   : > { %p9340_p11 = por %p488_p7, %p80_p0  ;;  %p9344_p12 = por %p494_p8, %p86_p3 }
  0x1d   : > { %s577_s1 = sand.u32 1, %s9168_s3   ;;  %s8768_s22 = sshll.u32 %s9172_s26, 5 }
  0x1e   : > { %s16067_s0 = scalar_select %p9340_p11, 1, 0 }
  0x1f   : > { %s16069_s21 = scalar_select %p9344_p12, 1, 0 }
  0x20   : > { %16068 = sst [smem:[#allocation14_spill]] %s16067_s0  ;;  %s8851_s23 = smul.u32 384, %s577_s1 }
  0x21   : > { %16070 = sst [smem:[#allocation15_spill]] %s16069_s21  ;;  %p9353_p13 = pnand %p8865_p10, %p82_p5 }
  0x22   : > { %s16071_s4 = sld [smem:[#allocation223_spill]]  ;;  %s581_s2 = scalar_lea.vmem [#allocation4], %s8851_s23 }
  0x23   : > { %s589_s0 = sshll.u32 %s581_s2, 4  ;;  %p7951_p0 = scmp.ge.s32.totalorder %s9172_s26, 1  ;;  %s590_s0 = int_to_ptr.vmem [resolvable:$true] %s589_s0 }
  0x24   : > { %s578_s20 = scalar_lea.sflag [#allocation5], %s577_s1  ;;  %p9080_p2 = pneg %p9353_p13 }
  0x28   : > { %s586_s29 = scalar_lea.hbm %s16071_s4, %s8768_s22  ;;  %s9083_s28 = scalar_lea.hbm %s16071_s4, 768 }
  0x29   : > { %s587_s19 = sshll.u32 %s586_s29, 4  ;;  %s588_s19 = int_to_ptr.hbm [resolvable:$true] %s587_s19 }
  0x2a   : > { %s9076_s21 = sshra.s32 %s588_s19, 4  ;;  %s9077_s21 = int_to_ptr.hbm [resolvable:$true] %s9076_s21 }
  0x2b   : > { %s9078_s3 = scalar_lea.hbm %s9077_s21, 384  ;;  %p9084_p5 = scmp.lt.s32.totalorder %s9077_s21, %s16071_s4 }
  0x2c   : > { %p9079_p1 = scmp.ne.s32.totalorder %s9077_s21, %s9078_s3  ;;  %p9085_p7 = scmp.lt.s32.totalorder %s9083_s28, %s9078_s3 }
  0x2e   : > { %p9081_p3 = pnand %p9080_p2, %p9079_p1  ;;  %p9086_p8 = por %p9085_p7, %p9084_p5 }
  0x30   : > { %p9082_p4 = pneg %p9081_p3 }
  0x32   : > { %p9087_p10 = pnand %p9086_p8, %p9082_p4 }
  0x34   : > { %9090 = shalt.err (!%p9087_p10)
}
  0x35   : > { %s9174_s2 = smov 1024   ;;  %s9175_s1 = smov 512  }
  0x36   : > { %s9176_s23 = smov 32   ;;  %p597_p1 = scmp.lt.s32.totalorder %s9172_s26, 3 }
  0x37   : > { %8860 = dma.hbm_to_vmem [thread:$0]  (!%p9353_p13), %s588_s19, 6144, %s590_s0, %s578_s20, %s9174_s2, %s9175_s1, %s9176_s23  }
  0x38   : > { %p598_p2 = pnand %p7951_p0, %p597_p1 }
  0x3a   : > { %601 = sbr.rel (%p598_p2) target bundleno = 2811 (0xafb), region = 100 }
  0x3f   : > { %s9372_s18 = sand.u32 1, %s9164_s25  }
  0x40   : > { %s8852_s3 = smul.u32 384, %s9372_s18  ;;  %s604_s21 = scalar_lea.sflag [#allocation5], %s9372_s18 }
  0x42   : > { %s9376_s22 = scalar_lea.vmem [#allocation4], %s8852_s3 }
  0x43   : > { %9151 = dma.done.wait (%p9333_p6), %s604_s21, 6144  }
  0x44   : > { %9153 = vsyncadd (%p9333_p6), %s604_s21, 4294961152  ;;  %v9177_v2 = vmov 0   ;;  %v7993_v3 = vld [vmem:[%s9376_s22 + $0x40] sm:$0xf]  ;;  %v8810_v5 = vld [vmem:[%s9376_s22 + $0x44] sm:$0xf] }
  0x45   : > { %8908 = vset.pattern.permute.xlu0 %v9177_v2  ;;  %8909 = vset.pattern.permute.xlu1 %v9177_v2  ;;  %v8814_v4 = vld [vmem:[%s9376_s22 + $0x5c] sm:$0xf0]  ;;  %v7995_v7 = vld [vmem:[%s9376_s22 + $0x60] sm:$0xf0]  ;;  %v8001_v8 = vld [vmem:[%s9376_s22 + $0x48] sm:$0xf] }
  0x46   : > { %8910 = vset.pattern.permute.xlu2 %v9177_v2  ;;  %v9385_v6 = vor.u32 %v8814_v4, %v7993_v3  ;;  %v8815_v9 = vld [vmem:[%s9376_s22 + $0x64] sm:$0xf0]  ;;  %v9390_v10 = vor.u32 %v8810_v5, %v7995_v7  ;;  %v8811_v12 = vld [vmem:[%s9376_s22 + $0x4c] sm:$0xf]  ;;  %v7961_v14 = vld [vmem:[%s9376_s22] sm:$0xf] }
  0x47   : > { %v9392_v11 = vor.u32 %v8815_v9, %v8001_v8  ;;  %v8003_v13 = vld [vmem:[%s9376_s22 + $0x68] sm:$0xf0]  ;;  %v8806_v16 = vld [vmem:[%s9376_s22 + $0x1c] sm:$0xf0]  ;;  %v8802_v17 = vld [vmem:[%s9376_s22 + $0x4] sm:$0xf] }
  0x48   : > { %16073 = vst [vmem:[#allocation16_spill] sm:$0xff] %v9385_v6  ;;  %909 = vmatpush.bf16.msra.mxu0 %v9385_v6  ;;  %v9398_v15 = vor.u32 %v8811_v12, %v8003_v13  ;;  %v7963_v18 = vld [vmem:[%s9376_s22 + $0x20] sm:$0xf0]  ;;  %927 = vmatpush.bf16.msra.mxu1 %v9390_v10  ;;  %v9405_v19 = vor.u32 %v8806_v16, %v7961_v14  ;;  %v7969_v21 = vld [vmem:[%s9376_s22 + $0x8] sm:$0xf]  ;;  %s16080_s30 = sld [smem:[#allocation225_spill]] }
  0x49   : > { %16074 = vst [vmem:[#allocation17_spill] sm:$0xff] %v9390_v10  ;;  %945 = vmatpush.bf16.msra.mxu2 %v9392_v11  ;;  %v9407_v20 = vor.u32 %v8802_v17, %v7963_v18  ;;  %v8807_v22 = vld [vmem:[%s9376_s22 + $0x24] sm:$0xf0]  ;;  %v8803_v23 = vld [vmem:[%s9376_s22 + $0xc] sm:$0xf]  ;;  %s16082_s24 = sld [smem:[#allocation224_spill]] }
  0x4a   : > { %16075 = vst [vmem:[#allocation18_spill] sm:$0xff] %v9392_v11  ;;  %963 = vmatpush.bf16.msra.mxu3 %v9398_v15  ;;  %v9413_v24 = vor.u32 %v8807_v22, %v7969_v21  ;;  %v7971_v25 = vld [vmem:[%s9376_s22 + $0x28] sm:$0xf0]  ;;  %vm896_vm0 = vcmask 261120   ;;  %v8009_v29 = vld [vmem:[%s9376_s22 + $0x50] sm:$0xf] }
  0x4b   : > { %16076 = vst [vmem:[#allocation19_spill] sm:$0xff] %v9398_v15  ;;  %v9419_v27 = vor.u32 %v8803_v23, %v7971_v25  ;;  %v8816_v30 = vld [vmem:[%s9376_s22 + $0x6c] sm:$0xf0]  ;;  %v8812_v31 = vld [vmem:[%s9376_s22 + $0x54] sm:$0xf]  ;;  %s16107_s7 = sld [smem:[#allocation229_spill]] }
  0x4c   : > { %16077 = vst [vmem:[#allocation20_spill] sm:$0xff] %v9405_v19  ;;  %910 = vmatpush.bf16.msra.mxu0 %v9405_v19  ;;  %v8011_v32 = vld [vmem:[%s9376_s22 + $0x70] sm:$0xf0]  ;;  %928 = vmatpush.bf16.msra.mxu1 %v9407_v20  ;;  %v9433_v33 = vor.u32 %v8816_v30, %v8009_v29  ;;  %v8017_v35 = vld [vmem:[%s9376_s22 + $0x58] sm:$0xf]  ;;  %vm2130_vm1 = vcmask 1040384  }
  0x4d   : > { %16078 = vst [vmem:[#allocation21_spill] sm:$0xff] %v9407_v20  ;;  %946 = vmatpush.bf16.msra.mxu2 %v9413_v24  ;;  %v9435_v34 = vor.u32 %v8812_v31, %v8011_v32  ;;  %v8817_v36 = vld [vmem:[%s9376_s22 + $0x74] sm:$0xf0]  ;;  %v8813_v37 = vld [vmem:[%s9376_s22 + $0x5c] sm:$0xf]  ;;  %vm2131_vm2 = vcmask 1041408  }
  0x4e   : > { %16079 = vst [vmem:[#allocation22_spill] sm:$0xff] %v9413_v24  ;;  %v684_v26 = vld [vmem:[%s16080_s30 + $0x10] sm:$0x7]  ;;  %964 = vmatpush.bf16.msra.mxu3 %v9419_v27  ;;  %v682_v38 = vld [vmem:[%s16080_s30] sm:$0xff]  ;;  %v9444_v39 = vor.u32 %v8817_v36, %v8017_v35  ;;  %v683_v41 = vld [vmem:[%s16080_s30 + $0x8] sm:$0xff]  ;;  %vm2123_vm3 = vcmask 154624  }
  0x4f   : > { %16081 = vst [vmem:[#allocation23_spill] sm:$0xff] %v9419_v27  ;;  %v9424_v28 = vld [vmem:[%s16082_s24] sm:$0xff]  ;;  %805 = vperm.xlu0 %8908, %v684_v26   ;;  %v7977_v42 = vld [vmem:[%s9376_s22 + $0x10] sm:$0xf]  ;;  %v8804_v45 = vld [vmem:[%s9376_s22 + $0x14] sm:$0xf]  ;;  %800 = vperm.xlu1 %8909, %v683_v41  }
  0x50   : > { %16083 = vst [vmem:[#allocation24_spill] sm:$0xff] %v9433_v33  ;;  %v8019_v40 = vld [vmem:[%s9376_s22 + $0x78] sm:$0xf0]  ;;  %8023 = vmatmul.msk.bf16.vlgmr.msra.gmra.mxu0 %vm896_vm0, %v9424_v28  ;;  %999 = vmatpush.bf16.msrb.mxu1 %v9435_v34  ;;  %v8808_v44 = vld [vmem:[%s9376_s22 + $0x2c] sm:$0xf0]  ;;  %v10101_v6 = vld [vmem:[%s9376_s22 + $0xc8] sm:$0xff] }
  0x51   : > { %16084 = vst [vmem:[#allocation25_spill] sm:$0xff] %v9435_v34  ;;  %v9454_v43 = vor.u32 %v8813_v37, %v8019_v40  ;;  %v7979_v46 = vld [vmem:[%s9376_s22 + $0x30] sm:$0xf0]  ;;  %8025 = vmatmul.msk.bf16.vlgmr.msra.gmra.mxu1 %vm896_vm0, %v9424_v28  ;;  %8027 = vmatmul.msk.bf16.vlgmr.msra.gmra.mxu2 %vm896_vm0, %v9424_v28  ;;  %v7985_v48 = vld [vmem:[%s9376_s22 + $0x18] sm:$0xf]  ;;  %v9471_v51 = vor.u32 %v8808_v44, %v7977_v42  ;;  %s16286_s6 = sld [smem:[#allocation228_spill]] }
  0x52   : > { %16085 = vst [vmem:[#allocation26_spill] sm:$0xff] %v9444_v39  ;;  %v9463_v47 = vor.u32 %v8804_v45, %v7979_v46  ;;  %v8809_v49 = vld [vmem:[%s9376_s22 + $0x34] sm:$0xf0]  ;;  %v8805_v50 = vld [vmem:[%s9376_s22 + $0x1c] sm:$0xf]  ;;  %8029 = vmatmul.msk.bf16.vlgmr.msra.gmra.mxu3 %vm896_vm0, %v9424_v28  ;;  %981 = vmatpush.bf16.msrb.mxu0 %v9433_v33  ;;  %v9902_v24 = vld [vmem:[%s9376_s22 + $0x30] sm:$0xff] }
  0x53   : > { %16086 = vst [vmem:[#allocation27_spill] sm:$0xff] %v9454_v43  ;;  %v7987_v52 = vld [vmem:[%s9376_s22 + $0x38] sm:$0xf0]  ;;  %1017 = vmatpush.bf16.msrb.mxu2 %v9444_v39  ;;  %1035 = vmatpush.bf16.msrb.mxu3 %v9454_v43  ;;  %v9476_v53 = vor.u32 %v8809_v49, %v7985_v48  ;;  %v681_v55 = vld [vmem:[%s16082_s24 + $0x8] sm:$0x3]  ;;  %s16359_s5 = sld [smem:[#allocation227_spill]] }
  0x54   : > { %16087 = vst [vmem:[#allocation28_spill] sm:$0xff] %v9463_v47  ;;  %v9478_v54 = vor.u32 %v8805_v50, %v7987_v52  ;;  %1000 = vmatpush.bf16.msrb.mxu1 %v9463_v47  ;;  %v813_v56 = vunpack.c.l.b16 %v681_v55  ;;  %v8089_v58 = vld [vmem:[%s9376_s22 + $0xc0] sm:$0xf]  ;;  %v8826_v60 = vld [vmem:[%s9376_s22 + $0xc4] sm:$0xf]  ;;  %v9916_v11 = vld [vmem:[%s9376_s22 + $0x38] sm:$0xff] }
  0x55   : > { %16088 = vst [vmem:[#allocation29_spill] sm:$0xff] %v9471_v51  ;;  %v8830_v59 = vld [vmem:[%s9376_s22 + $0xdc] sm:$0xf0]  ;;  %v8091_v62 = vld [vmem:[%s9376_s22 + $0xe0] sm:$0xf0]  ;;  %s16368_s27 = sld [smem:[#allocation226_spill]] }
  0x56   : > { %16089 = vst [vmem:[#allocation30_spill] sm:$0xff] %v9476_v53  ;;  %982 = vmatpush.bf16.msrb.mxu0 %v9471_v51  ;;  %v9487_v57 = vpack.c.b16 %v813_v56, %v813_v56  ;;  %v9500_v61 = vor.u32 %v8830_v59, %v8089_v58  ;;  %v8097_v63 = vld [vmem:[%s9376_s22 + $0xc8] sm:$0xf]  ;;  %v9505_v1 = vor.u32 %v8826_v60, %v8091_v62  ;;  %v8827_v3 = vld [vmem:[%s9376_s22 + $0xcc] sm:$0xf]  ;;  %v9896_v39 = vld [vmem:[%s9376_s22] sm:$0xff] }
  0x57   : > { %16090 = vst [vmem:[#allocation31_spill] sm:$0xff] %v9478_v54  ;;  %795 = vperm.xlu0 %8908, %v682_v38   ;;  %1018 = vmatpush.bf16.msrb.mxu2 %v9476_v53  ;;  %v8831_v0 = vld [vmem:[%s9376_s22 + $0xe4] sm:$0xf0]  ;;  %v8099_v4 = vld [vmem:[%s9376_s22 + $0xe8] sm:$0xf0]  ;;  %s16428_s8 = sld [smem:[#allocation230_spill]] }
  0x58   : > { %1036 = vmatpush.bf16.msrb.mxu3 %v9478_v54  ;;  %16091 = vst [vmem:[#allocation32_spill] sm:$0xff] %v9500_v61  ;;  %v9507_v2 = vor.u32 %v8831_v0, %v8097_v63  ;;  %v8057_v5 = vld [vmem:[%s9376_s22 + $0x80] sm:$0xf]  ;;  %v9513_v7 = vor.u32 %v8827_v3, %v8099_v4  ;;  %v8818_v9 = vld [vmem:[%s9376_s22 + $0x84] sm:$0xf]  ;;  %1240 = vmatpush.bf16.msra.mxu1 %v9505_v1  ;;  %v699_v60 = vld [vmem:[%s16107_s7 + $0x10] sm:$0xff] }
  0x59   : > { %16092 = vst [vmem:[#allocation33_spill] sm:$0xff] %v9505_v1  ;;  %v8822_v8 = vld [vmem:[%s9376_s22 + $0x9c] sm:$0xf0]  ;;  %v8059_v12 = vld [vmem:[%s9376_s22 + $0xa0] sm:$0xf0]  ;;  %2514 = vperm.xlu1 %8909, %v699_v60   ;;  %v745_v3 = vld [vmem:[%s15501_s14 + $0x30] sm:$0xff] }
  0x5a   : > { %16093 = vst [vmem:[#allocation34_spill] sm:$0xff] %v9507_v2  ;;  %1222 = vmatpush.bf16.msra.mxu0 %v9500_v61  ;;  %v9520_v13 = vor.u32 %v8822_v8, %v8057_v5  ;;  %v9522_v14 = vor.u32 %v8818_v9, %v8059_v12  ;;  %v8065_v16 = vld [vmem:[%s9376_s22 + $0x88] sm:$0xf]  ;;  %v8819_v18 = vld [vmem:[%s9376_s22 + $0x8c] sm:$0xf]  ;;  %v743_v4 = vld [vmem:[%s15501_s14 + $0x20] sm:$0xff] }
  0x5b   : > { %16094 = vst [vmem:[#allocation35_spill] sm:$0xff] %v9513_v7  ;;  %1258 = vmatpush.bf16.msra.mxu2 %v9507_v2  ;;  %v8823_v17 = vld [vmem:[%s9376_s22 + $0xa4] sm:$0xf0]  ;;  %v8067_v22 = vld [vmem:[%s9376_s22 + $0xa8] sm:$0xf0]  ;;  %v9880_v54 = vld [vmem:[%s9376_s22 + $0x18] sm:$0xff] }
  0x5c   : > { %16095 = vst [vmem:[#allocation36_spill] sm:$0xff] %v9520_v13  ;;  %1276 = vmatpush.bf16.msra.mxu3 %v9513_v7  ;;  %v9528_v21 = vor.u32 %v8823_v17, %v8065_v16  ;;  %v9531_v23 = vor.u32 %v8819_v18, %v8067_v22  ;;  %1241 = vmatpush.bf16.msra.mxu1 %v9522_v14  ;;  %v8105_v25 = vld [vmem:[%s9376_s22 + $0xd0] sm:$0xf]  ;;  %v8828_v29 = vld [vmem:[%s9376_s22 + $0xd4] sm:$0xf]  ;;  %v698_v62 = vld [vmem:[%s16107_s7 + $0x8] sm:$0xff] }
  0x5d   : > { %16096 = vst [vmem:[#allocation37_spill] sm:$0xff] %v9522_v14  ;;  %v8832_v26 = vld [vmem:[%s9376_s22 + $0xec] sm:$0xf0]  ;;  %v8107_v31 = vld [vmem:[%s9376_s22 + $0xf0] sm:$0xf0]  ;;  %v706_v0 = vld [vmem:[%s15498_s11 + $0x8] sm:$0xff] }
  0x5e   : > { %16097 = vst [vmem:[#allocation38_spill] sm:$0xff] %v9528_v21  ;;  %1223 = vmatpush.bf16.msra.mxu0 %v9520_v13  ;;  %v9556_v30 = vor.u32 %v8832_v26, %v8105_v25  ;;  %v8113_v32 = vld [vmem:[%s9376_s22 + $0xd8] sm:$0xf]  ;;  %v9561_v36 = vor.u32 %v8828_v29, %v8107_v31  ;;  %v8829_v38 = vld [vmem:[%s9376_s22 + $0xdc] sm:$0xf]  ;;  %v9873_v13 = vld [vmem:[%s9376_s22 + $0x10] sm:$0xff] }
  0x5f   : > { %16098 = vst [vmem:[#allocation39_spill] sm:$0xff] %v9531_v23  ;;  %1259 = vmatpush.bf16.msra.mxu2 %v9528_v21  ;;  %v8833_v35 = vld [vmem:[%s9376_s22 + $0xf4] sm:$0xf0]  ;;  %v8115_v40 = vld [vmem:[%s9376_s22 + $0xf8] sm:$0xf0]  ;;  %2509 = vperm.xlu0 %8908, %v698_v62   ;;  %s7953_s21 = sshll.u32 %s9315_s9, 3 }
  0x60   : > { %8024 = vmatmul.msk.bf16.gmra.mxu0 %vm896_vm0, %v9487_v57  ;;  %1277 = vmatpush.bf16.msra.mxu3 %v9531_v23  ;;  %16099 = vst [vmem:[#allocation40_spill] sm:$0xff] %v9556_v30  ;;  %v9563_v37 = vor.u32 %v8833_v35, %v8113_v32  ;;  %v8073_v41 = vld [vmem:[%s9376_s22 + $0x90] sm:$0xf]  ;;  %v9569_v42 = vor.u32 %v8829_v38, %v8115_v40  ;;  %v8820_v45 = vld [vmem:[%s9376_s22 + $0x94] sm:$0xf]  ;;  %v744_v32 = vld [vmem:[%s15501_s14 + $0x28] sm:$0xff] }
  0x61   : > { %8026 = vmatmul.msk.bf16.gmra.mxu1 %vm896_vm0, %v9487_v57  ;;  %8028 = vmatmul.msk.bf16.gmra.mxu2 %vm896_vm0, %v9487_v57  ;;  %16100 = vst [vmem:[#allocation41_spill] sm:$0xff] %v9561_v36  ;;  %v8824_v44 = vld [vmem:[%s9376_s22 + $0xac] sm:$0xf0]  ;;  %v8075_v46 = vld [vmem:[%s9376_s22 + $0xb0] sm:$0xf0]  ;;  %v9854_v23 = vld [vmem:[%s9376_s22 + $0x40] sm:$0xff] }
  0x62   : > { %8030 = vmatmul.msk.bf16.gmra.mxu3 %vm896_vm0, %v9487_v57  ;;  %16101 = vst [vmem:[#allocation42_spill] sm:$0xff] %v9563_v37  ;;  %v9576_v48 = vor.u32 %v8824_v44, %v8073_v41  ;;  %v9578_v49 = vor.u32 %v8820_v45, %v8075_v46  ;;  %v8081_v50 = vld [vmem:[%s9376_s22 + $0x98] sm:$0xf]  ;;  %v8821_v55 = vld [vmem:[%s9376_s22 + $0x9c] sm:$0xf]  ;;  %v16144_v20 = vunpack.c.l.bf16 %v9854_v23  ;;  %p12445_p6 = scmp.lt.s32.totalorder %s7953_s21, 15 }
  0x63   : > { %16102 = vst [vmem:[#allocation43_spill] sm:$0xff] %v9569_v42  ;;  %v8825_v52 = vld [vmem:[%s9376_s22 + $0xb4] sm:$0xf0]  ;;  %v8083_v58 = vld [vmem:[%s9376_s22 + $0xb8] sm:$0xf0]  ;;  %s16591_s29 = sld [smem:[#allocation222_spill]] }
  0x64   : > { %16103 = vst [vmem:[#allocation44_spill] sm:$0xff] %v9576_v48  ;;  %v9584_v56 = vor.u32 %v8825_v52, %v8081_v50  ;;  %v9587_v59 = vor.u32 %v8821_v55, %v8083_v58  ;;  %v702_v63 = vld [vmem:[#allocation2] sm:$0x1]  ;;  %v8185_v5 = vld [vmem:[%s9376_s22 + $0x140] sm:$0xf]  ;;  %v742_v35 = vld [vmem:[%s15501_s14 + $0x18] sm:$0xff] }
  0x65   : > { %16104 = vst [vmem:[#allocation45_spill] sm:$0xff] %v9578_v49  ;;  %3260 = vperm.xlu1 %8909, %v702_v63   ;;  %v8846_v8 = vld [vmem:[%s9376_s22 + $0x15c] sm:$0xf0]  ;;  %v8842_v9 = vld [vmem:[%s9376_s22 + $0x144] sm:$0xf]  ;;  %s17414_s21 = smov (!%p12445_p6, %s7953_s21), 15 }
  0x66   : > { %16105 = vst [vmem:[#allocation46_spill] sm:$0xff] %v9584_v56  ;;  %v8187_v12 = vld [vmem:[%s9376_s22 + $0x160] sm:$0xf0]  ;;  %v9628_v16 = vor.u32 %v8846_v8, %v8185_v5  ;;  %v8193_v18 = vld [vmem:[%s9376_s22 + $0x148] sm:$0xf]  ;;  %v760_v5 = vld [vmem:[%s15503_s16 + $0x18] sm:$0xff] }
  0x67   : > { %16106 = vst [vmem:[#allocation47_spill] sm:$0xff] %v9587_v59  ;;  %4018 = vperm.xlu0 %8908, %v706_v0   ;;  %v9630_v17 = vor.u32 %v8842_v9, %v8187_v12  ;;  %v8847_v22 = vld [vmem:[%s9376_s22 + $0x164] sm:$0xf0]  ;;  %v8843_v25 = vld [vmem:[%s9376_s22 + $0x14c] sm:$0xf]  ;;  %v739_v63 = vld [vmem:[%s15501_s14] sm:$0xff] }
  0x68   : > { %16108 = vst [vmem:[#allocation48_spill] sm:$0xff] %v9628_v16  ;;  %v9635_v26 = vor.u32 %v8847_v22, %v8193_v18  ;;  %v8195_v29 = vld [vmem:[%s9376_s22 + $0x168] sm:$0xf0]  ;;  %v8153_v38 = vld [vmem:[%s9376_s22 + $0x100] sm:$0xf]  ;;  %v764_v0 = vld [vmem:[%s15503_s16 + $0x38] sm:$0xff] }
  0x69   : > { %16109 = vst [vmem:[#allocation49_spill] sm:$0xff] %v9630_v17  ;;  %v9640_v31 = vor.u32 %v8843_v25, %v8195_v29  ;;  %v8838_v40 = vld [vmem:[%s9376_s22 + $0x11c] sm:$0xf0]  ;;  %v8834_v41 = vld [vmem:[%s9376_s22 + $0x104] sm:$0xf]  ;;  %s7954_s0 = sshll.u32 %s17414_s21, 2 }
  0x6a   : > { %16110 = vst [vmem:[#allocation50_spill] sm:$0xff] %v9635_v26  ;;  %v9653_v44 = vor.u32 %v8838_v40, %v8153_v38  ;;  %v8155_v45 = vld [vmem:[%s9376_s22 + $0x120] sm:$0xf0]  ;;  %v8161_v46 = vld [vmem:[%s9376_s22 + $0x108] sm:$0xf]  ;;  %s12531_s2 = scalar_lea.vmem %s16591_s29, %s7954_s0  ;;  %vm4246_vm4 = vcmask 1043456  }
  0x6b   : > { %16111 = vst [vmem:[#allocation51_spill] sm:$0xff] %v9640_v31  ;;  %v8839_v50 = vld [vmem:[%s9376_s22 + $0x124] sm:$0xf0]  ;;  %v9658_v52 = vor.u32 %v8834_v41, %v8155_v45  ;;  %v8835_v58 = vld [vmem:[%s9376_s22 + $0x10c] sm:$0xf]  ;;  %vm4221_vm5 = vcmask 64512  }
  0x6c   : > { %16112 = vst [vmem:[#allocation52_spill] sm:$0xff] %v9653_v44  ;;  %v9660_v55 = vor.u32 %v8839_v50, %v8161_v46  ;;  %v8163_v60 = vld [vmem:[%s9376_s22 + $0x128] sm:$0xf0]  ;;  %v8201_v9 = vld [vmem:[%s9376_s22 + $0x150] sm:$0xf]  ;;  %vm4711_vm6 = vcmask 130048  }
  0x6d   : > { %5224 = vperm.xlu1 %8909, %v745_v3   ;;  %16113 = vst [vmem:[#allocation53_spill] sm:$0xff] %v9658_v52  ;;  %v9665_v62 = vor.u32 %v8835_v58, %v8163_v60  ;;  %v765_v3 = vld [vmem:[%s15503_s16 + $0x40] sm:$0xff]  ;;  %v758_v8 = vld [vmem:[%s15503_s16 + $0x8] sm:$0xff]  ;;  %v8848_v12 = vld [vmem:[%s9376_s22 + $0x16c] sm:$0xf0]  ;;  %vm5531_vm7 = vcmask 523264  }
  0x6e   : > { %16114 = vst [vmem:[#allocation54_spill] sm:$0xff] %v9660_v55  ;;  %v8844_v18 = vld [vmem:[%s9376_s22 + $0x154] sm:$0xf]  ;;  %v9707_v22 = vor.u32 %v8848_v12, %v8201_v9  ;;  %v8209_v29 = vld [vmem:[%s9376_s22 + $0x158] sm:$0xf]  ;;  %s7952_s20 = sshll.u32 %s9372_s18, 8 }
  0x6f   : > { %5214 = vperm.xlu0 %8908, %v743_v4   ;;  %16115 = vst [vmem:[#allocation55_spill] sm:$0xff] %v9665_v62  ;;  %v763_v4 = vld [vmem:[%s15503_s16 + $0x30] sm:$0xff]  ;;  %v8845_v40 = vld [vmem:[%s9376_s22 + $0x15c] sm:$0xf]  ;;  %v8841_v9 = vld [vmem:[%s9376_s22 + $0x134] sm:$0xf0] }
  0x70   : > { %8031 = vmatmul.msk.bf16.vlgmr.msrb.gmra.mxu0 %vm896_vm0, %v9424_v28  ;;  %16116 = vst [vmem:[#allocation56_spill] sm:$0xff] %v9707_v22  ;;  %v8203_v25 = vld [vmem:[%s9376_s22 + $0x170] sm:$0xf0]  ;;  %v8211_v41 = vld [vmem:[%s9376_s22 + $0x178] sm:$0xf0]  ;;  %s13786_s0 = scalar_lea.vmem [#allocation7], %s7952_s20 }
  0x71   : > { %8033 = vmatmul.msk.bf16.vlgmr.msrb.gmra.mxu1 %vm896_vm0, %v9424_v28  ;;  %8035 = vmatmul.msk.bf16.vlgmr.msrb.gmra.mxu2 %vm896_vm0, %v9424_v28  ;;  %v9719_v45 = vor.u32 %v8845_v40, %v8211_v41  ;;  %v8169_v46 = vld [vmem:[%s9376_s22 + $0x110] sm:$0xf]  ;;  %v8836_v58 = vld [vmem:[%s9376_s22 + $0x114] sm:$0xf]  ;;  %16126 = vst [vmem:[#allocation66_spill] sm:$0xff] %v9854_v23  ;;  %s17031_s28 = sld [smem:[#allocation231_spill]] }
  0x72   : > { %8037 = vmatmul.msk.bf16.vlgmr.msrb.gmra.mxu3 %vm896_vm0, %v9424_v28  ;;  %1294 = vmatpush.bf16.msrb.mxu0 %v9556_v30  ;;  %v8840_v50 = vld [vmem:[%s9376_s22 + $0x12c] sm:$0xf0]  ;;  %v9870_v30 = vld [vmem:[%s9376_s22 + $0x48] sm:$0xff]  ;;  %16128 = vst [vmem:[#allocation68_spill] sm:$0xff] %v9873_v13  ;;  %s17401_s23 = sld [smem:[#allocation232_spill]]  ;;  %s7858_s21 = sshll.u32 %s13786_s0, 4  ;;  %s7859_s21 = int_to_ptr.vmem [resolvable:$true] %s7858_s21 }
  0x73   : > { %1312 = vmatpush.bf16.msrb.mxu1 %v9561_v36  ;;  %1330 = vmatpush.bf16.msrb.mxu2 %v9563_v37  ;;  %16119 = vst [vmem:[#allocation59_spill] sm:$0xff] %v9719_v45  ;;  %s7846_s29 = scalar_lea.sflag [#allocation6], %s9372_s18 }
  0x74   : > { %1348 = vmatpush.bf16.msrb.mxu3 %v9569_v42  ;;  %16127 = vst [vmem:[#allocation67_spill] sm:$0xff] %v9870_v30 }
  0x75   : > { %5219 = vperm.xlu1 %8909, %v744_v32   ;;  %v8849_v32 = vld [vmem:[%s9376_s22 + $0x174] sm:$0xf0]  ;;  %16129 = vst [vmem:[#allocation69_spill] sm:$0xff] %v9880_v54 }
  0x76   : > { %1295 = vmatpush.bf16.msrb.mxu0 %v9576_v48  ;;  %v9714_v38 = vor.u32 %v8849_v32, %v8209_v29  ;;  %v8179_v29 = vld [vmem:[%s9376_s22 + $0x138] sm:$0xf0]  ;;  %16130 = vst [vmem:[#allocation70_spill] sm:$0xff] %v9896_v39 }
  0x77   : > { %1313 = vmatpush.bf16.msrb.mxu1 %v9578_v49  ;;  %1331 = vmatpush.bf16.msrb.mxu2 %v9584_v56  ;;  %16131 = vst [vmem:[#allocation71_spill] sm:$0xff] %v9902_v24 }
  0x78   : > { %1349 = vmatpush.bf16.msrb.mxu3 %v9587_v59  ;;  %5209 = vperm.xlu0 %8908, %v742_v35   ;;  %v9712_v35 = vor.u32 %v8844_v18, %v8203_v25  ;;  %16118 = vst [vmem:[#allocation58_spill] sm:$0xff] %v9714_v38  ;;  %v8837_v25 = vld [vmem:[%s9376_s22 + $0x11c] sm:$0xf] }
  0x79   : > { %v9750_v32 = vor.u32 %v8837_v25, %v8179_v29  ;;  %16137 = vst [vmem:[#allocation75_spill] sm:$0xff] %v9916_v11 }
  0x7a   : > { %16117 = vst [vmem:[#allocation57_spill] sm:$0xff] %v9712_v35 }
  0x7b   : > { %16123 = vst [vmem:[#allocation63_spill] sm:$0xff] %v9750_v32 }
  0x7c   : > { %16180 = vst [vmem:[#allocation101_spill] sm:$0xff] %v10101_v6 }
  0x7d   : > { %5194 = vperm.xlu1 %8909, %v739_v63   ;;  %v759_v63 = vld [vmem:[%s15503_s16 + $0x10] sm:$0xff] }
  0x80   : > { %8032 = vmatmul.msk.bf16.gmra.mxu0 %vm896_vm0, %v9487_v57  ;;  %5493 = vperm.xlu0 %8908, %v764_v0   ;;  %v766_v0 = vld [vmem:[%s15503_s16 + $0x48] sm:$0x1] }
  0x81   : > { %8034 = vmatmul.msk.bf16.gmra.mxu1 %vm896_vm0, %v9487_v57  ;;  %8036 = vmatmul.msk.bf16.gmra.mxu2 %vm896_vm0, %v9487_v57 }
  0x82   : > { %8038 = vmatmul.msk.bf16.gmra.mxu3 %vm896_vm0, %v9487_v57 }
  0x85   : > { %5498 = vperm.xlu1 %8909, %v765_v3  }
  0x88   : > { %5488 = vperm.xlu0 %8908, %v763_v4   ;;  %v9737_v4 = vor.u32 %v8840_v50, %v8169_v46 }
  0x8a   : > { %16120 = vst [vmem:[#allocation60_spill] sm:$0xff] %v9737_v4 }
  0x8d   : > { %5473 = vperm.xlu1 %8909, %v760_v5   ;;  %v8171_v5 = vld [vmem:[%s9376_s22 + $0x130] sm:$0xf0] }
  0x8e   : > { %v9742_v12 = vor.u32 %v8836_v58, %v8171_v5  ;;  %v757_v58 = vld [vmem:[%s15503_s16] sm:$0xff] }
  0x90   : > { %8119 = vmatmul.msk.bf16.vlgmr.msra.gmra.mxu0 %vm896_vm0, %v9424_v28  ;;  %5463 = vperm.xlu0 %8908, %v758_v8   ;;  %v8177_v8 = vld [vmem:[%s9376_s22 + $0x118] sm:$0xf]  ;;  %16121 = vst [vmem:[#allocation61_spill] sm:$0xff] %v9742_v12 }
  0x91   : > { %8121 = vmatmul.msk.bf16.vlgmr.msra.gmra.mxu1 %vm896_vm0, %v9424_v28  ;;  %8123 = vmatmul.msk.bf16.vlgmr.msra.gmra.mxu2 %vm896_vm0, %v9424_v28  ;;  %v9744_v18 = vor.u32 %v8841_v9, %v8177_v8 }
  0x92   : > { %8125 = vmatmul.msk.bf16.vlgmr.msra.gmra.mxu3 %vm896_vm0, %v9424_v28  ;;  %1535 = vmatpush.bf16.msra.mxu0 %v9628_v16 }
  0x93   : > { %1553 = vmatpush.bf16.msra.mxu1 %v9630_v17  ;;  %1571 = vmatpush.bf16.msra.mxu2 %v9635_v26  ;;  %16122 = vst [vmem:[#allocation62_spill] sm:$0xff] %v9744_v18 }
  0x94   : > { %1589 = vmatpush.bf16.msra.mxu3 %v9640_v31 }
  0x95   : > { %5468 = vperm.xlu1 %8909, %v759_v63  }
  0x96   : > { %1536 = vmatpush.bf16.msra.mxu0 %v9653_v44 }
  0x97   : > { %1554 = vmatpush.bf16.msra.mxu1 %v9658_v52  ;;  %1572 = vmatpush.bf16.msra.mxu2 %v9660_v55 }
  0x98   : > { %1590 = vmatpush.bf16.msra.mxu3 %v9665_v62  ;;  %5503 = vperm.xlu0 %8908, %v766_v0  }
  0x9d   : > { %5458 = vperm.xlu1 %8909, %v757_v58  }
  0xa0   : > { %8120 = vmatmul.msk.bf16.gmra.mxu0 %vm896_vm0, %v9487_v57 }
  0xa1   : > { %8122 = vmatmul.msk.bf16.gmra.mxu1 %vm896_vm0, %v9487_v57  ;;  %8124 = vmatmul.msk.bf16.gmra.mxu2 %vm896_vm0, %v9487_v57 }
  0xa2   : > { %8126 = vmatmul.msk.bf16.gmra.mxu3 %vm896_vm0, %v9487_v57 }
  0xb0   : > { %8127 = vmatmul.msk.bf16.vlgmr.msrb.gmra.mxu0 %vm896_vm0, %v9424_v28 }
  0xb1   : > { %8129 = vmatmul.msk.bf16.vlgmr.msrb.gmra.mxu1 %vm896_vm0, %v9424_v28  ;;  %8131 = vmatmul.msk.bf16.vlgmr.msrb.gmra.mxu2 %vm896_vm0, %v9424_v28 }
  0xb2   : > { %8133 = vmatmul.msk.bf16.vlgmr.msrb.gmra.mxu3 %vm896_vm0, %v9424_v28  ;;  %1607 = vmatpush.bf16.msrb.mxu0 %v9707_v22 }
  0xb3   : > { %1625 = vmatpush.bf16.msrb.mxu1 %v9712_v35  ;;  %1643 = vmatpush.bf16.msrb.mxu2 %v9714_v38 }
  0xb4   : > { %1661 = vmatpush.bf16.msrb.mxu3 %v9719_v45 }
  0xb6   : > { %1608 = vmatpush.bf16.msrb.mxu0 %v9737_v4 }
  0xb7   : > { %1626 = vmatpush.bf16.msrb.mxu1 %v9742_v12  ;;  %1644 = vmatpush.bf16.msrb.mxu2 %v9744_v18 }
  0xb8   : > { %1662 = vmatpush.bf16.msrb.mxu3 %v9750_v32 }
  0xc0   : > { %8128 = vmatmul.msk.bf16.gmra.mxu0 %vm896_vm0, %v9487_v57 }
  0xc1   : > { %8130 = vmatmul.msk.bf16.gmra.mxu1 %vm896_vm0, %v9487_v57  ;;  %8132 = vmatmul.msk.bf16.gmra.mxu2 %vm896_vm0, %v9487_v57  ;;  %v9831_v17 = vpop.permute.xlu0 %805  ;;  %v9856_v21 = vpop.permute.xlu1 %800 }
  0xc2   : > { %8134 = vmatmul.msk.bf16.gmra.mxu3 %vm896_vm0, %v9487_v57 }
  0xc9   : > { %v9843_v37 = vpop.permute.xlu0 %795 }
  0xcd   : > { %v9726_v60 = vpop.f32.mrf.mxu0 }
  0xce   : > { %v9735_v3 = vpop.f32.mrf.mxu1 }
  0xcf   : > { %v931_v43 = vadd.f32 %v9735_v3, %v9843_v37 }
  0xd0   : > { %8215 = vmatmul.msk.bf16.vlgmr.msra.gmra.mxu0 %vm896_vm0, %v9424_v28 }
  0xd1   : > { %8217 = vmatmul.msk.bf16.vlgmr.msra.gmra.mxu1 %vm896_vm0, %v9424_v28  ;;  %8219 = vmatmul.msk.bf16.vlgmr.msra.gmra.mxu2 %vm896_vm0, %v9424_v28 }
  0xd2   : > { %8221 = vmatmul.msk.bf16.vlgmr.msra.gmra.mxu3 %vm896_vm0, %v9424_v28 }
  0xd4   : > { %v948_v40 = vpop.f32.mrf.mxu2 }
  0xd5   : > { %v966_v41 = vpop.f32.mrf.mxu3  ;;  %v9762_v46 = vpop.f32.mrf.mxu0 }
  0xd6   : > { %v9764_v50 = vpop.f32.mrf.mxu1 }
  0xdc   : > { %v9769_v63 = vpop.f32.mrf.mxu2 }
  0xdd   : > { %v9771_v0 = vpop.f32.mrf.mxu3  ;;  %v9773_v5 = vpop.f32.mrf.mxu0  ;;  %v951_v61 = vadd.f32 %v9769_v63, %v9856_v21 }
  0xde   : > { %v9775_v8 = vpop.f32.mrf.mxu1  ;;  %v969_v14 = vadd.f32 %v9771_v0, %v9856_v21  ;;  %v918_v53 = vadd.f32 %v9773_v5, %v9831_v17 }
  0xdf   : > { %v936_v63 = vadd.f32 %v9775_v8, %v9831_v17  ;;  %v1057_v15 = vmax.f32 %v951_v61, 0.0  ;;  %v915_v61 = vadd.f32 %v9762_v46, %v9856_v21 }
  0xe0   : > { %8216 = vmatmul.msk.bf16.gmra.mxu0 %vm896_vm0, %v9487_v57  ;;  %v1058_v5 = vmax.f32 %v969_v14, 0.0  ;;  %v1063_v0 = vmax.f32 %v918_v53, 0.0 }
  0xe1   : > { %8218 = vmatmul.msk.bf16.gmra.mxu1 %vm896_vm0, %v9487_v57  ;;  %8220 = vmatmul.msk.bf16.gmra.mxu2 %vm896_vm0, %v9487_v57 }
  0xe2   : > { %8222 = vmatmul.msk.bf16.gmra.mxu3 %vm896_vm0, %v9487_v57 }
  0xe4   : > { %v9785_v9 = vpop.f32.mrf.mxu2 }
  0xe5   : > { %v9787_v25 = vpop.f32.mrf.mxu3  ;;  %v919_v29 = vpop.f32.mrf.mxu0  ;;  %v954_v53 = vadd.f32 %v9785_v9, %v9831_v17  ;;  %v1048_v9 = vmax.f32 %v931_v43, 0.0  ;;  %v16148_v43 = vunpack.c.h.bf16 %v9854_v23 }
  0xe6   : > { %v937_v58 = vpop.f32.mrf.mxu1  ;;  %v972_v46 = vadd.f32 %v9787_v25, %v9831_v17 }
  0xe8   : > { %v1066_v33 = vmax.f32 %v972_v46, 0.0 }
  0xec   : > { %v955_v32 = vpop.f32.mrf.mxu2 }
  0xed   : > { %v973_v18 = vpop.f32.mrf.mxu3  ;;  %v9789_v45 = vpop.f32.mrf.mxu0 }
  0xee   : > { %v9791_v38 = vpop.f32.mrf.mxu1 }
  0xf0   : > { %8223 = vmatmul.msk.bf16.vlgmr.msrb.gmra.mxu0 %vm896_vm0, %v9424_v28 }
  0xf1   : > { %8225 = vmatmul.msk.bf16.vlgmr.msrb.gmra.mxu1 %vm896_vm0, %v9424_v28  ;;  %8227 = vmatmul.msk.bf16.vlgmr.msrb.gmra.mxu2 %vm896_vm0, %v9424_v28 }
  0xf2   : > { %8229 = vmatmul.msk.bf16.vlgmr.msrb.gmra.mxu3 %vm896_vm0, %v9424_v28 }
  0xf4   : > { %v9801_v29 = vpop.f32.mrf.mxu2 }
  0xf5   : > { %v9803_v32 = vpop.f32.mrf.mxu3  ;;  %v9805_v18 = vpop.f32.mrf.mxu0 }
  0xf6   : > { %v9807_v58 = vpop.f32.mrf.mxu1 }
  0xfc   : > { %v9809_v62 = vpop.f32.mrf.mxu2 }
  0xfd   : > { %v9811_v55 = vpop.f32.mrf.mxu3  ;;  %v9813_v31 = vpop.f32.mrf.mxu0 }
  0xfe   : > { %v9815_v26 = vpop.f32.mrf.mxu1 }
 0x100   : > { %8224 = vmatmul.msk.bf16.gmra.mxu0 %vm896_vm0, %v9487_v57 }
 0x101   : > { %8226 = vmatmul.msk.bf16.gmra.mxu1 %vm896_vm0, %v9487_v57  ;;  %8228 = vmatmul.msk.bf16.gmra.mxu2 %vm896_vm0, %v9487_v57 }
 0x102   : > { %8230 = vmatmul.msk.bf16.gmra.mxu3 %vm896_vm0, %v9487_v57 }
 0x104   : > { %v9825_v28 = vpop.f32.mrf.mxu2 }
 0x105   : > { %v9827_v12 = vpop.f32.mrf.mxu3  ;;  %v991_v4 = vpop.f32.mrf.mxu0 }
 0x106   : > { %v1009_v35 = vpop.f32.mrf.mxu1  ;;  %v9851_v4 = vld [vmem:[%s9376_s22 + $0x28] sm:$0xff] }
 0x107   : > { %v9846_v35 = vld [vmem:[%s9376_s22 + $0x8] sm:$0xff]  ;;  %16125 = vst [vmem:[#allocation65_spill] sm:$0xff] %v9851_v4  ;;  %v16142_v3 = vunpack.c.h.bf16 %v9851_v4 }
 0x108   : > { %16124 = vst [vmem:[#allocation64_spill] sm:$0xff] %v9846_v35  ;;  %v16133_v8 = vunpack.c.l.bf16 %v9846_v35  ;;  %v16135_v27 = vunpack.c.h.bf16 %v9846_v35 }
 0x109   : > { %v9950_v34 = vadd.f32 %v16142_v3, %v1058_v5  ;;  %v1003_v5 = vadd.f32 %v9791_v38, %v9843_v37  ;;  %v1055_v3 = vmax.f32 %v915_v61, 0.0  ;;  %v987_v38 = vadd.f32 %v9805_v18, %v9856_v21  ;;  %v9978_v61 = vld [vmem:[%s9376_s22 + $0x58] sm:$0xff] }
 0x10a   : > { %16150 = vst [vmem:[#allocation83_spill] sm:$0xff] %v9978_v61  ;;  %v1005_v18 = vadd.f32 %v9807_v58, %v9856_v21 }
 0x10b   : > { %16143 = vst [vmem:[#allocation79_spill] sm:$0xff] %v9950_v34  ;;  %v1059_v10 = vmax.f32 %v987_v38, 0.0 }
 0x10c   : > { %v1027_v52 = vpop.f32.mrf.mxu2 }
 0x10d   : > { %v1045_v22 = vpop.f32.mrf.mxu3  ;;  %v9829_v44 = vpop.f32.mrf.mxu0  ;;  %v949_v52 = vadd.f32 %v948_v40, %v9843_v37  ;;  %v9178_v40 = vmov 65535  }
 0x10e   : > { %v9833_v16 = vpop.f32.mrf.mxu1  ;;  %v967_v22 = vadd.f32 %v966_v41, %v9843_v37  ;;  %v2132_v41 = vsel %vm2130_vm1, 4294967295, %v9178_v40 }
 0x10f   : > { %v1049_v2 = vmax.f32 %v949_v52, 0.0  ;;  %v913_v52 = vadd.f32 %v9726_v60, %v9843_v37  ;;  %v9905_v60 = vsel %vm2131_vm2, %v2132_v41, 0 }
 0x110   : > { %v1050_v49 = vmax.f32 %v967_v22, 0.0  ;;  %16132 = vst [vmem:[#allocation72_spill] sm:$0xff] %v9905_v60 }
 0x111   : > { %v9909_v22 = vadd.f32 %v16133_v8, %v1049_v2  ;;  %v1047_v47 = vmax.f32 %v913_v52, 0.0  ;;  %v1064_v2 = vmax.f32 %v936_v63, 0.0  ;;  %v9934_v52 = vld [vmem:[%s9376_s22 + $0x20] sm:$0xff]  ;;  %v933_v63 = vadd.f32 %v9764_v50, %v9856_v21 }
 0x112   : > { %v9913_v40 = vadd.f32 %v16135_v27, %v1050_v49  ;;  %16138 = vst [vmem:[#allocation76_spill] sm:$0xff] %v9934_v52  ;;  %v16139_v27 = vunpack.c.l.bf16 %v9851_v4  ;;  %v9954_v50 = vadd.f32 %v16144_v20, %v1063_v0  ;;  %v15572_v14 = vunpack.c.l.bf16 %v9934_v52 }
 0x113   : > { %16134 = vst [vmem:[#allocation73_spill] sm:$0xff] %v9909_v22  ;;  %v1065_v4 = vmax.f32 %v954_v53, 0.0  ;;  %v1056_v0 = vmax.f32 %v933_v63, 0.0 }
 0x114   : > { %v9835_v59 = vpop.f32.mrf.mxu2  ;;  %16136 = vst [vmem:[#allocation74_spill] sm:$0xff] %v9913_v40  ;;  %v9940_v41 = vadd.f32 %v16139_v27, %v1057_v15  ;;  %v985_v15 = vadd.f32 %v9789_v45, %v9843_v37  ;;  %v9964_v27 = vadd.f32 %v16148_v43, %v1064_v2  ;;  %v1039_v2 = vadd.f32 %v9803_v32, %v9843_v37  ;;  %v9992_v45 = vld [vmem:[%s9376_s22 + $0x80] sm:$0xff] }
 0x115   : > { %v9837_v56 = vpop.f32.mrf.mxu3  ;;  %v9839_v57 = vpop.f32.mrf.mxu0  ;;  %16145 = vst [vmem:[#allocation80_spill] sm:$0xff] %v9954_v50  ;;  %v16151_v43 = vunpack.c.h.bf16 %v9896_v39  ;;  %v1052_v32 = vmax.f32 %v1003_v5, 0.0  ;;  %v1023_v5 = vadd.f32 %v9809_v62, %v9856_v21  ;;  %v1008_v62 = vadd.f32 %v9815_v26, %v9831_v17 }
 0x116   : > { %v9841_v42 = vpop.f32.mrf.mxu1  ;;  %16140 = vst [vmem:[#allocation77_spill] sm:$0xff] %v9940_v41 }
 0x117   : > { %16149 = vst [vmem:[#allocation82_spill] sm:$0xff] %v9964_v27  ;;  %v9985_v46 = vadd.f32 %v16151_v43, %v1048_v9  ;;  %v16155_v9 = vunpack.c.l.bf16 %v9870_v30 }
 0x118   : > { %16153 = vst [vmem:[#allocation85_spill] sm:$0xff] %v9992_v45 }
 0x119   : > { %16152 = vst [vmem:[#allocation84_spill] sm:$0xff] %v9985_v46 }
 0x11c   : > { %v9858_v7 = vpop.f32.mrf.mxu2 }
 0x11d   : > { %v9862_v48 = vpop.f32.mrf.mxu3  ;;  %v9864_v36 = vpop.f32.mrf.mxu0 }
 0x11e   : > { %v9875_v1 = vpop.f32.mrf.mxu1 }
 0x124   : > { %v9921_v51 = vpop.f32.mrf.mxu2 }
 0x125   : > { %v9927_v49 = vpop.f32.mrf.mxu3  ;;  %v1232_v35 = vpop.f32.mrf.mxu0 }
 0x126   : > { %v1250_v8 = vpop.f32.mrf.mxu1  ;;  %v9945_v35 = vld [vmem:[%s9376_s22 + $0x50] sm:$0xff] }
 0x127   : > { %16141 = vst [vmem:[#allocation78_spill] sm:$0xff] %v9945_v35  ;;  %v16146_v8 = vunpack.c.l.bf16 %v9896_v39  ;;  %v1054_v39 = vmax.f32 %v1039_v2, 0.0  ;;  %v990_v2 = vadd.f32 %v9813_v31, %v9831_v17  ;;  %v16168_v31 = vunpack.c.h.bf16 %v9880_v54 }
 0x129   : > { %v9960_v25 = vadd.f32 %v16146_v8, %v1047_v47  ;;  %v1021_v47 = vadd.f32 %v9801_v29, %v9843_v37  ;;  %v1051_v8 = vmax.f32 %v985_v15, 0.0  ;;  %v9996_v15 = vadd.f32 %v15572_v14, %v1055_v3 }
 0x12a   : > { %v16156_v29 = vunpack.c.h.bf16 %v9934_v52  ;;  %v16158_v3 = vunpack.c.h.bf16 %v9870_v30  ;;  %v10051_v38 = vadd.f32 %v16168_v31, %v1054_v39  ;;  %v16173_v39 = vunpack.c.h.bf16 %v9902_v24 }
 0x12b   : > { %16147 = vst [vmem:[#allocation81_spill] sm:$0xff] %v9960_v25  ;;  %v1053_v14 = vmax.f32 %v1021_v47, 0.0  ;;  %v1060_v47 = vmax.f32 %v1005_v18, 0.0  ;;  %v16166_v18 = vunpack.c.l.bf16 %v9880_v54  ;;  %v1262_v52 = vadd.f32 %v9835_v59, %v9843_v37 }
 0x12c   : > { %v1268_v20 = vpop.f32.mrf.mxu2  ;;  %16154 = vst [vmem:[#allocation86_spill] sm:$0xff] %v9996_v15  ;;  %v10008_v58 = vadd.f32 %v16156_v29, %v1056_v0  ;;  %v1041_v0 = vadd.f32 %v9811_v55, %v9856_v21  ;;  %v1226_v55 = vadd.f32 %v9829_v44, %v9843_v37  ;;  %v16170_v29 = vunpack.c.l.bf16 %v9902_v24  ;;  %v10080_v24 = vld [vmem:[%s9376_s22 + $0xc0] sm:$0xff] }
 0x12d   : > { %v1286_v53 = vpop.f32.mrf.mxu3  ;;  %v9998_v63 = vpop.f32.mrf.mxu0  ;;  %v10002_v20 = vadd.f32 %v16155_v9, %v1065_v4  ;;  %v10017_v4 = vld [vmem:[%s9376_s22 + $0x88] sm:$0xff]  ;;  %v16161_v9 = vunpack.c.l.bf16 %v9873_v13  ;;  %16169 = vst [vmem:[#allocation94_spill] sm:$0xff] %v10051_v38  ;;  %v1061_v44 = vmax.f32 %v1023_v5, 0.0  ;;  %v10068_v31 = vadd.f32 %v16173_v39, %v1060_v47 }
 0x12e   : > { %16157 = vst [vmem:[#allocation87_spill] sm:$0xff] %v10008_v58  ;;  %v10010_v23 = vpop.f32.mrf.mxu1  ;;  %v10014_v53 = vadd.f32 %v16158_v3, %v1066_v33  ;;  %v16163_v33 = vunpack.c.h.bf16 %v9873_v13  ;;  %v10055_v13 = vadd.f32 %v16170_v29, %v1059_v10  ;;  %v1062_v30 = vmax.f32 %v1041_v0, 0.0 }
 0x12f   : > { %16160 = vst [vmem:[#allocation89_spill] sm:$0xff] %v10017_v4  ;;  %v10021_v43 = vadd.f32 %v16161_v9, %v1051_v8  ;;  %v10036_v8 = vld [vmem:[%s9376_s22 + $0xa0] sm:$0xff]  ;;  %v1244_v9 = vadd.f32 %v9833_v16, %v9843_v37  ;;  %v1026_v16 = vadd.f32 %v9825_v28, %v9831_v17  ;;  %v1067_v10 = vmax.f32 %v990_v2, 0.0 }
 0x130   : > { %16159 = vst [vmem:[#allocation88_spill] sm:$0xff] %v10014_v53  ;;  %v10030_v3 = vadd.f32 %v16163_v33, %v1052_v32  ;;  %v10047_v33 = vadd.f32 %v16166_v18, %v1053_v14  ;;  %v10062_v14 = vld [vmem:[%s9376_s22 + $0xa8] sm:$0xff]  ;;  %v1044_v29 = vadd.f32 %v9827_v12, %v9831_v17  ;;  %v1068_v32 = vmax.f32 %v1008_v62, 0.0 }
 0x131   : > { %16162 = vst [vmem:[#allocation90_spill] sm:$0xff] %v10021_v43  ;;  %v1360_v26 = vmax.f32 %v1226_v55, 0.0  ;;  %v1361_v54 = vmax.f32 %v1244_v9, 0.0  ;;  %v1280_v12 = vadd.f32 %v9837_v56, %v9843_v37  ;;  %v1228_v2 = vadd.f32 %v9839_v57, %v9856_v21 }
 0x132   : > { %16164 = vst [vmem:[#allocation91_spill] sm:$0xff] %v10030_v3  ;;  %v16176_v55 = vunpack.c.l.bf16 %v9916_v11  ;;  %v16178_v59 = vunpack.c.h.bf16 %v9916_v11  ;;  %v1069_v19 = vmax.f32 %v1026_v16, 0.0  ;;  %v1246_v56 = vadd.f32 %v9841_v42, %v9856_v21 }
 0x133   : > { %16165 = vst [vmem:[#allocation92_spill] sm:$0xff] %v10036_v8  ;;  %v16181_v57 = vunpack.c.l.bf16 %v9945_v35  ;;  %v1070_v39 = vmax.f32 %v1044_v29, 0.0  ;;  %v16185_v42 = vunpack.c.h.bf16 %v9992_v45  ;;  %v1363_v29 = vmax.f32 %v1280_v12, 0.0 }
 0x134   : > { %16167 = vst [vmem:[#allocation93_spill] sm:$0xff] %v10047_v33  ;;  %v10064_v18 = vpop.f32.mrf.mxu2  ;;  %v10092_v9 = vadd.f32 %v16176_v55, %v1061_v44  ;;  %v10096_v5 = vadd.f32 %v16178_v59, %v1062_v30  ;;  %v16182_v55 = vunpack.c.h.bf16 %v9945_v35  ;;  %v16183_v30 = vunpack.c.l.bf16 %v9992_v45  ;;  %v10163_v44 = vld [vmem:[%s9376_s22 + $0x98] sm:$0xff] }
 0x135   : > { %16171 = vst [vmem:[#allocation95_spill] sm:$0xff] %v10055_v13  ;;  %v10073_v0 = vpop.f32.mrf.mxu3  ;;  %v10075_v28 = vpop.f32.mrf.mxu0  ;;  %v10105_v60 = vadd.f32 %v16181_v57, %v1067_v10  ;;  %v10119_v59 = vadd.f32 %v16185_v42, %v1361_v54  ;;  %v10122_v10 = vld [vmem:[%s9376_s22 + $0x90] sm:$0xff]  ;;  %v1368_v57 = vmax.f32 %v1228_v2, 0.0  ;;  %v1282_v54 = vadd.f32 %v9862_v48, %v9856_v21 }
 0x136   : > { %16172 = vst [vmem:[#allocation96_spill] sm:$0xff] %v10062_v14  ;;  %v10082_v47 = vpop.f32.mrf.mxu1  ;;  %v10111_v11 = vadd.f32 %v16182_v55, %v1068_v32  ;;  %v10115_v16 = vadd.f32 %v16183_v30, %v1360_v26  ;;  %v16188_v32 = vunpack.c.l.bf16 %v9978_v61  ;;  %v1369_v26 = vmax.f32 %v1246_v56, 0.0 }
 0x137   : > { %16174 = vst [vmem:[#allocation97_spill] sm:$0xff] %v10068_v31  ;;  %v1264_v30 = vadd.f32 %v9858_v7, %v9856_v21  ;;  %v16190_v12 = vunpack.c.h.bf16 %v9978_v61  ;;  %v1231_v42 = vadd.f32 %v9864_v36, %v9831_v17  ;;  %v16195_v62 = vunpack.c.h.bf16 %v10017_v4 }
 0x138   : > { %16175 = vst [vmem:[#allocation98_spill] sm:$0xff] %v10080_v24  ;;  %v10128_v55 = vadd.f32 %v16188_v32, %v1069_v19  ;;  %v1249_v19 = vadd.f32 %v9875_v1, %v9831_v17  ;;  %v10151_v48 = vadd.f32 %v10115_v16, %v9960_v25  ;;  %v16197_v35 = vunpack.c.l.bf16 %v10036_v8 }
 0x139   : > { %16177 = vst [vmem:[#allocation99_spill] sm:$0xff] %v10092_v9  ;;  %v10138_v2 = vadd.f32 %v16190_v12, %v1070_v39  ;;  %v10155_v39 = vadd.f32 %v10119_v59, %v9985_v46  ;;  %v16192_v12 = vunpack.c.l.bf16 %v10017_v4  ;;  %v10169_v61 = vadd.f32 %v16195_v62, %v1363_v29 }
 0x13a   : > { %16179 = vst [vmem:[#allocation100_spill] sm:$0xff] %v10096_v5  ;;  %v1362_v5 = vmax.f32 %v1262_v52, 0.0  ;;  %v10173_v45 = vadd.f32 %v16197_v35, %v1368_v57  ;;  %v16200_v1 = vunpack.c.h.bf16 %v10036_v8  ;;  %v1370_v4 = vmax.f32 %v1264_v30, 0.0 }
 0x13b   : > { %16184 = vst [vmem:[#allocation102_spill] sm:$0xff] %v10115_v16  ;;  %v1371_v62 = vmax.f32 %v1282_v54, 0.0  ;;  %v1298_v29 = vadd.f32 %v9998_v63, %v9843_v37  ;;  %v1376_v35 = vmax.f32 %v1231_v42, 0.0  ;;  %v1377_v57 = vmax.f32 %v1249_v19, 0.0 }
 0x13c   : > { %16186 = vst [vmem:[#allocation103_spill] sm:$0xff] %v10119_v59  ;;  %v10134_v52 = vpop.f32.mrf.mxu2  ;;  %v10159_v36 = vadd.f32 %v16192_v12, %v1362_v5  ;;  %v1267_v59 = vadd.f32 %v9921_v51, %v9831_v17  ;;  %v1285_v5 = vadd.f32 %v9927_v49, %v9831_v17  ;;  %v10180_v12 = vld [vmem:[%s9376_s22 + $0xb0] sm:$0xff]  ;;  %v10184_v46 = vadd.f32 %v16200_v1, %v1369_v26  ;;  %v10199_v1 = vld [vmem:[%s9376_s22 + $0xb8] sm:$0xff] }
 0x13d   : > { %16187 = vst [vmem:[#allocation104_spill] sm:$0xff] %v10122_v10  ;;  %v10145_v32 = vpop.f32.mrf.mxu3  ;;  %v10147_v7 = vpop.f32.mrf.mxu0  ;;  %v1316_v51 = vadd.f32 %v10010_v23, %v9843_v37  ;;  %v10203_v63 = vadd.f32 %v10169_v61, %v9913_v40  ;;  %v10207_v23 = vadd.f32 %v10173_v45, %v9996_v15  ;;  %v16203_v30 = vunpack.c.l.bf16 %v10062_v14  ;;  %v10222_v40 = vld [vmem:[%s9376_s22 + $0xd0] sm:$0xff] }
 0x13e   : > { %16189 = vst [vmem:[#allocation105_spill] sm:$0xff] %v10128_v55  ;;  %v10165_v56 = vpop.f32.mrf.mxu1  ;;  %v10193_v49 = vadd.f32 %v10159_v36, %v9909_v22  ;;  %v1378_v42 = vmax.f32 %v1267_v59, 0.0  ;;  %v1379_v19 = vmax.f32 %v1285_v5, 0.0  ;;  %v10211_v16 = vadd.f32 %v10184_v46, %v10008_v58 }
 0x13f   : > { %16191 = vst [vmem:[#allocation106_spill] sm:$0xff] %v10138_v2  ;;  %v10215_v54 = vadd.f32 %v16203_v30, %v1370_v4  ;;  %v16205_v26 = vunpack.c.h.bf16 %v10062_v14  ;;  %v16208_v59 = vunpack.c.l.bf16 %v10080_v24  ;;  %v16210_v22 = vunpack.c.h.bf16 %v10080_v24 }
 0x140   : > { %16193 = vst [vmem:[#allocation107_spill] sm:$0xff] %v10159_v36  ;;  %v1365_v58 = vmax.f32 %v1316_v51, 0.0 }
 0x141   : > { %16194 = vst [vmem:[#allocation108_spill] sm:$0xff] %v10163_v44  ;;  %v10219_v8 = vadd.f32 %v16205_v26, %v1371_v62  ;;  %v10226_v5 = vadd.f32 %v16208_v59, %v1376_v35  ;;  %v1334_v62 = vadd.f32 %v10064_v18, %v9843_v37  ;;  %v1300_v35 = vadd.f32 %v10075_v28, %v9856_v21  ;;  %v10241_v59 = vld [vmem:[%s9376_s22 + $0xd8] sm:$0xff] }
 0x142   : > { %16196 = vst [vmem:[#allocation109_spill] sm:$0xff] %v10169_v61  ;;  %v1364_v61 = vmax.f32 %v1298_v29, 0.0  ;;  %v1352_v29 = vadd.f32 %v10073_v0, %v9843_v37  ;;  %v1318_v18 = vadd.f32 %v10082_v47, %v9856_v21  ;;  %v10256_v28 = vadd.f32 %v10215_v54, %v9940_v41 }
 0x143   : > { %16198 = vst [vmem:[#allocation110_spill] sm:$0xff] %v10173_v45  ;;  %v10272_v47 = vadd.f32 %v10226_v5, %v9954_v50  ;;  %v16220_v26 = vunpack.c.h.bf16 %v10122_v10  ;;  %v1321_v45 = vadd.f32 %v10165_v56, %v9831_v17 }
 0x144   : > { %16199 = vst [vmem:[#allocation111_spill] sm:$0xff] %v10180_v12  ;;  %v1338_v36 = vpop.f32.mrf.mxu2  ;;  %v1367_v24 = vmax.f32 %v1352_v29, 0.0  ;;  %v1336_v29 = vadd.f32 %v10134_v52, %v9856_v21 }
 0x145   : > { %16201 = vst [vmem:[#allocation112_spill] sm:$0xff] %v10184_v46  ;;  %v10230_v46 = vadd.f32 %v16210_v22, %v1377_v57  ;;  %v1356_v30 = vpop.f32.mrf.mxu3  ;;  %v1304_v14 = vpop.f32.mrf.mxu0  ;;  %v16213_v57 = vunpack.c.l.bf16 %v10101_v6 }
 0x146   : > { %16202 = vst [vmem:[#allocation113_spill] sm:$0xff] %v10199_v1  ;;  %v1322_v22 = vpop.f32.mrf.mxu1  ;;  %v16215_v14 = vunpack.c.h.bf16 %v10101_v6  ;;  %v10280_v6 = vadd.f32 %v16220_v26, %v1365_v58  ;;  %v1373_v58 = vmax.f32 %v1318_v18, 0.0  ;;  %v1303_v26 = vadd.f32 %v10147_v7, %v9831_v17 }
 0x147   : > { %16204 = vst [vmem:[#allocation114_spill] sm:$0xff] %v10215_v54  ;;  %v10245_v51 = vadd.f32 %v16213_v57, %v1378_v42  ;;  %v10260_v22 = vadd.f32 %v10219_v8, %v9950_v34  ;;  %v16217_v42 = vunpack.c.l.bf16 %v10122_v10  ;;  %v10276_v0 = vadd.f32 %v10230_v46, %v9964_v27  ;;  %v10285_v34 = vld [vmem:[%s9376_s22 + $0x108] sm:$0xff]  ;;  %v10306_v10 = vld [vmem:[%s9376_s22 + $0x120] sm:$0xff] }
 0x148   : > { %16206 = vst [vmem:[#allocation115_spill] sm:$0xff] %v10219_v8  ;;  %v10249_v4 = vadd.f32 %v16215_v14, %v1379_v19  ;;  %v10268_v14 = vld [vmem:[%s9376_s22 + $0x100] sm:$0xff]  ;;  %v1372_v19 = vmax.f32 %v1300_v35, 0.0  ;;  %v1354_v35 = vadd.f32 %v10145_v32, %v9856_v21  ;;  %v10310_v18 = vadd.f32 %v10280_v6, %v10030_v3 }
 0x149   : > { %16207 = vst [vmem:[#allocation116_spill] sm:$0xff] %v10222_v40  ;;  %v10264_v57 = vadd.f32 %v16217_v42, %v1364_v61  ;;  %v1366_v42 = vmax.f32 %v1334_v62, 0.0  ;;  %v10289_v54 = vadd.f32 %v10245_v51, %v10002_v20  ;;  %v16227_v61 = vunpack.c.h.bf16 %v10163_v44 }
 0x14a   : > { %16209 = vst [vmem:[#allocation117_spill] sm:$0xff] %v10226_v5  ;;  %v10293_v41 = vadd.f32 %v10249_v4, %v10014_v53 }
 0x14b   : > { %16211 = vst [vmem:[#allocation118_spill] sm:$0xff] %v10230_v46  ;;  %v10298_v62 = vadd.f32 %v10264_v57, %v10021_v43  ;;  %v10322_v15 = vadd.f32 %v16227_v61, %v1367_v24  ;;  %v1374_v61 = vmax.f32 %v1336_v29, 0.0  ;;  %v16234_v29 = vunpack.c.l.bf16 %v10268_v14 }
 0x14c   : > { %16212 = vst [vmem:[#allocation119_spill] sm:$0xff] %v10241_v59  ;;  %v1340_v8 = vpop.f32.mrf.mxu2 }
 0x14d   : > { %16214 = vst [vmem:[#allocation120_spill] sm:$0xff] %v10245_v51  ;;  %v1538_v43 = vpop.f32.mrf.mxu0  ;;  %v16225_v8 = vunpack.c.l.bf16 %v10163_v44  ;;  %v10339_v44 = vld [vmem:[%s9376_s22 + $0x128] sm:$0xff] }
 0x14e   : > { %16216 = vst [vmem:[#allocation121_spill] sm:$0xff] %v10249_v4  ;;  %v1539_v7 = vadd.f32 %v1538_v43, %v9843_v37  ;;  %v1380_v43 = vmax.f32 %v1303_v26, 0.0 }
 0x14f   : > { %16218 = vst [vmem:[#allocation122_spill] sm:$0xff] %v10264_v57  ;;  %v1358_v57 = vpop.f32.mrf.mxu3  ;;  %v10318_v32 = vadd.f32 %v16225_v8, %v1366_v42  ;;  %v1375_v8 = vmax.f32 %v1354_v35, 0.0 }
 0x150   : > { %16219 = vst [vmem:[#allocation123_spill] sm:$0xff] %v10268_v14  ;;  %v1556_v57 = vpop.f32.mrf.mxu1 }
 0x151   : > { %16221 = vst [vmem:[#allocation124_spill] sm:$0xff] %v10280_v6  ;;  %v16229_v6 = vunpack.c.l.bf16 %v10180_v12  ;;  %v1557_v42 = vadd.f32 %v1556_v57, %v9843_v37  ;;  %v10345_v56 = vadd.f32 %v10318_v32, %v10047_v33  ;;  %v10349_v57 = vadd.f32 %v10322_v15, %v10051_v38 }
 0x152   : > { %16222 = vst [vmem:[#allocation125_spill] sm:$0xff] %v10285_v34 }
 0x153   : > { %16223 = vst [vmem:[#allocation126_spill] sm:$0xff] %v10306_v10  ;;  %v10326_v3 = vadd.f32 %v16229_v6, %v1372_v19  ;;  %v1339_v6 = vadd.f32 %v1338_v36, %v9831_v17  ;;  %v1673_v19 = vmax.f32 %v1539_v7, 0.0  ;;  %v1381_v7 = vmax.f32 %v1321_v45, 0.0 }
 0x154   : > { %16224 = vst [vmem:[#allocation127_spill] sm:$0xff] %v10310_v18  ;;  %v16231_v18 = vunpack.c.h.bf16 %v10180_v12  ;;  %v1357_v12 = vadd.f32 %v1356_v30, %v9831_v17  ;;  %v10360_v30 = vld [vmem:[%s9376_s22 + $0x140] sm:$0xff]  ;;  %v1574_v33 = vpop.f32.mrf.mxu2  ;;  %v16243_v45 = vunpack.c.l.bf16 %v10222_v40 }
 0x155   : > { %16226 = vst [vmem:[#allocation128_spill] sm:$0xff] %v10318_v32  ;;  %v10353_v36 = vadd.f32 %v10326_v3, %v10055_v13  ;;  %v10357_v26 = vadd.f32 %v16234_v29, %v1673_v19  ;;  %v16241_v19 = vunpack.c.h.bf16 %v10199_v1  ;;  %v1382_v32 = vmax.f32 %v1339_v6, 0.0 }
 0x156   : > { %16228 = vst [vmem:[#allocation129_spill] sm:$0xff] %v10322_v15  ;;  %v10331_v52 = vadd.f32 %v16231_v18, %v1373_v58  ;;  %v1674_v58 = vmax.f32 %v1557_v42, 0.0  ;;  %v16237_v42 = vunpack.c.h.bf16 %v10268_v14  ;;  %v16239_v15 = vunpack.c.l.bf16 %v10199_v1  ;;  %v1540_v14 = vpop.f32.mrf.mxu0 }
 0x157   : > { %16230 = vst [vmem:[#allocation130_spill] sm:$0xff] %v10326_v3  ;;  %v10377_v29 = vadd.f32 %v16241_v19, %v1375_v8  ;;  %v1592_v24 = vpop.f32.mrf.mxu3  ;;  %v1541_v6 = vadd.f32 %v1540_v14, %v9856_v21  ;;  %v16249_v3 = vld [vmem:[#allocation100_spill] sm:$0xff] }
 0x158   : > { %16232 = vst [vmem:[#allocation131_spill] sm:$0xff] %v10331_v52  ;;  %v10364_v35 = vadd.f32 %v10331_v52, %v10068_v31  ;;  %v10368_v18 = vadd.f32 %v16237_v42, %v1674_v58  ;;  %v10373_v38 = vadd.f32 %v16239_v15, %v1374_v61  ;;  %v10382_v31 = vadd.f32 %v16243_v45, %v1380_v43  ;;  %v1558_v19 = vpop.f32.mrf.mxu1 }
 0x159   : > { %16233 = vst [vmem:[#allocation132_spill] sm:$0xff] %v10339_v44  ;;  %v1383_v58 = vmax.f32 %v1357_v12, 0.0  ;;  %v1575_v42 = vadd.f32 %v1574_v33, %v9843_v37  ;;  %v1793_v61 = vadd.f32 %v10151_v48, %v10357_v26  ;;  %v1593_v8 = vadd.f32 %v1592_v24, %v9843_v37 }
 0x15a   : > { %16235 = vst [vmem:[#allocation133_spill] sm:$0xff] %v10357_v26  ;;  %v16245_v43 = vunpack.c.h.bf16 %v10222_v40  ;;  %v1794_v33 = vadd.f32 %v10155_v39, %v10368_v18  ;;  %v1559_v15 = vadd.f32 %v1558_v19, %v9856_v21  ;;  %v10400_v48 = vadd.f32 %v10373_v38, %v10092_v9 }
 0x15b   : > { %16236 = vst [vmem:[#allocation134_spill] sm:$0xff] %v10360_v30  ;;  %v1675_v45 = vmax.f32 %v1575_v42, 0.0  ;;  %v16247_v24 = vunpack.c.l.bf16 %v10241_v59  ;;  %v1676_v1 = vmax.f32 %v1593_v8, 0.0  ;;  %v1681_v52 = vmax.f32 %v1541_v6, 0.0 }
 0x15c   : > { %16238 = vst [vmem:[#allocation135_spill] sm:$0xff] %v10368_v18  ;;  %v10393_v12 = vadd.f32 %v16245_v43, %v1381_v7  ;;  %v10408_v7 = vadd.f32 %v10377_v29, %v16249_v3  ;;  %v16250_v43 = vunpack.c.h.bf16 %v10241_v59  ;;  %v16252_v42 = vunpack.c.l.bf16 %v10285_v34  ;;  %v10465_v3 = vld [vmem:[%s9376_s22 + $0x110] sm:$0xff] }
 0x15d   : > { %16240 = vst [vmem:[#allocation136_spill] sm:$0xff] %v10373_v38  ;;  %v10404_v14 = vadd.f32 %v16247_v24, %v1382_v32  ;;  %v1682_v40 = vmax.f32 %v1559_v15, 0.0  ;;  %v10419_v38 = vld [vmem:[%s9376_s22 + $0x148] sm:$0xff]  ;;  %v10423_v32 = vadd.f32 %v10382_v31, %v10105_v60  ;;  %v10425_v8 = vmul.f32 0.33333334, %v1793_v61 }
 0x15e   : > { %16242 = vst [vmem:[#allocation137_spill] sm:$0xff] %v10377_v29  ;;  %v10412_v39 = vadd.f32 %v16250_v43, %v1383_v58  ;;  %v10416_v19 = vadd.f32 %v16252_v42, %v1675_v45  ;;  %v16255_v6 = vunpack.c.h.bf16 %v10285_v34  ;;  %v16257_v58 = vunpack.c.l.bf16 %v10306_v10  ;;  %v1543_v29 = vpop.f32.mrf.mxu0 }
 0x15f   : > { %16244 = vst [vmem:[#allocation138_spill] sm:$0xff] %v10382_v31  ;;  %v10437_v15 = vadd.f32 %v10393_v12, %v10111_v11  ;;  %v10439_v45 = vmul.f32 0.33333334, %v1794_v33  ;;  %v16259_v61 = vunpack.c.h.bf16 %v10306_v10  ;;  %v1594_v10 = vpop.f32.mrf.mxu3 }
 0x160   : > { %16246 = vst [vmem:[#allocation139_spill] sm:$0xff] %v10393_v12  ;;  %v10429_v24 = vadd.f32 %v16255_v6, %v1676_v1  ;;  %v10433_v43 = vadd.f32 %v16257_v58, %v1681_v52  ;;  %v1795_v42 = vadd.f32 %v10193_v49, %v10416_v19  ;;  %v10449_v1 = vadd.f32 %v10404_v14, %v10128_v55  ;;  %v1576_v6 = vpop.f32.mrf.mxu2  ;;  %v1561_v9 = vpop.f32.mrf.mxu1 }
 0x161   : > { %16248 = vst [vmem:[#allocation140_spill] sm:$0xff] %v10404_v14  ;;  %v10445_v59 = vadd.f32 %v16259_v61, %v1682_v40  ;;  %v10457_v34 = vadd.f32 %v10412_v39, %v10138_v2  ;;  %v1577_v61 = vadd.f32 %v1576_v6, %v9856_v21  ;;  %v1595_v58 = vadd.f32 %v1594_v10, %v9856_v21 }
 0x162   : > { %16251 = vst [vmem:[#allocation141_spill] sm:$0xff] %v10412_v39  ;;  %v1796_v52 = vadd.f32 %v10203_v63, %v10429_v24  ;;  %v10459_v49 = vmul.f32 0.33333334, %v1795_v42  ;;  %v1801_v40 = vadd.f32 %v10207_v23, %v10433_v43  ;;  %v1985_v63 = vsub.f32 %v10357_v26, %v10425_v8 }
 0x163   : > { %16253 = vst [vmem:[#allocation142_spill] sm:$0xff] %v10416_v19  ;;  %v1802_v33 = vadd.f32 %v10211_v16, %v10445_v59  ;;  %v1544_v42 = vadd.f32 %v1543_v29, %v9831_v17  ;;  %v1986_v23 = vsub.f32 %v10368_v18, %v10439_v45  ;;  %v1683_v13 = vmax.f32 %v1577_v61, 0.0  ;;  %v10489_v18 = vld [vmem:[%s9376_s22 + $0x118] sm:$0xff] }
 0x164   : > { %16254 = vst [vmem:[#allocation143_spill] sm:$0xff] %v10419_v38  ;;  %v10475_v6 = vmul.f32 0.33333334, %v1796_v52  ;;  %v1562_v39 = vadd.f32 %v1561_v9, %v9831_v17  ;;  %v1684_v2 = vmax.f32 %v1595_v58, 0.0  ;;  %v1987_v10 = vsub.f32 %v10416_v19, %v10459_v49  ;;  %v10538_v19 = vld [vmem:[%s9376_s22 + $0x130] sm:$0xff] }
 0x165   : > { %16256 = vst [vmem:[#allocation144_spill] sm:$0xff] %v10429_v24  ;;  %v1689_v14 = vmax.f32 %v1544_v42, 0.0  ;;  %v10482_v55 = vmul.f32 0.33333334, %v1801_v40  ;;  %v16263_v29 = vunpack.c.l.bf16 %v10339_v44  ;;  %v10491_v61 = vmul.f32 0.33333334, %v1802_v33 }
 0x166   : > { %16258 = vst [vmem:[#allocation145_spill] sm:$0xff] %v10433_v43  ;;  %v1690_v52 = vmax.f32 %v1562_v39, 0.0  ;;  %v16266_v9 = vunpack.c.h.bf16 %v10339_v44  ;;  %v16268_v42 = vunpack.c.l.bf16 %v10360_v30  ;;  %v10503_v40 = vsub.f32 %v9960_v25, %v10425_v8 }
 0x167   : > { %16260 = vst [vmem:[#allocation146_spill] sm:$0xff] %v10445_v59  ;;  %v10505_v26 = vmul.f32 %v1985_v63, %v1985_v63  ;;  %v1988_v39 = vsub.f32 %v10429_v24, %v10475_v6  ;;  %v16272_v33 = vunpack.c.h.bf16 %v10360_v30  ;;  %v10525_v44 = vsub.f32 %v10433_v43, %v10482_v55  ;;  %v1545_v30 = vpop.f32.mrf.mxu0 }
 0x168   : > { %16261 = vst [vmem:[#allocation147_spill] sm:$0xff] %v10457_v34  ;;  %v10486_v34 = vadd.f32 %v16263_v29, %v1683_v13  ;;  %v10495_v58 = vadd.f32 %v16266_v9, %v1684_v2  ;;  %v10499_v16 = vadd.f32 %v16268_v42, %v1689_v14  ;;  %v10507_v13 = vmul.f32 %v1986_v23, %v1986_v23  ;;  %v1579_v9 = vpop.f32.mrf.mxu2  ;;  %v1563_v24 = vpop.f32.mrf.mxu1 }
 0x169   : > { %16262 = vst [vmem:[#allocation148_spill] sm:$0xff] %v10465_v3  ;;  %v10513_v29 = vadd.f32 %v16272_v33, %v1690_v52  ;;  %v10521_v42 = vmul.f32 %v1987_v10, %v1987_v10  ;;  %v1597_v33 = vpop.f32.mrf.mxu3  ;;  %v10540_v43 = vmul.f32 %v1988_v39, %v1988_v39  ;;  %v2097_v30 = vpack.c.bf16 %v10482_v55, %v10425_v8 }
 0x16a   : > { %16264 = vst [vmem:[#allocation149_spill] sm:$0xff] %v10486_v34  ;;  %v1803_v2 = vadd.f32 %v10256_v28, %v10486_v34  ;;  %v1809_v14 = vadd.f32 %v10272_v47, %v10499_v16  ;;  %v1580_v28 = vadd.f32 %v1579_v9, %v9831_v17  ;;  %v10532_v47 = vsub.f32 %v10445_v59, %v10491_v61  ;;  %v10545_v9 = vld [vmem:[%s9376_s22 + $0x138] sm:$0xff] }
 0x16b   : > { %16265 = vst [vmem:[#allocation150_spill] sm:$0xff] %v10489_v18  ;;  %v1810_v52 = vadd.f32 %v10276_v0, %v10513_v29  ;;  %v1804_v10 = vadd.f32 %v10260_v22, %v10495_v58  ;;  %v1598_v63 = vadd.f32 %v1597_v33, %v9831_v17 }
 0x16c   : > { %16267 = vst [vmem:[#allocation151_spill] sm:$0xff] %v10495_v58  ;;  %v1833_v23 = vmul.f32 0.33333334, %v1809_v14  ;;  %v1691_v25 = vmax.f32 %v1580_v28, 0.0  ;;  %v10547_v59 = vmul.f32 0.33333334, %v1803_v2 }
 0x16d   : > { %16269 = vst [vmem:[#allocation152_spill] sm:$0xff] %v10499_v16  ;;  %v1834_v0 = vmul.f32 0.33333334, %v1810_v52  ;;  %v16279_v52 = vunpack.c.l.bf16 %v10419_v38  ;;  %v1692_v2 = vmax.f32 %v1598_v63, 0.0 }
 0x16e   : > { %16270 = vst [vmem:[#allocation153_spill] sm:$0xff] %v10505_v26  ;;  %v1929_v22 = vsub.f32 %v10226_v5, %v1833_v23  ;;  %v2001_v24 = vsub.f32 %v10499_v16, %v1833_v23  ;;  %v2105_v33 = vpack.c.bf16 %v1833_v23, %v1833_v23 }
 0x16f   : > { %16271 = vst [vmem:[#allocation154_spill] sm:$0xff] %v10507_v13  ;;  %v1858_v14 = vsub.f32 %v9964_v27, %v1834_v0  ;;  %v1930_v39 = vsub.f32 %v10230_v46, %v1834_v0  ;;  %v10557_v28 = vadd.f32 %v16279_v52, %v1691_v25  ;;  %v10569_v25 = vsub.f32 %v10486_v34, %v10547_v59 }
 0x170   : > { %16273 = vst [vmem:[#allocation155_spill] sm:$0xff] %v10513_v29  ;;  %v1953_v26 = vmul.f32 %v1929_v22, %v1929_v22  ;;  %v2002_v52 = vsub.f32 %v10513_v29, %v1834_v0  ;;  %v2106_v27 = vpack.c.bf16 %v1834_v0, %v1834_v0  ;;  %v16285_v29 = vld [vmem:[#allocation72_spill] sm:$0xff] }
 0x171   : > { %16274 = vst [vmem:[#allocation156_spill] sm:$0xff] %v10521_v42  ;;  %v1857_v42 = vsub.f32 %v9954_v50, %v1833_v23  ;;  %v1811_v46 = vadd.f32 %v10289_v54, %v10557_v28  ;;  %v1581_v50 = vpop.f32.mrf.mxu2  ;;  %v1954_v22 = vmul.f32 %v1930_v39, %v1930_v39  ;;  %v1599_v16 = vpop.f32.mrf.mxu3 }
 0x172   : > { %16275 = vst [vmem:[#allocation157_spill] sm:$0xff] %v10532_v47  ;;  %v1610_v47 = vpop.f32.mrf.mxu0  ;;  %v2099_v50 = vpack.c.bf16 %v10547_v59, %v10459_v49  ;;  %v2138_v39 = vand.u32 %v16285_v29, %v2106_v27 }
 0x173   : > { %16276 = vst [vmem:[#allocation158_spill] sm:$0xff] %v10538_v19  ;;  %v1881_v13 = vmul.f32 %v1857_v42, %v1857_v42  ;;  %v1882_v42 = vmul.f32 %v1858_v14, %v1858_v14  ;;  %v1835_v5 = vmul.f32 0.33333334, %v1811_v46  ;;  %v2025_v14 = vmul.f32 %v2001_v24, %v2001_v24 }
 0x174   : > { %16277 = vst [vmem:[#allocation159_spill] sm:$0xff] %v10540_v43  ;;  %v10560_v43 = vmul.f32 0.33333334, %v1804_v10  ;;  %v16282_v10 = vunpack.c.h.bf16 %v10419_v38  ;;  %v2135_v38 = vand.u32 %v16285_v29, %v2105_v33  ;;  %v2026_v33 = vmul.f32 %v2002_v52, %v2002_v52  ;;  %2183 = vmatpush.bf16.msra.mxu1 %v2138_v39  ;;  %v10598_v52 = vld [vmem:[%s16286_s6] sm:$0xff] }
 0x175   : > { %16278 = vst [vmem:[#allocation160_spill] sm:$0xff] %v10545_v9  ;;  %v1977_v23 = vadd.f32 %v1953_v26, %v1881_v13  ;;  %v1859_v46 = vsub.f32 %v10002_v20, %v1835_v5  ;;  %v1931_v16 = vsub.f32 %v10245_v51, %v1835_v5 }
 0x176   : > { %16280 = vst [vmem:[#allocation161_spill] sm:$0xff] %v10557_v28  ;;  %v10574_v63 = vadd.f32 %v16282_v10, %v1692_v2  ;;  %v10578_v54 = vsub.f32 %v10495_v58, %v10560_v43  ;;  %v1628_v2 = vpop.f32.mrf.mxu1  ;;  %2164 = vmatpush.bf16.msra.mxu0 %v2135_v38  ;;  %v1611_v10 = vadd.f32 %v1610_v47, %v9843_v37 }
 0x177   : > { %16281 = vst [vmem:[#allocation162_spill] sm:$0xff] %v10569_v25  ;;  %v1978_v58 = vadd.f32 %v1954_v22, %v1882_v42  ;;  %v2100_v25 = vpack.c.bf16 %v10560_v43, %v10475_v6  ;;  %v1883_v26 = vmul.f32 %v1859_v46, %v1859_v46  ;;  %v1955_v38 = vmul.f32 %v1931_v16, %v1931_v16 }
 0x178   : > { %16283 = vst [vmem:[#allocation163_spill] sm:$0xff] %v10574_v63  ;;  %v1812_v34 = vadd.f32 %v10293_v41, %v10574_v63  ;;  %v1629_v41 = vadd.f32 %v1628_v2, %v9843_v37  ;;  %v10600_v42 = vadd.f32 %v2025_v14, %v1977_v23  ;;  %v16287_v46 = vunpack.c.l.bf16 %v10465_v3 }
 0x179   : > { %16284 = vst [vmem:[#allocation164_spill] sm:$0xff] %v10578_v54  ;;  %v2107_v54 = vpack.c.bf16 %v1835_v5, %v1835_v5  ;;  %v1646_v39 = vpop.f32.mrf.mxu2  ;;  %v2003_v16 = vsub.f32 %v10557_v28, %v1835_v5  ;;  %v1664_v14 = vpop.f32.mrf.mxu3 }
 0x17a   : > { %v1836_v0 = vmul.f32 0.33333334, %v1812_v34  ;;  %v1677_v34 = vmax.f32 %v1611_v10, 0.0  ;;  %v1678_v51 = vmax.f32 %v1629_v41, 0.0  ;;  %2165 = vmatpush.bf16.msra.mxu0 %v2097_v30  ;;  %v1647_v23 = vadd.f32 %v1646_v39, %v9843_v37 }
 0x17b   : > { %v2141_v27 = vand.u32 %v16285_v29, %v2107_v54  ;;  %v16289_v54 = vunpack.c.h.bf16 %v10465_v3  ;;  %v16291_v30 = vpack.c.bf16 %v10491_v61, %v10439_v45  ;;  %v1665_v5 = vadd.f32 %v1664_v14, %v9843_v37 }
 0x17c   : > { %v1860_v13 = vsub.f32 %v10014_v53, %v1836_v0  ;;  %v1932_v24 = vsub.f32 %v10249_v4, %v1836_v0  ;;  %v2108_v47 = vpack.c.bf16 %v1836_v0, %v1836_v0  ;;  %v10604_v53 = vadd.f32 %v16287_v46, %v1677_v34 }
 0x17d   : > { %v10609_v10 = vadd.f32 %v16289_v54, %v1678_v51  ;;  %2202 = vmatpush.bf16.msra.mxu2 %v2141_v27  ;;  %2184 = vmatpush.bf16.msra.mxu1 %v16291_v30  ;;  %v1979_v46 = vadd.f32 %v1955_v38, %v1883_v26  ;;  %v1679_v54 = vmax.f32 %v1647_v23, 0.0  ;;  %v1680_v3 = vmax.f32 %v1665_v5, 0.0  ;;  %v10637_v23 = vld [vmem:[%s9376_s22 + $0x150] sm:$0xff] }
 0x17e   : > { %v1884_v22 = vmul.f32 %v1860_v13, %v1860_v13  ;;  %v1956_v2 = vmul.f32 %v1932_v24, %v1932_v24  ;;  %16288 = vst [vmem:[#allocation72_spill] sm:$0xff] %v10604_v53  ;;  %v2144_v41 = vand.u32 %v16285_v29, %v2108_v47  ;;  %v1612_v13 = vpop.f32.mrf.mxu0  ;;  %v2004_v24 = vsub.f32 %v10574_v63, %v1836_v0  ;;  %v1630_v27 = vpop.f32.mrf.mxu1  ;;  %v16292_v47 = vld [vmem:[#allocation127_spill] sm:$0xff] }
 0x17f   : > { %16290 = vst [vmem:[#allocation165_spill] sm:$0xff] %v10609_v10  ;;  %v1797_v34 = vadd.f32 %v10298_v62, %v10604_v53  ;;  %v1613_v51 = vadd.f32 %v1612_v13, %v9856_v21  ;;  %v1798_v39 = vadd.f32 %v16292_v47, %v10609_v10  ;;  %8239 = vmatmul.msk.bf16.vlgmr.msra.gmra.mxu0 %vm2123_vm3, %v10598_v52  ;;  %v16293_v26 = vunpack.c.l.bf16 %v10489_v18 }
 0x180   : > { %2221 = vmatpush.bf16.msra.mxu3 %v2144_v41  ;;  %v1631_v62 = vadd.f32 %v1630_v27, %v9856_v21  ;;  %v10626_v0 = vadd.f32 %v2026_v33, %v1978_v58  ;;  %v1980_v30 = vadd.f32 %v1956_v2, %v1884_v22  ;;  %v2027_v14 = vmul.f32 %v2003_v16, %v2003_v16 }
 0x181   : > { %v1685_v37 = vmax.f32 %v1613_v51, 0.0  ;;  %v10628_v13 = vmul.f32 0.33333334, %v1797_v34  ;;  %v10632_v38 = vadd.f32 %v16293_v26, %v1679_v54  ;;  %8241 = vmatmul.msk.bf16.vlgmr.msra.gmra.mxu1 %vm2123_vm3, %v10598_v52  ;;  %2203 = vmatpush.bf16.msra.mxu2 %v2099_v50  ;;  %16295 = vst [vmem:[#allocation166_spill] sm:$0xff] %v10637_v23  ;;  %v2028_v27 = vmul.f32 %v2004_v24, %v2004_v24 }
 0x182   : > { %v1686_v41 = vmax.f32 %v1631_v62, 0.0  ;;  %v10639_v58 = vmul.f32 0.33333334, %v1798_v39  ;;  %v16296_v33 = vunpack.c.h.bf16 %v10489_v18  ;;  %v16298_v2 = vunpack.c.l.bf16 %v10538_v19 }
 0x183   : > { %16294 = vst [vmem:[#allocation127_spill] sm:$0xff] %v10632_v38  ;;  %v10649_v34 = vadd.f32 %v2027_v14, %v1979_v46  ;;  %v1799_v5 = vadd.f32 %v10345_v56, %v10632_v38  ;;  %v16300_v50 = vunpack.c.h.bf16 %v10538_v19  ;;  %v10658_v47 = vadd.f32 %v2028_v27, %v1980_v30  ;;  %v1648_v56 = vpop.f32.mrf.mxu2  ;;  %v10675_v14 = vld [vmem:[%s9376_s22 + $0x158] sm:$0xff] }
 0x184   : > { %v10643_v22 = vadd.f32 %v16296_v33, %v1680_v3  ;;  %v10647_v16 = vadd.f32 %v16298_v2, %v1685_v37  ;;  %2222 = vmatpush.bf16.msra.mxu3 %v2100_v25  ;;  %8243 = vmatmul.msk.bf16.vlgmr.msra.gmra.mxu2 %vm2123_vm3, %v10598_v52  ;;  %v1989_v54 = vsub.f32 %v10604_v53, %v10628_v13 }
 0x185   : > { %v10655_v51 = vadd.f32 %v16300_v50, %v1686_v41  ;;  %v10669_v25 = vmul.f32 0.33333334, %v1799_v5  ;;  %v1649_v30 = vadd.f32 %v1648_v56, %v9856_v21  ;;  %16302 = vst [vmem:[#allocation170_spill] sm:$0xff] %v10675_v14 }
 0x186   : > { %16297 = vst [vmem:[#allocation167_spill] sm:$0xff] %v10643_v22  ;;  %v1800_v3 = vadd.f32 %v10349_v57, %v10643_v22  ;;  %v1805_v46 = vadd.f32 %v10353_v36, %v10647_v16  ;;  %v1666_v57 = vpop.f32.mrf.mxu3  ;;  %v1615_v37 = vpop.f32.mrf.mxu0  ;;  %v1990_v36 = vsub.f32 %v10609_v10, %v10639_v58 }
 0x187   : > { %16299 = vst [vmem:[#allocation168_spill] sm:$0xff] %v10647_v16  ;;  %v1806_v62 = vadd.f32 %v10364_v35, %v10655_v51  ;;  %8245 = vmatmul.msk.bf16.vlgmr.msra.gmra.mxu3 %vm2123_vm3, %v10598_v52  ;;  %v1667_v26 = vadd.f32 %v1666_v57, %v9856_v21  ;;  %v1616_v41 = vadd.f32 %v1615_v37, %v9831_v17  ;;  %v1633_v27 = vpop.f32.mrf.mxu1  ;;  %v1687_v5 = vmax.f32 %v1649_v30, 0.0 }
 0x188   : > { %16301 = vst [vmem:[#allocation169_spill] sm:$0xff] %v10655_v51  ;;  %v10684_v35 = vmul.f32 0.33333334, %v1800_v3  ;;  %v10686_v2 = vmul.f32 0.33333334, %v1805_v46  ;;  %v1634_v50 = vadd.f32 %v1633_v27, %v9831_v17  ;;  %v1991_v56 = vsub.f32 %v10632_v38, %v10669_v25 }
 0x189   : > { %v1688_v39 = vmax.f32 %v1667_v26, 0.0  ;;  %v1693_v24 = vmax.f32 %v1616_v41, 0.0  ;;  %v10692_v21 = vmul.f32 %v1989_v54, %v1989_v54  ;;  %v10694_v57 = vmul.f32 0.33333334, %v1806_v62 }
 0x18a   : > { %v16303_v37 = vunpack.c.l.bf16 %v10545_v9  ;;  %v1694_v46 = vmax.f32 %v1634_v50, 0.0  ;;  %v10700_v33 = vmul.f32 %v1990_v36, %v1990_v36  ;;  %v16305_v30 = vunpack.c.h.bf16 %v10545_v9 }
 0x18b   : > { %v16306_v26 = vunpack.c.l.bf16 %v10637_v23  ;;  %v10713_v62 = vsub.f32 %v10643_v22, %v10684_v35  ;;  %v1651_v54 = vpop.f32.mrf.mxu2 }
 0x18c   : > { %v10698_v3 = vadd.f32 %v16303_v37, %v1687_v5  ;;  %v10704_v27 = vadd.f32 %v16305_v30, %v1688_v39  ;;  %v10717_v5 = vsub.f32 %v10647_v16, %v10686_v2  ;;  %v16308_v39 = vunpack.c.h.bf16 %v10637_v23 }
 0x18d   : > { %v10708_v41 = vadd.f32 %v16306_v26, %v1693_v24  ;;  %v10728_v24 = vld [vmem:[%s16286_s6 + $0x8] sm:$0xff]  ;;  %v10730_v37 = vmul.f32 %v1991_v56, %v1991_v56  ;;  %v1652_v18 = vadd.f32 %v1651_v54, %v9831_v17  ;;  %v2074_v54 = vmul.f32 0.5, %v10626_v0 }
 0x18e   : > { %16304 = vst [vmem:[#allocation171_spill] sm:$0xff] %v10698_v3  ;;  %v1807_v36 = vadd.f32 %v10400_v48, %v10698_v3  ;;  %v10723_v50 = vadd.f32 %v16308_v39, %v1694_v46  ;;  %v1808_v30 = vadd.f32 %v10408_v7, %v10704_v27  ;;  %v2073_v48 = vmul.f32 0.5, %v10600_v42  ;;  %v1669_v56 = vpop.f32.mrf.mxu3  ;;  %v1617_v7 = vpop.f32.mrf.mxu0 }
 0x18f   : > { %16307 = vst [vmem:[#allocation172_spill] sm:$0xff] %v10708_v41  ;;  %v1813_v26 = vadd.f32 %v10423_v32, %v10708_v41  ;;  %v10739_v46 = vsub.f32 %v10655_v51, %v10694_v57  ;;  %v1670_v19 = vadd.f32 %v1669_v56, %v9831_v17  ;;  %v1635_v22 = vpop.f32.mrf.mxu1  ;;  %8240 = vmatmul.msk.bf16.gmra.mxu0 %vm2123_vm3, %v10728_v24 }
 0x190   : > { %16309 = vst [vmem:[#allocation173_spill] sm:$0xff] %v10723_v50  ;;  %v1814_v39 = vadd.f32 %v10437_v15, %v10723_v50  ;;  %v10746_v23 = vmul.f32 0.33333334, %v1807_v36  ;;  %v10751_v38 = vmul.f32 0.33333334, %v1808_v30  ;;  %v1695_v15 = vmax.f32 %v1652_v18, 0.0 }
 0x191   : > { %v1837_v32 = vmul.f32 0.33333334, %v1813_v26  ;;  %v2089_v17 = vpack.c.bf16 %v2073_v48, %v2073_v48  ;;  %v16310_v18 = vunpack.c.l.bf16 %v10675_v14  ;;  %8242 = vmatmul.msk.bf16.gmra.mxu1 %vm2123_vm3, %v10728_v24  ;;  %v1696_v48 = vmax.f32 %v1670_v19, 0.0 }
 0x192   : > { %v1838_v51 = vmul.f32 0.33333334, %v1814_v39  ;;  %v10770_v0 = vsub.f32 %v10698_v3, %v10746_v23 }
 0x193   : > { %v1861_v7 = vsub.f32 %v10105_v60, %v1837_v32  ;;  %v1933_v36 = vsub.f32 %v10382_v31, %v1837_v32  ;;  %v2005_v26 = vsub.f32 %v10708_v41, %v1837_v32  ;;  %v10764_v39 = vadd.f32 %v16310_v18, %v1695_v15  ;;  %v1653_v3 = vpop.f32.mrf.mxu2 }
 0x194   : > { %v1862_v56 = vsub.f32 %v10111_v11, %v1838_v51  ;;  %v1934_v22 = vsub.f32 %v10393_v12, %v1838_v51  ;;  %v2006_v30 = vsub.f32 %v10723_v50, %v1838_v51  ;;  %v2090_v50 = vpack.c.bf16 %v2074_v54, %v2074_v54  ;;  %8244 = vmatmul.msk.bf16.gmra.mxu2 %vm2123_vm3, %v10728_v24 }
 0x195   : > { %16311 = vst [vmem:[#allocation174_spill] sm:$0xff] %v10764_v39  ;;  %v1885_v42 = vmul.f32 %v1861_v7, %v1861_v7  ;;  %v1957_v9 = vmul.f32 %v1933_v36, %v1933_v36  ;;  %v1815_v53 = vadd.f32 %v10449_v1, %v10764_v39  ;;  %v2029_v63 = vmul.f32 %v2005_v26, %v2005_v26  ;;  %v16314_v1 = vld [vmem:[#allocation147_spill] sm:$0xff] }
 0x196   : > { %v1886_v10 = vmul.f32 %v1862_v56, %v1862_v56  ;;  %v1958_v16 = vmul.f32 %v1934_v22, %v1934_v22  ;;  %v16312_v15 = vunpack.c.h.bf16 %v10675_v14  ;;  %v2109_v28 = vpack.c.bf16 %v1837_v32, %v1837_v32  ;;  %v1671_v56 = vpop.f32.mrf.mxu3  ;;  %v16316_v32 = vld [vmem:[#allocation140_spill] sm:$0xff] }
 0x197   : > { %v1981_v41 = vadd.f32 %v1957_v9, %v1885_v42  ;;  %v2030_v36 = vmul.f32 %v2006_v30, %v2006_v30  ;;  %v1839_v19 = vmul.f32 0.33333334, %v1815_v53  ;;  %v2110_v22 = vpack.c.bf16 %v1838_v51, %v1838_v51  ;;  %8246 = vmatmul.msk.bf16.gmra.mxu3 %vm2123_vm3, %v10728_v24 }
 0x198   : > { %v10776_v18 = vadd.f32 %v16312_v15, %v1696_v48  ;;  %v1982_v7 = vadd.f32 %v1958_v16, %v1886_v10  ;;  %v2147_v9 = vand.u32 %v16285_v29, %v2109_v28  ;;  %v2327_v42 = vand.u32 %v16285_v29, %v2089_v17  ;;  %v16315_v48 = vld [vmem:[#allocation105_spill] sm:$0xff]  ;;  %v16317_v28 = vld [vmem:[#allocation86_spill] sm:$0xff] }
 0x199   : > { %v2053_v12 = vadd.f32 %v2029_v63, %v1981_v41  ;;  %v1863_v3 = vsub.f32 %v16315_v48, %v1839_v19  ;;  %v1935_v10 = vsub.f32 %v16316_v32, %v1839_v19  ;;  %v2007_v53 = vsub.f32 %v10764_v39, %v1839_v19 }
 0x19a   : > { %16313 = vst [vmem:[#allocation175_spill] sm:$0xff] %v10776_v18  ;;  %v1816_v54 = vadd.f32 %v16314_v1, %v10776_v18  ;;  %v2054_v26 = vadd.f32 %v2030_v36, %v1982_v7  ;;  %2240 = vmatpush.bf16.msrb.mxu0 %v2147_v9  ;;  %v2150_v63 = vand.u32 %v16285_v29, %v2110_v22  ;;  %v16318_v7 = vld [vmem:[#allocation106_spill] sm:$0xff]  ;;  %v16319_v1 = vld [vmem:[#allocation141_spill] sm:$0xff] }
 0x19b   : > { %v2330_v51 = vand.u32 %v16285_v29, %v2090_v50  ;;  %v2111_v41 = vpack.c.bf16 %v1839_v19, %v1839_v19  ;;  %v1887_v30 = vmul.f32 %v1863_v3, %v1863_v3  ;;  %v1959_v15 = vmul.f32 %v1935_v10, %v1935_v10 }
 0x19c   : > { %v1840_v16 = vmul.f32 0.33333334, %v1816_v54  ;;  %v2031_v56 = vmul.f32 %v2007_v53, %v2007_v53  ;;  %v1849_v17 = vsub.f32 %v16317_v28, %v10482_v55  ;;  %2259 = vmatpush.bf16.msrb.mxu1 %v2150_v63  ;;  %v1865_v50 = vmul.f32 %v10503_v40, %v10503_v40  ;;  %v16322_v40 = vld [vmem:[#allocation110_spill] sm:$0xff] }
 0x19d   : > { %v2153_v54 = vand.u32 %v16285_v29, %v2111_v41  ;;  %v1983_v9 = vadd.f32 %v1959_v15, %v1887_v30  ;;  %v16320_v39 = vpack.c.bf16 %v10686_v2, %v10628_v13  ;;  %v1921_v30 = vsub.f32 %v16322_v40, %v10482_v55  ;;  %v16326_v55 = vld [vmem:[#allocation103_spill] sm:$0xff] }
 0x19e   : > { %v1864_v36 = vsub.f32 %v16318_v7, %v1840_v16  ;;  %v1936_v14 = vsub.f32 %v16319_v1, %v1840_v16  ;;  %v2008_v32 = vsub.f32 %v10776_v18, %v1840_v16  ;;  %v2112_v22 = vpack.c.bf16 %v1840_v16, %v1840_v16  ;;  %v16321_v16 = vld [vmem:[#allocation102_spill] sm:$0xff] }
 0x19f   : > { %v1873_v19 = vmul.f32 %v1849_v17, %v1849_v17  ;;  %2241 = vmatpush.bf16.msrb.mxu0 %v16320_v39  ;;  %2278 = vmatpush.bf16.msrb.mxu2 %v2153_v54  ;;  %v2077_v1 = vmul.f32 0.5, %v2053_v12  ;;  %v10802_v31 = vadd.f32 %v2031_v56, %v1983_v9  ;;  %v1913_v41 = vsub.f32 %v16321_v16, %v10425_v8  ;;  %v16324_v12 = vld [vmem:[#allocation84_spill] sm:$0xff] }
 0x1a0   : > { %v1888_v3 = vmul.f32 %v1864_v36, %v1864_v36  ;;  %v1960_v10 = vmul.f32 %v1936_v14, %v1936_v14  ;;  %v2032_v53 = vmul.f32 %v2008_v32, %v2008_v32  ;;  %v2156_v63 = vand.u32 %v16285_v29, %v2112_v22 }
 0x1a1   : > { %v16323_v14 = vpack.c.bf16 %v10694_v57, %v10639_v58  ;;  %v2017_v39 = vmul.f32 %v10525_v44, %v10525_v44  ;;  %v1842_v32 = vsub.f32 %v16324_v12, %v10439_v45  ;;  %v1937_v8 = vmul.f32 %v1913_v41, %v1913_v41 }
 0x1a2   : > { %v1984_v15 = vadd.f32 %v1960_v10, %v1888_v3  ;;  %2297 = vmatpush.bf16.msrb.mxu3 %v2156_v63  ;;  %v1945_v17 = vmul.f32 %v1921_v30, %v1921_v30  ;;  %v1914_v36 = vsub.f32 %v16326_v55, %v10439_v45  ;;  %v2078_v54 = vmul.f32 0.5, %v2054_v26  ;;  %8247 = vmatmul.msk.bf16.vlgmr.msrb.gmra.mxu0 %vm2123_vm3, %v10598_v52  ;;  %v16327_v3 = vld [vmem:[#allocation112_spill] sm:$0xff]  ;;  %v16328_v30 = vld [vmem:[#allocation157_spill] sm:$0xff] }
 0x1a3   : > { %2356 = vmatpush.bf16.msra.mxu0 %v2327_v42  ;;  %2260 = vmatpush.bf16.msrb.mxu1 %v16323_v14  ;;  %v16325_v42 = vld [vmem:[#allocation87_spill] sm:$0xff]  ;;  %v1866_v44 = vmul.f32 %v1842_v32, %v1842_v32  ;;  %v1922_v10 = vsub.f32 %v16327_v3, %v10491_v61  ;;  %v2018_v45 = vmul.f32 %v16328_v30, %v16328_v30  ;;  %v16329_v32 = vld [vmem:[#allocation153_spill] sm:$0xff] }
 0x1a4   : > { %v1850_v56 = vsub.f32 %v16325_v42, %v10491_v61  ;;  %v10820_v9 = vadd.f32 %v2032_v53, %v1984_v15  ;;  %v1969_v63 = vadd.f32 %v1945_v17, %v1873_v19  ;;  %v1938_v41 = vmul.f32 %v1914_v36, %v1914_v36 }
 0x1a5   : > { %v1946_v26 = vmul.f32 %v1922_v10, %v1922_v10  ;;  %v2103_v53 = vpack.c.bf16 %v10746_v23, %v10669_v25  ;;  %v2104_v15 = vpack.c.bf16 %v10751_v38, %v10684_v35  ;;  %v2093_v14 = vpack.c.bf16 %v2077_v1, %v2077_v1  ;;  %v16330_v10 = vld [vmem:[#allocation154_spill] sm:$0xff] }
 0x1a6   : > { %v1874_v22 = vmul.f32 %v1850_v56, %v1850_v56  ;;  %8249 = vmatmul.msk.bf16.vlgmr.msrb.gmra.mxu1 %vm2123_vm3, %v10598_v52  ;;  %v2041_v61 = vadd.f32 %v2017_v39, %v1969_v63  ;;  %v1962_v18 = vadd.f32 %v1938_v41, %v1866_v44  ;;  %v2094_v3 = vpack.c.bf16 %v2078_v54, %v2078_v54  ;;  %v16331_v54 = vld [vmem:[#allocation90_spill] sm:$0xff] }
 0x1a7   : > { %2375 = vmatpush.bf16.msra.mxu1 %v2330_v51  ;;  %v1961_v51 = vadd.f32 %v1937_v8, %v1865_v50  ;;  %2279 = vmatpush.bf16.msrb.mxu2 %v2103_v53  ;;  %v2339_v50 = vand.u32 %v16285_v29, %v2093_v14  ;;  %v2075_v19 = vmul.f32 0.5, %v10649_v34  ;;  %v2076_v8 = vmul.f32 0.5, %v10658_v47  ;;  %v16332_v34 = vld [vmem:[#allocation95_spill] sm:$0xff] }
 0x1a8   : > { %v1970_v55 = vadd.f32 %v1946_v26, %v1874_v22  ;;  %2298 = vmatpush.bf16.msrb.mxu3 %v2104_v15  ;;  %v2065_v36 = vmul.f32 0.5, %v2041_v61  ;;  %v2034_v30 = vadd.f32 %v16330_v10, %v1962_v18  ;;  %v2342_v1 = vand.u32 %v16285_v29, %v2094_v3  ;;  %v16333_v18 = vld [vmem:[#allocation122_spill] sm:$0xff]  ;;  %v16336_v61 = vld [vmem:[#allocation97_spill] sm:$0xff] }
 0x1a9   : > { %v2033_v56 = vadd.f32 %v16329_v32, %v1961_v51  ;;  %v2091_v51 = vpack.c.bf16 %v2075_v19, %v2075_v19  ;;  %v2092_v39 = vpack.c.bf16 %v2076_v8, %v2076_v8  ;;  %v1845_v44 = vsub.f32 %v16331_v54, %v10628_v13  ;;  %v16334_v15 = vld [vmem:[#allocation130_spill] sm:$0xff] }
 0x1aa   : > { %v2042_v4 = vadd.f32 %v2018_v45, %v1970_v55  ;;  %v2058_v63 = vmul.f32 0.5, %v2034_v30  ;;  %8251 = vmatmul.msk.bf16.vlgmr.msrb.gmra.mxu2 %vm2123_vm3, %v10598_v52  ;;  %v1853_v47 = vsub.f32 %v16332_v34, %v10686_v2  ;;  %v1917_v3 = vsub.f32 %v16333_v18, %v10628_v13  ;;  %v16335_v13 = vld [vmem:[#allocation91_spill] sm:$0xff] }
 0x1ab   : > { %v2057_v17 = vmul.f32 0.5, %v2033_v56  ;;  %8253 = vmatmul.msk.bf16.vlgmr.msrb.gmra.mxu3 %vm2123_vm3, %v10598_v52  ;;  %v2333_v41 = vand.u32 %v16285_v29, %v2091_v51  ;;  %v2336_v45 = vand.u32 %v16285_v29, %v2092_v39  ;;  %v1869_v26 = vmul.f32 %v1845_v44, %v1845_v44  ;;  %v16338_v30 = vld [vmem:[#allocation131_spill] sm:$0xff]  ;;  %v16339_v44 = vld [vmem:[#allocation73_spill] sm:$0xff] }
 0x1ac   : > { %v2066_v55 = vmul.f32 0.5, %v2042_v4  ;;  %v1877_v53 = vmul.f32 %v1853_v47, %v1853_v47  ;;  %v1925_v14 = vsub.f32 %v16334_v15, %v10686_v2  ;;  %v1941_v32 = vmul.f32 %v1917_v3, %v1917_v3  ;;  %v16337_v2 = vld [vmem:[#allocation124_spill] sm:$0xff] }
 0x1ad   : > { %v2081_v22 = vpack.c.bf16 %v2065_v36, %v2057_v17  ;;  %v2021_v52 = vmul.f32 %v10717_v5, %v10717_v5  ;;  %2394 = vmatpush.bf16.msra.mxu2 %v2333_v41  ;;  %v1846_v4 = vsub.f32 %v16335_v13, %v10639_v58  ;;  %v1854_v19 = vsub.f32 %v16336_v61, %v10694_v57 }
 0x1ae   : > { %v2082_v56 = vpack.c.bf16 %v2066_v55, %v2058_v63  ;;  %v2079_v8 = vmul.f32 0.5, %v10802_v31  ;;  %2413 = vmatpush.bf16.msra.mxu3 %v2336_v45  ;;  %v1949_v17 = vmul.f32 %v1925_v14, %v1925_v14  ;;  %v1965_v36 = vadd.f32 %v1941_v32, %v1869_v26  ;;  %v16342_v26 = vld [vmem:[#allocation114_spill] sm:$0xff] }
 0x1af   : > { %2357 = vmatpush.bf16.msra.mxu0 %v2081_v22  ;;  %v1918_v10 = vsub.f32 %v16337_v2, %v10639_v58  ;;  %v1926_v5 = vsub.f32 %v16338_v30, %v10694_v57  ;;  %v1878_v51 = vmul.f32 %v1854_v19, %v1854_v19  ;;  %v2022_v39 = vmul.f32 %v10739_v46, %v10739_v46  ;;  %v16340_v58 = vld [vmem:[#allocation77_spill] sm:$0xff]  ;;  %v16341_v57 = vld [vmem:[#allocation107_spill] sm:$0xff] }
 0x1b0   : > { %2376 = vmatpush.bf16.msra.mxu1 %v2082_v56  ;;  %v1843_v22 = vsub.f32 %v16339_v44, %v10459_v49  ;;  %v1973_v31 = vadd.f32 %v1949_v17, %v1877_v53  ;;  %v2037_v63 = vadd.f32 %v10692_v21, %v1965_v36  ;;  %v1851_v55 = vsub.f32 %v16340_v58, %v10547_v59  ;;  %v16343_v21 = vld [vmem:[#allocation162_spill] sm:$0xff] }
 0x1b1   : > { %v1942_v47 = vmul.f32 %v1918_v10, %v1918_v10  ;;  %v1950_v3 = vmul.f32 %v1926_v5, %v1926_v5  ;;  %v1915_v45 = vsub.f32 %v16341_v57, %v10459_v49  ;;  %v1923_v14 = vsub.f32 %v16342_v26, %v10547_v59  ;;  %v16344_v5 = vld [vmem:[#allocation74_spill] sm:$0xff] }
 0x1b2   : > { %v1867_v41 = vmul.f32 %v1843_v22, %v1843_v22  ;;  %v2045_v46 = vadd.f32 %v2021_v52, %v1973_v31  ;;  %v2061_v32 = vmul.f32 0.5, %v2037_v63  ;;  %v2019_v17 = vmul.f32 %v16343_v21, %v16343_v21  ;;  %8248 = vmatmul.msk.bf16.gmra.mxu0 %vm2123_vm3, %v10728_v24  ;;  %v16346_v31 = vld [vmem:[#allocation109_spill] sm:$0xff] }
 0x1b3   : > { %2432 = vmatpush.bf16.msrb.mxu0 %v2339_v50  ;;  %v1870_v50 = vmul.f32 %v1846_v4, %v1846_v4  ;;  %v1974_v4 = vadd.f32 %v1950_v3, %v1878_v51  ;;  %v1939_v53 = vmul.f32 %v1915_v45, %v1915_v45  ;;  %v1947_v19 = vmul.f32 %v1923_v14, %v1923_v14  ;;  %v16345_v51 = vld [vmem:[#allocation79_spill] sm:$0xff] }
 0x1b4   : > { %2451 = vmatpush.bf16.msrb.mxu1 %v2342_v1  ;;  %v1875_v1 = vmul.f32 %v1851_v55, %v1851_v55  ;;  %v2069_v36 = vmul.f32 0.5, %v2045_v46  ;;  %v1844_v59 = vsub.f32 %v16344_v5, %v10475_v6  ;;  %v1852_v22 = vsub.f32 %v16345_v51, %v10560_v43 }
 0x1b5   : > { %v1966_v56 = vadd.f32 %v1942_v47, %v1870_v50  ;;  %v2046_v49 = vadd.f32 %v2022_v39, %v1974_v4  ;;  %v1963_v52 = vadd.f32 %v1939_v53, %v1867_v41  ;;  %v1916_v63 = vsub.f32 %v16346_v31, %v10475_v6  ;;  %v16349_v53 = vld [vmem:[#allocation164_spill] sm:$0xff] }
 0x1b6   : > { %8250 = vmatmul.msk.bf16.gmra.mxu1 %vm2123_vm3, %v10728_v24  ;;  %v1971_v50 = vadd.f32 %v1947_v19, %v1875_v1  ;;  %v2085_v47 = vpack.c.bf16 %v2069_v36, %v2061_v32  ;;  %v1868_v45 = vmul.f32 %v1844_v59, %v1844_v59  ;;  %v1876_v46 = vmul.f32 %v1852_v22, %v1852_v22 }
 0x1b7   : > { %v2038_v10 = vadd.f32 %v10700_v33, %v1966_v56  ;;  %v2070_v55 = vmul.f32 0.5, %v2046_v49  ;;  %v16347_v33 = vld [vmem:[#allocation156_spill] sm:$0xff]  ;;  %v16348_v56 = vld [vmem:[#allocation115_spill] sm:$0xff]  ;;  %v1940_v1 = vmul.f32 %v1916_v63, %v1916_v63  ;;  %v2020_v19 = vmul.f32 %v16349_v53, %v16349_v53  ;;  %v16350_v49 = vld [vmem:[#allocation93_spill] sm:$0xff] }
 0x1b8   : > { %v2035_v39 = vadd.f32 %v16347_v33, %v1963_v52  ;;  %v2043_v14 = vadd.f32 %v2019_v17, %v1971_v50  ;;  %v1924_v4 = vsub.f32 %v16348_v56, %v10560_v43  ;;  %2433 = vmatpush.bf16.msrb.mxu0 %v2085_v47  ;;  %v2095_v21 = vpack.c.bf16 %v2079_v8, %v2079_v8  ;;  %v16351_v43 = vld [vmem:[#allocation99_spill] sm:$0xff]  ;;  %v16352_v8 = vld [vmem:[#allocation128_spill] sm:$0xff] }
 0x1b9   : > { %v2062_v3 = vmul.f32 0.5, %v2038_v10  ;;  %v2080_v36 = vmul.f32 0.5, %v10820_v9  ;;  %v1964_v10 = vadd.f32 %v1940_v1, %v1868_v45  ;;  %v1847_v59 = vsub.f32 %v16350_v49, %v10669_v25  ;;  %v16353_v9 = vld [vmem:[#allocation159_spill] sm:$0xff]  ;;  %v16354_v33 = vld [vmem:[#allocation136_spill] sm:$0xff] }
 0x1ba   : > { %v2059_v30 = vmul.f32 0.5, %v2035_v39  ;;  %v2067_v6 = vmul.f32 0.5, %v2043_v14  ;;  %v1948_v32 = vmul.f32 %v1924_v4, %v1924_v4  ;;  %v2345_v17 = vand.u32 %v16285_v29, %v2095_v21  ;;  %8252 = vmatmul.msk.bf16.gmra.mxu2 %vm2123_vm3, %v10728_v24 }
 0x1bb   : > { %v2086_v41 = vpack.c.bf16 %v2070_v55, %v2062_v3  ;;  %v1855_v52 = vsub.f32 %v16351_v43, %v10746_v23  ;;  %v2096_v63 = vpack.c.bf16 %v2080_v36, %v2080_v36  ;;  %v1919_v47 = vsub.f32 %v16352_v8, %v10669_v25  ;;  %8254 = vmatmul.msk.bf16.gmra.mxu3 %vm2123_vm3, %v10728_v24  ;;  %v16356_v24 = vld [vmem:[#allocation100_spill] sm:$0xff]  ;;  %v16357_v36 = vld [vmem:[#allocation129_spill] sm:$0xff] }
 0x1bc   : > { %v2083_v50 = vpack.c.bf16 %v2067_v6, %v2059_v30  ;;  %v1972_v22 = vadd.f32 %v1948_v32, %v1876_v46  ;;  %v2036_v3 = vadd.f32 %v16353_v9, %v1964_v10  ;;  %v1871_v55 = vmul.f32 %v1847_v59, %v1847_v59  ;;  %v700_v30 = vld [vmem:[%s16107_s7 + $0x18] sm:$0xff] }
 0x1bd   : > { %2452 = vmatpush.bf16.msrb.mxu1 %v2086_v41  ;;  %v1879_v45 = vmul.f32 %v1855_v52, %v1855_v52  ;;  %v1927_v39 = vsub.f32 %v16354_v33, %v10746_v23  ;;  %v2000_v25 = vsub.f32 %v10704_v27, %v10751_v38  ;;  %v2348_v46 = vand.u32 %v16285_v29, %v2096_v63  ;;  %v16355_v23 = vld [vmem:[#allocation94_spill] sm:$0xff] }
 0x1be   : > { %2395 = vmatpush.bf16.msra.mxu2 %v2083_v50  ;;  %v2044_v14 = vadd.f32 %v2020_v19, %v1972_v22  ;;  %v1943_v4 = vmul.f32 %v1919_v47, %v1919_v47  ;;  %v2060_v41 = vmul.f32 0.5, %v2036_v3  ;;  %v1848_v53 = vsub.f32 %v16355_v23, %v10684_v35  ;;  %2519 = vperm.xlu2 %8910, %v700_v30   ;;  %v16358_v19 = vld [vmem:[#allocation137_spill] sm:$0xff] }
 0x1bf   : > { %v1951_v1 = vmul.f32 %v1927_v39, %v1927_v39  ;;  %v1856_v21 = vsub.f32 %v16356_v24, %v10751_v38  ;;  %v1920_v10 = vsub.f32 %v16357_v36, %v10684_v35  ;;  %v1928_v59 = vsub.f32 %v16358_v19, %v10751_v38  ;;  %v16360_v39 = vld [vmem:[#allocation80_spill] sm:$0xff] }
 0x1c0   : > { %v2068_v6 = vmul.f32 0.5, %v2044_v14  ;;  %v1967_v32 = vadd.f32 %v1943_v4, %v1871_v55  ;;  %v2023_v50 = vmul.f32 %v10770_v0, %v10770_v0  ;;  %v1872_v22 = vmul.f32 %v1848_v53, %v1848_v53 }
 0x1c1   : > { %v1975_v52 = vadd.f32 %v1951_v1, %v1879_v45  ;;  %v1880_v63 = vmul.f32 %v1856_v21, %v1856_v21  ;;  %v1944_v3 = vmul.f32 %v1920_v10, %v1920_v10  ;;  %v1952_v55 = vmul.f32 %v1928_v59, %v1928_v59  ;;  %v16362_v45 = vld [vmem:[#allocation82_spill] sm:$0xff]  ;;  %v16364_v10 = vld [vmem:[#allocation88_spill] sm:$0xff] }
 0x1c2   : > { %2470 = vmatpush.bf16.msrb.mxu2 %v2345_v17  ;;  %v10926_v17 = vld [vmem:[%s16359_s5] sm:$0xff]  ;;  %v2084_v47 = vpack.c.bf16 %v2068_v6, %v2060_v41  ;;  %v2039_v9 = vadd.f32 %v10730_v37, %v1967_v32  ;;  %v2016_v35 = vmul.f32 %v10713_v62, %v10713_v62  ;;  %v16361_v30 = vpack.c.bf16 %v16360_v39, %v16360_v39 }
 0x1c3   : > { %v2047_v38 = vadd.f32 %v2023_v50, %v1975_v52  ;;  %v16363_v0 = vpack.c.bf16 %v16362_v45, %v16362_v45  ;;  %v1968_v41 = vadd.f32 %v1944_v3, %v1872_v22  ;;  %v1976_v1 = vadd.f32 %v1952_v55, %v1880_v63  ;;  %8263 = vmatmul.msk.bf16.vlgmr.msra.gmra.mxu0 %vm2123_vm3, %v10926_v17  ;;  %v16365_v22 = vld [vmem:[#allocation81_spill] sm:$0xff] }
 0x1c4   : > { %v2587_v14 = vand.u32 %v16361_v30, %v16285_v29  ;;  %2414 = vmatpush.bf16.msra.mxu3 %v2084_v47  ;;  %v2024_v37 = vmul.f32 %v2000_v25, %v2000_v25  ;;  %v2063_v62 = vmul.f32 0.5, %v2039_v9  ;;  %v2564_v32 = vpack.c.bf16 %v10002_v20, %v10002_v20  ;;  %v697_v20 = vld [vmem:[%s16107_s7] sm:$0xff]  ;;  %v8773_v3 = vld [vmem:[%s16359_s5 + $0x8] sm:$0xff] }
 0x1c5   : > { %v2590_v4 = vand.u32 %v16363_v0, %v16285_v29  ;;  %v2071_v53 = vmul.f32 0.5, %v2047_v38  ;;  %v2040_v21 = vadd.f32 %v2016_v35, %v1968_v41  ;;  %v2565_v59 = vpack.c.bf16 %v16364_v10, %v16364_v10  ;;  %v16369_v30 = vld [vmem:[#allocation120_spill] sm:$0xff]  ;;  %v16370_v0 = vld [vmem:[#allocation121_spill] sm:$0xff]  ;;  %v16371_v41 = vld [vmem:[#allocation103_spill] sm:$0xff] }
 0x1c6   : > { %8265 = vmatmul.msk.bf16.vlgmr.msra.gmra.mxu1 %vm2123_vm3, %v10926_v17  ;;  %v2048_v6 = vadd.f32 %v2024_v37, %v1976_v1  ;;  %2616 = vmatpush.bf16.msra.mxu0 %v2587_v14  ;;  %v2555_v63 = vpack.c.bf16 %v16325_v42, %v16324_v12  ;;  %v2593_v9 = vand.u32 %v2564_v32, %v16285_v29  ;;  %v16372_v1 = vld [vmem:[#allocation112_spill] sm:$0xff] }
 0x1c7   : > { %2635 = vmatpush.bf16.msra.mxu1 %v2590_v4  ;;  %v2087_v25 = vpack.c.bf16 %v2071_v53, %v2063_v62  ;;  %v2064_v52 = vmul.f32 0.5, %v2040_v21  ;;  %2504 = vperm.xlu2 %8910, %v697_v20   ;;  %v2556_v12 = vpack.c.bf16 %v16340_v58, %v16339_v44  ;;  %v2557_v42 = vpack.c.bf16 %v16345_v51, %v16344_v5 }
 0x1c8   : > { %2489 = vmatpush.bf16.msrb.mxu3 %v2348_v46  ;;  %v2072_v50 = vmul.f32 0.5, %v2048_v6  ;;  %v2554_v46 = vpack.c.bf16 %v16317_v28, %v16365_v22  ;;  %v2596_v28 = vand.u32 %v2565_v59, %v16285_v29  ;;  %v2566_v44 = vpack.c.bf16 %v10105_v60, %v10105_v60 }
 0x1c9   : > { %2471 = vmatpush.bf16.msrb.mxu2 %v2087_v25  ;;  %v2567_v58 = vpack.c.bf16 %v10111_v11, %v10111_v11  ;;  %v2568_v55 = vpack.c.bf16 %v16315_v48, %v16315_v48  ;;  %v2558_v60 = vpack.c.bf16 %v16332_v34, %v16331_v54  ;;  %v2569_v11 = vpack.c.bf16 %v16318_v7, %v16318_v7  ;;  %v16366_v54 = vld [vmem:[#allocation117_spill] sm:$0xff] }
 0x1ca   : > { %v2088_v47 = vpack.c.bf16 %v2072_v50, %v2064_v52  ;;  %2617 = vmatpush.bf16.msra.mxu0 %v2554_v46  ;;  %8267 = vmatmul.msk.bf16.vlgmr.msra.gmra.mxu2 %vm2123_vm3, %v10926_v17  ;;  %v2599_v5 = vand.u32 %v2566_v44, %v16285_v29  ;;  %v2559_v35 = vpack.c.bf16 %v16336_v61, %v16335_v13  ;;  %v16367_v13 = vld [vmem:[#allocation118_spill] sm:$0xff]  ;;  %v11055_v25 = vld [vmem:[%s16368_s27 + $0x8] sm:$0xff] }
 0x1cb   : > { %2636 = vmatpush.bf16.msra.mxu1 %v2555_v63  ;;  %8269 = vmatmul.msk.bf16.vlgmr.msra.gmra.mxu3 %vm2123_vm3, %v10926_v17  ;;  %v2602_v51 = vand.u32 %v2567_v58, %v16285_v29  ;;  %v2605_v38 = vand.u32 %v2568_v55, %v16285_v29  ;;  %v2608_v39 = vand.u32 %v2569_v11, %v16285_v29  ;;  %v16373_v46 = vld [vmem:[#allocation138_spill] sm:$0xff]  ;;  %v16375_v58 = vld [vmem:[#allocation140_spill] sm:$0xff]  ;;  %v16376_v55 = vld [vmem:[#allocation141_spill] sm:$0xff] }
 0x1cc   : > { %2490 = vmatpush.bf16.msrb.mxu3 %v2088_v47  ;;  %v2560_v48 = vpack.c.bf16 %v16351_v43, %v16350_v49  ;;  %v2561_v7 = vpack.c.bf16 %v16356_v24, %v16355_v23  ;;  %v2802_v34 = vpack.c.bf16 %v16366_v54, %v16366_v54  ;;  %v2803_v61 = vpack.c.bf16 %v16367_v13, %v16367_v13  ;;  %v11014_v43 = vld [vmem:[%s16368_s27] sm:$0xff] }
 0x1cd   : > { %2654 = vmatpush.bf16.msra.mxu2 %v2593_v9  ;;  %v2804_v14 = vpack.c.bf16 %v16369_v30, %v16369_v30  ;;  %v2794_v45 = vpack.c.bf16 %v16322_v40, %v16321_v16  ;;  %v2805_v4 = vpack.c.bf16 %v16370_v0, %v16370_v0  ;;  %v2795_v37 = vpack.c.bf16 %v16372_v1, %v16371_v41  ;;  %v16374_v47 = vld [vmem:[#allocation139_spill] sm:$0xff] }
 0x1ce   : > { %v2811_v24 = vand.u32 %v2802_v34, %v16285_v29  ;;  %v2796_v32 = vpack.c.bf16 %v16342_v26, %v16341_v57  ;;  %v2797_v10 = vpack.c.bf16 %v16348_v56, %v16346_v31  ;;  %v2806_v63 = vpack.c.bf16 %v16373_v46, %v16373_v46  ;;  %v16377_v11 = vld [vmem:[#allocation131_spill] sm:$0xff]  ;;  %v16382_v46 = vld [vmem:[#allocation145_spill] sm:$0xff] }
 0x1cf   : > { %v2817_v21 = vand.u32 %v2804_v14, %v16285_v29  ;;  %v2820_v16 = vand.u32 %v2805_v4, %v16285_v29  ;;  %v2807_v20 = vpack.c.bf16 %v16374_v47, %v16374_v47  ;;  %v2801_v54 = vpack.c.bf16 %v16358_v19, %v16357_v36  ;;  %v16378_v36 = vld [vmem:[#allocation152_spill] sm:$0xff]  ;;  %v16379_v30 = vld [vmem:[#allocation155_spill] sm:$0xff] }
 0x1d0   : > { %2673 = vmatpush.bf16.msra.mxu3 %v2596_v28  ;;  %v3026_v19 = vpack.c.bf16 %v16378_v36, %v16378_v36  ;;  %v3027_v14 = vpack.c.bf16 %v16379_v30, %v16379_v30  ;;  %v16383_v47 = vld [vmem:[#allocation163_spill] sm:$0xff]  ;;  %v16388_v30 = vld [vmem:[#allocation144_spill] sm:$0xff] }
 0x1d1   : > { %2655 = vmatpush.bf16.msra.mxu2 %v2556_v12  ;;  %v2823_v12 = vand.u32 %v2806_v63, %v16285_v29 }
 0x1d3   : > { %8264 = vmatmul.msk.bf16.gmra.mxu0 %vm2123_vm3, %v8773_v3 }
 0x1d4   : > { %2674 = vmatpush.bf16.msra.mxu3 %v2557_v42  ;;  %v2826_v42 = vand.u32 %v2807_v20, %v16285_v29  ;;  %v3029_v20 = vpack.c.bf16 %v16383_v47, %v16383_v47 }
 0x1d6   : > { %8266 = vmatmul.msk.bf16.gmra.mxu1 %vm2123_vm3, %v8773_v3 }
 0x1da   : > { %8268 = vmatmul.msk.bf16.gmra.mxu2 %vm2123_vm3, %v8773_v3 }
 0x1db   : > { %8270 = vmatmul.msk.bf16.gmra.mxu3 %vm2123_vm3, %v8773_v3 }
 0x1e3   : > { %8271 = vmatmul.msk.bf16.vlgmr.msrb.gmra.mxu0 %vm2123_vm3, %v10926_v17 }
 0x1e4   : > { %2692 = vmatpush.bf16.msrb.mxu0 %v2599_v5  ;;  %v2808_v5 = vpack.c.bf16 %v16375_v58, %v16375_v58  ;;  %v16385_v58 = vld [vmem:[#allocation146_spill] sm:$0xff] }
 0x1e6   : > { %8273 = vmatmul.msk.bf16.vlgmr.msrb.gmra.mxu1 %vm2123_vm3, %v10926_v17 }
 0x1e7   : > { %2711 = vmatpush.bf16.msrb.mxu1 %v2602_v51  ;;  %v2798_v51 = vpack.c.bf16 %v16334_v15, %v16333_v18 }
 0x1e8   : > { %2693 = vmatpush.bf16.msrb.mxu0 %v2558_v60  ;;  %v2809_v60 = vpack.c.bf16 %v16376_v55, %v16376_v55 }
 0x1ea   : > { %8275 = vmatmul.msk.bf16.vlgmr.msrb.gmra.mxu2 %vm2123_vm3, %v10926_v17 }
 0x1eb   : > { %2712 = vmatpush.bf16.msrb.mxu1 %v2559_v35  ;;  %8277 = vmatmul.msk.bf16.vlgmr.msrb.gmra.mxu3 %vm2123_vm3, %v10926_v17  ;;  %v2814_v17 = vand.u32 %v2803_v61, %v16285_v29  ;;  %v2799_v35 = vpack.c.bf16 %v16377_v11, %v16337_v2  ;;  %v2800_v2 = vpack.c.bf16 %v16354_v33, %v16352_v8 }
 0x1ec   : > { %2730 = vmatpush.bf16.msrb.mxu2 %v2605_v38  ;;  %2749 = vmatpush.bf16.msrb.mxu3 %v2608_v39 }
 0x1f0   : > { %2731 = vmatpush.bf16.msrb.mxu2 %v2560_v48  ;;  %2750 = vmatpush.bf16.msrb.mxu3 %v2561_v7  ;;  %v2829_v48 = vand.u32 %v2808_v5, %v16285_v29  ;;  %v2832_v7 = vand.u32 %v2809_v60, %v16285_v29 }
 0x1f3   : > { %8272 = vmatmul.msk.bf16.gmra.mxu0 %vm2123_vm3, %v8773_v3 }
 0x1f6   : > { %8274 = vmatmul.msk.bf16.gmra.mxu1 %vm2123_vm3, %v8773_v3 }
 0x1fa   : > { %8276 = vmatmul.msk.bf16.gmra.mxu2 %vm2123_vm3, %v8773_v3 }
 0x1fb   : > { %8278 = vmatmul.msk.bf16.gmra.mxu3 %vm2123_vm3, %v8773_v3 }
 0x1fc   : > { %v11009_v49 = vpop.f32.mrf.mxu0 }
 0x1fe   : > { %v11016_v23 = vpop.f32.mrf.mxu1 }
 0x203   : > { %8287 = vmatmul.msk.bf16.vlgmr.msra.gmra.mxu0 %vm2123_vm3, %v11014_v43 }
 0x204   : > { %2840 = vmatpush.bf16.msra.mxu0 %v2811_v24  ;;  %v11032_v62 = vpop.f32.mrf.mxu0 }
 0x206   : > { %8289 = vmatmul.msk.bf16.vlgmr.msra.gmra.mxu1 %vm2123_vm3, %v11014_v43  ;;  %v11034_v53 = vpop.f32.mrf.mxu1 }
 0x207   : > { %2859 = vmatpush.bf16.msra.mxu1 %v2814_v17  ;;  %v11037_v6 = vpop.f32.mrf.mxu2 }
 0x208   : > { %2841 = vmatpush.bf16.msra.mxu0 %v2794_v45 }
 0x20a   : > { %8291 = vmatmul.msk.bf16.vlgmr.msra.gmra.mxu2 %vm2123_vm3, %v11014_v43  ;;  %v11044_v40 = vpop.f32.mrf.mxu3 }
 0x20b   : > { %2860 = vmatpush.bf16.msra.mxu1 %v2795_v37  ;;  %8293 = vmatmul.msk.bf16.vlgmr.msra.gmra.mxu3 %vm2123_vm3, %v11014_v43  ;;  %v3035_v37 = vand.u32 %v3026_v19, %v16285_v29 }
 0x20c   : > { %2878 = vmatpush.bf16.msra.mxu2 %v2817_v21  ;;  %2897 = vmatpush.bf16.msra.mxu3 %v2820_v16  ;;  %v11050_v59 = vpop.f32.mrf.mxu0  ;;  %v3038_v21 = vand.u32 %v3027_v14, %v16285_v29  ;;  %v16380_v16 = vld [vmem:[#allocation161_spill] sm:$0xff]  ;;  %v16389_v14 = vld [vmem:[#allocation151_spill] sm:$0xff] }
 0x20e   : > { %v11057_v52 = vpop.f32.mrf.mxu1 }
 0x20f   : > { %v11059_v50 = vpop.f32.mrf.mxu2 }
 0x210   : > { %2879 = vmatpush.bf16.msra.mxu2 %v2796_v32  ;;  %2898 = vmatpush.bf16.msra.mxu3 %v2797_v10  ;;  %v16381_v10 = vld [vmem:[#allocation133_spill] sm:$0xff] }
 0x211   : > { %v3018_v63 = vpack.c.bf16 %v16382_v46, %v16381_v10 }
 0x212   : > { %v11065_v57 = vpop.f32.mrf.mxu3 }
 0x213   : > { %8288 = vmatmul.msk.bf16.gmra.mxu0 %vm2123_vm3, %v11055_v25 }
 0x214   : > { %v11067_v26 = vpop.f32.mrf.mxu0 }
 0x216   : > { %8290 = vmatmul.msk.bf16.gmra.mxu1 %vm2123_vm3, %v11055_v25  ;;  %v11069_v31 = vpop.f32.mrf.mxu1 }
 0x217   : > { %v11071_v56 = vpop.f32.mrf.mxu2 }
 0x21a   : > { %8292 = vmatmul.msk.bf16.gmra.mxu2 %vm2123_vm3, %v11055_v25  ;;  %v11077_v22 = vpop.f32.mrf.mxu3 }
 0x21b   : > { %8294 = vmatmul.msk.bf16.gmra.mxu3 %vm2123_vm3, %v11055_v25 }
 0x21f   : > { %v11083_v9 = vpop.f32.mrf.mxu0  ;;  %v11091_v3 = vpop.f32.mrf.mxu2 }
 0x222   : > { %v11095_v44 = vpop.f32.mrf.mxu3 }
 0x223   : > { %v11085_v28 = vpop.f32.mrf.mxu1  ;;  %8295 = vmatmul.msk.bf16.vlgmr.msrb.gmra.mxu0 %vm2123_vm3, %v11014_v43 }
 0x224   : > { %2916 = vmatpush.bf16.msrb.mxu0 %v2823_v12 }
 0x226   : > { %8297 = vmatmul.msk.bf16.vlgmr.msrb.gmra.mxu1 %vm2123_vm3, %v11014_v43 }
 0x227   : > { %2935 = vmatpush.bf16.msrb.mxu1 %v2826_v42  ;;  %v11105_v38 = vpop.f32.mrf.mxu0  ;;  %v16384_v42 = vld [vmem:[#allocation135_spill] sm:$0xff] }
 0x228   : > { %2917 = vmatpush.bf16.msrb.mxu0 %v2798_v51  ;;  %v3019_v5 = vpack.c.bf16 %v16385_v58, %v16384_v42 }
 0x22a   : > { %8299 = vmatmul.msk.bf16.vlgmr.msrb.gmra.mxu2 %vm2123_vm3, %v11014_v43 }
 0x22b   : > { %2936 = vmatpush.bf16.msrb.mxu1 %v2799_v35  ;;  %v11107_v39 = vpop.f32.mrf.mxu1  ;;  %8301 = vmatmul.msk.bf16.vlgmr.msrb.gmra.mxu3 %vm2123_vm3, %v11014_v43 }
 0x22c   : > { %2954 = vmatpush.bf16.msrb.mxu2 %v2829_v48  ;;  %2973 = vmatpush.bf16.msrb.mxu3 %v2832_v7  ;;  %v3044_v48 = vand.u32 %v3029_v20, %v16285_v29 }
 0x22d   : > { %v11115_v18 = vpop.f32.mrf.mxu2 }
 0x22e   : > { %v11117_v15 = vpop.f32.mrf.mxu3 }
 0x22f   : > { %v11123_v34 = vpop.f32.mrf.mxu0 }
 0x230   : > { %2955 = vmatpush.bf16.msrb.mxu2 %v2800_v2  ;;  %2974 = vmatpush.bf16.msrb.mxu3 %v2801_v54  ;;  %v16386_v2 = vld [vmem:[#allocation142_spill] sm:$0xff] }
 0x233   : > { %v11125_v13 = vpop.f32.mrf.mxu1  ;;  %8296 = vmatmul.msk.bf16.gmra.mxu0 %vm2123_vm3, %v11055_v25 }
 0x235   : > { %v11131_v61 = vpop.f32.mrf.mxu2 }
 0x236   : > { %8298 = vmatmul.msk.bf16.gmra.mxu1 %vm2123_vm3, %v11055_v25  ;;  %v11133_v24 = vpop.f32.mrf.mxu3 }
 0x237   : > { %v11135_v8 = vpop.f32.mrf.mxu0 }
 0x23a   : > { %8300 = vmatmul.msk.bf16.gmra.mxu2 %vm2123_vm3, %v11055_v25 }
 0x23b   : > { %v11137_v33 = vpop.f32.mrf.mxu1  ;;  %8302 = vmatmul.msk.bf16.gmra.mxu3 %vm2123_vm3, %v11055_v25 }
 0x23d   : > { %v11145_v17 = vpop.f32.mrf.mxu2 }
 0x23e   : > { %v11149_v45 = vpop.f32.mrf.mxu3 }
 0x240   : > { %v2359_v0 = vpop.f32.mrf.mxu0 }
 0x241   : > { %v11152_v4 = vadd.f32 %v2359_v0, %v11009_v49  ;;  %v705_v49 = vld [vmem:[%s15498_s11] sm:$0xff]  ;;  %v3021_v0 = vpack.c.bf16 %v16389_v14, %v16388_v30 }
 0x242   : > { %4013 = vperm.xlu2 %8910, %v705_v49   ;;  %v16395_v30 = vld [vmem:[#allocation175_spill] sm:$0xff] }
 0x243   : > { %v2378_v41 = vpop.f32.mrf.mxu1  ;;  %8303 = vmatmul.msk.bf16.vlgmr.msra.gmra.mxu0 %vm2123_vm3, %v11014_v43  ;;  %v3033_v14 = vpack.c.bf16 %v16395_v30, %v16395_v30 }
 0x244   : > { %v11155_v1 = vadd.f32 %v2378_v41, %v11016_v23  ;;  %3064 = vmatpush.bf16.msra.mxu0 %v3035_v37  ;;  %v3028_v23 = vpack.c.bf16 %v16380_v16, %v16380_v16 }
 0x245   : > { %v11168_v32 = vpop.f32.mrf.mxu2 }
 0x246   : > { %8305 = vmatmul.msk.bf16.vlgmr.msra.gmra.mxu1 %vm2123_vm3, %v11014_v43  ;;  %v11174_v12 = vpop.f32.mrf.mxu3  ;;  %v3041_v35 = vand.u32 %v3028_v23, %v16285_v29 }
 0x247   : > { %3083 = vmatpush.bf16.msra.mxu1 %v3038_v21 }
 0x248   : > { %3065 = vmatpush.bf16.msra.mxu0 %v3018_v63  ;;  %v2361_v51 = vpop.f32.mrf.mxu0  ;;  %v740_v63 = vld [vmem:[%s15501_s14 + $0x8] sm:$0xff] }
 0x249   : > { %v11179_v55 = vadd.f32 %v2361_v51, %v11032_v62  ;;  %v746_v62 = vld [vmem:[%s15501_s14 + $0x38] sm:$0xff] }
 0x24a   : > { %8307 = vmatmul.msk.bf16.vlgmr.msra.gmra.mxu2 %vm2123_vm3, %v11014_v43  ;;  %5229 = vperm.xlu2 %8910, %v746_v62  }
 0x24b   : > { %3084 = vmatpush.bf16.msra.mxu1 %v3019_v5  ;;  %v2380_v60 = vpop.f32.mrf.mxu1  ;;  %8309 = vmatmul.msk.bf16.vlgmr.msra.gmra.mxu3 %vm2123_vm3, %v11014_v43 }
 0x24c   : > { %v11182_v11 = vadd.f32 %v2380_v60, %v11034_v53  ;;  %3102 = vmatpush.bf16.msra.mxu2 %v3041_v35  ;;  %3121 = vmatpush.bf16.msra.mxu3 %v3044_v48  ;;  %v16387_v53 = vld [vmem:[#allocation149_spill] sm:$0xff] }
 0x24d   : > { %v2397_v7 = vpop.f32.mrf.mxu2  ;;  %v3020_v54 = vpack.c.bf16 %v16387_v53, %v16386_v2  ;;  %v16393_v53 = vld [vmem:[#allocation72_spill] sm:$0xff] }
 0x24e   : > { %v11196_v36 = vadd.f32 %v2397_v7, %v11037_v6  ;;  %v2416_v19 = vpop.f32.mrf.mxu3  ;;  %v741_v6 = vld [vmem:[%s15501_s14 + $0x10] sm:$0xff] }
 0x24f   : > { %v11201_v41 = vadd.f32 %v2416_v19, %v11044_v40 }
 0x250   : > { %3103 = vmatpush.bf16.msra.mxu2 %v3020_v54  ;;  %v2364_v37 = vpop.f32.mrf.mxu0  ;;  %3122 = vmatpush.bf16.msra.mxu3 %v3021_v0  ;;  %v16394_v54 = vld [vmem:[#allocation168_spill] sm:$0xff] }
 0x251   : > { %v11204_v21 = vadd.f32 %v2364_v37, %v11050_v59  ;;  %v3022_v19 = vpack.c.bf16 %v16394_v54, %v16393_v53  ;;  %v16396_v37 = vld [vmem:[#allocation165_spill] sm:$0xff] }
 0x252   : > { %5204 = vperm.xlu2 %8910, %v741_v6  }
 0x253   : > { %v2383_v49 = vpop.f32.mrf.mxu1  ;;  %8304 = vmatmul.msk.bf16.gmra.mxu0 %vm2123_vm3, %v11055_v25 }
 0x254   : > { %v11207_v16 = vadd.f32 %v2383_v49, %v11057_v52  ;;  %v16397_v49 = vld [vmem:[#allocation169_spill] sm:$0xff] }
 0x255   : > { %v2399_v40 = vpop.f32.mrf.mxu2  ;;  %v3023_v6 = vpack.c.bf16 %v16397_v49, %v16396_v37 }
 0x256   : > { %8306 = vmatmul.msk.bf16.gmra.mxu1 %vm2123_vm3, %v11055_v25  ;;  %v11217_v23 = vadd.f32 %v2399_v40, %v11059_v50  ;;  %v2418_v59 = vpop.f32.mrf.mxu3  ;;  %v16390_v50 = vld [vmem:[#allocation172_spill] sm:$0xff] }
 0x257   : > { %v11220_v10 = vadd.f32 %v2418_v59, %v11065_v57  ;;  %v3030_v47 = vpack.c.bf16 %v16390_v50, %v16390_v50  ;;  %v16391_v57 = vld [vmem:[#allocation173_spill] sm:$0xff] }
 0x258   : > { %v11222_v52 = vpop.f32.mrf.mxu0  ;;  %v3031_v42 = vpack.c.bf16 %v16391_v57, %v16391_v57 }
 0x259   : > { %v3047_v7 = vand.u32 %v3030_v47, %v16285_v29 }
 0x25a   : > { %8308 = vmatmul.msk.bf16.gmra.mxu2 %vm2123_vm3, %v11055_v25  ;;  %5199 = vperm.xlu2 %8910, %v740_v63  }
 0x25b   : > { %v11224_v46 = vpop.f32.mrf.mxu1  ;;  %8310 = vmatmul.msk.bf16.gmra.mxu3 %vm2123_vm3, %v11055_v25 }
 0x25d   : > { %v2402_v20 = vpop.f32.mrf.mxu2 }
 0x25e   : > { %v11238_v58 = vadd.f32 %v2402_v20, %v11071_v56  ;;  %v2421_v5 = vpop.f32.mrf.mxu3  ;;  %v3050_v56 = vand.u32 %v3031_v42, %v16285_v29  ;;  %v3056_v20 = vand.u32 %v3033_v14, %v16285_v29  ;;  %v16398_v42 = vld [vmem:[#allocation127_spill] sm:$0xff] }
 0x25f   : > { %v11241_v51 = vadd.f32 %v2421_v5, %v11077_v22  ;;  %v762_v22 = vld [vmem:[%s15503_s16 + $0x28] sm:$0xff] }
 0x260   : > { %v2435_v60 = vpop.f32.mrf.mxu0 }
 0x261   : > { %v11244_v35 = vadd.f32 %v2435_v60, %v11083_v9  ;;  %v16392_v9 = vld [vmem:[#allocation174_spill] sm:$0xff] }
 0x262   : > { %5483 = vperm.xlu2 %8910, %v762_v22  }
 0x263   : > { %v2454_v48 = vpop.f32.mrf.mxu1  ;;  %8311 = vmatmul.msk.bf16.vlgmr.msrb.gmra.mxu0 %vm2123_vm3, %v11014_v43 }
 0x264   : > { %v11247_v62 = vadd.f32 %v2454_v48, %v11085_v28  ;;  %3140 = vmatpush.bf16.msrb.mxu0 %v3047_v7  ;;  %v3032_v28 = vpack.c.bf16 %v16392_v9, %v16392_v9  ;;  %v16400_v7 = vld [vmem:[#allocation167_spill] sm:$0xff] }
 0x265   : > { %v11260_v2 = vpop.f32.mrf.mxu2 }
 0x266   : > { %8313 = vmatmul.msk.bf16.vlgmr.msrb.gmra.mxu1 %vm2123_vm3, %v11014_v43  ;;  %v11266_v0 = vpop.f32.mrf.mxu3  ;;  %v3053_v47 = vand.u32 %v3032_v28, %v16285_v29  ;;  %v3025_v29 = vpack.c.bf16 %v10704_v27, %v16400_v7  ;;  %v776_v27 = vld [vmem:[#allocation3] sm:$0x1]  ;;  %v11357_v7 = vpop.permute.xlu0 %2509 }
 0x267   : > { %3159 = vmatpush.bf16.msrb.mxu1 %v3050_v56 }
 0x268   : > { %3141 = vmatpush.bf16.msrb.mxu0 %v3022_v19  ;;  %v2437_v40 = vpop.f32.mrf.mxu0 }
 0x269   : > { %v11271_v59 = vadd.f32 %v2437_v40, %v11105_v38  ;;  %v761_v38 = vld [vmem:[%s15503_s16 + $0x20] sm:$0xff] }
 0x26a   : > { %8315 = vmatmul.msk.bf16.vlgmr.msrb.gmra.mxu2 %vm2123_vm3, %v11014_v43  ;;  %5478 = vperm.xlu2 %8910, %v761_v38  }
 0x26b   : > { %3160 = vmatpush.bf16.msrb.mxu1 %v3023_v6  ;;  %v2456_v63 = vpop.f32.mrf.mxu1  ;;  %8317 = vmatmul.msk.bf16.vlgmr.msrb.gmra.mxu3 %vm2123_vm3, %v11014_v43 }
 0x26c   : > { %v11274_v50 = vadd.f32 %v2456_v63, %v11107_v39  ;;  %3178 = vmatpush.bf16.msrb.mxu2 %v3053_v47  ;;  %3197 = vmatpush.bf16.msrb.mxu3 %v3056_v20  ;;  %v16399_v39 = vld [vmem:[#allocation171_spill] sm:$0xff] }
 0x26d   : > { %v2473_v57 = vpop.f32.mrf.mxu2  ;;  %v3024_v5 = vpack.c.bf16 %v16399_v39, %v16398_v42  ;;  %v2367_v42 = vadd.f32 %v11222_v52, %v11067_v26  ;;  %v11347_v39 = vpop.permute.xlu1 %2514 }
 0x26e   : > { %v11288_v60 = vadd.f32 %v2473_v57, %v11115_v18  ;;  %v2492_v48 = vpop.f32.mrf.mxu3  ;;  %v11361_v26 = vadd.f32 %v11347_v39, %v11207_v16 }
 0x26f   : > { %v11293_v56 = vadd.f32 %v2492_v48, %v11117_v15  ;;  %v11355_v48 = vadd.f32 %v11347_v39, %v11204_v21  ;;  %v11373_v21 = vadd.f32 %v11357_v7, %v11179_v55 }
 0x270   : > { %3179 = vmatpush.bf16.msrb.mxu2 %v3024_v5  ;;  %v2440_v22 = vpop.f32.mrf.mxu0  ;;  %3198 = vmatpush.bf16.msrb.mxu3 %v3025_v29  ;;  %v2386_v5 = vadd.f32 %v11224_v46, %v11069_v31 }
 0x271   : > { %v11296_v9 = vadd.f32 %v2440_v22, %v11123_v34 }
 0x272   : > { %6365 = vperm.xlu2 %8910, %v776_v27  }
 0x273   : > { %v2459_v28 = vpop.f32.mrf.mxu1  ;;  %8312 = vmatmul.msk.bf16.gmra.mxu0 %vm2123_vm3, %v11055_v25 }
 0x274   : > { %v11299_v53 = vadd.f32 %v2459_v28, %v11125_v13 }
 0x275   : > { %v2475_v18 = vpop.f32.mrf.mxu2 }
 0x276   : > { %8314 = vmatmul.msk.bf16.gmra.mxu1 %vm2123_vm3, %v11055_v25  ;;  %v11306_v15 = vadd.f32 %v2475_v18, %v11131_v61  ;;  %v2494_v54 = vpop.f32.mrf.mxu3  ;;  %v11383_v18 = vadd.f32 %v11357_v7, %v11182_v11 }
 0x277   : > { %v11309_v34 = vadd.f32 %v2494_v54, %v11133_v24 }
 0x278   : > { %v11311_v19 = vpop.f32.mrf.mxu0  ;;  %16402 = vst [vmem:[#allocation105_spill] sm:$0xff] %v11383_v18 }
 0x27a   : > { %8316 = vmatmul.msk.bf16.gmra.mxu2 %vm2123_vm3, %v11055_v25 }
 0x27b   : > { %v11313_v13 = vpop.f32.mrf.mxu1  ;;  %8318 = vmatmul.msk.bf16.gmra.mxu3 %vm2123_vm3, %v11055_v25 }
 0x27d   : > { %v2478_v30 = vpop.f32.mrf.mxu2 }
 0x27e   : > { %v11320_v14 = vadd.f32 %v2478_v30, %v11145_v17  ;;  %v2497_v61 = vpop.f32.mrf.mxu3  ;;  %v11337_v17 = vpop.permute.xlu2 %2519 }
 0x27f   : > { %v11323_v37 = vadd.f32 %v2497_v61, %v11149_v45  ;;  %v11366_v22 = vadd.f32 %v11337_v17, %v2367_v42  ;;  %v11376_v28 = vadd.f32 %v11337_v17, %v2386_v5 }
 0x280   : > { %v2619_v24 = vpop.f32.mrf.mxu0 }
 0x281   : > { %16401 = vst [vmem:[#allocation147_spill] sm:$0xff] %v11376_v28 }
 0x283   : > { %v2638_v49 = vpop.f32.mrf.mxu1  ;;  %8319 = vmatmul.msk.bf16.vlgmr.msra.gmra.mxu0 %vm2123_vm3, %v11014_v43 }
 0x285   : > { %v11329_v6 = vpop.f32.mrf.mxu2 }
 0x286   : > { %8321 = vmatmul.msk.bf16.vlgmr.msra.gmra.mxu1 %vm2123_vm3, %v11014_v43  ;;  %v11331_v40 = vpop.f32.mrf.mxu3  ;;  %v11363_v29 = vpop.permute.xlu2 %2504 }
 0x287   : > { %v11390_v61 = vadd.f32 %v11363_v29, %v11152_v4 }
 0x288   : > { %v2621_v63 = vpop.f32.mrf.mxu0 }
 0x289   : > { %16403 = vst [vmem:[#allocation86_spill] sm:$0xff] %v11390_v61  ;;  %v11393_v55 = vadd.f32 %v2621_v63, %v11373_v21  ;;  %v11410_v4 = vadd.f32 %v2619_v24, %v11390_v61 }
 0x28a   : > { %8323 = vmatmul.msk.bf16.vlgmr.msra.gmra.mxu2 %vm2123_vm3, %v11014_v43 }
 0x28b   : > { %v2640_v47 = vpop.f32.mrf.mxu1  ;;  %8325 = vmatmul.msk.bf16.vlgmr.msra.gmra.mxu3 %vm2123_vm3, %v11014_v43  ;;  %16404 = vst [vmem:[#allocation106_spill] sm:$0xff] %v11393_v55 }
 0x28c   : > { %v11403_v11 = vadd.f32 %v2640_v47, %v11383_v18  ;;  %16407 = vst [vmem:[#allocation84_spill] sm:$0xff] %v11410_v4 }
 0x28d   : > { %v11339_v45 = vpop.f32.mrf.mxu2 }
 0x28e   : > { %v11341_v20 = vpop.f32.mrf.mxu3  ;;  %16406 = vst [vmem:[#allocation110_spill] sm:$0xff] %v11403_v11 }
 0x290   : > { %v2624_v38 = vpop.f32.mrf.mxu0 }
 0x291   : > { %v11369_v31 = vadd.f32 %v2624_v38, %v11355_v48 }
 0x293   : > { %v2643_v57 = vpop.f32.mrf.mxu1  ;;  %8320 = vmatmul.msk.bf16.gmra.mxu0 %vm2123_vm3, %v11055_v25  ;;  %v15756_v42 = vmax.f32 %v11369_v31, 0.0 }
 0x294   : > { %v11379_v16 = vadd.f32 %v2643_v57, %v11361_v26  ;;  %v11400_v57 = vadd.f32 %v11363_v29, %v11155_v1 }
 0x295   : > { %v2659_v52 = vpop.f32.mrf.mxu2 }
 0x296   : > { %8322 = vmatmul.msk.bf16.gmra.mxu1 %vm2123_vm3, %v11055_v25  ;;  %v2678_v46 = vpop.f32.mrf.mxu3  ;;  %16405 = vst [vmem:[#allocation102_spill] sm:$0xff] %v11400_v57  ;;  %v15758_v63 = vmax.f32 %v11379_v16, 0.0  ;;  %v11417_v1 = vadd.f32 %v2638_v49, %v11400_v57  ;;  %v15761_v49 = vmax.f32 %v11410_v4, 0.0 }
 0x298   : > { %v2626_v27 = vpop.f32.mrf.mxu0  ;;  %16408 = vst [vmem:[#allocation87_spill] sm:$0xff] %v11417_v1 }
 0x299   : > { %v11386_v54 = vadd.f32 %v2626_v27, %v11366_v22 }
 0x29a   : > { %8324 = vmatmul.msk.bf16.gmra.mxu2 %vm2123_vm3, %v11055_v25 }
 0x29b   : > { %v2645_v30 = vpop.f32.mrf.mxu1  ;;  %v15755_v5 = vmax.f32 %v11386_v54, 0.0  ;;  %8326 = vmatmul.msk.bf16.gmra.mxu3 %vm2123_vm3, %v11055_v25 }
 0x29c   : > { %v11396_v38 = vadd.f32 %v2645_v30, %v11376_v28  ;;  %v15759_v28 = vmax.f32 %v11403_v11, 0.0 }
 0x29d   : > { %v3250_v47 = vpack.c.bf16 %v15755_v5, %v15756_v42  ;;  %v2662_v61 = vpop.f32.mrf.mxu2  ;;  %v2405_v5 = vadd.f32 %v11260_v2, %v11091_v3  ;;  %v15760_v42 = vmax.f32 %v11417_v1, 0.0 }
 0x29e   : > { %v15757_v27 = vmax.f32 %v11396_v38, 0.0  ;;  %v2681_v18 = vpop.f32.mrf.mxu3 }
 0x29f   : > { %3273 = vmatpush.bf16.msra.mxu0 %v3250_v47  ;;  %v3243_v3 = vpack.c.bf16 %v15759_v28, %v15760_v42  ;;  %v11464_v2 = vadd.f32 %v11337_v17, %v2405_v5 }
 0x2a0   : > { %v3251_v24 = vpack.c.bf16 %v15757_v27, %v15758_v63  ;;  %v11430_v57 = vpop.f32.mrf.mxu0  ;;  %v2424_v27 = vadd.f32 %v11266_v0, %v11095_v44  ;;  %v16409_v63 = vmax.f32 %v11393_v55, 0.0  ;;  %v11455_v44 = vadd.f32 %v11347_v39, %v11241_v51 }
 0x2a2   : > { %3286 = vmatpush.bf16.msra.mxu1 %v3251_v24  ;;  %v3242_v47 = vpack.c.bf16 %v16409_v63, %v15761_v49  ;;  %v11445_v24 = vadd.f32 %v11347_v39, %v11238_v58  ;;  %v11461_v58 = vadd.f32 %v11357_v7, %v11217_v23  ;;  %v11471_v63 = vadd.f32 %v11357_v7, %v11220_v10 }
 0x2a3   : > { %v11435_v30 = vpop.f32.mrf.mxu1  ;;  %8327 = vmatmul.msk.bf16.vlgmr.msrb.gmra.mxu0 %vm2123_vm3, %v11014_v43  ;;  %v11474_v51 = vadd.f32 %v11337_v17, %v2424_v27  ;;  %v11481_v23 = vadd.f32 %v11363_v29, %v11196_v36  ;;  %v11491_v10 = vadd.f32 %v11363_v29, %v11201_v41 }
 0x2a4   : > { %3274 = vmatpush.bf16.msra.mxu0 %v3242_v47  ;;  %v11467_v0 = vadd.f32 %v2662_v61, %v11445_v24  ;;  %v11477_v47 = vadd.f32 %v2681_v18, %v11455_v44  ;;  %v11484_v5 = vadd.f32 %v2659_v52, %v11461_v58  ;;  %v11494_v27 = vadd.f32 %v2678_v46, %v11471_v63 }
 0x2a5   : > { %v2664_v28 = vpop.f32.mrf.mxu2  ;;  %v11501_v36 = vadd.f32 %v11339_v45, %v11481_v23  ;;  %v11507_v41 = vadd.f32 %v11341_v20, %v11491_v10 }
 0x2a6   : > { %8329 = vmatmul.msk.bf16.vlgmr.msrb.gmra.mxu1 %vm2123_vm3, %v11014_v43  ;;  %16410 = vst [vmem:[#allocation157_spill] sm:$0xff] %v11467_v0  ;;  %v11487_v61 = vadd.f32 %v2664_v28, %v11464_v2  ;;  %v15766_v52 = vmax.f32 %v11467_v0, 0.0  ;;  %v15769_v46 = vmax.f32 %v11477_v47, 0.0  ;;  %v16418_v1 = vmax.f32 %v11484_v5, 0.0 }
 0x2a7   : > { %3287 = vmatpush.bf16.msra.mxu1 %v3243_v3  ;;  %16411 = vst [vmem:[#allocation153_spill] sm:$0xff] %v11477_v47  ;;  %v2683_v3 = vpop.f32.mrf.mxu3  ;;  %v15771_v0 = vmax.f32 %v11507_v41, 0.0 }
 0x2a8   : > { %16412 = vst [vmem:[#allocation154_spill] sm:$0xff] %v11484_v5  ;;  %v11497_v18 = vadd.f32 %v2683_v3, %v11474_v51  ;;  %v2697_v42 = vpop.f32.mrf.mxu0  ;;  %v15765_v28 = vmax.f32 %v11487_v61, 0.0  ;;  %v15772_v3 = vmax.f32 %v11501_v36, 0.0 }
 0x2a9   : > { %16413 = vst [vmem:[#allocation90_spill] sm:$0xff] %v11487_v61 }
 0x2aa   : > { %16414 = vst [vmem:[#allocation95_spill] sm:$0xff] %v11494_v27  ;;  %v15768_v11 = vmax.f32 %v11497_v18, 0.0  ;;  %v3252_v45 = vpack.c.bf16 %v15765_v28, %v15766_v52  ;;  %8331 = vmatmul.msk.bf16.vlgmr.msrb.gmra.mxu2 %vm2123_vm3, %v11014_v43  ;;  %v3244_v47 = vpack.c.bf16 %v16418_v1, %v15772_v3  ;;  %v11549_v1 = vadd.f32 %v11347_v39, %v11296_v9 }
 0x2ab   : > { %16415 = vst [vmem:[#allocation122_spill] sm:$0xff] %v11497_v18  ;;  %v2716_v49 = vpop.f32.mrf.mxu1  ;;  %8333 = vmatmul.msk.bf16.vlgmr.msrb.gmra.mxu3 %vm2123_vm3, %v11014_v43  ;;  %v11580_v3 = vadd.f32 %v11363_v29, %v11244_v35  ;;  %v11642_v18 = vadd.f32 %v11347_v39, %v11320_v14  ;;  %v11658_v14 = vadd.f32 %v11357_v7, %v11306_v15 }
 0x2ac   : > { %16416 = vst [vmem:[#allocation130_spill] sm:$0xff] %v11501_v36  ;;  %v3253_v20 = vpack.c.bf16 %v15768_v11, %v15769_v46  ;;  %3299 = vmatpush.bf16.msra.mxu2 %v3252_v45  ;;  %v16419_v11 = vmax.f32 %v11494_v27, 0.0  ;;  %v2462_v36 = vadd.f32 %v11313_v13, %v11137_v33  ;;  %v11563_v33 = vadd.f32 %v11357_v7, %v11271_v59 }
 0x2ad   : > { %16417 = vst [vmem:[#allocation91_spill] sm:$0xff] %v11507_v41  ;;  %v11527_v28 = vpop.f32.mrf.mxu2  ;;  %v11601_v35 = vadd.f32 %v11430_v57, %v11580_v3  ;;  %v11678_v15 = vadd.f32 %v11363_v29, %v11288_v60 }
 0x2ae   : > { %3312 = vmatpush.bf16.msra.mxu3 %v3253_v20  ;;  %v3245_v43 = vpack.c.bf16 %v16419_v11, %v15771_v0  ;;  %v2443_v20 = vadd.f32 %v11311_v19, %v11135_v8  ;;  %v11553_v11 = vadd.f32 %v11347_v39, %v11299_v53  ;;  %v11566_v13 = vadd.f32 %v11337_v17, %v2462_v36 }
 0x2af   : > { %v11529_v52 = vpop.f32.mrf.mxu3  ;;  %v11573_v0 = vadd.f32 %v11357_v7, %v11274_v50  ;;  %v11583_v59 = vadd.f32 %v2697_v42, %v11563_v33  ;;  %16426 = vst [vmem:[#allocation162_spill] sm:$0xff] %v11601_v35  ;;  %v11698_v60 = vadd.f32 %v11527_v28, %v11678_v15 }
 0x2b0   : > { %v2700_v46 = vpop.f32.mrf.mxu0  ;;  %3300 = vmatpush.bf16.msra.mxu2 %v3244_v47  ;;  %v11556_v8 = vadd.f32 %v11337_v17, %v2443_v20 }
 0x2b1   : > { %v11559_v19 = vadd.f32 %v2700_v46, %v11549_v1  ;;  %16423 = vst [vmem:[#allocation77_spill] sm:$0xff] %v11583_v59  ;;  %v11593_v50 = vadd.f32 %v2716_v49, %v11573_v0  ;;  %v15782_v41 = vmax.f32 %v11583_v59, 0.0 }
 0x2b2   : > { %3313 = vmatpush.bf16.msra.mxu3 %v3245_v43  ;;  %16436 = vst [vmem:[#allocation99_spill] sm:$0xff] %v11698_v60 }
 0x2b3   : > { %v2719_v45 = vpop.f32.mrf.mxu1  ;;  %8328 = vmatmul.msk.bf16.gmra.mxu0 %vm2123_vm3, %v11055_v25  ;;  %16420 = vst [vmem:[#allocation97_spill] sm:$0xff] %v11559_v19 }
 0x2b4   : > { %v11569_v9 = vadd.f32 %v2719_v45, %v11553_v11  ;;  %v11590_v45 = vadd.f32 %v11363_v29, %v11247_v62  ;;  %16425 = vst [vmem:[#allocation114_spill] sm:$0xff] %v11593_v50 }
 0x2b5   : > { %v2735_v47 = vpop.f32.mrf.mxu2 }
 0x2b6   : > { %8330 = vmatmul.msk.bf16.gmra.mxu1 %vm2123_vm3, %v11055_v25  ;;  %16421 = vst [vmem:[#allocation124_spill] sm:$0xff] %v11569_v9  ;;  %v15781_v42 = vmax.f32 %v11569_v9, 0.0  ;;  %v11609_v62 = vadd.f32 %v11435_v30, %v11590_v45  ;;  %v15784_v30 = vmax.f32 %v11601_v35, 0.0 }
 0x2b7   : > { %v2754_v43 = vpop.f32.mrf.mxu3 }
 0x2b8   : > { %v2702_v53 = vpop.f32.mrf.mxu0  ;;  %16427 = vst [vmem:[#allocation74_spill] sm:$0xff] %v11609_v62 }
 0x2b9   : > { %v11576_v20 = vadd.f32 %v2702_v53, %v11556_v8  ;;  %v15779_v53 = vmax.f32 %v11559_v19, 0.0 }
 0x2ba   : > { %8332 = vmatmul.msk.bf16.gmra.mxu2 %vm2123_vm3, %v11055_v25 }
 0x2bb   : > { %16422 = vst [vmem:[#allocation73_spill] sm:$0xff] %v11576_v20  ;;  %v2721_v46 = vpop.f32.mrf.mxu1  ;;  %v15778_v27 = vmax.f32 %v11576_v20, 0.0  ;;  %8334 = vmatmul.msk.bf16.gmra.mxu3 %vm2123_vm3, %v11055_v25 }
 0x2bc   : > { %v11586_v36 = vadd.f32 %v2721_v46, %v11566_v13 }
 0x2bd   : > { %v3254_v49 = vpack.c.bf16 %v15778_v27, %v15779_v53  ;;  %v2738_v5 = vpop.f32.mrf.mxu2  ;;  %v11627_v27 = vld [vmem:[%s16428_s8] sm:$0x1]  ;;  %v2481_v53 = vadd.f32 %v11329_v6, %v11168_v32  ;;  %v16429_v32 = vmax.f32 %v11593_v50, 0.0 }
 0x2be   : > { %16424 = vst [vmem:[#allocation107_spill] sm:$0xff] %v11586_v36  ;;  %v15780_v46 = vmax.f32 %v11586_v36, 0.0 }
 0x2bf   : > { %v2757_v25 = vpop.f32.mrf.mxu3  ;;  %3325 = vmatpush.bf16.msrb.mxu0 %v3254_v49  ;;  %v2500_v49 = vadd.f32 %v11331_v40, %v11174_v12  ;;  %v11652_v12 = vadd.f32 %v11347_v39, %v11323_v37  ;;  %v11661_v40 = vadd.f32 %v11337_v17, %v2481_v53  ;;  %v11681_v53 = vadd.f32 %v2735_v47, %v11658_v14 }
 0x2c0   : > { %v3255_v57 = vpack.c.bf16 %v15780_v46, %v15781_v42  ;;  %v11622_v61 = vpop.f32.mrf.mxu0  ;;  %v15783_v46 = vmax.f32 %v11609_v62, 0.0 }
 0x2c1   : > { %v11671_v37 = vadd.f32 %v11337_v17, %v2500_v49  ;;  %v11674_v39 = vadd.f32 %v2757_v25, %v11652_v12  ;;  %16432 = vst [vmem:[#allocation156_spill] sm:$0xff] %v11681_v53 }
 0x2c2   : > { %3338 = vmatpush.bf16.msrb.mxu1 %v3255_v57  ;;  %v3246_v57 = vpack.c.bf16 %v15782_v41, %v15784_v30  ;;  %v3247_v6 = vpack.c.bf16 %v16429_v32, %v15783_v46  ;;  %v11664_v41 = vadd.f32 %v2738_v5, %v11642_v18  ;;  %v11668_v32 = vadd.f32 %v11357_v7, %v11309_v34 }
 0x2c3   : > { %v11632_v42 = vpop.f32.mrf.mxu1  ;;  %8335 = vmatmul.msk.bf16.vlgmr.msra.gmra.mxu0 %vm896_vm0, %v11627_v27  ;;  %16431 = vst [vmem:[#allocation109_spill] sm:$0xff] %v11674_v39  ;;  %v11688_v34 = vadd.f32 %v11363_v29, %v11293_v56  ;;  %v15789_v29 = vmax.f32 %v11674_v39, 0.0  ;;  %v15792_v30 = vmax.f32 %v11698_v60, 0.0  ;;  %v16438_v46 = vmax.f32 %v11681_v53, 0.0  ;;  %v16443_v53 = vld [vmem:[#allocation147_spill] sm:$0xff] }
 0x2c4   : > { %3326 = vmatpush.bf16.msrb.mxu0 %v3246_v57  ;;  %16430 = vst [vmem:[#allocation79_spill] sm:$0xff] %v11664_v41  ;;  %v11691_v17 = vadd.f32 %v2754_v43, %v11668_v32  ;;  %v15786_v47 = vmax.f32 %v11664_v41, 0.0 }
 0x2c5   : > { %v2740_v57 = vpop.f32.mrf.mxu2  ;;  %v11704_v56 = vadd.f32 %v11529_v52, %v11688_v34 }
 0x2c6   : > { %8336 = vmatmul.msk.bf16.vlgmr.msra.gmra.mxu1 %vm896_vm0, %v11627_v27  ;;  %v11684_v5 = vadd.f32 %v2740_v57, %v11661_v40  ;;  %16434 = vst [vmem:[#allocation164_spill] sm:$0xff] %v11691_v17 }
 0x2c7   : > { %3339 = vmatpush.bf16.msrb.mxu1 %v3247_v6  ;;  %v2759_v6 = vpop.f32.mrf.mxu3  ;;  %16437 = vst [vmem:[#allocation128_spill] sm:$0xff] %v11704_v56 }
 0x2c8   : > { %16433 = vst [vmem:[#allocation115_spill] sm:$0xff] %v11684_v5  ;;  %v11694_v7 = vadd.f32 %v2759_v6, %v11671_v37  ;;  %v2845_v25 = vpop.f32.mrf.mxu0  ;;  %v15785_v49 = vmax.f32 %v11684_v5, 0.0  ;;  %v15794_v6 = vmax.f32 %v11704_v56, 0.0  ;;  %v3248_v5 = vpack.c.bf16 %v16438_v46, %v15792_v30 }
 0x2ca   : > { %16435 = vst [vmem:[#allocation93_spill] sm:$0xff] %v11694_v7  ;;  %v15788_v43 = vmax.f32 %v11694_v7, 0.0  ;;  %v3256_v28 = vpack.c.bf16 %v15785_v49, %v15786_v47  ;;  %8337 = vmatmul.msk.bf16.vlgmr.msra.gmra.mxu2 %vm896_vm0, %v11627_v27 }
 0x2cb   : > { %v2864_v57 = vpop.f32.mrf.mxu1  ;;  %8338 = vmatmul.msk.bf16.vlgmr.msra.gmra.mxu3 %vm896_vm0, %v11627_v27 }
 0x2cc   : > { %v3257_v52 = vpack.c.bf16 %v15788_v43, %v15789_v29  ;;  %3351 = vmatpush.bf16.msrb.mxu2 %v3256_v28  ;;  %v16439_v43 = vmax.f32 %v11691_v17, 0.0 }
 0x2cd   : > { %v2881_v49 = vpop.f32.mrf.mxu2 }
 0x2ce   : > { %3364 = vmatpush.bf16.msrb.mxu3 %v3257_v52  ;;  %v3249_v29 = vpack.c.bf16 %v16439_v43, %v15794_v6  ;;  %v11743_v43 = vadd.f32 %v2845_v25, %v11373_v21  ;;  %v16441_v6 = vld [vmem:[#allocation105_spill] sm:$0xff] }
 0x2cf   : > { %v2900_v47 = vpop.f32.mrf.mxu3  ;;  %v11749_v56 = vadd.f32 %v2864_v57, %v16441_v6 }
 0x2d0   : > { %v2848_v7 = vpop.f32.mrf.mxu0  ;;  %3352 = vmatpush.bf16.msrb.mxu2 %v3248_v5  ;;  %16440 = vst [vmem:[#allocation159_spill] sm:$0xff] %v11743_v43 }
 0x2d1   : > { %v11737_v52 = vadd.f32 %v2848_v7, %v11355_v48  ;;  %16442 = vst [vmem:[#allocation136_spill] sm:$0xff] %v11749_v56  ;;  %v16445_v7 = vld [vmem:[#allocation86_spill] sm:$0xff]  ;;  %v15813_v59 = vmax.f32 %v11749_v56, 0.0 }
 0x2d2   : > { %3365 = vmatpush.bf16.msrb.mxu3 %v3249_v29  ;;  %v11756_v41 = vadd.f32 %v11622_v61, %v16445_v7 }
 0x2d3   : > { %v2867_v39 = vpop.f32.mrf.mxu1  ;;  %8339 = vmatmul.msk.bf16.vlgmr.msrb.gmra.mxu0 %vm896_vm0, %v11627_v27 }
 0x2d4   : > { %v11740_v30 = vadd.f32 %v2867_v39, %v11361_v26  ;;  %16446 = vst [vmem:[#allocation100_spill] sm:$0xff] %v11756_v41  ;;  %v15808_v39 = vmax.f32 %v11737_v52, 0.0  ;;  %v15812_v36 = vmax.f32 %v11756_v41, 0.0 }
 0x2d5   : > { %v2883_v28 = vpop.f32.mrf.mxu2 }
 0x2d6   : > { %8340 = vmatmul.msk.bf16.vlgmr.msrb.gmra.mxu1 %vm896_vm0, %v11627_v27  ;;  %v15810_v57 = vmax.f32 %v11740_v30, 0.0 }
 0x2d7   : > { %v2902_v46 = vpop.f32.mrf.mxu3 }
 0x2d8   : > { %v2850_v17 = vpop.f32.mrf.mxu0 }
 0x2d9   : > { %v11746_v5 = vadd.f32 %v2850_v17, %v11366_v22  ;;  %v16447_v17 = vld [vmem:[#allocation102_spill] sm:$0xff] }
 0x2da   : > { %8341 = vmatmul.msk.bf16.vlgmr.msrb.gmra.mxu2 %vm896_vm0, %v11627_v27  ;;  %v11764_v25 = vadd.f32 %v11632_v42, %v16447_v17 }
 0x2db   : > { %v2869_v29 = vpop.f32.mrf.mxu1  ;;  %v15807_v50 = vmax.f32 %v11746_v5, 0.0  ;;  %8342 = vmatmul.msk.bf16.vlgmr.msrb.gmra.mxu3 %vm896_vm0, %v11627_v27 }
 0x2dc   : > { %v11752_v60 = vadd.f32 %v2869_v29, %v16443_v53  ;;  %16448 = vst [vmem:[#allocation129_spill] sm:$0xff] %v11764_v25  ;;  %v15814_v20 = vmax.f32 %v11764_v25, 0.0 }
 0x2dd   : > { %v3387_v62 = vpack.c.bf16 %v15807_v50, %v15808_v39  ;;  %v2886_v35 = vpop.f32.mrf.mxu2  ;;  %v16449_v50 = vmax.f32 %v11743_v43, 0.0  ;;  %v11799_v43 = vadd.f32 %v2883_v28, %v11461_v58 }
 0x2de   : > { %16444 = vst [vmem:[#allocation94_spill] sm:$0xff] %v11752_v60  ;;  %v15809_v29 = vmax.f32 %v11752_v60, 0.0 }
 0x2df   : > { %v2905_v9 = vpop.f32.mrf.mxu3  ;;  %3401 = vmatpush.bf16.msra.mxu0 %v3387_v62  ;;  %v3379_v39 = vpack.c.bf16 %v16449_v50, %v15812_v36  ;;  %16452 = vst [vmem:[#allocation82_spill] sm:$0xff] %v11799_v43 }
 0x2e0   : > { %v3388_v42 = vpack.c.bf16 %v15809_v29, %v15810_v57  ;;  %v2919_v61 = vpop.f32.mrf.mxu0  ;;  %v3380_v29 = vpack.c.bf16 %v15813_v59, %v15814_v20  ;;  %v11791_v57 = vadd.f32 %v2886_v35, %v11445_v24  ;;  %v11794_v62 = vadd.f32 %v2905_v9, %v11455_v44 }
 0x2e1   : > { %v11807_v35 = vadd.f32 %v2902_v46, %v11471_v63  ;;  %v11818_v20 = vadd.f32 %v2900_v47, %v11491_v10 }
 0x2e2   : > { %3414 = vmatpush.bf16.msra.mxu1 %v3388_v42  ;;  %16450 = vst [vmem:[#allocation137_spill] sm:$0xff] %v11791_v57  ;;  %v15822_v28 = vmax.f32 %v11791_v57, 0.0  ;;  %v15826_v56 = vmax.f32 %v11794_v62, 0.0 }
 0x2e3   : > { %v2938_v19 = vpop.f32.mrf.mxu1  ;;  %3402 = vmatpush.bf16.msra.mxu0 %v3379_v39  ;;  %16451 = vst [vmem:[#allocation80_spill] sm:$0xff] %v11794_v62  ;;  %v15828_v55 = vmax.f32 %v11818_v20, 0.0 }
 0x2e4   : > { %16454 = vst [vmem:[#allocation81_spill] sm:$0xff] %v11807_v35 }
 0x2e5   : > { %v2888_v42 = vpop.f32.mrf.mxu2  ;;  %16457 = vst [vmem:[#allocation120_spill] sm:$0xff] %v11818_v20 }
 0x2e6   : > { %3415 = vmatpush.bf16.msra.mxu1 %v3380_v29  ;;  %8343 = vmatmul.msk.bf16.vlgmr.msra.gmra.mxu0 %vm896_vm0, %v11627_v27  ;;  %v11802_v50 = vadd.f32 %v2888_v42, %v11464_v2  ;;  %v11813_v29 = vadd.f32 %v2881_v49, %v11481_v23  ;;  %v15827_v49 = vmax.f32 %v11807_v35, 0.0 }
 0x2e7   : > { %v2907_v36 = vpop.f32.mrf.mxu3 }
 0x2e8   : > { %16453 = vst [vmem:[#allocation88_spill] sm:$0xff] %v11802_v50  ;;  %v11810_v9 = vadd.f32 %v2907_v36, %v11474_v51  ;;  %v2921_v39 = vpop.f32.mrf.mxu0  ;;  %v15821_v59 = vmax.f32 %v11802_v50, 0.0  ;;  %v15825_v47 = vmax.f32 %v11813_v29, 0.0  ;;  %v16458_v50 = vmax.f32 %v11799_v43, 0.0 }
 0x2e9   : > { %8344 = vmatmul.msk.bf16.vlgmr.msra.gmra.mxu1 %vm896_vm0, %v11627_v27  ;;  %16456 = vst [vmem:[#allocation118_spill] sm:$0xff] %v11813_v29 }
 0x2ea   : > { %16455 = vst [vmem:[#allocation117_spill] sm:$0xff] %v11810_v9  ;;  %v15824_v46 = vmax.f32 %v11810_v9, 0.0  ;;  %v3389_v36 = vpack.c.bf16 %v15821_v59, %v15822_v28  ;;  %v3381_v59 = vpack.c.bf16 %v16458_v50, %v15825_v47  ;;  %v3382_v28 = vpack.c.bf16 %v15827_v49, %v15828_v55 }
 0x2eb   : > { %v2940_v42 = vpop.f32.mrf.mxu1  ;;  %v11853_v49 = vadd.f32 %v2921_v39, %v11563_v33  ;;  %v11870_v39 = vadd.f32 %v2938_v19, %v11590_v45 }
 0x2ec   : > { %v3390_v41 = vpack.c.bf16 %v15824_v46, %v15826_v56  ;;  %3427 = vmatpush.bf16.msra.mxu2 %v3389_v36  ;;  %v11859_v55 = vadd.f32 %v2940_v42, %v11573_v0 }
 0x2ed   : > { %v2957_v4 = vpop.f32.mrf.mxu2  ;;  %16461 = vst [vmem:[#allocation112_spill] sm:$0xff] %v11853_v49  ;;  %v15844_v60 = vmax.f32 %v11870_v39, 0.0 }
 0x2ee   : > { %3440 = vmatpush.bf16.msra.mxu3 %v3390_v41  ;;  %16463 = vst [vmem:[#allocation139_spill] sm:$0xff] %v11859_v55 }
 0x2ef   : > { %v2976_v25 = vpop.f32.mrf.mxu3  ;;  %16466 = vst [vmem:[#allocation131_spill] sm:$0xff] %v11870_v39 }
 0x2f0   : > { %v2924_v9 = vpop.f32.mrf.mxu0  ;;  %3428 = vmatpush.bf16.msra.mxu2 %v3381_v59 }
 0x2f1   : > { %v11847_v36 = vadd.f32 %v2924_v9, %v11549_v1  ;;  %v11865_v9 = vadd.f32 %v2919_v61, %v11580_v3  ;;  %v15843_v61 = vmax.f32 %v11859_v55, 0.0 }
 0x2f2   : > { %3441 = vmatpush.bf16.msra.mxu3 %v3382_v28 }
 0x2f3   : > { %v2943_v46 = vpop.f32.mrf.mxu1  ;;  %8345 = vmatmul.msk.bf16.vlgmr.msra.gmra.mxu2 %vm896_vm0, %v11627_v27  ;;  %16459 = vst [vmem:[#allocation121_spill] sm:$0xff] %v11847_v36  ;;  %v15842_v62 = vmax.f32 %v11865_v9, 0.0 }
 0x2f4   : > { %v11850_v47 = vadd.f32 %v2943_v46, %v11553_v11  ;;  %16465 = vst [vmem:[#allocation141_spill] sm:$0xff] %v11865_v9  ;;  %v15838_v46 = vmax.f32 %v11847_v36, 0.0 }
 0x2f5   : > { %8346 = vmatmul.msk.bf16.vlgmr.msra.gmra.mxu3 %vm896_vm0, %v11627_v27  ;;  %v2959_v41 = vpop.f32.mrf.mxu2 }
 0x2f6   : > { %16460 = vst [vmem:[#allocation103_spill] sm:$0xff] %v11850_v47 }
 0x2f7   : > { %v2978_v50 = vpop.f32.mrf.mxu3 }
 0x2f8   : > { %v2926_v56 = vpop.f32.mrf.mxu0 }
 0x2f9   : > { %v11856_v59 = vadd.f32 %v2926_v56, %v11556_v8  ;;  %v15840_v56 = vmax.f32 %v11850_v47, 0.0 }
 0x2fb   : > { %16462 = vst [vmem:[#allocation138_spill] sm:$0xff] %v11856_v59  ;;  %v2945_v28 = vpop.f32.mrf.mxu1  ;;  %v15837_v20 = vmax.f32 %v11856_v59, 0.0 }
 0x2fc   : > { %v11862_v35 = vadd.f32 %v2945_v28, %v11566_v13 }
 0x2fd   : > { %v3391_v28 = vpack.c.bf16 %v15837_v20, %v15838_v46  ;;  %v2962_v19 = vpop.f32.mrf.mxu2  ;;  %v16467_v20 = vmax.f32 %v11853_v49, 0.0  ;;  %v11903_v49 = vadd.f32 %v2959_v41, %v11658_v14 }
 0x2fe   : > { %16464 = vst [vmem:[#allocation140_spill] sm:$0xff] %v11862_v35  ;;  %v15839_v43 = vmax.f32 %v11862_v35, 0.0 }
 0x2ff   : > { %v2981_v57 = vpop.f32.mrf.mxu3  ;;  %3453 = vmatpush.bf16.msrb.mxu0 %v3391_v28  ;;  %v3383_v46 = vpack.c.bf16 %v16467_v20, %v15842_v62  ;;  %16470 = vst [vmem:[#allocation161_spill] sm:$0xff] %v11903_v49 }
 0x300   : > { %v3392_v29 = vpack.c.bf16 %v15839_v43, %v15840_v56  ;;  %v3067_v42 = vpop.f32.mrf.mxu0  ;;  %v3384_v43 = vpack.c.bf16 %v15843_v61, %v15844_v60  ;;  %v11895_v56 = vadd.f32 %v2962_v19, %v11642_v18  ;;  %v11898_v28 = vadd.f32 %v2981_v57, %v11652_v12 }
 0x301   : > { %v11917_v19 = vadd.f32 %v2957_v4, %v11678_v15  ;;  %v11922_v60 = vadd.f32 %v2976_v25, %v11688_v34 }
 0x302   : > { %3466 = vmatpush.bf16.msrb.mxu1 %v3392_v29  ;;  %16468 = vst [vmem:[#allocation152_spill] sm:$0xff] %v11895_v56  ;;  %v15852_v41 = vmax.f32 %v11895_v56, 0.0  ;;  %v15856_v55 = vmax.f32 %v11898_v28, 0.0 }
 0x303   : > { %v3086_v36 = vpop.f32.mrf.mxu1  ;;  %3454 = vmatpush.bf16.msrb.mxu0 %v3383_v46  ;;  %16469 = vst [vmem:[#allocation155_spill] sm:$0xff] %v11898_v28  ;;  %v15855_v25 = vmax.f32 %v11917_v19, 0.0  ;;  %v15858_v35 = vmax.f32 %v11922_v60, 0.0 }
 0x304   : > { %16474 = vst [vmem:[#allocation135_spill] sm:$0xff] %v11917_v19 }
 0x305   : > { %v2964_v29 = vpop.f32.mrf.mxu2  ;;  %16475 = vst [vmem:[#allocation146_spill] sm:$0xff] %v11922_v60 }
 0x306   : > { %3467 = vmatpush.bf16.msrb.mxu1 %v3384_v43  ;;  %8347 = vmatmul.msk.bf16.vlgmr.msrb.gmra.mxu0 %vm896_vm0, %v11627_v27  ;;  %v11906_v20 = vadd.f32 %v2964_v29, %v11661_v40  ;;  %v11911_v43 = vadd.f32 %v2978_v50, %v11668_v32 }
 0x307   : > { %v2983_v62 = vpop.f32.mrf.mxu3 }
 0x308   : > { %16471 = vst [vmem:[#allocation133_spill] sm:$0xff] %v11906_v20  ;;  %v11914_v57 = vadd.f32 %v2983_v62, %v11671_v37  ;;  %v3069_v46 = vpop.f32.mrf.mxu0  ;;  %v15851_v61 = vmax.f32 %v11906_v20, 0.0  ;;  %v15857_v62 = vmax.f32 %v11911_v43, 0.0  ;;  %v16476_v20 = vmax.f32 %v11903_v49, 0.0 }
 0x309   : > { %8348 = vmatmul.msk.bf16.vlgmr.msrb.gmra.mxu1 %vm896_vm0, %v11627_v27  ;;  %16472 = vst [vmem:[#allocation145_spill] sm:$0xff] %v11911_v43 }
 0x30a   : > { %16473 = vst [vmem:[#allocation163_spill] sm:$0xff] %v11914_v57  ;;  %v15854_v50 = vmax.f32 %v11914_v57, 0.0  ;;  %v3393_v4 = vpack.c.bf16 %v15851_v61, %v15852_v41  ;;  %v3385_v61 = vpack.c.bf16 %v16476_v20, %v15855_v25  ;;  %v3386_v41 = vpack.c.bf16 %v15857_v62, %v15858_v35 }
 0x30b   : > { %v3088_v29 = vpop.f32.mrf.mxu1  ;;  %v11957_v62 = vadd.f32 %v3069_v46, %v11373_v21  ;;  %v11974_v21 = vadd.f32 %v3086_v36, %v16447_v17 }
 0x30c   : > { %v3394_v9 = vpack.c.bf16 %v15854_v50, %v15856_v55  ;;  %3479 = vmatpush.bf16.msrb.mxu2 %v3393_v4  ;;  %v11963_v35 = vadd.f32 %v3088_v29, %v16441_v6 }
 0x30d   : > { %v3105_v47 = vpop.f32.mrf.mxu2  ;;  %v15864_v6 = vmax.f32 %v11957_v62, 0.0  ;;  %v15875_v29 = vmax.f32 %v11974_v21, 0.0 }
 0x30e   : > { %3492 = vmatpush.bf16.msrb.mxu3 %v3394_v9 }
 0x30f   : > { %v3124_v39 = vpop.f32.mrf.mxu3 }
 0x310   : > { %v3072_v57 = vpop.f32.mrf.mxu0  ;;  %3480 = vmatpush.bf16.msrb.mxu2 %v3385_v61 }
 0x311   : > { %v11951_v4 = vadd.f32 %v3072_v57, %v11355_v48  ;;  %v11969_v48 = vadd.f32 %v3067_v42, %v16445_v7  ;;  %v15868_v7 = vmax.f32 %v11963_v35, 0.0 }
 0x312   : > { %3493 = vmatpush.bf16.msrb.mxu3 %v3386_v41 }
 0x313   : > { %v3091_v50 = vpop.f32.mrf.mxu1  ;;  %8349 = vmatmul.msk.bf16.vlgmr.msrb.gmra.mxu2 %vm896_vm0, %v11627_v27  ;;  %v15865_v36 = vmax.f32 %v11969_v48, 0.0 }
 0x314   : > { %v11954_v25 = vadd.f32 %v3091_v50, %v11361_v26  ;;  %v15863_v26 = vmax.f32 %v11951_v4, 0.0 }
 0x315   : > { %8350 = vmatmul.msk.bf16.vlgmr.msrb.gmra.mxu3 %vm896_vm0, %v11627_v27  ;;  %v3107_v9 = vpop.f32.mrf.mxu2 }
 0x317   : > { %v3126_v20 = vpop.f32.mrf.mxu3 }
 0x318   : > { %v3074_v55 = vpop.f32.mrf.mxu0 }
 0x319   : > { %v11960_v61 = vadd.f32 %v3074_v55, %v11366_v22  ;;  %v15862_v22 = vmax.f32 %v11954_v25, 0.0 }
 0x31b   : > { %v3093_v41 = vpop.f32.mrf.mxu1  ;;  %v15860_v57 = vmax.f32 %v11960_v61, 0.0 }
 0x31c   : > { %v11966_v43 = vadd.f32 %v3093_v41, %v16443_v53 }
 0x31d   : > { %v3515_v53 = vpack.c.bf16 %v15860_v57, %v15863_v26  ;;  %v3110_v17 = vpop.f32.mrf.mxu2  ;;  %v3507_v57 = vpack.c.bf16 %v15864_v6, %v15865_v36  ;;  %v12007_v26 = vadd.f32 %v3107_v9, %v11461_v58 }
 0x31e   : > { %v15861_v55 = vmax.f32 %v11966_v43, 0.0 }
 0x31f   : > { %v3129_v46 = vpop.f32.mrf.mxu3  ;;  %3529 = vmatpush.bf16.msra.mxu0 %v3515_v53  ;;  %16477 = vst [vmem:[#allocation142_spill] sm:$0xff] %v12007_v26 }
 0x320   : > { %v3516_v42 = vpack.c.bf16 %v15861_v55, %v15862_v22  ;;  %v3143_v50 = vpop.f32.mrf.mxu0  ;;  %v3508_v55 = vpack.c.bf16 %v15868_v7, %v15875_v29  ;;  %v11999_v22 = vadd.f32 %v3110_v17, %v11445_v24  ;;  %v12002_v53 = vadd.f32 %v3129_v46, %v11455_v44 }
 0x321   : > { %v12015_v24 = vadd.f32 %v3126_v20, %v11471_v63  ;;  %v12026_v17 = vadd.f32 %v3124_v39, %v11491_v10  ;;  %v15870_v20 = vmax.f32 %v12007_v26, 0.0 }
 0x322   : > { %3542 = vmatpush.bf16.msra.mxu1 %v3516_v42  ;;  %v15867_v58 = vmax.f32 %v11999_v22, 0.0  ;;  %v15872_v46 = vmax.f32 %v12002_v53, 0.0 }
 0x323   : > { %v3162_v41 = vpop.f32.mrf.mxu1  ;;  %3530 = vmatpush.bf16.msra.mxu0 %v3507_v57  ;;  %16478 = vst [vmem:[#allocation149_spill] sm:$0xff] %v12015_v24  ;;  %v15874_v39 = vmax.f32 %v12026_v17, 0.0 }
 0x324   : > { %16480 = vst [vmem:[#allocation151_spill] sm:$0xff] %v12026_v17 }
 0x325   : > { %v3112_v42 = vpop.f32.mrf.mxu2 }
 0x326   : > { %3543 = vmatpush.bf16.msra.mxu1 %v3508_v55  ;;  %8351 = vmatmul.msk.bf16.vlgmr.msra.gmra.mxu0 %vm896_vm0, %v11627_v27  ;;  %v12010_v6 = vadd.f32 %v3112_v42, %v11464_v2  ;;  %v12021_v55 = vadd.f32 %v3105_v47, %v11481_v23  ;;  %v15873_v23 = vmax.f32 %v12015_v24, 0.0 }
 0x327   : > { %v3131_v36 = vpop.f32.mrf.mxu3 }
 0x328   : > { %v12018_v44 = vadd.f32 %v3131_v36, %v11474_v51  ;;  %v3145_v57 = vpop.f32.mrf.mxu0  ;;  %16479 = vst [vmem:[#allocation144_spill] sm:$0xff] %v12021_v55  ;;  %v15866_v9 = vmax.f32 %v12010_v6, 0.0  ;;  %v15871_v10 = vmax.f32 %v12021_v55, 0.0 }
 0x329   : > { %8352 = vmatmul.msk.bf16.vlgmr.msra.gmra.mxu1 %vm896_vm0, %v11627_v27 }
 0x32a   : > { %v15869_v63 = vmax.f32 %v12018_v44, 0.0  ;;  %v3517_v51 = vpack.c.bf16 %v15866_v9, %v15867_v58  ;;  %v3509_v9 = vpack.c.bf16 %v15870_v20, %v15871_v10  ;;  %v3510_v58 = vpack.c.bf16 %v15873_v23, %v15874_v39 }
 0x32b   : > { %v3164_v2 = vpop.f32.mrf.mxu1  ;;  %v12061_v23 = vadd.f32 %v3145_v57, %v11563_v33  ;;  %v12078_v33 = vadd.f32 %v3162_v41, %v11590_v45 }
 0x32c   : > { %v3518_v47 = vpack.c.bf16 %v15869_v63, %v15872_v46  ;;  %3555 = vmatpush.bf16.msra.mxu2 %v3517_v51  ;;  %v12067_v39 = vadd.f32 %v3164_v2, %v11573_v0 }
 0x32d   : > { %v3181_v36 = vpop.f32.mrf.mxu2  ;;  %16483 = vst [vmem:[#allocation174_spill] sm:$0xff] %v12061_v23  ;;  %v15880_v0 = vmax.f32 %v12061_v23, 0.0 }
 0x32e   : > { %3568 = vmatpush.bf16.msra.mxu3 %v3518_v47  ;;  %16485 = vst [vmem:[#allocation168_spill] sm:$0xff] %v12067_v39 }
 0x32f   : > { %v3200_v42 = vpop.f32.mrf.mxu3  ;;  %16488 = vst [vmem:[#allocation169_spill] sm:$0xff] %v12078_v33 }
 0x330   : > { %v3148_v7 = vpop.f32.mrf.mxu0  ;;  %3556 = vmatpush.bf16.msra.mxu2 %v3509_v9 }
 0x331   : > { %v12055_v47 = vadd.f32 %v3148_v7, %v11549_v1  ;;  %v12073_v1 = vadd.f32 %v3143_v50, %v11580_v3  ;;  %v15888_v3 = vmax.f32 %v12067_v39, 0.0 }
 0x332   : > { %3569 = vmatpush.bf16.msra.mxu3 %v3510_v58 }
 0x333   : > { %v3167_v63 = vpop.f32.mrf.mxu1  ;;  %8353 = vmatmul.msk.bf16.vlgmr.msra.gmra.mxu2 %vm896_vm0, %v11627_v27  ;;  %16481 = vst [vmem:[#allocation172_spill] sm:$0xff] %v12055_v47  ;;  %v15881_v41 = vmax.f32 %v12073_v1, 0.0 }
 0x334   : > { %v12058_v10 = vadd.f32 %v3167_v63, %v11553_v11  ;;  %16487 = vst [vmem:[#allocation165_spill] sm:$0xff] %v12073_v1  ;;  %v15879_v11 = vmax.f32 %v12055_v47, 0.0 }
 0x335   : > { %8354 = vmatmul.msk.bf16.vlgmr.msra.gmra.mxu3 %vm896_vm0, %v11627_v27  ;;  %v3183_v51 = vpop.f32.mrf.mxu2 }
 0x336   : > { %16482 = vst [vmem:[#allocation173_spill] sm:$0xff] %v12058_v10 }
 0x337   : > { %v3202_v20 = vpop.f32.mrf.mxu3 }
 0x338   : > { %v3150_v46 = vpop.f32.mrf.mxu0 }
 0x339   : > { %v12064_v58 = vadd.f32 %v3150_v46, %v11556_v8  ;;  %v15878_v8 = vmax.f32 %v12058_v10, 0.0  ;;  %v15889_v46 = vmax.f32 %v12078_v33, 0.0 }
 0x33b   : > { %16484 = vst [vmem:[#allocation72_spill] sm:$0xff] %v12064_v58  ;;  %v3169_v9 = vpop.f32.mrf.mxu1  ;;  %v15876_v7 = vmax.f32 %v12064_v58, 0.0 }
 0x33c   : > { %v12070_v29 = vadd.f32 %v3169_v9, %v11566_v13 }
 0x33d   : > { %v3519_v13 = vpack.c.bf16 %v15876_v7, %v15879_v11  ;;  %v3186_v45 = vpop.f32.mrf.mxu2  ;;  %v3511_v7 = vpack.c.bf16 %v15880_v0, %v15881_v41  ;;  %v12111_v11 = vadd.f32 %v3183_v51, %v11658_v14 }
 0x33e   : > { %16486 = vst [vmem:[#allocation175_spill] sm:$0xff] %v12070_v29  ;;  %v15877_v57 = vmax.f32 %v12070_v29, 0.0 }
 0x33f   : > { %v3205_v2 = vpop.f32.mrf.mxu3  ;;  %3581 = vmatpush.bf16.msrb.mxu0 %v3519_v13  ;;  %16491 = vst [vmem:[#allocation167_spill] sm:$0xff] %v12111_v11 }
 0x340   : > { %v3520_v50 = vpack.c.bf16 %v15877_v57, %v15878_v8  ;;  %v3276_v63 = vpop.f32.mrf.mxu0  ;;  %v3512_v57 = vpack.c.bf16 %v15888_v3, %v15889_v46  ;;  %v12103_v8 = vadd.f32 %v3186_v45, %v11642_v18  ;;  %v12106_v13 = vadd.f32 %v3205_v2, %v11652_v12 }
 0x341   : > { %v12119_v18 = vadd.f32 %v3202_v20, %v11668_v32  ;;  %v12130_v45 = vadd.f32 %v3200_v42, %v11688_v34  ;;  %v15886_v20 = vmax.f32 %v12111_v11, 0.0 }
 0x342   : > { %3594 = vmatpush.bf16.msrb.mxu1 %v3520_v50  ;;  %16489 = vst [vmem:[#allocation127_spill] sm:$0xff] %v12103_v8  ;;  %v15885_v14 = vmax.f32 %v12103_v8, 0.0  ;;  %v15884_v2 = vmax.f32 %v12106_v13, 0.0 }
 0x343   : > { %v3289_v9 = vpop.f32.mrf.mxu1  ;;  %3582 = vmatpush.bf16.msrb.mxu0 %v3511_v7  ;;  %16490 = vst [vmem:[#allocation171_spill] sm:$0xff] %v12106_v13  ;;  %v15891_v42 = vmax.f32 %v12130_v45, 0.0 }
 0x344   : > { %16493 = vst [vmem:[#allocation147_spill] sm:$0xff] %v12119_v18 }
 0x345   : > { %v3188_v50 = vpop.f32.mrf.mxu2  ;;  %16496 = vst [vmem:[#allocation176_spill] sm:$0xff] %v12130_v45 }
 0x346   : > { %3595 = vmatpush.bf16.msrb.mxu1 %v3512_v57  ;;  %8355 = vmatmul.msk.bf16.vlgmr.msrb.gmra.mxu0 %vm896_vm0, %v11627_v27  ;;  %v12114_v0 = vadd.f32 %v3188_v50, %v11661_v40  ;;  %v12125_v57 = vadd.f32 %v3181_v36, %v11678_v15  ;;  %v15890_v15 = vmax.f32 %v12119_v18, 0.0 }
 0x347   : > { %v3207_v41 = vpop.f32.mrf.mxu3 }
 0x348   : > { %16492 = vst [vmem:[#allocation105_spill] sm:$0xff] %v12114_v0  ;;  %v12122_v12 = vadd.f32 %v3207_v41, %v11671_v37  ;;  %v3278_v7 = vpop.f32.mrf.mxu0  ;;  %v15882_v51 = vmax.f32 %v12114_v0, 0.0  ;;  %v15887_v34 = vmax.f32 %v12125_v57, 0.0 }
 0x349   : > { %8356 = vmatmul.msk.bf16.vlgmr.msrb.gmra.mxu1 %vm896_vm0, %v11627_v27  ;;  %16495 = vst [vmem:[#allocation102_spill] sm:$0xff] %v12125_v57 }
 0x34a   : > { %16494 = vst [vmem:[#allocation86_spill] sm:$0xff] %v12122_v12  ;;  %v15883_v32 = vmax.f32 %v12122_v12, 0.0  ;;  %v3521_v37 = vpack.c.bf16 %v15882_v51, %v15885_v14  ;;  %v3513_v7 = vpack.c.bf16 %v15886_v20, %v15887_v34  ;;  %v3261_v34 = vpop.permute.xlu1 %3260 }
 0x34b   : > { %v3291_v40 = vpop.f32.mrf.mxu1  ;;  %v12158_v46 = vperm.slane %v3261_v34, 0 }
 0x34c   : > { %v3522_v36 = vpack.c.bf16 %v15883_v32, %v15884_v2  ;;  %3607 = vmatpush.bf16.msrb.mxu2 %v3521_v37  ;;  %v3514_v40 = vpack.c.bf16 %v15890_v15, %v15891_v42 }
 0x34d   : > { %v3302_v41 = vpop.f32.mrf.mxu2  ;;  %v12161_v15 = vadd.f32 %v3276_v63, %v12158_v46 }
 0x34e   : > { %3620 = vmatpush.bf16.msrb.mxu3 %v3522_v36 }
 0x34f   : > { %v3315_v50 = vpop.f32.mrf.mxu3 }
 0x350   : > { %v3328_v51 = vpop.f32.mrf.mxu0  ;;  %3608 = vmatpush.bf16.msrb.mxu2 %v3513_v7  ;;  %v12164_v7 = vadd.f32 %v3289_v9, %v12158_v46 }
 0x352   : > { %3621 = vmatpush.bf16.msrb.mxu3 %v3514_v40 }
 0x353   : > { %v3341_v32 = vpop.f32.mrf.mxu1  ;;  %8357 = vmatmul.msk.bf16.vlgmr.msrb.gmra.mxu2 %vm896_vm0, %v11627_v27 }
 0x354   : > { %v12208_v49 = vadd.f32 %v3341_v32, %v12158_v46 }
 0x355   : > { %8358 = vmatmul.msk.bf16.vlgmr.msrb.gmra.mxu3 %vm896_vm0, %v11627_v27  ;;  %v3304_v37 = vpop.f32.mrf.mxu2 }
 0x357   : > { %v3317_v36 = vpop.f32.mrf.mxu3 }
 0x358   : > { %v3330_v2 = vpop.f32.mrf.mxu0  ;;  %v3372_v36 = vmax.f32 %v12164_v7, 0.0 }
 0x35b   : > { %v3343_v14 = vpop.f32.mrf.mxu1 }
 0x35c   : > { %v3371_v14 = vmax.f32 %v12161_v15, 0.0 }
 0x35d   : > { %v3354_v20 = vpop.f32.mrf.mxu2 }
 0x35f   : > { %v3367_v3 = vpop.f32.mrf.mxu3 }
 0x360   : > { %v12236_v28 = vadd.f32 %v3367_v3, %v12158_v46 }
 0x363   : > { %v3404_v40 = vpop.f32.mrf.mxu0 }
 0x364   : > { %v12167_v42 = vadd.f32 %v3404_v40, %v12158_v46  ;;  %v12177_v40 = vadd.f32 %v3302_v41, %v12158_v46 }
 0x365   : > { %v3356_v34 = vpop.f32.mrf.mxu2 }
 0x366   : > { %v3417_v27 = vpop.f32.mrf.mxu1  ;;  %v3499_v2 = vmax.f32 %v12167_v42, 0.0 }
 0x367   : > { %v12170_v37 = vadd.f32 %v3417_v27, %v12158_v46  ;;  %v3369_v18 = vpop.f32.mrf.mxu3  ;;  %v12180_v27 = vadd.f32 %v3315_v50, %v12158_v46 }
 0x368   : > { %v3635_v9 = vmax.f32 %v3371_v14, %v3499_v2  ;;  %v15901_v18 = vmax.f32 %v12177_v40, 0.0 }
 0x369   : > { %v3500_v63 = vmax.f32 %v12170_v37, 0.0 }
 0x36b   : > { %v3636_v45 = vmax.f32 %v3372_v36, %v3500_v63  ;;  %v3406_v60 = vpop.f32.mrf.mxu0 }
 0x36c   : > { %v15904_v60 = vmax.f32 %v12180_v27, 0.0 }
 0x36e   : > { %v3419_v11 = vpop.f32.mrf.mxu1 }
 0x376   : > { %v3430_v57 = vpop.f32.mrf.mxu2 }
 0x377   : > { %v12183_v15 = vadd.f32 %v3430_v57, %v12158_v46 }
 0x378   : > { %v3443_v42 = vpop.f32.mrf.mxu3 }
 0x379   : > { %v12186_v7 = vadd.f32 %v3443_v42, %v12158_v46  ;;  %v15900_v37 = vmax.f32 %v12183_v15, 0.0  ;;  %v12205_v42 = vadd.f32 %v3328_v51, %v12158_v46 }
 0x37b   : > { %v15903_v11 = vmax.f32 %v12186_v7, 0.0  ;;  %v12196_v41 = vmax.f32 %v15901_v18, %v15900_v37  ;;  %v15909_v13 = vmax.f32 %v12205_v42, 0.0 }
 0x37d   : > { %v12202_v57 = vmax.f32 %v15904_v60, %v15903_v11  ;;  %v12233_v60 = vadd.f32 %v3354_v20, %v12158_v46 }
 0x37e   : > { %v3432_v50 = vpop.f32.mrf.mxu2 }
 0x37f   : > { %v15912_v50 = vmax.f32 %v12208_v49, 0.0  ;;  %v15921_v56 = vmax.f32 %v12233_v60, 0.0 }
 0x380   : > { %v3445_v34 = vpop.f32.mrf.mxu3 }
 0x383   : > { %v3456_v19 = vpop.f32.mrf.mxu0 }
 0x384   : > { %v12211_v12 = vadd.f32 %v3456_v19, %v12158_v46 }
 0x386   : > { %v3469_v37 = vpop.f32.mrf.mxu1  ;;  %v15908_v11 = vmax.f32 %v12211_v12, 0.0 }
 0x387   : > { %v12214_v18 = vadd.f32 %v3469_v37, %v12158_v46 }
 0x388   : > { %v12224_v32 = vmax.f32 %v15909_v13, %v15908_v11 }
 0x389   : > { %v15911_v51 = vmax.f32 %v12214_v18, 0.0 }
 0x38b   : > { %v12230_v19 = vmax.f32 %v15912_v50, %v15911_v51  ;;  %v3458_v37 = vpop.f32.mrf.mxu0 }
 0x38c   : > { %v15927_v37 = vmax.f32 %v12236_v28, 0.0 }
 0x38e   : > { %v3471_v34 = vpop.f32.mrf.mxu1 }
 0x396   : > { %v3482_v0 = vpop.f32.mrf.mxu2 }
 0x397   : > { %v12239_v8 = vadd.f32 %v3482_v0, %v12158_v46 }
 0x398   : > { %v3495_v11 = vpop.f32.mrf.mxu3 }
 0x399   : > { %v12242_v13 = vadd.f32 %v3495_v11, %v12158_v46  ;;  %v15920_v51 = vmax.f32 %v12239_v8, 0.0 }
 0x39b   : > { %v15926_v20 = vmax.f32 %v12242_v13, 0.0  ;;  %v12252_v3 = vmax.f32 %v15921_v56, %v15920_v51 }
 0x39d   : > { %v12258_v0 = vmax.f32 %v15927_v37, %v15926_v20 }
 0x39e   : > { %v3484_v11 = vpop.f32.mrf.mxu2 }
 0x3a0   : > { %v3497_v34 = vpop.f32.mrf.mxu3 }
 0x3a3   : > { %v3532_v50 = vpop.f32.mrf.mxu0 }
 0x3a4   : > { %v3533_v39 = vadd.f32 %v3532_v50, %v12158_v46 }
 0x3a6   : > { %v3545_v33 = vpop.f32.mrf.mxu1  ;;  %v3627_v1 = vmax.f32 %v3533_v39, 0.0 }
 0x3a7   : > { %v3546_v23 = vadd.f32 %v3545_v33, %v12158_v46 }
 0x3a8   : > { %v3643_v10 = vmax.f32 %v3635_v9, %v3627_v1  ;;  %v16497_v9 = vmax.f32 %v12177_v40, 0.0 }
 0x3a9   : > { %v3628_v29 = vmax.f32 %v3546_v23, 0.0 }
 0x3aa   : > { %v3651_v51 = vsub.f32 %v3371_v14, %v3643_v10  ;;  %v3675_v56 = vsub.f32 %v3499_v2, %v3643_v10  ;;  %v3699_v47 = vsub.f32 %v3627_v1, %v3643_v10 }
 0x3ab   : > { %v3644_v58 = vmax.f32 %v3636_v45, %v3628_v29  ;;  %v3534_v17 = vpop.f32.mrf.mxu0 }
 0x3ac   : > { %v3659_v20 = vmul.f32 1.442695, %v3651_v51  ;;  %v3683_v37 = vmul.f32 1.442695, %v3675_v56  ;;  %v3707_v11 = vmul.f32 1.442695, %v3699_v47 }
 0x3ad   : > { %v3652_v59 = vsub.f32 %v3372_v36, %v3644_v58  ;;  %v3676_v24 = vsub.f32 %v3500_v63, %v3644_v58  ;;  %v3700_v34 = vsub.f32 %v3628_v29, %v3644_v58 }
 0x3ae   : > { %v3547_v26 = vpop.f32.mrf.mxu1  ;;  %8911 = vpow2.f32 %v3659_v20 }
 0x3af   : > { %v3661_v55 = vmul.f32 1.442695, %v3652_v59  ;;  %v3685_v50 = vmul.f32 1.442695, %v3676_v24  ;;  %8913 = vpow2.f32 %v3683_v37  ;;  %v3709_v39 = vmul.f32 1.442695, %v3700_v34 }
 0x3b0   : > { %8915 = vpow2.f32 %v3707_v11  ;;  %v16498_v37 = vmax.f32 %v12183_v15, 0.0  ;;  %v16499_v34 = vmax.f32 %v12180_v27, 0.0 }
 0x3b1   : > { %8917 = vpow2.f32 %v3661_v55 }
 0x3b2   : > { %8919 = vpow2.f32 %v3685_v50 }
 0x3b3   : > { %8921 = vpow2.f32 %v3709_v39  ;;  %v16500_v39 = vmax.f32 %v12186_v7, 0.0 }
 0x3b4   : > { %v8912_v23 = vpop.eup %8911 }
 0x3b5   : > { %v8914_v33 = vpop.eup %8913 }
 0x3b6   : > { %v8916_v10 = vpop.eup %8915  ;;  %v3731_v1 = vadd.f32 %v8914_v33, %v8912_v23  ;;  %v3558_v17 = vpop.f32.mrf.mxu2 }
 0x3b7   : > { %v8918_v45 = vpop.eup %8917  ;;  %v3559_v29 = vadd.f32 %v3558_v17, %v12158_v46 }
 0x3b8   : > { %v8920_v14 = vpop.eup %8919  ;;  %v3739_v56 = vadd.f32 %v8916_v10, %v3731_v1  ;;  %v3571_v26 = vpop.f32.mrf.mxu3 }
 0x3b9   : > { %v3732_v59 = vadd.f32 %v8920_v14, %v8918_v45  ;;  %v3572_v24 = vadd.f32 %v3571_v26, %v12158_v46  ;;  %v8922_v47 = vpop.eup %8921  ;;  %v3629_v58 = vmax.f32 %v3559_v29, 0.0 }
 0x3ba   : > { %8923 = vrcp.f32 %v3739_v56 }
 0x3bb   : > { %v3740_v55 = vadd.f32 %v8922_v47, %v3732_v59  ;;  %v3630_v2 = vmax.f32 %v3572_v24, 0.0  ;;  %v3645_v36 = vmax.f32 %v12196_v41, %v3629_v58 }
 0x3bd   : > { %8925 = vrcp.f32 %v3740_v55  ;;  %v3646_v63 = vmax.f32 %v12202_v57, %v3630_v2  ;;  %v3653_v51 = vsub.f32 %v16497_v9, %v3645_v36  ;;  %v3677_v20 = vsub.f32 %v16498_v37, %v3645_v36 }
 0x3be   : > { %v3701_v11 = vsub.f32 %v3629_v58, %v3645_v36  ;;  %v3560_v56 = vpop.f32.mrf.mxu2 }
 0x3bf   : > { %v3654_v50 = vsub.f32 %v16499_v34, %v3646_v63  ;;  %v3678_v1 = vsub.f32 %v16500_v39, %v3646_v63  ;;  %v3702_v17 = vsub.f32 %v3630_v2, %v3646_v63  ;;  %v3663_v41 = vmul.f32 1.442695, %v3653_v51 }
 0x3c0   : > { %v8924_v29 = vpop.eup %8923  ;;  %v3687_v26 = vmul.f32 1.442695, %v3677_v20  ;;  %v3711_v59 = vmul.f32 1.442695, %v3701_v11  ;;  %v3573_v57 = vpop.f32.mrf.mxu3  ;;  %v16501_v39 = vmax.f32 %v11369_v31, 0.0  ;;  %v16505_v31 = vmax.f32 %v11951_v4, 0.0 }
 0x3c1   : > { %v3755_v24 = vmul.f32 %v8924_v29, %v8912_v23  ;;  %v3835_v40 = vmul.f32 %v8924_v29, %v8914_v33  ;;  %v3915_v55 = vmul.f32 %v8924_v29, %v8916_v10  ;;  %v3665_v9 = vmul.f32 1.442695, %v3654_v50 }
 0x3c2   : > { %8927 = vpow2.f32 %v3663_v41  ;;  %v3689_v15 = vmul.f32 1.442695, %v3678_v1  ;;  %v3713_v7 = vmul.f32 1.442695, %v3702_v17  ;;  %v16502_v17 = vmax.f32 %v11386_v54, 0.0 }
 0x3c3   : > { %v8926_v58 = vpop.eup %8925  ;;  %v12274_v36 = vperm.slane %v3755_v24, 0  ;;  %v12276_v27 = vperm.slane %v3835_v40, 0  ;;  %8929 = vpow2.f32 %v3687_v26  ;;  %v3584_v2 = vpop.f32.mrf.mxu0  ;;  %v12278_v11 = vperm.slane %v3915_v55, 0 }
 0x3c4   : > { %v3756_v63 = vmul.f32 %v8926_v58, %v8918_v45  ;;  %v3836_v37 = vmul.f32 %v8926_v58, %v8920_v14  ;;  %v3916_v51 = vmul.f32 %v8926_v58, %v8922_v47  ;;  %8931 = vpow2.f32 %v3711_v59 }
 0x3c5   : > { %8933 = vpow2.f32 %v3665_v9  ;;  %v3585_v23 = vadd.f32 %v3584_v2, %v12158_v46  ;;  %v3787_v1 = vmul.f32 %v12274_v36, %v16501_v39  ;;  %v3795_v56 = vmul.f32 %v12274_v36, %v16502_v17 }
 0x3c6   : > { %v3597_v20 = vpop.f32.mrf.mxu1  ;;  %v12282_v10 = vperm.slane %v3756_v63, 0  ;;  %v12284_v34 = vperm.slane %v3836_v37, 0  ;;  %8935 = vpow2.f32 %v3689_v15  ;;  %v12286_v50 = vperm.slane %v3916_v51, 0 }
 0x3c7   : > { %v3598_v33 = vadd.f32 %v3597_v20, %v12158_v46  ;;  %8937 = vpow2.f32 %v3713_v7  ;;  %v3631_v45 = vmax.f32 %v3585_v23, 0.0  ;;  %v16503_v29 = vmax.f32 %v11737_v52, 0.0 }
 0x3c8   : > { %v8928_v47 = vpop.eup %8927  ;;  %v16504_v26 = vmax.f32 %v11746_v5, 0.0  ;;  %v3947_v55 = vmul.f32 %v12278_v11, %v16505_v31  ;;  %v16506_v54 = vmax.f32 %v11960_v61, 0.0  ;;  %v16507_v5 = vmax.f32 %v11379_v16, 0.0 }
 0x3c9   : > { %v3632_v14 = vmax.f32 %v3598_v33, 0.0  ;;  %v3867_v41 = vmul.f32 %v12276_v27, %v16503_v29  ;;  %v8930_v57 = vpop.eup %8929  ;;  %v3647_v24 = vmax.f32 %v12224_v32, %v3631_v45  ;;  %v16508_v32 = vmax.f32 %v12205_v42, 0.0 }
 0x3ca   : > { %v3875_v59 = vmul.f32 %v12276_v27, %v16504_v26  ;;  %v3955_v9 = vmul.f32 %v12278_v11, %v16506_v54  ;;  %v8932_v52 = vpop.eup %8931  ;;  %v3733_v15 = vadd.f32 %v8930_v57, %v8928_v47  ;;  %v3788_v2 = vmul.f32 %v12282_v10, %v16507_v5 }
 0x3cb   : > { %v3648_v40 = vmax.f32 %v12230_v19, %v3632_v14  ;;  %v3899_v58 = vadd.f32 %v3867_v41, %v3787_v1  ;;  %v8934_v63 = vpop.eup %8933  ;;  %v3655_v19 = vsub.f32 %v16508_v32, %v3647_v24  ;;  %v16509_v4 = vmax.f32 %v12211_v12, 0.0  ;;  %v3586_v23 = vpop.f32.mrf.mxu0 }
 0x3cc   : > { %v3907_v7 = vadd.f32 %v3875_v59, %v3795_v56  ;;  %v3703_v51 = vsub.f32 %v3631_v45, %v3647_v24  ;;  %v16510_v61 = vmax.f32 %v12208_v49, 0.0  ;;  %v8936_v33 = vpop.eup %8935  ;;  %v3741_v39 = vadd.f32 %v8932_v52, %v3733_v15 }
 0x3cd   : > { %v3679_v37 = vsub.f32 %v16509_v4, %v3647_v24  ;;  %v16511_v1 = vmax.f32 %v12214_v18, 0.0  ;;  %v3704_v16 = vsub.f32 %v3632_v14, %v3648_v40  ;;  %v3979_v56 = vadd.f32 %v3947_v55, %v3899_v58  ;;  %v8938_v41 = vpop.eup %8937  ;;  %v16514_v55 = vld [vmem:[#allocation94_spill] sm:$0xff] }
 0x3ce   : > { %v3656_v20 = vsub.f32 %v16510_v61, %v3648_v40  ;;  %v3599_v29 = vpop.f32.mrf.mxu1  ;;  %v3734_v26 = vadd.f32 %v8936_v33, %v8934_v63  ;;  %v3667_v42 = vmul.f32 1.442695, %v3655_v19  ;;  %v3715_v31 = vmul.f32 1.442695, %v3703_v51 }
 0x3cf   : > { %v3680_v17 = vsub.f32 %v16511_v1, %v3648_v40  ;;  %v3691_v59 = vmul.f32 1.442695, %v3679_v37  ;;  %8939 = vrcp.f32 %v3741_v39  ;;  %v3717_v24 = vmul.f32 1.442695, %v3704_v16 }
 0x3d0   : > { %v3669_v12 = vmul.f32 1.442695, %v3656_v20  ;;  %v3742_v49 = vadd.f32 %v8938_v41, %v3734_v26  ;;  %8941 = vpow2.f32 %v3667_v42  ;;  %v3987_v54 = vadd.f32 %v3955_v9, %v3907_v7  ;;  %v16518_v7 = vld [vmem:[#allocation84_spill] sm:$0xff]  ;;  %v16520_v20 = vld [vmem:[#allocation106_spill] sm:$0xff] }
 0x3d1   : > { %v3693_v45 = vmul.f32 1.442695, %v3680_v17  ;;  %v16512_v15 = vmax.f32 %v11396_v38, 0.0  ;;  %8943 = vpow2.f32 %v3691_v59  ;;  %v16513_v14 = vmax.f32 %v11740_v30, 0.0 }
 0x3d2   : > { %v16515_v58 = vmax.f32 %v16514_v55, 0.0  ;;  %v16516_v32 = vmax.f32 %v11954_v25, 0.0  ;;  %8945 = vrcp.f32 %v3742_v49  ;;  %v4003_v4 = vpack.c.bf16 %v3987_v54, %v3979_v56  ;;  %v16522_v25 = vld [vmem:[#allocation100_spill] sm:$0xff] }
 0x3d3   : > { %v3796_v18 = vmul.f32 %v12282_v10, %v16512_v15  ;;  %v3868_v40 = vmul.f32 %v12284_v34, %v16513_v14  ;;  %v16517_v9 = vmax.f32 %v11966_v43, 0.0  ;;  %v16519_v37 = vmax.f32 %v16518_v7, 0.0  ;;  %v16524_v43 = vld [vmem:[#allocation159_spill] sm:$0xff] }
 0x3d4   : > { %v3876_v5 = vmul.f32 %v12284_v34, %v16515_v58  ;;  %v3948_v19 = vmul.f32 %v12286_v50, %v16516_v32  ;;  %8947 = vpow2.f32 %v3715_v31  ;;  %v16521_v23 = vmax.f32 %v16520_v20, 0.0  ;;  %4035 = vmatpush.bf16.msra.mxu0 %v4003_v4 }
 0x3d5   : > { %v3956_v38 = vmul.f32 %v12286_v50, %v16517_v9  ;;  %v3771_v30 = vmul.f32 %v12274_v36, %v16519_v37  ;;  %v3900_v51 = vadd.f32 %v3868_v40, %v3788_v2  ;;  %8949 = vpow2.f32 %v3669_v12  ;;  %v8940_v29 = vpop.eup %8939  ;;  %v16530_v37 = vld [vmem:[#allocation110_spill] sm:$0xff] }
 0x3d6   : > { %v3908_v61 = vadd.f32 %v3876_v5, %v3796_v18  ;;  %v3779_v39 = vmul.f32 %v12274_v36, %v16521_v23  ;;  %v16523_v1 = vmax.f32 %v16522_v25, 0.0  ;;  %v16525_v16 = vmax.f32 %v16524_v43, 0.0  ;;  %v12346_v2 = vpop.eup %8941  ;;  %v3610_v58 = vpop.f32.mrf.mxu2 }
 0x3d7   : > { %8951 = vpow2.f32 %v3693_v45  ;;  %v3980_v26 = vadd.f32 %v3948_v19, %v3900_v51  ;;  %v3757_v59 = vmul.f32 %v8940_v29, %v8928_v47  ;;  %v3837_v31 = vmul.f32 %v8940_v29, %v8930_v57  ;;  %v12351_v54 = vpop.eup %8943 }
 0x3d8   : > { %v3851_v17 = vmul.f32 %v12276_v27, %v16523_v1  ;;  %v3859_v56 = vmul.f32 %v12276_v27, %v16525_v16  ;;  %v3988_v42 = vadd.f32 %v3956_v38, %v3908_v61  ;;  %v3917_v49 = vmul.f32 %v8940_v29, %v8932_v52  ;;  %v8946_v27 = vpop.eup %8945  ;;  %v16528_v52 = vld [vmem:[#allocation87_spill] sm:$0xff]  ;;  %v3623_v43 = vpop.f32.mrf.mxu3 }
 0x3d9   : > { %v16526_v36 = vmax.f32 %v11969_v48, 0.0  ;;  %8953 = vpow2.f32 %v3717_v24  ;;  %v12353_v40 = vperm.slane %v3757_v59, 0  ;;  %v3735_v45 = vadd.f32 %v12351_v54, %v12346_v2 }
 0x3da   : > { %v4004_v15 = vpack.c.bf16 %v3988_v42, %v3980_v26  ;;  %v3883_v18 = vadd.f32 %v3851_v17, %v3771_v30  ;;  %v3891_v14 = vadd.f32 %v3859_v56, %v3779_v39  ;;  %v16527_v47 = vmax.f32 %v11957_v62, 0.0  ;;  %v8948_v5 = vpop.eup %8947 }
 0x3db   : > { %v3931_v12 = vmul.f32 %v12278_v11, %v16526_v36  ;;  %v16529_v48 = vmax.f32 %v16528_v52, 0.0  ;;  %v3758_v24 = vmul.f32 %v8946_v27, %v8934_v63  ;;  %v3838_v32 = vmul.f32 %v8946_v27, %v8936_v33  ;;  %v12363_v9 = vpop.eup %8949 }
 0x3dc   : > { %v3939_v57 = vmul.f32 %v12278_v11, %v16527_v47  ;;  %v3918_v19 = vmul.f32 %v8946_v27, %v8938_v41  ;;  %4049 = vmatpush.bf16.msra.mxu1 %v4004_v15  ;;  %v3743_v38 = vadd.f32 %v8948_v5, %v3735_v45  ;;  %v16531_v30 = vmax.f32 %v16530_v37, 0.0  ;;  %v16532_v11 = vld [vmem:[#allocation129_spill] sm:$0xff]  ;;  %v16534_v41 = vld [vmem:[#allocation136_spill] sm:$0xff] }
 0x3dd   : > { %v3772_v55 = vmul.f32 %v12282_v10, %v16529_v48  ;;  %v3963_v4 = vadd.f32 %v3931_v12, %v3883_v18  ;;  %v16533_v51 = vmax.f32 %v16532_v11, 0.0  ;;  %v8952_v20 = vpop.eup %8951  ;;  %v12371_v23 = vperm.slane %v3837_v31, 0 }
 0x3de   : > { %v3971_v7 = vadd.f32 %v3939_v57, %v3891_v14  ;;  %v3780_v62 = vmul.f32 %v12282_v10, %v16531_v30  ;;  %v12373_v63 = vperm.slane %v3917_v49, 0  ;;  %v12375_v33 = vperm.slane %v3758_v24, 0  ;;  %v16538_v14 = vld [vmem:[#allocation157_spill] sm:$0xff]  ;;  %v3612_v47 = vpop.f32.mrf.mxu2  ;;  %v16540_v57 = vld [vmem:[#allocation90_spill] sm:$0xff] }
 0x3df   : > { %v3852_v61 = vmul.f32 %v12284_v34, %v16533_v51  ;;  %v16535_v39 = vmax.f32 %v16534_v41, 0.0  ;;  %8955 = vrcp.f32 %v3743_v38  ;;  %v3736_v1 = vadd.f32 %v8952_v20, %v12363_v9  ;;  %v8954_v16 = vpop.eup %8953  ;;  %v16548_v41 = vld [vmem:[#allocation153_spill] sm:$0xff] }
 0x3e0   : > { %v3995_v17 = vpack.c.bf16 %v3971_v7, %v3963_v4  ;;  %v16536_v29 = vmax.f32 %v11974_v21, 0.0  ;;  %v16537_v42 = vmax.f32 %v11963_v35, 0.0  ;;  %v3611_v31 = vadd.f32 %v3610_v58, %v12158_v46 }
 0x3e1   : > { %v3860_v25 = vmul.f32 %v12284_v34, %v16535_v39  ;;  %v3884_v10 = vadd.f32 %v3852_v61, %v3772_v55  ;;  %v12390_v34 = vld [vmem:[%s15497_s10] sm:$0xff]  ;;  %v12393_v49 = vperm.slane %v3838_v32, 0  ;;  %v12395_v36 = vperm.slane %v3918_v19, 0  ;;  %v16542_v55 = vld [vmem:[#allocation137_spill] sm:$0xff] }
 0x3e2   : > { %v3932_v26 = vmul.f32 %v12286_v50, %v16536_v29  ;;  %v3940_v59 = vmul.f32 %v12286_v50, %v16537_v42  ;;  %v3744_v12 = vadd.f32 %v8954_v16, %v3736_v1  ;;  %4036 = vmatpush.bf16.msra.mxu0 %v3995_v17  ;;  %v3624_v21 = vadd.f32 %v3623_v43, %v12158_v46  ;;  %v16544_v19 = vld [vmem:[#allocation88_spill] sm:$0xff] }
 0x3e3   : > { %v3892_v56 = vadd.f32 %v3860_v25, %v3780_v62  ;;  %v3633_v35 = vmax.f32 %v3611_v31, 0.0  ;;  %v16539_v50 = vmax.f32 %v16538_v14, 0.0  ;;  %v16541_v52 = vmax.f32 %v16540_v57, 0.0 }
 0x3e4   : > { %v3964_v15 = vadd.f32 %v3932_v26, %v3884_v10  ;;  %8957 = vrcp.f32 %v3744_v12  ;;  %v3634_v45 = vmax.f32 %v3624_v21, 0.0  ;;  %v16543_v58 = vmax.f32 %v16542_v55, 0.0 }
 0x3e5   : > { %v3972_v18 = vadd.f32 %v3940_v59, %v3892_v56  ;;  %v3789_v27 = vmul.f32 %v12353_v40, %v16539_v50  ;;  %v3797_v48 = vmul.f32 %v12353_v40, %v16541_v52  ;;  %8363 = vmatmul.msk.bf16.vlgmr.msra.gmra.mxu0 %vm896_vm0, %v12390_v34  ;;  %v3649_v46 = vmax.f32 %v12252_v3, %v3633_v35  ;;  %v8956_v30 = vpop.eup %8955  ;;  %v3625_v59 = vpop.f32.mrf.mxu3 }
 0x3e6   : > { %v3869_v24 = vmul.f32 %v12371_v23, %v16543_v58  ;;  %v16545_v4 = vmax.f32 %v16544_v19, 0.0  ;;  %v16546_v7 = vmax.f32 %v11999_v22, 0.0  ;;  %v3650_v62 = vmax.f32 %v12258_v0, %v3634_v45 }
 0x3e7   : > { %v3996_v32 = vpack.c.bf16 %v3972_v18, %v3964_v15  ;;  %v16547_v51 = vmax.f32 %v12010_v6, 0.0  ;;  %v16549_v39 = vmax.f32 %v16548_v41, 0.0  ;;  %v3759_v25 = vmul.f32 %v8956_v30, %v12346_v2  ;;  %v16565_v41 = vld [vmem:[#allocation154_spill] sm:$0xff] }
 0x3e8   : > { %v3877_v38 = vmul.f32 %v12371_v23, %v16545_v4  ;;  %v3949_v37 = vmul.f32 %v12373_v63, %v16546_v7  ;;  %v3901_v11 = vadd.f32 %v3869_v24, %v3789_v27  ;;  %v3839_v1 = vmul.f32 %v8956_v30, %v12351_v54  ;;  %v16559_v24 = vld [vmem:[#allocation117_spill] sm:$0xff] }
 0x3e9   : > { %v3957_v61 = vmul.f32 %v12373_v63, %v16547_v51  ;;  %v3790_v3 = vmul.f32 %v12375_v33, %v16549_v39  ;;  %v3919_v22 = vmul.f32 %v8956_v30, %v8948_v5  ;;  %4050 = vmatpush.bf16.msra.mxu1 %v3996_v32  ;;  %v16550_v17 = vmax.f32 %v12233_v60, 0.0  ;;  %v16563_v30 = vld [vmem:[#allocation130_spill] sm:$0xff] }
 0x3ea   : > { %v16551_v0 = vmax.f32 %v12239_v8, 0.0  ;;  %v3705_v6 = vsub.f32 %v3633_v35, %v3649_v46  ;;  %v16552_v56 = vmax.f32 %v12236_v28, 0.0  ;;  %v16553_v26 = vmax.f32 %v12242_v13, 0.0  ;;  %v8958_v60 = vpop.eup %8957 }
 0x3eb   : > { %v3657_v10 = vsub.f32 %v16550_v17, %v3649_v46  ;;  %v12433_v31 = vperm.slane %v3759_v25, 0  ;;  %v12435_v2 = vperm.slane %v3839_v1, 0  ;;  %v12437_v54 = vperm.slane %v3919_v22, 0  ;;  %v16567_v1 = vld [vmem:[#allocation118_spill] sm:$0xff] }
 0x3ec   : > { %v3681_v43 = vsub.f32 %v16551_v0, %v3649_v46  ;;  %v3658_v29 = vsub.f32 %v16552_v56, %v3650_v62  ;;  %v3682_v42 = vsub.f32 %v16553_v26, %v3650_v62  ;;  %8364 = vmatmul.msk.bf16.vlgmr.msra.gmra.mxu1 %vm896_vm0, %v12390_v34  ;;  %v3719_v28 = vmul.f32 1.442695, %v3705_v6  ;;  %v16571_v6 = vld [vmem:[#allocation144_spill] sm:$0xff] }
 0x3ed   : > { %v3671_v5 = vmul.f32 1.442695, %v3657_v10  ;;  %v3706_v21 = vsub.f32 %v3634_v45, %v3650_v62  ;;  %v3760_v13 = vmul.f32 %v8958_v60, %v12363_v9  ;;  %v3840_v15 = vmul.f32 %v8958_v60, %v8952_v20  ;;  %v16569_v10 = vld [vmem:[#allocation82_spill] sm:$0xff] }
 0x3ee   : > { %v3695_v8 = vmul.f32 1.442695, %v3681_v43  ;;  %v3673_v12 = vmul.f32 1.442695, %v3658_v29  ;;  %v3920_v18 = vmul.f32 %v8958_v60, %v8954_v16  ;;  %v3697_v35 = vmul.f32 1.442695, %v3682_v42 }
 0x3ef   : > { %8959 = vpow2.f32 %v3671_v5  ;;  %v3721_v14 = vmul.f32 1.442695, %v3706_v21  ;;  %v3909_v50 = vadd.f32 %v3877_v38, %v3797_v48  ;;  %v12449_v27 = vperm.slane %v3760_v13, 0  ;;  %v16555_v16 = vld [vmem:[#allocation122_spill] sm:$0xff]  ;;  %v16557_v48 = vld [vmem:[#allocation80_spill] sm:$0xff]  ;;  %v16575_v42 = vld [vmem:[#allocation91_spill] sm:$0xff] }
 0x3f0   : > { %8961 = vpow2.f32 %v3695_v8  ;;  %v12451_v47 = vperm.slane %v3840_v15, 0  ;;  %v12453_v45 = vperm.slane %v3920_v18, 0  ;;  %v3981_v9 = vadd.f32 %v3949_v37, %v3901_v11  ;;  %v16573_v29 = vld [vmem:[#allocation142_spill] sm:$0xff]  ;;  %v16577_v15 = vld [vmem:[#allocation95_spill] sm:$0xff] }
 0x3f1   : > { %8963 = vpow2.f32 %v3719_v28  ;;  %v3989_v20 = vadd.f32 %v3957_v61, %v3909_v50  ;;  %v16556_v57 = vmax.f32 %v16555_v16, 0.0  ;;  %v16558_v55 = vmax.f32 %v16557_v48, 0.0 }
 0x3f2   : > { %8965 = vpow2.f32 %v3673_v12  ;;  %v16560_v32 = vmax.f32 %v16559_v24, 0.0  ;;  %v16561_v19 = vmax.f32 %v12002_v53, 0.0  ;;  %v16562_v7 = vmax.f32 %v12018_v44, 0.0 }
 0x3f3   : > { %v3798_v52 = vmul.f32 %v12375_v33, %v16556_v57  ;;  %8967 = vpow2.f32 %v3697_v35  ;;  %v3870_v58 = vmul.f32 %v12393_v49, %v16558_v55  ;;  %v4005_v38 = vpack.c.bf16 %v3989_v20, %v3981_v9  ;;  %v16581_v9 = vld [vmem:[#allocation81_spill] sm:$0xff] }
 0x3f4   : > { %v3878_v46 = vmul.f32 %v12393_v49, %v16560_v32  ;;  %v3950_v4 = vmul.f32 %v12395_v36, %v16561_v19  ;;  %8969 = vpow2.f32 %v3721_v14  ;;  %v3958_v37 = vmul.f32 %v12395_v36, %v16562_v7  ;;  %v16579_v14 = vld [vmem:[#allocation120_spill] sm:$0xff]  ;;  %v16585_v7 = vld [vmem:[#allocation149_spill] sm:$0xff] }
 0x3f5   : > { %v16564_v62 = vmax.f32 %v16563_v30, 0.0  ;;  %v12479_v51 = vpop.eup %8959  ;;  %v3902_v61 = vadd.f32 %v3870_v58, %v3790_v3  ;;  %v16566_v39 = vmax.f32 %v16565_v41, 0.0  ;;  %v16568_v44 = vmax.f32 %v16567_v1, 0.0  ;;  %4063 = vmatpush.bf16.msra.mxu2 %v4005_v38  ;;  %v16583_v58 = vld [vmem:[#allocation151_spill] sm:$0xff]  ;;  %v16587_v30 = vld [vmem:[#allocation97_spill] sm:$0xff] }
 0x3f6   : > { %v3910_v53 = vadd.f32 %v3878_v46, %v3798_v52  ;;  %v12487_v17 = vpop.eup %8961  ;;  %v16570_v0 = vmax.f32 %v16569_v10, 0.0  ;;  %v16572_v56 = vmax.f32 %v16571_v6, 0.0  ;;  %v16574_v26 = vmax.f32 %v16573_v29, 0.0 }
 0x3f7   : > { %v3773_v11 = vmul.f32 %v12353_v40, %v16564_v62  ;;  %v3781_v25 = vmul.f32 %v12353_v40, %v16566_v39  ;;  %v3853_v22 = vmul.f32 %v12371_v23, %v16568_v44  ;;  %v16576_v59 = vmax.f32 %v16575_v42, 0.0  ;;  %v8964_v60 = vpop.eup %8963  ;;  %v16592_v44 = vld [vmem:[#allocation121_spill] sm:$0xff] }
 0x3f8   : > { %v3861_v43 = vmul.f32 %v12371_v23, %v16570_v0  ;;  %v3933_v3 = vmul.f32 %v12373_v63, %v16572_v56  ;;  %v3941_v40 = vmul.f32 %v12373_v63, %v16574_v26  ;;  %v3737_v8 = vadd.f32 %v12487_v17, %v12479_v51  ;;  %v12503_v23 = vpop.eup %8965  ;;  %v16594_v0 = vld [vmem:[#allocation138_spill] sm:$0xff]  ;;  %v16596_v56 = vld [vmem:[#allocation172_spill] sm:$0xff] }
 0x3f9   : > { %v3774_v5 = vmul.f32 %v12375_v33, %v16576_v59  ;;  %v3982_v28 = vadd.f32 %v3950_v4, %v3902_v61  ;;  %v3990_v12 = vadd.f32 %v3958_v37, %v3910_v53  ;;  %v3885_v21 = vadd.f32 %v3853_v22, %v3773_v11  ;;  %v8968_v57 = vpop.eup %8967  ;;  %v16589_v61 = vld [vmem:[#allocation73_spill] sm:$0xff]  ;;  %v16598_v26 = vld [vmem:[#allocation72_spill] sm:$0xff] }
 0x3fa   : > { %v3893_v13 = vadd.f32 %v3861_v43, %v3781_v25  ;;  %v16578_v18 = vmax.f32 %v16577_v15, 0.0  ;;  %v16580_v63 = vmax.f32 %v16579_v14, 0.0  ;;  %v16582_v20 = vmax.f32 %v16581_v9, 0.0  ;;  %v8970_v46 = vpop.eup %8969  ;;  %v12552_v15 = vld [vmem:[%s12531_s2] sm:$0xff] }
 0x3fb   : > { %v3745_v52 = vadd.f32 %v8964_v60, %v3737_v8  ;;  %v4006_v48 = vpack.c.bf16 %v3990_v12, %v3982_v28  ;;  %v3965_v55 = vadd.f32 %v3933_v3, %v3885_v21  ;;  %v16584_v24 = vmax.f32 %v16583_v58, 0.0  ;;  %v16602_v12 = vld [vmem:[#allocation107_spill] sm:$0xff]  ;;  %v16606_v9 = vld [vmem:[#allocation140_spill] sm:$0xff] }
 0x3fc   : > { %v3782_v35 = vmul.f32 %v12375_v33, %v16578_v18  ;;  %v3854_v50 = vmul.f32 %v12393_v49, %v16580_v63  ;;  %v3862_v16 = vmul.f32 %v12393_v49, %v16582_v20  ;;  %v3738_v33 = vadd.f32 %v8968_v57, %v12503_v23  ;;  %v16604_v14 = vld [vmem:[#allocation103_spill] sm:$0xff] }
 0x3fd   : > { %v3934_v32 = vmul.f32 %v12395_v36, %v16584_v24  ;;  %v3973_v19 = vadd.f32 %v3941_v40, %v3893_v13  ;;  %8971 = vrcp.f32 %v3745_v52  ;;  %4077 = vmatpush.bf16.msra.mxu3 %v4006_v48  ;;  %v16586_v37 = vmax.f32 %v16585_v7, 0.0  ;;  %v16608_v48 = vld [vmem:[#allocation173_spill] sm:$0xff]  ;;  %v16610_v24 = vld [vmem:[#allocation175_spill] sm:$0xff] }
 0x3fe   : > { %v3886_v4 = vadd.f32 %v3854_v50, %v3774_v5  ;;  %v3894_v38 = vadd.f32 %v3862_v16, %v3782_v35  ;;  %v16588_v62 = vmax.f32 %v16587_v30, 0.0  ;;  %v16590_v53 = vmax.f32 %v16589_v61, 0.0  ;;  %v16600_v5 = vld [vmem:[#allocation124_spill] sm:$0xff] }
 0x3ff   : > { %v3942_v49 = vmul.f32 %v12395_v36, %v16586_v37  ;;  %v3746_v39 = vadd.f32 %v8970_v46, %v3738_v33  ;;  %v3997_v25 = vpack.c.bf16 %v3973_v19, %v3965_v55  ;;  %v16593_v22 = vmax.f32 %v16592_v44, 0.0  ;;  %v16612_v19 = vld [vmem:[#allocation162_spill] sm:$0xff] }
 0x400   : > { %v3791_v11 = vmul.f32 %v12433_v31, %v16588_v62  ;;  %v3799_v41 = vmul.f32 %v12433_v31, %v16590_v53  ;;  %v3966_v1 = vadd.f32 %v3934_v32, %v3886_v4  ;;  %v16595_v43 = vmax.f32 %v16594_v0, 0.0 }
 0x401   : > { %v3871_v36 = vmul.f32 %v12435_v2, %v16593_v22  ;;  %v3974_v10 = vadd.f32 %v3942_v49, %v3894_v38  ;;  %v16597_v3 = vmax.f32 %v16596_v56, 0.0  ;;  %v16599_v40 = vmax.f32 %v16598_v26, 0.0  ;;  %4064 = vmatpush.bf16.msra.mxu2 %v3997_v25 }
 0x402   : > { %v3879_v6 = vmul.f32 %v12435_v2, %v16595_v43  ;;  %8973 = vrcp.f32 %v3746_v39  ;;  %v16601_v8 = vmax.f32 %v16600_v5, 0.0  ;;  %v16603_v21 = vmax.f32 %v16602_v12, 0.0  ;;  %v16620_v5 = vld [vmem:[#allocation165_spill] sm:$0xff]  ;;  %v16622_v12 = vld [vmem:[#allocation174_spill] sm:$0xff] }
 0x403   : > { %v3951_v29 = vmul.f32 %v12437_v54, %v16597_v3  ;;  %v3959_v42 = vmul.f32 %v12437_v54, %v16599_v40  ;;  %v3903_v59 = vadd.f32 %v3871_v36, %v3791_v11  ;;  %v3998_v18 = vpack.c.bf16 %v3974_v10, %v3966_v1  ;;  %v8972_v7 = vpop.eup %8971  ;;  %v16616_v36 = vld [vmem:[#allocation141_spill] sm:$0xff] }
 0x404   : > { %v3792_v28 = vmul.f32 %v12449_v27, %v16601_v8  ;;  %v3800_v13 = vmul.f32 %v12449_v27, %v16603_v21  ;;  %v3911_v35 = vadd.f32 %v3879_v6, %v3799_v41  ;;  %v16605_v63 = vmax.f32 %v16604_v14, 0.0  ;;  %8365 = vmatmul.msk.bf16.vlgmr.msra.gmra.mxu2 %vm896_vm0, %v12390_v34  ;;  %v16614_v41 = vld [vmem:[#allocation77_spill] sm:$0xff] }
 0x405   : > { %v16607_v20 = vmax.f32 %v16606_v9, 0.0  ;;  %v3983_v52 = vadd.f32 %v3951_v29, %v3903_v59  ;;  %v16609_v55 = vmax.f32 %v16608_v48, 0.0  ;;  %v16611_v32 = vmax.f32 %v16610_v24, 0.0  ;;  %4078 = vmatpush.bf16.msra.mxu3 %v3998_v18  ;;  %v16630_v48 = vld [vmem:[#allocation139_spill] sm:$0xff]  ;;  %v16632_v24 = vld [vmem:[#allocation169_spill] sm:$0xff] }
 0x406   : > { %v3872_v50 = vmul.f32 %v12451_v47, %v16605_v63  ;;  %v16613_v4 = vmax.f32 %v16612_v19, 0.0  ;;  %v3991_v37 = vadd.f32 %v3959_v42, %v3911_v35  ;;  %v4205_v62 = vunpack.c.l.b16 %v12552_v15  ;;  %v16634_v19 = vld [vmem:[#allocation168_spill] sm:$0xff] }
 0x407   : > { %v3880_v16 = vmul.f32 %v12451_v47, %v16607_v20  ;;  %v3952_v58 = vmul.f32 %v12453_v45, %v16609_v55  ;;  %v3960_v33 = vmul.f32 %v12453_v45, %v16611_v32  ;;  %v3761_v11 = vmul.f32 %v8972_v7, %v12479_v51  ;;  %v16618_v51 = vld [vmem:[#allocation112_spill] sm:$0xff] }
 0x408   : > { %v3775_v38 = vmul.f32 %v12433_v31, %v16613_v4  ;;  %v3904_v49 = vadd.f32 %v3872_v50, %v3792_v28  ;;  %v3841_v61 = vmul.f32 %v8972_v7, %v12487_v17  ;;  %v3921_v53 = vmul.f32 %v8972_v7, %v8964_v60  ;;  %v8974_v43 = vpop.eup %8973  ;;  %8366 = vmatmul.msk.bf16.vlgmr.msra.gmra.mxu3 %vm896_vm0, %v12390_v34  ;;  %v16626_v50 = vld [vmem:[#allocation114_spill] sm:$0xff]  ;;  %v16636_v7 = vld [vmem:[#allocation79_spill] sm:$0xff] }
 0x409   : > { %v3912_v30 = vadd.f32 %v3880_v16, %v3800_v13  ;;  %v16615_v39 = vmax.f32 %v16614_v41, 0.0  ;;  %v4007_v1 = vpack.c.bf16 %v3991_v37, %v3983_v52  ;;  %v16617_v10 = vmax.f32 %v16616_v36, 0.0  ;;  %v16628_v16 = vld [vmem:[#allocation131_spill] sm:$0xff]  ;;  %v16640_v41 = vld [vmem:[#allocation152_spill] sm:$0xff] }
 0x40a   : > { %v3984_v44 = vadd.f32 %v3952_v58, %v3904_v49  ;;  %v3769_v6 = vperm.slane %v3761_v11, 0  ;;  %v12580_v56 = vperm.slane %v3841_v61, 0  ;;  %v12582_v3 = vperm.slane %v3921_v53, 0  ;;  %v16638_v11 = vld [vmem:[#allocation115_spill] sm:$0xff] }
 0x40b   : > { %v3783_v25 = vmul.f32 %v12433_v31, %v16615_v39  ;;  %v3992_v22 = vadd.f32 %v3960_v33, %v3912_v30  ;;  %v3855_v0 = vmul.f32 %v12435_v2, %v16617_v10  ;;  %v16619_v17 = vmax.f32 %v16618_v51, 0.0  ;;  %4091 = vmatpush.bf16.msrb.mxu0 %v4007_v1  ;;  %v16642_v1 = vld [vmem:[#allocation133_spill] sm:$0xff]  ;;  %v16644_v36 = vld [vmem:[#allocation127_spill] sm:$0xff] }
 0x40c   : > { %v3762_v60 = vmul.f32 %v8974_v43, %v12503_v23  ;;  %v3842_v29 = vmul.f32 %v8974_v43, %v8968_v57  ;;  %v3922_v26 = vmul.f32 %v8974_v43, %v8970_v46  ;;  %v16621_v8 = vmax.f32 %v16620_v5, 0.0  ;;  %v16624_v23 = vld [vmem:[#allocation74_spill] sm:$0xff] }
 0x40d   : > { %v3863_v31 = vmul.f32 %v12435_v2, %v16619_v17  ;;  %v4008_v40 = vpack.c.bf16 %v3992_v22, %v3984_v44  ;;  %v3887_v42 = vadd.f32 %v3855_v0, %v3775_v38  ;;  %v16623_v21 = vmax.f32 %v16622_v12, 0.0  ;;  %v16646_v0 = vld [vmem:[#allocation105_spill] sm:$0xff] }
 0x40e   : > { %v3935_v28 = vmul.f32 %v12437_v54, %v16621_v8  ;;  %v3770_v18 = vperm.slane %v3762_v60, 0  ;;  %v12596_v35 = vperm.slane %v3842_v29, 0  ;;  %v12598_v2 = vperm.slane %v3922_v26, 0  ;;  %v16648_v60 = vld [vmem:[#allocation109_spill] sm:$0xff] }
 0x40f   : > { %v3895_v59 = vadd.f32 %v3863_v31, %v3783_v25  ;;  %v3943_v13 = vmul.f32 %v12437_v54, %v16623_v21  ;;  %4105 = vmatpush.bf16.msrb.mxu1 %v4008_v40  ;;  %v16625_v57 = vmax.f32 %v16624_v23, 0.0  ;;  %v16627_v9 = vmax.f32 %v16626_v50, 0.0  ;;  %v16650_v40 = vld [vmem:[#allocation93_spill] sm:$0xff] }
 0x410   : > { %v3967_v14 = vadd.f32 %v3935_v28, %v3887_v42  ;;  %v16629_v52 = vmax.f32 %v16628_v16, 0.0  ;;  %v16631_v55 = vmax.f32 %v16630_v48, 0.0  ;;  %v16633_v32 = vmax.f32 %v16632_v24, 0.0  ;;  %v16652_v28 = vld [vmem:[#allocation155_spill] sm:$0xff] }
 0x411   : > { %v3776_v46 = vmul.f32 %v12449_v27, %v16625_v57  ;;  %v3975_v63 = vadd.f32 %v3943_v13, %v3895_v59  ;;  %v3784_v20 = vmul.f32 %v12449_v27, %v16627_v9  ;;  %v16635_v4 = vmax.f32 %v16634_v19, 0.0  ;;  %v16654_v13 = vld [vmem:[#allocation163_spill] sm:$0xff]  ;;  %v16658_v9 = vld [vmem:[#allocation86_spill] sm:$0xff] }
 0x412   : > { %v3856_v54 = vmul.f32 %v12451_v47, %v16629_v52  ;;  %v3864_v58 = vmul.f32 %v12451_v47, %v16631_v55  ;;  %v3936_v33 = vmul.f32 %v12453_v45, %v16633_v32  ;;  %v16637_v37 = vmax.f32 %v16636_v7, 0.0  ;;  %v16660_v32 = vld [vmem:[#allocation99_spill] sm:$0xff] }
 0x413   : > { %v3944_v38 = vmul.f32 %v12453_v45, %v16635_v4  ;;  %v3999_v27 = vpack.c.bf16 %v3975_v63, %v3967_v14  ;;  %v16639_v61 = vmax.f32 %v16638_v11, 0.0  ;;  %v16641_v39 = vmax.f32 %v16640_v41, 0.0  ;;  %v16656_v14 = vld [vmem:[#allocation171_spill] sm:$0xff]  ;;  %v16662_v4 = vld [vmem:[#allocation156_spill] sm:$0xff] }
 0x414   : > { %v3793_v49 = vmul.f32 %v3769_v6, %v16637_v37  ;;  %v3888_v30 = vadd.f32 %v3856_v54, %v3776_v46  ;;  %v3896_v25 = vadd.f32 %v3864_v58, %v3784_v20  ;;  %v16643_v44 = vmax.f32 %v16642_v1, 0.0  ;;  %v16664_v11 = vld [vmem:[#allocation135_spill] sm:$0xff] }
 0x415   : > { %v3801_v53 = vmul.f32 %v3769_v6, %v16639_v61  ;;  %v3873_v47 = vmul.f32 %v12580_v56, %v16641_v39  ;;  %v16645_v10 = vmax.f32 %v16644_v36, 0.0  ;;  %v16647_v43 = vmax.f32 %v16646_v0, 0.0  ;;  %4092 = vmatpush.bf16.msrb.mxu0 %v3999_v27 }
 0x416   : > { %v3881_v22 = vmul.f32 %v12580_v56, %v16643_v44  ;;  %v3968_v17 = vadd.f32 %v3936_v33, %v3888_v30  ;;  %v16649_v29 = vmax.f32 %v16648_v60, 0.0  ;;  %v16651_v42 = vmax.f32 %v16650_v40, 0.0  ;;  %v16670_v44 = vld [vmem:[#allocation167_spill] sm:$0xff] }
 0x417   : > { %v3953_v45 = vmul.f32 %v12582_v3, %v16645_v10  ;;  %v3961_v51 = vmul.f32 %v12582_v3, %v16647_v43  ;;  %v3905_v31 = vadd.f32 %v3873_v47, %v3793_v49  ;;  %v3976_v5 = vadd.f32 %v3944_v38, %v3896_v25  ;;  %v16668_v47 = vld [vmem:[#allocation102_spill] sm:$0xff]  ;;  %v16672_v10 = vld [vmem:[#allocation128_spill] sm:$0xff] }
 0x418   : > { %v3794_v26 = vmul.f32 %v3770_v18, %v16649_v29  ;;  %v3802_v59 = vmul.f32 %v3770_v18, %v16651_v42  ;;  %v3913_v8 = vadd.f32 %v3881_v22, %v3801_v53  ;;  %v16653_v12 = vmax.f32 %v16652_v28, 0.0  ;;  %8367 = vmatmul.msk.bf16.vlgmr.msrb.gmra.mxu0 %vm896_vm0, %v12390_v34  ;;  %v16674_v43 = vld [vmem:[#allocation164_spill] sm:$0xff] }
 0x419   : > { %v16655_v23 = vmax.f32 %v16654_v13, 0.0  ;;  %v3985_v46 = vadd.f32 %v3953_v45, %v3905_v31  ;;  %v16657_v63 = vmax.f32 %v16656_v14, 0.0  ;;  %v16659_v20 = vmax.f32 %v16658_v9, 0.0  ;;  %v4158_v31 = vld [vmem:[%s12531_s2 + $0x8] sm:$0xff] }
 0x41a   : > { %v3874_v21 = vmul.f32 %v12596_v35, %v16653_v12  ;;  %v4213_v52 = vpack.c.b16 %v4205_v62, %v4205_v62  ;;  %v4000_v54 = vpack.c.bf16 %v3976_v5, %v3968_v17  ;;  %v3993_v48 = vadd.f32 %v3961_v51, %v3913_v8  ;;  %v16680_v8 = vld [vmem:[#allocation176_spill] sm:$0xff] }
 0x41b   : > { %v3882_v57 = vmul.f32 %v12596_v35, %v16655_v23  ;;  %v3954_v50 = vmul.f32 %v12598_v2, %v16657_v63  ;;  %v3962_v16 = vmul.f32 %v12598_v2, %v16659_v20  ;;  %v4206_v24 = vunpack.c.h.b16 %v12552_v15  ;;  %v16666_v15 = vld [vmem:[#allocation161_spill] sm:$0xff] }
 0x41c   : > { %v3906_v55 = vadd.f32 %v3874_v21, %v3794_v26  ;;  %v16661_v33 = vmax.f32 %v16660_v32, 0.0  ;;  %v16663_v38 = vmax.f32 %v16662_v4, 0.0  ;;  %4106 = vmatpush.bf16.msrb.mxu1 %v4000_v54  ;;  %v4009_v37 = vpack.c.bf16 %v3993_v48, %v3985_v46  ;;  %v16676_v26 = vld [vmem:[#allocation146_spill] sm:$0xff]  ;;  %v16682_v46 = vld [vmem:[#allocation147_spill] sm:$0xff] }
 0x41d   : > { %v3914_v58 = vadd.f32 %v3882_v57, %v3802_v59  ;;  %v4248_v27 = vsel %vm4246_vm4, %v4213_v52, 0  ;;  %v4214_v30 = vpack.c.b16 %v4206_v24, %v4206_v24  ;;  %v16665_v61 = vmax.f32 %v16664_v11, 0.0  ;;  %v12734_v24 = vld [vmem:[%s15499_s12 + $0x18] sm:$0xff] }
 0x41e   : > { %v3777_v19 = vmul.f32 %v3769_v6, %v16661_v33  ;;  %v3785_v7 = vmul.f32 %v3769_v6, %v16663_v38  ;;  %v3986_v62 = vadd.f32 %v3954_v50, %v3906_v55  ;;  %4278 = vmatpush.bf16.msra.mxu0 %v4248_v27  ;;  %v16667_v41 = vmax.f32 %v16666_v15, 0.0  ;;  %4119 = vmatpush.bf16.msrb.mxu2 %v4009_v37  ;;  %v12694_v55 = vld [vmem:[%s15499_s12] sm:$0xff]  ;;  %v4160_v32 = vld [vmem:[%s12531_s2 + $0x18] sm:$0xff] }
 0x41f   : > { %v3994_v49 = vadd.f32 %v3962_v16, %v3914_v58  ;;  %v3857_v53 = vmul.f32 %v12580_v56, %v16665_v61  ;;  %v16669_v25 = vmax.f32 %v16668_v47, 0.0  ;;  %v16671_v22 = vmax.f32 %v16670_v44, 0.0  ;;  %8368 = vmatmul.msk.bf16.vlgmr.msrb.gmra.mxu1 %vm896_vm0, %v12390_v34  ;;  %v12766_v47 = vld [vmem:[%s15499_s12 + $0x28] sm:$0xff] }
 0x420   : > { %v3865_v39 = vmul.f32 %v12580_v56, %v16667_v41  ;;  %v16673_v45 = vmax.f32 %v16672_v10, 0.0  ;;  %v16675_v51 = vmax.f32 %v16674_v43, 0.0  ;;  %v4251_v56 = vsel %vm4246_vm4, %v4214_v30, 0  ;;  %v12751_v30 = vld [vmem:[%s15499_s12 + $0x20] sm:$0xff] }
 0x421   : > { %v3937_v6 = vmul.f32 %v12582_v3, %v16669_v25  ;;  %v4010_v1 = vpack.c.bf16 %v3994_v49, %v3986_v62  ;;  %v3945_v36 = vmul.f32 %v12582_v3, %v16671_v22  ;;  %v3889_v60 = vadd.f32 %v3857_v53, %v3777_v19  ;;  %4327 = vmatpush.bf16.msra.mxu1 %v4251_v56  ;;  %v16678_v3 = vld [vmem:[#allocation145_spill] sm:$0xff]  ;;  %v12768_v25 = vpop.permute.xlu2 %4013 }
 0x422   : > { %v3778_v0 = vmul.f32 %v3770_v18, %v16673_v45  ;;  %v3786_v17 = vmul.f32 %v3770_v18, %v16675_v51  ;;  %v3897_v29 = vadd.f32 %v3865_v39, %v3785_v7  ;;  %v16677_v40 = vmax.f32 %v16676_v26, 0.0  ;;  %v4159_v7 = vld [vmem:[%s12531_s2 + $0x10] sm:$0xff] }
 0x423   : > { %4133 = vmatpush.bf16.msrb.mxu3 %v4010_v1  ;;  %v16679_v59 = vmax.f32 %v16678_v3, 0.0  ;;  %v16681_v18 = vmax.f32 %v16680_v8, 0.0  ;;  %v3969_v12 = vadd.f32 %v3937_v6, %v3889_v60  ;;  %v4207_v23 = vunpack.c.l.b16 %v4158_v31  ;;  %v12773_v1 = vpop.permute.xlu0 %4018  ;;  %v12787_v60 = vld [vmem:[%s15499_s12 + $0x30] sm:$0xff] }
 0x424   : > { %v3858_v42 = vmul.f32 %v12596_v35, %v16677_v40  ;;  %v3977_v21 = vadd.f32 %v3945_v36, %v3897_v29  ;;  %v16683_v14 = vmax.f32 %v16682_v46, 0.0  ;;  %v4208_v50 = vunpack.c.h.b16 %v4158_v31 }
 0x425   : > { %v3866_v5 = vmul.f32 %v12596_v35, %v16679_v59  ;;  %v3938_v28 = vmul.f32 %v12598_v2, %v16681_v18  ;;  %v4215_v16 = vpack.c.b16 %v4207_v23, %v4207_v23  ;;  %v4211_v33 = vunpack.c.l.b16 %v4160_v32 }
 0x426   : > { %v3890_v13 = vadd.f32 %v3858_v42, %v3778_v0  ;;  %v3946_v63 = vmul.f32 %v12598_v2, %v16683_v14  ;;  %v4001_v9 = vpack.c.bf16 %v3977_v21, %v3969_v12  ;;  %v4216_v54 = vpack.c.b16 %v4208_v50, %v4208_v50  ;;  %v12708_v2 = vld [vmem:[%s15499_s12 + $0x8] sm:$0xff]  ;;  %v12801_v42 = vld [vmem:[%s15499_s12 + $0x38] sm:$0xff] }
 0x427   : > { %v3898_v57 = vadd.f32 %v3866_v5, %v3786_v17  ;;  %v4254_v35 = vsel %vm4246_vm4, %v4215_v16, 0  ;;  %v4212_v19 = vunpack.c.h.b16 %v4160_v32  ;;  %v4219_v4 = vpack.c.b16 %v4211_v33, %v4211_v33 }
 0x428   : > { %v3970_v20 = vadd.f32 %v3938_v28, %v3890_v13  ;;  %4120 = vmatpush.bf16.msrb.mxu2 %v4001_v9  ;;  %v4257_v58 = vsel %vm4246_vm4, %v4216_v54, 0  ;;  %8403 = vmatmul.msk.bf16.vlgmr.msra.gmra.mxu0 %vm4221_vm5, %v12694_v55  ;;  %v4209_v49 = vunpack.c.l.b16 %v4159_v7  ;;  %v4210_v27 = vunpack.c.h.b16 %v4159_v7 }
 0x429   : > { %v3978_v52 = vadd.f32 %v3946_v63, %v3898_v57  ;;  %v4220_v38 = vpack.c.b16 %v4212_v19, %v4212_v19  ;;  %v4266_v37 = vsel %vm4246_vm4, %v4219_v4, 0 }
 0x42a   : > { %v4217_v11 = vpack.c.b16 %v4209_v49, %v4209_v49  ;;  %v4218_v61 = vpack.c.b16 %v4210_v27, %v4210_v27 }
 0x42b   : > { %v4002_v48 = vpack.c.bf16 %v3978_v52, %v3970_v20  ;;  %8369 = vmatmul.msk.bf16.vlgmr.msrb.gmra.mxu2 %vm896_vm0, %v12390_v34  ;;  %v4269_v62 = vsel %vm4246_vm4, %v4220_v38, 0 }
 0x42c   : > { %4376 = vmatpush.bf16.msra.mxu2 %v4254_v35  ;;  %v4260_v53 = vsel %vm4246_vm4, %v4217_v11, 0  ;;  %v4263_v15 = vsel %vm4246_vm4, %v4218_v61, 0 }
 0x42d   : > { %4134 = vmatpush.bf16.msrb.mxu3 %v4002_v48  ;;  %4474 = vmatpush.bf16.msrb.mxu0 %v4260_v53 }
 0x42e   : > { %4523 = vmatpush.bf16.msrb.mxu1 %v4263_v15 }
 0x42f   : > { %8411 = vmatmul.msk.bf16.vlgmr.msra.gmra.mxu1 %vm4221_vm5, %v12694_v55 }
 0x430   : > { %8370 = vmatmul.msk.bf16.vlgmr.msrb.gmra.mxu3 %vm896_vm0, %v12390_v34  ;;  %v12721_v34 = vld [vmem:[%s15499_s12 + $0x10] sm:$0xff]  ;;  %4572 = vmatpush.bf16.msrb.mxu2 %v4266_v37 }
 0x431   : > { %4425 = vmatpush.bf16.msra.mxu3 %v4257_v58 }
 0x435   : > { %4621 = vmatpush.bf16.msrb.mxu3 %v4269_v62 }
 0x438   : > { %8404 = vmatmul.msk.bf16.gmra.mxu0 %vm4221_vm5, %v12708_v2 }
 0x43b   : > { %8419 = vmatmul.msk.bf16.vlgmr.msra.gmra.mxu2 %vm4221_vm5, %v12694_v55 }
 0x43f   : > { %8412 = vmatmul.msk.bf16.gmra.mxu1 %vm4221_vm5, %v12708_v2 }
 0x440   : > { %8427 = vmatmul.msk.bf16.vlgmr.msra.gmra.mxu3 %vm4221_vm5, %v12694_v55 }
 0x448   : > { %8405 = vmatmul.msk.bf16.gmra.mxu0 %vm4221_vm5, %v12721_v34 }
 0x44b   : > { %8420 = vmatmul.msk.bf16.gmra.mxu2 %vm4221_vm5, %v12708_v2 }
 0x44f   : > { %8413 = vmatmul.msk.bf16.gmra.mxu1 %vm4221_vm5, %v12721_v34 }
 0x450   : > { %8428 = vmatmul.msk.bf16.gmra.mxu3 %vm4221_vm5, %v12708_v2 }
 0x458   : > { %8406 = vmatmul.msk.bf16.gmra.mxu0 %vm4221_vm5, %v12734_v24 }
 0x45b   : > { %8421 = vmatmul.msk.bf16.gmra.mxu2 %vm4221_vm5, %v12721_v34 }
 0x45f   : > { %8414 = vmatmul.msk.bf16.gmra.mxu1 %vm4221_vm5, %v12734_v24 }
 0x460   : > { %8429 = vmatmul.msk.bf16.gmra.mxu3 %vm4221_vm5, %v12721_v34 }
 0x462   : > { %v4038_v41 = vpop.f32.mrf.mxu0 }
 0x463   : > { %v4039_v6 = vadd.f32 %v4038_v41, %v12768_v25 }
 0x465   : > { %v4141_v36 = vmax.f32 %v4039_v6, 0.0 }
 0x468   : > { %8407 = vmatmul.msk.bf16.gmra.mxu0 %vm4221_vm5, %v12751_v30 }
 0x469   : > { %v4052_v39 = vpop.f32.mrf.mxu1 }
 0x46a   : > { %v4040_v44 = vpop.f32.mrf.mxu0  ;;  %v4053_v45 = vadd.f32 %v4052_v39, %v12768_v25 }
 0x46b   : > { %8422 = vmatmul.msk.bf16.gmra.mxu2 %vm4221_vm5, %v12734_v24  ;;  %v4041_v22 = vadd.f32 %v4040_v44, %v12773_v1 }
 0x46c   : > { %v4142_v17 = vmax.f32 %v4053_v45, 0.0 }
 0x46d   : > { %v4149_v10 = vmax.f32 %v4041_v22, 0.0 }
 0x46f   : > { %8415 = vmatmul.msk.bf16.gmra.mxu1 %vm4221_vm5, %v12751_v30  ;;  %v4663_v0 = vpack.c.bf16 %v4149_v10, %v4141_v36 }
 0x470   : > { %8430 = vmatmul.msk.bf16.gmra.mxu3 %vm4221_vm5, %v12734_v24 }
 0x471   : > { %v4054_v43 = vpop.f32.mrf.mxu1  ;;  %4743 = vmatpush.bf16.msra.mxu0 %v4663_v0 }
 0x472   : > { %v4055_v51 = vadd.f32 %v4054_v43, %v12773_v1 }
 0x474   : > { %v4150_v31 = vmax.f32 %v4055_v51, 0.0 }
 0x476   : > { %v4664_v56 = vpack.c.bf16 %v4150_v31, %v4142_v17 }
 0x478   : > { %8408 = vmatmul.msk.bf16.gmra.mxu0 %vm4221_vm5, %v12766_v47  ;;  %4792 = vmatpush.bf16.msra.mxu1 %v4664_v56 }
 0x47b   : > { %8423 = vmatmul.msk.bf16.gmra.mxu2 %vm4221_vm5, %v12751_v30 }
 0x47f   : > { %8416 = vmatmul.msk.bf16.gmra.mxu1 %vm4221_vm5, %v12766_v47 }
 0x480   : > { %8431 = vmatmul.msk.bf16.gmra.mxu3 %vm4221_vm5, %v12751_v30 }
 0x487   : > { %v4066_v29 = vpop.f32.mrf.mxu2 }
 0x488   : > { %8409 = vmatmul.msk.bf16.gmra.mxu0 %vm4221_vm5, %v12787_v60  ;;  %v4067_v40 = vadd.f32 %v4066_v29, %v12768_v25 }
 0x48a   : > { %v4143_v18 = vmax.f32 %v4067_v40, 0.0 }
 0x48b   : > { %8424 = vmatmul.msk.bf16.gmra.mxu2 %vm4221_vm5, %v12766_v47  ;;  %v4080_v26 = vpop.f32.mrf.mxu3 }
 0x48c   : > { %v4081_v8 = vadd.f32 %v4080_v26, %v12768_v25 }
 0x48e   : > { %v4144_v57 = vmax.f32 %v4081_v8, 0.0 }
 0x48f   : > { %8417 = vmatmul.msk.bf16.gmra.mxu1 %vm4221_vm5, %v12787_v60  ;;  %v4068_v3 = vpop.f32.mrf.mxu2 }
 0x490   : > { %8432 = vmatmul.msk.bf16.gmra.mxu3 %vm4221_vm5, %v12766_v47  ;;  %v4069_v5 = vadd.f32 %v4068_v3, %v12773_v1 }
 0x492   : > { %v4151_v28 = vmax.f32 %v4069_v5, 0.0 }
 0x493   : > { %v4082_v12 = vpop.f32.mrf.mxu3 }
 0x494   : > { %v4083_v21 = vadd.f32 %v4082_v12, %v12773_v1  ;;  %v4665_v13 = vpack.c.bf16 %v4151_v28, %v4143_v18 }
 0x495   : > { %v4094_v59 = vpop.f32.mrf.mxu0 }
 0x496   : > { %v4152_v46 = vmax.f32 %v4083_v21, 0.0  ;;  %4841 = vmatpush.bf16.msra.mxu2 %v4665_v13  ;;  %v4095_v9 = vadd.f32 %v4094_v59, %v12768_v25 }
 0x498   : > { %8410 = vmatmul.msk.bf16.gmra.mxu0 %vm4221_vm5, %v12801_v42  ;;  %v4666_v14 = vpack.c.bf16 %v4152_v46, %v4144_v57  ;;  %v4145_v54 = vmax.f32 %v4095_v9, 0.0 }
 0x49a   : > { %4890 = vmatpush.bf16.msra.mxu3 %v4666_v14 }
 0x49b   : > { %8425 = vmatmul.msk.bf16.gmra.mxu2 %vm4221_vm5, %v12787_v60 }
 0x49c   : > { %v4108_v23 = vpop.f32.mrf.mxu1 }
 0x49d   : > { %v4096_v63 = vpop.f32.mrf.mxu0  ;;  %v4109_v48 = vadd.f32 %v4108_v23, %v12768_v25 }
 0x49e   : > { %v4097_v50 = vadd.f32 %v4096_v63, %v12773_v1 }
 0x49f   : > { %8418 = vmatmul.msk.bf16.gmra.mxu1 %vm4221_vm5, %v12801_v42  ;;  %v4146_v19 = vmax.f32 %v4109_v48, 0.0 }
 0x4a0   : > { %8433 = vmatmul.msk.bf16.gmra.mxu3 %vm4221_vm5, %v12787_v60  ;;  %v4153_v16 = vmax.f32 %v4097_v50, 0.0 }
 0x4a2   : > { %v4667_v58 = vpack.c.bf16 %v4153_v16, %v4145_v54 }
 0x4a4   : > { %v4110_v20 = vpop.f32.mrf.mxu1 }
 0x4a5   : > { %v4111_v52 = vadd.f32 %v4110_v20, %v12773_v1  ;;  %v12817_v35 = vpop.f32.mrf.mxu0 }
 0x4a7   : > { %v4154_v32 = vmax.f32 %v4111_v52, 0.0 }
 0x4a8   : > { %8435 = vmatmul.msk.bf16.vlgmr.msrb.gmra.mxu0 %vm4221_vm5, %v12694_v55 }
 0x4a9   : > { %4939 = vmatpush.bf16.msrb.mxu0 %v4667_v58  ;;  %v4668_v38 = vpack.c.bf16 %v4154_v32, %v4146_v19 }
 0x4ab   : > { %8426 = vmatmul.msk.bf16.gmra.mxu2 %vm4221_vm5, %v12801_v42 }
 0x4ac   : > { %v12826_v4 = vpop.f32.mrf.mxu1 }
 0x4ad   : > { %v12830_v37 = vpop.f32.mrf.mxu0 }
 0x4ae   : > { %v4122_v33 = vpop.f32.mrf.mxu2 }
 0x4af   : > { %8443 = vmatmul.msk.bf16.vlgmr.msrb.gmra.mxu1 %vm4221_vm5, %v12694_v55  ;;  %v4123_v62 = vadd.f32 %v4122_v33, %v12768_v25 }
 0x4b0   : > { %8434 = vmatmul.msk.bf16.gmra.mxu3 %vm4221_vm5, %v12801_v42  ;;  %4988 = vmatpush.bf16.msrb.mxu1 %v4668_v38 }
 0x4b1   : > { %v4147_v53 = vmax.f32 %v4123_v62, 0.0 }
 0x4b3   : > { %v4136_v7 = vpop.f32.mrf.mxu3 }
 0x4b4   : > { %v12833_v27 = vpop.f32.mrf.mxu1  ;;  %v4137_v61 = vadd.f32 %v4136_v7, %v12768_v25 }
 0x4b5   : > { %v12838_v6 = vpop.f32.mrf.mxu0 }
 0x4b6   : > { %v4124_v49 = vpop.f32.mrf.mxu2  ;;  %v4148_v22 = vmax.f32 %v4137_v61, 0.0 }
 0x4b7   : > { %v4125_v11 = vadd.f32 %v4124_v49, %v12773_v1 }
 0x4b8   : > { %8436 = vmatmul.msk.bf16.gmra.mxu0 %vm4221_vm5, %v12708_v2 }
 0x4b9   : > { %v4155_v15 = vmax.f32 %v4125_v11, 0.0 }
 0x4bb   : > { %v4138_v41 = vpop.f32.mrf.mxu3  ;;  %v4669_v44 = vpack.c.bf16 %v4155_v15, %v4147_v53  ;;  %8451 = vmatmul.msk.bf16.vlgmr.msrb.gmra.mxu2 %vm4221_vm5, %v12694_v55 }
 0x4bc   : > { %v4139_v39 = vadd.f32 %v4138_v41, %v12773_v1  ;;  %v12848_v45 = vpop.f32.mrf.mxu1 }
 0x4bd   : > { %5037 = vmatpush.bf16.msrb.mxu2 %v4669_v44  ;;  %v12854_v0 = vpop.f32.mrf.mxu0 }
 0x4be   : > { %v4156_v36 = vmax.f32 %v4139_v39, 0.0  ;;  %v12846_v25 = vpop.f32.mrf.mxu2 }
 0x4bf   : > { %16684 = vst [vmem:[#allocation94_spill] sm:$0xff] %v12846_v25  ;;  %8444 = vmatmul.msk.bf16.gmra.mxu1 %vm4221_vm5, %v12708_v2 }
 0x4c0   : > { %v4670_v10 = vpack.c.bf16 %v4156_v36, %v4148_v22  ;;  %8459 = vmatmul.msk.bf16.vlgmr.msrb.gmra.mxu3 %vm4221_vm5, %v12694_v55 }
 0x4c2   : > { %5086 = vmatpush.bf16.msrb.mxu3 %v4670_v10 }
 0x4c3   : > { %v12850_v1 = vpop.f32.mrf.mxu3 }
 0x4c4   : > { %16685 = vst [vmem:[#allocation84_spill] sm:$0xff] %v12850_v1  ;;  %v12858_v51 = vpop.f32.mrf.mxu1 }
 0x4c5   : > { %v12862_v31 = vpop.f32.mrf.mxu0 }
 0x4c6   : > { %v12856_v43 = vpop.f32.mrf.mxu2 }
 0x4c8   : > { %8437 = vmatmul.msk.bf16.gmra.mxu0 %vm4221_vm5, %v12721_v34 }
 0x4cb   : > { %v12860_v17 = vpop.f32.mrf.mxu3  ;;  %8452 = vmatmul.msk.bf16.gmra.mxu2 %vm4221_vm5, %v12708_v2 }
 0x4cc   : > { %16686 = vst [vmem:[#allocation106_spill] sm:$0xff] %v12860_v17  ;;  %v12872_v56 = vpop.f32.mrf.mxu1 }
 0x4cd   : > { %v12878_v26 = vpop.f32.mrf.mxu0 }
 0x4ce   : > { %v12870_v55 = vpop.f32.mrf.mxu2 }
 0x4cf   : > { %8445 = vmatmul.msk.bf16.gmra.mxu1 %vm4221_vm5, %v12721_v34 }
 0x4d0   : > { %8460 = vmatmul.msk.bf16.gmra.mxu3 %vm4221_vm5, %v12708_v2 }
 0x4d3   : > { %v12874_v29 = vpop.f32.mrf.mxu3 }
 0x4d4   : > { %16687 = vst [vmem:[#allocation100_spill] sm:$0xff] %v12874_v29  ;;  %v12882_v3 = vpop.f32.mrf.mxu1 }
 0x4d5   : > { %v12886_v5 = vpop.f32.mrf.mxu0 }
 0x4d6   : > { %v12880_v40 = vpop.f32.mrf.mxu2 }
 0x4d8   : > { %8438 = vmatmul.msk.bf16.gmra.mxu0 %vm4221_vm5, %v12734_v24 }
 0x4db   : > { %v12884_v59 = vpop.f32.mrf.mxu3  ;;  %8453 = vmatmul.msk.bf16.gmra.mxu2 %vm4221_vm5, %v12721_v34 }
 0x4dc   : > { %v12896_v8 = vpop.f32.mrf.mxu1 }
 0x4dd   : > { %v12902_v28 = vpop.f32.mrf.mxu0 }
 0x4de   : > { %v12894_v2 = vpop.f32.mrf.mxu2 }
 0x4df   : > { %8446 = vmatmul.msk.bf16.gmra.mxu1 %vm4221_vm5, %v12734_v24 }
 0x4e0   : > { %8461 = vmatmul.msk.bf16.gmra.mxu3 %vm4221_vm5, %v12721_v34 }
 0x4e3   : > { %v12898_v18 = vpop.f32.mrf.mxu3 }
 0x4e4   : > { %v12906_v21 = vpop.f32.mrf.mxu1 }
 0x4e5   : > { %v12910_v23 = vpop.f32.mrf.mxu0 }
 0x4e6   : > { %v12904_v12 = vpop.f32.mrf.mxu2  ;;  %16688 = vst [vmem:[#allocation159_spill] sm:$0xff] %v12910_v23 }
 0x4e8   : > { %8439 = vmatmul.msk.bf16.gmra.mxu0 %vm4221_vm5, %v12751_v30 }
 0x4eb   : > { %v12908_v13 = vpop.f32.mrf.mxu3  ;;  %8454 = vmatmul.msk.bf16.gmra.mxu2 %vm4221_vm5, %v12734_v24 }
 0x4ec   : > { %v12920_v57 = vpop.f32.mrf.mxu1 }
 0x4ed   : > { %16689 = vst [vmem:[#allocation87_spill] sm:$0xff] %v12920_v57  ;;  %v12926_v14 = vpop.f32.mrf.mxu0 }
 0x4ee   : > { %v12918_v34 = vpop.f32.mrf.mxu2  ;;  %16690 = vst [vmem:[#allocation110_spill] sm:$0xff] %v12926_v14 }
 0x4ef   : > { %8447 = vmatmul.msk.bf16.gmra.mxu1 %vm4221_vm5, %v12751_v30 }
 0x4f0   : > { %8462 = vmatmul.msk.bf16.gmra.mxu3 %vm4221_vm5, %v12734_v24 }
 0x4f3   : > { %v12922_v46 = vpop.f32.mrf.mxu3 }
 0x4f4   : > { %v12930_v50 = vpop.f32.mrf.mxu1 }
 0x4f5   : > { %16691 = vst [vmem:[#allocation129_spill] sm:$0xff] %v12930_v50  ;;  %v12934_v20 = vpop.f32.mrf.mxu0 }
 0x4f6   : > { %v12928_v63 = vpop.f32.mrf.mxu2  ;;  %16692 = vst [vmem:[#allocation136_spill] sm:$0xff] %v12934_v20 }
 0x4f8   : > { %8440 = vmatmul.msk.bf16.gmra.mxu0 %vm4221_vm5, %v12766_v47 }
 0x4fb   : > { %v12932_v9 = vpop.f32.mrf.mxu3  ;;  %8455 = vmatmul.msk.bf16.gmra.mxu2 %vm4221_vm5, %v12751_v30 }
 0x4fc   : > { %v12944_v16 = vpop.f32.mrf.mxu1 }
 0x4fd   : > { %16694 = vst [vmem:[#allocation90_spill] sm:$0xff] %v12944_v16  ;;  %v12950_v54 = vpop.f32.mrf.mxu0 }
 0x4fe   : > { %v12942_v24 = vpop.f32.mrf.mxu2  ;;  %16696 = vst [vmem:[#allocation88_spill] sm:$0xff] %v12950_v54  ;;  %v13096_v54 = vld [vmem:[%s15500_s13 + $0x18] sm:$0xff] }
 0x4ff   : > { %16693 = vst [vmem:[#allocation157_spill] sm:$0xff] %v12942_v24  ;;  %8448 = vmatmul.msk.bf16.gmra.mxu1 %vm4221_vm5, %v12766_v47 }
 0x500   : > { %8463 = vmatmul.msk.bf16.gmra.mxu3 %vm4221_vm5, %v12751_v30 }
 0x503   : > { %v12946_v52 = vpop.f32.mrf.mxu3 }
 0x504   : > { %16695 = vst [vmem:[#allocation137_spill] sm:$0xff] %v12946_v52  ;;  %v12954_v58 = vpop.f32.mrf.mxu1 }
 0x505   : > { %16698 = vst [vmem:[#allocation122_spill] sm:$0xff] %v12954_v58  ;;  %v12958_v33 = vpop.f32.mrf.mxu0 }
 0x506   : > { %v12952_v48 = vpop.f32.mrf.mxu2  ;;  %16700 = vst [vmem:[#allocation117_spill] sm:$0xff] %v12958_v33 }
 0x507   : > { %16697 = vst [vmem:[#allocation153_spill] sm:$0xff] %v12952_v48 }
 0x508   : > { %8441 = vmatmul.msk.bf16.gmra.mxu0 %vm4221_vm5, %v12787_v60 }
 0x50b   : > { %v12956_v32 = vpop.f32.mrf.mxu3  ;;  %8456 = vmatmul.msk.bf16.gmra.mxu2 %vm4221_vm5, %v12766_v47 }
 0x50c   : > { %16699 = vst [vmem:[#allocation80_spill] sm:$0xff] %v12956_v32  ;;  %v12968_v19 = vpop.f32.mrf.mxu1 }
 0x50d   : > { %16702 = vst [vmem:[#allocation154_spill] sm:$0xff] %v12968_v19  ;;  %v12974_v7 = vpop.f32.mrf.mxu0 }
 0x50e   : > { %v12966_v30 = vpop.f32.mrf.mxu2  ;;  %16704 = vst [vmem:[#allocation82_spill] sm:$0xff] %v12974_v7 }
 0x50f   : > { %16701 = vst [vmem:[#allocation130_spill] sm:$0xff] %v12966_v30  ;;  %8449 = vmatmul.msk.bf16.gmra.mxu1 %vm4221_vm5, %v12787_v60 }
 0x510   : > { %8464 = vmatmul.msk.bf16.gmra.mxu3 %vm4221_vm5, %v12766_v47 }
 0x513   : > { %v12970_v38 = vpop.f32.mrf.mxu3 }
 0x514   : > { %16703 = vst [vmem:[#allocation118_spill] sm:$0xff] %v12970_v38  ;;  %v12978_v49 = vpop.f32.mrf.mxu1 }
 0x515   : > { %16706 = vst [vmem:[#allocation142_spill] sm:$0xff] %v12978_v49  ;;  %v12982_v61 = vpop.f32.mrf.mxu0 }
 0x516   : > { %v12976_v62 = vpop.f32.mrf.mxu2  ;;  %16708 = vst [vmem:[#allocation95_spill] sm:$0xff] %v12982_v61 }
 0x517   : > { %16705 = vst [vmem:[#allocation144_spill] sm:$0xff] %v12976_v62  ;;  %v13067_v62 = vld [vmem:[%s15500_s13 + $0x10] sm:$0xff] }
 0x518   : > { %8442 = vmatmul.msk.bf16.gmra.mxu0 %vm4221_vm5, %v12801_v42 }
 0x51b   : > { %v12980_v11 = vpop.f32.mrf.mxu3  ;;  %8457 = vmatmul.msk.bf16.gmra.mxu2 %vm4221_vm5, %v12787_v60 }
 0x51c   : > { %16707 = vst [vmem:[#allocation91_spill] sm:$0xff] %v12980_v11  ;;  %v12992_v53 = vpop.f32.mrf.mxu1 }
 0x51d   : > { %16710 = vst [vmem:[#allocation81_spill] sm:$0xff] %v12992_v53  ;;  %v12998_v41 = vpop.f32.mrf.mxu0 }
 0x51e   : > { %v12990_v47 = vpop.f32.mrf.mxu2  ;;  %16712 = vst [vmem:[#allocation149_spill] sm:$0xff] %v12998_v41 }
 0x51f   : > { %16709 = vst [vmem:[#allocation120_spill] sm:$0xff] %v12990_v47  ;;  %8450 = vmatmul.msk.bf16.gmra.mxu1 %vm4221_vm5, %v12801_v42 }
 0x520   : > { %8465 = vmatmul.msk.bf16.gmra.mxu3 %vm4221_vm5, %v12787_v60  ;;  %v13009_v60 = vld [vmem:[%s15500_s13] sm:$0xff] }
 0x523   : > { %v12994_v15 = vpop.f32.mrf.mxu3 }
 0x524   : > { %16711 = vst [vmem:[#allocation151_spill] sm:$0xff] %v12994_v15  ;;  %v13002_v44 = vpop.f32.mrf.mxu1 }
 0x525   : > { %16714 = vst [vmem:[#allocation73_spill] sm:$0xff] %v13002_v44  ;;  %v13011_v36 = vpop.f32.mrf.mxu0 }
 0x526   : > { %v13000_v39 = vpop.f32.mrf.mxu2  ;;  %16716 = vst [vmem:[#allocation138_spill] sm:$0xff] %v13011_v36 }
 0x527   : > { %16713 = vst [vmem:[#allocation97_spill] sm:$0xff] %v13000_v39 }
 0x528   : > { %8499 = vmatmul.msk.bf16.vlgmr.msra.gmra.mxu0 %vm4711_vm6, %v13009_v60 }
 0x52b   : > { %v13004_v22 = vpop.f32.mrf.mxu3  ;;  %8458 = vmatmul.msk.bf16.gmra.mxu2 %vm4221_vm5, %v12801_v42 }
 0x52c   : > { %16715 = vst [vmem:[#allocation121_spill] sm:$0xff] %v13004_v22  ;;  %v13021_v22 = vpop.f32.mrf.mxu1 }
 0x52d   : > { %16718 = vst [vmem:[#allocation72_spill] sm:$0xff] %v13021_v22  ;;  %v13027_v44 = vpop.f32.mrf.mxu0 }
 0x52e   : > { %v13019_v10 = vpop.f32.mrf.mxu2  ;;  %16720 = vst [vmem:[#allocation107_spill] sm:$0xff] %v13027_v44 }
 0x52f   : > { %16717 = vst [vmem:[#allocation172_spill] sm:$0xff] %v13019_v10  ;;  %8507 = vmatmul.msk.bf16.vlgmr.msra.gmra.mxu1 %vm4711_vm6, %v13009_v60 }
 0x530   : > { %8466 = vmatmul.msk.bf16.gmra.mxu3 %vm4221_vm5, %v12801_v42  ;;  %v13038_v42 = vld [vmem:[%s15500_s13 + $0x8] sm:$0xff] }
 0x533   : > { %v13023_v39 = vpop.f32.mrf.mxu3 }
 0x534   : > { %16719 = vst [vmem:[#allocation124_spill] sm:$0xff] %v13023_v39  ;;  %v13031_v15 = vpop.f32.mrf.mxu1 }
 0x535   : > { %16722 = vst [vmem:[#allocation140_spill] sm:$0xff] %v13031_v15  ;;  %v13040_v10 = vpop.f32.mrf.mxu0 }
 0x536   : > { %v13029_v41 = vpop.f32.mrf.mxu2  ;;  %16724 = vst [vmem:[#allocation175_spill] sm:$0xff] %v13040_v10 }
 0x537   : > { %16721 = vst [vmem:[#allocation103_spill] sm:$0xff] %v13029_v41 }
 0x538   : > { %8500 = vmatmul.msk.bf16.gmra.mxu0 %vm4711_vm6, %v13038_v42 }
 0x53b   : > { %v13033_v53 = vpop.f32.mrf.mxu3  ;;  %8515 = vmatmul.msk.bf16.vlgmr.msra.gmra.mxu2 %vm4711_vm6, %v13009_v60 }
 0x53c   : > { %16723 = vst [vmem:[#allocation173_spill] sm:$0xff] %v13033_v53  ;;  %v13050_v39 = vpop.f32.mrf.mxu1 }
 0x53d   : > { %16726 = vst [vmem:[#allocation77_spill] sm:$0xff] %v13050_v39  ;;  %v13056_v47 = vpop.f32.mrf.mxu0 }
 0x53e   : > { %v13048_v41 = vpop.f32.mrf.mxu2  ;;  %16728 = vst [vmem:[#allocation112_spill] sm:$0xff] %v13056_v47  ;;  %v13292_v47 = vpop.permute.xlu2 %5229 }
 0x53f   : > { %16725 = vst [vmem:[#allocation162_spill] sm:$0xff] %v13048_v41  ;;  %8508 = vmatmul.msk.bf16.gmra.mxu1 %vm4711_vm6, %v13038_v42 }
 0x540   : > { %8523 = vmatmul.msk.bf16.vlgmr.msra.gmra.mxu3 %vm4711_vm6, %v13009_v60 }
 0x543   : > { %v13052_v53 = vpop.f32.mrf.mxu3 }
 0x544   : > { %16727 = vst [vmem:[#allocation141_spill] sm:$0xff] %v13052_v53  ;;  %v13060_v11 = vpop.f32.mrf.mxu1  ;;  %v13125_v53 = vld [vmem:[%s15500_s13 + $0x20] sm:$0xff] }
 0x545   : > { %16730 = vst [vmem:[#allocation174_spill] sm:$0xff] %v13060_v11  ;;  %v13069_v7 = vpop.f32.mrf.mxu0 }
 0x546   : > { %v13058_v61 = vpop.f32.mrf.mxu2  ;;  %16732 = vst [vmem:[#allocation114_spill] sm:$0xff] %v13069_v7  ;;  %v13312_v1 = vpop.permute.xlu2 %5204 }
 0x547   : > { %16729 = vst [vmem:[#allocation165_spill] sm:$0xff] %v13058_v61 }
 0x548   : > { %8501 = vmatmul.msk.bf16.gmra.mxu0 %vm4711_vm6, %v13067_v62 }
 0x54b   : > { %v13062_v49 = vpop.f32.mrf.mxu3  ;;  %8516 = vmatmul.msk.bf16.gmra.mxu2 %vm4711_vm6, %v13038_v42 }
 0x54c   : > { %16731 = vst [vmem:[#allocation74_spill] sm:$0xff] %v13062_v49  ;;  %v13079_v19 = vpop.f32.mrf.mxu1 }
 0x54d   : > { %16734 = vst [vmem:[#allocation139_spill] sm:$0xff] %v13079_v19  ;;  %v13085_v33 = vpop.f32.mrf.mxu0 }
 0x54e   : > { %v13077_v38 = vpop.f32.mrf.mxu2  ;;  %16736 = vst [vmem:[#allocation168_spill] sm:$0xff] %v13085_v33 }
 0x54f   : > { %16733 = vst [vmem:[#allocation131_spill] sm:$0xff] %v13077_v38  ;;  %8509 = vmatmul.msk.bf16.gmra.mxu1 %vm4711_vm6, %v13067_v62 }
 0x550   : > { %8524 = vmatmul.msk.bf16.gmra.mxu3 %vm4711_vm6, %v13038_v42 }
 0x553   : > { %v13081_v30 = vpop.f32.mrf.mxu3 }
 0x554   : > { %16735 = vst [vmem:[#allocation169_spill] sm:$0xff] %v13081_v30  ;;  %v13089_v58 = vpop.f32.mrf.mxu1 }
 0x555   : > { %16738 = vst [vmem:[#allocation115_spill] sm:$0xff] %v13089_v58  ;;  %v13098_v52 = vpop.f32.mrf.mxu0 }
 0x556   : > { %v13087_v32 = vpop.f32.mrf.mxu2  ;;  %16740 = vst [vmem:[#allocation133_spill] sm:$0xff] %v13098_v52 }
 0x557   : > { %16737 = vst [vmem:[#allocation79_spill] sm:$0xff] %v13087_v32  ;;  %v13154_v32 = vld [vmem:[%s15500_s13 + $0x28] sm:$0xff] }
 0x558   : > { %8502 = vmatmul.msk.bf16.gmra.mxu0 %vm4711_vm6, %v13096_v54  ;;  %16756 = vst [vmem:[#allocation164_spill] sm:$0xff] %v13154_v32 }
 0x55b   : > { %v13091_v48 = vpop.f32.mrf.mxu3  ;;  %8517 = vmatmul.msk.bf16.gmra.mxu2 %vm4711_vm6, %v13067_v62 }
 0x55c   : > { %16739 = vst [vmem:[#allocation152_spill] sm:$0xff] %v13091_v48  ;;  %v13108_v24 = vpop.f32.mrf.mxu1 }
 0x55d   : > { %16742 = vst [vmem:[#allocation105_spill] sm:$0xff] %v13108_v24  ;;  %v13114_v50 = vpop.f32.mrf.mxu0 }
 0x55e   : > { %v13106_v16 = vpop.f32.mrf.mxu2  ;;  %16744 = vst [vmem:[#allocation93_spill] sm:$0xff] %v13114_v50  ;;  %v13296_v50 = vpop.permute.xlu1 %5224 }
 0x55f   : > { %16741 = vst [vmem:[#allocation127_spill] sm:$0xff] %v13106_v16  ;;  %8510 = vmatmul.msk.bf16.gmra.mxu1 %vm4711_vm6, %v13096_v54 }
 0x560   : > { %8525 = vmatmul.msk.bf16.gmra.mxu3 %vm4711_vm6, %v13067_v62 }
 0x563   : > { %v13110_v20 = vpop.f32.mrf.mxu3 }
 0x564   : > { %16743 = vst [vmem:[#allocation109_spill] sm:$0xff] %v13110_v20  ;;  %v13118_v57 = vpop.f32.mrf.mxu1 }
 0x565   : > { %16746 = vst [vmem:[#allocation163_spill] sm:$0xff] %v13118_v57  ;;  %v13127_v49 = vpop.f32.mrf.mxu0 }
 0x566   : > { %v13116_v14 = vpop.f32.mrf.mxu2  ;;  %16748 = vst [vmem:[#allocation86_spill] sm:$0xff] %v13127_v49  ;;  %v13319_v25 = vpop.permute.xlu1 %5219 }
 0x567   : > { %16745 = vst [vmem:[#allocation155_spill] sm:$0xff] %v13116_v14  ;;  %v13212_v14 = vld [vmem:[%s15500_s13 + $0x38] sm:$0xff] }
 0x568   : > { %8503 = vmatmul.msk.bf16.gmra.mxu0 %vm4711_vm6, %v13125_v53  ;;  %16774 = vst [vmem:[#allocation190_spill] sm:$0xff] %v13212_v14 }
 0x56b   : > { %v13120_v23 = vpop.f32.mrf.mxu3  ;;  %8518 = vmatmul.msk.bf16.gmra.mxu2 %vm4711_vm6, %v13096_v54 }
 0x56c   : > { %16747 = vst [vmem:[#allocation171_spill] sm:$0xff] %v13120_v23  ;;  %v13137_v30 = vpop.f32.mrf.mxu1 }
 0x56d   : > { %16750 = vst [vmem:[#allocation156_spill] sm:$0xff] %v13137_v30  ;;  %v13143_v48 = vpop.f32.mrf.mxu0 }
 0x56e   : > { %v13135_v41 = vpop.f32.mrf.mxu2  ;;  %16752 = vst [vmem:[#allocation161_spill] sm:$0xff] %v13143_v48 }
 0x56f   : > { %16749 = vst [vmem:[#allocation99_spill] sm:$0xff] %v13135_v41  ;;  %8511 = vmatmul.msk.bf16.gmra.mxu1 %vm4711_vm6, %v13125_v53 }
 0x570   : > { %8526 = vmatmul.msk.bf16.gmra.mxu3 %vm4711_vm6, %v13096_v54 }
 0x573   : > { %v13139_v61 = vpop.f32.mrf.mxu3 }
 0x574   : > { %16751 = vst [vmem:[#allocation135_spill] sm:$0xff] %v13139_v61  ;;  %v13147_v38 = vpop.f32.mrf.mxu1  ;;  %v13183_v61 = vld [vmem:[%s15500_s13 + $0x30] sm:$0xff] }
 0x575   : > { %16754 = vst [vmem:[#allocation167_spill] sm:$0xff] %v13147_v38  ;;  %v13156_v23 = vpop.f32.mrf.mxu0 }
 0x576   : > { %v13145_v49 = vpop.f32.mrf.mxu2  ;;  %16757 = vst [vmem:[#allocation146_spill] sm:$0xff] %v13156_v23 }
 0x577   : > { %16753 = vst [vmem:[#allocation102_spill] sm:$0xff] %v13145_v49 }
 0x578   : > { %8504 = vmatmul.msk.bf16.gmra.mxu0 %vm4711_vm6, %v13154_v32  ;;  %16765 = vst [vmem:[#allocation181_spill] sm:$0xff] %v13183_v61 }
 0x57b   : > { %v13149_v20 = vpop.f32.mrf.mxu3  ;;  %8519 = vmatmul.msk.bf16.gmra.mxu2 %vm4711_vm6, %v13125_v53 }
 0x57c   : > { %16755 = vst [vmem:[#allocation128_spill] sm:$0xff] %v13149_v20  ;;  %v13166_v38 = vpop.f32.mrf.mxu1 }
 0x57d   : > { %16759 = vst [vmem:[#allocation176_spill] sm:$0xff] %v13166_v38  ;;  %v13172_v20 = vpop.f32.mrf.mxu0 }
 0x57e   : > { %v13164_v48 = vpop.f32.mrf.mxu2  ;;  %16761 = vst [vmem:[#allocation177_spill] sm:$0xff] %v13172_v20 }
 0x57f   : > { %16758 = vst [vmem:[#allocation145_spill] sm:$0xff] %v13164_v48  ;;  %8512 = vmatmul.msk.bf16.gmra.mxu1 %vm4711_vm6, %v13154_v32 }
 0x580   : > { %8527 = vmatmul.msk.bf16.gmra.mxu3 %vm4711_vm6, %v13125_v53 }
 0x583   : > { %v13168_v30 = vpop.f32.mrf.mxu3 }
 0x584   : > { %16760 = vst [vmem:[#allocation147_spill] sm:$0xff] %v13168_v30  ;;  %v13176_v49 = vpop.f32.mrf.mxu1 }
 0x585   : > { %16763 = vst [vmem:[#allocation179_spill] sm:$0xff] %v13176_v49  ;;  %v13185_v48 = vpop.f32.mrf.mxu0 }
 0x586   : > { %v13174_v23 = vpop.f32.mrf.mxu2  ;;  %16766 = vst [vmem:[#allocation182_spill] sm:$0xff] %v13185_v48 }
 0x587   : > { %16762 = vst [vmem:[#allocation178_spill] sm:$0xff] %v13174_v23 }
 0x588   : > { %8505 = vmatmul.msk.bf16.gmra.mxu0 %vm4711_vm6, %v13183_v61 }
 0x58b   : > { %v13178_v16 = vpop.f32.mrf.mxu3  ;;  %8520 = vmatmul.msk.bf16.gmra.mxu2 %vm4711_vm6, %v13154_v32 }
 0x58c   : > { %16764 = vst [vmem:[#allocation180_spill] sm:$0xff] %v13178_v16  ;;  %v13195_v23 = vpop.f32.mrf.mxu1 }
 0x58d   : > { %16768 = vst [vmem:[#allocation184_spill] sm:$0xff] %v13195_v23  ;;  %v13201_v49 = vpop.f32.mrf.mxu0 }
 0x58e   : > { %v13193_v38 = vpop.f32.mrf.mxu2  ;;  %16770 = vst [vmem:[#allocation186_spill] sm:$0xff] %v13201_v49 }
 0x58f   : > { %16767 = vst [vmem:[#allocation183_spill] sm:$0xff] %v13193_v38  ;;  %8513 = vmatmul.msk.bf16.gmra.mxu1 %vm4711_vm6, %v13183_v61 }
 0x590   : > { %8528 = vmatmul.msk.bf16.gmra.mxu3 %vm4711_vm6, %v13154_v32 }
 0x593   : > { %v13197_v16 = vpop.f32.mrf.mxu3 }
 0x594   : > { %16769 = vst [vmem:[#allocation185_spill] sm:$0xff] %v13197_v16  ;;  %v13205_v30 = vpop.f32.mrf.mxu1 }
 0x595   : > { %16772 = vst [vmem:[#allocation188_spill] sm:$0xff] %v13205_v30  ;;  %v13214_v38 = vpop.f32.mrf.mxu0 }
 0x596   : > { %v13203_v48 = vpop.f32.mrf.mxu2  ;;  %16775 = vst [vmem:[#allocation191_spill] sm:$0xff] %v13214_v38 }
 0x597   : > { %16771 = vst [vmem:[#allocation187_spill] sm:$0xff] %v13203_v48 }
 0x598   : > { %8506 = vmatmul.msk.bf16.gmra.mxu0 %vm4711_vm6, %v13212_v14 }
 0x59b   : > { %v13207_v20 = vpop.f32.mrf.mxu3  ;;  %8521 = vmatmul.msk.bf16.gmra.mxu2 %vm4711_vm6, %v13183_v61 }
 0x59c   : > { %16773 = vst [vmem:[#allocation189_spill] sm:$0xff] %v13207_v20  ;;  %v13224_v23 = vpop.f32.mrf.mxu1 }
 0x59d   : > { %16777 = vst [vmem:[#allocation193_spill] sm:$0xff] %v13224_v23  ;;  %v13230_v48 = vpop.f32.mrf.mxu0 }
 0x59e   : > { %v13222_v16 = vpop.f32.mrf.mxu2  ;;  %16779 = vst [vmem:[#allocation195_spill] sm:$0xff] %v13230_v48 }
 0x59f   : > { %16776 = vst [vmem:[#allocation192_spill] sm:$0xff] %v13222_v16  ;;  %8514 = vmatmul.msk.bf16.gmra.mxu1 %vm4711_vm6, %v13212_v14 }
 0x5a0   : > { %8529 = vmatmul.msk.bf16.gmra.mxu3 %vm4711_vm6, %v13183_v61 }
 0x5a3   : > { %v13226_v20 = vpop.f32.mrf.mxu3 }
 0x5a4   : > { %16778 = vst [vmem:[#allocation194_spill] sm:$0xff] %v13226_v20  ;;  %v13234_v30 = vpop.f32.mrf.mxu1 }
 0x5a5   : > { %16781 = vst [vmem:[#allocation197_spill] sm:$0xff] %v13234_v30  ;;  %v13238_v41 = vpop.f32.mrf.mxu0 }
 0x5a6   : > { %v13232_v38 = vpop.f32.mrf.mxu2 }
 0x5a7   : > { %16780 = vst [vmem:[#allocation196_spill] sm:$0xff] %v13232_v38 }
 0x5a8   : > { %8531 = vmatmul.msk.bf16.vlgmr.msrb.gmra.mxu0 %vm4711_vm6, %v13009_v60 }
 0x5ab   : > { %v13236_v49 = vpop.f32.mrf.mxu3  ;;  %8522 = vmatmul.msk.bf16.gmra.mxu2 %vm4711_vm6, %v13212_v14 }
 0x5ac   : > { %16782 = vst [vmem:[#allocation198_spill] sm:$0xff] %v13236_v49  ;;  %v13248_v16 = vpop.f32.mrf.mxu1 }
 0x5ad   : > { %v4747_v49 = vpop.f32.mrf.mxu0 }
 0x5ae   : > { %v13246_v20 = vpop.f32.mrf.mxu2 }
 0x5af   : > { %16783 = vst [vmem:[#allocation199_spill] sm:$0xff] %v13246_v20  ;;  %8539 = vmatmul.msk.bf16.vlgmr.msrb.gmra.mxu1 %vm4711_vm6, %v13009_v60 }
 0x5b0   : > { %8530 = vmatmul.msk.bf16.gmra.mxu3 %vm4711_vm6, %v13212_v14 }
 0x5b3   : > { %v13250_v23 = vpop.f32.mrf.mxu3 }
 0x5b4   : > { %16784 = vst [vmem:[#allocation200_spill] sm:$0xff] %v13250_v23  ;;  %v13256_v30 = vpop.f32.mrf.mxu1 }
 0x5b5   : > { %v4750_v22 = vpop.f32.mrf.mxu0 }
 0x5b6   : > { %v13254_v38 = vpop.f32.mrf.mxu2  ;;  %v5144_v32 = vadd.f32 %v4750_v22, %v12838_v6 }
 0x5b7   : > { %16785 = vst [vmem:[#allocation201_spill] sm:$0xff] %v13254_v38 }
 0x5b8   : > { %8532 = vmatmul.msk.bf16.gmra.mxu0 %vm4711_vm6, %v13038_v42 }
 0x5bb   : > { %v13258_v48 = vpop.f32.mrf.mxu3  ;;  %8547 = vmatmul.msk.bf16.vlgmr.msrb.gmra.mxu2 %vm4711_vm6, %v13009_v60 }
 0x5bc   : > { %16786 = vst [vmem:[#allocation202_spill] sm:$0xff] %v13258_v48  ;;  %v13268_v20 = vpop.f32.mrf.mxu1 }
 0x5bd   : > { %v4752_v48 = vpop.f32.mrf.mxu0 }
 0x5be   : > { %v13266_v23 = vpop.f32.mrf.mxu2 }
 0x5bf   : > { %16787 = vst [vmem:[#allocation203_spill] sm:$0xff] %v13266_v23  ;;  %8540 = vmatmul.msk.bf16.gmra.mxu1 %vm4711_vm6, %v13038_v42 }
 0x5c0   : > { %8555 = vmatmul.msk.bf16.vlgmr.msrb.gmra.mxu3 %vm4711_vm6, %v13009_v60 }
 0x5c3   : > { %v13270_v15 = vpop.f32.mrf.mxu3 }
 0x5c4   : > { %16788 = vst [vmem:[#allocation204_spill] sm:$0xff] %v13270_v15  ;;  %v4801_v39 = vpop.f32.mrf.mxu1 }
 0x5c5   : > { %v4755_v11 = vpop.f32.mrf.mxu0 }
 0x5c6   : > { %v13274_v38 = vpop.f32.mrf.mxu2  ;;  %v5160_v17 = vadd.f32 %v4755_v11, %v12862_v31 }
 0x5c8   : > { %8533 = vmatmul.msk.bf16.gmra.mxu0 %vm4711_vm6, %v13067_v62 }
 0x5cb   : > { %v13276_v36 = vpop.f32.mrf.mxu3  ;;  %8548 = vmatmul.msk.bf16.gmra.mxu2 %vm4711_vm6, %v13038_v42 }
 0x5cc   : > { %16789 = vst [vmem:[#allocation205_spill] sm:$0xff] %v13276_v36  ;;  %v4804_v57 = vpop.f32.mrf.mxu1 }
 0x5cd   : > { %v4757_v44 = vpop.f32.mrf.mxu0 }
 0x5ce   : > { %v13284_v60 = vpop.f32.mrf.mxu2  ;;  %v5168_v61 = vadd.f32 %v4757_v44, %v12878_v26  ;;  %v5152_v26 = vadd.f32 %v4752_v48, %v12854_v0  ;;  %v5136_v48 = vadd.f32 %v4747_v49, %v12830_v37  ;;  %v13345_v37 = vpop.permute.xlu2 %5199 }
 0x5cf   : > { %8541 = vmatmul.msk.bf16.gmra.mxu1 %vm4711_vm6, %v13067_v62 }
 0x5d0   : > { %8556 = vmatmul.msk.bf16.gmra.mxu3 %vm4711_vm6, %v13038_v42  ;;  %v13302_v42 = vpop.permute.xlu0 %5214 }
 0x5d1   : > { %v5264_v31 = vadd.f32 %v13302_v42, %v5160_v17  ;;  %v5153_v17 = vadd.f32 %v4801_v39, %v12858_v51  ;;  %v5145_v51 = vadd.f32 %v13268_v20, %v12848_v45 }
 0x5d3   : > { %v13286_v19 = vpop.f32.mrf.mxu3 }
 0x5d4   : > { %16790 = vst [vmem:[#allocation206_spill] sm:$0xff] %v13286_v19  ;;  %v4806_v58 = vpop.f32.mrf.mxu1 }
 0x5d5   : > { %v4760_v7 = vpop.f32.mrf.mxu0  ;;  %v5169_v19 = vadd.f32 %v4806_v58, %v12882_v3 }
 0x5d6   : > { %v13290_v10 = vpop.f32.mrf.mxu2  ;;  %v5176_v52 = vadd.f32 %v4760_v7, %v12886_v5  ;;  %v5272_v7 = vadd.f32 %v13319_v25, %v5168_v61 }
 0x5d8   : > { %8534 = vmatmul.msk.bf16.gmra.mxu0 %vm4711_vm6, %v13096_v54  ;;  %v5280_v23 = vadd.f32 %v13296_v50, %v5176_v52  ;;  %v5336_v58 = vmax.f32 %v5272_v7, 0.0 }
 0x5da   : > { %v5344_v52 = vmax.f32 %v5280_v23, 0.0  ;;  %v5273_v23 = vadd.f32 %v13319_v25, %v5169_v19 }
 0x5db   : > { %v13294_v24 = vpop.f32.mrf.mxu3  ;;  %8549 = vmatmul.msk.bf16.gmra.mxu2 %vm4711_vm6, %v13067_v62 }
 0x5dc   : > { %v4809_v14 = vpop.f32.mrf.mxu1 }
 0x5dd   : > { %v4762_v36 = vpop.f32.mrf.mxu0  ;;  %v5177_v5 = vadd.f32 %v4809_v14, %v12896_v8  ;;  %v5161_v8 = vadd.f32 %v4804_v57, %v12872_v56  ;;  %v5128_v56 = vadd.f32 %v13238_v41, %v12817_v35  ;;  %v5328_v57 = vmax.f32 %v5264_v31, 0.0 }
 0x5de   : > { %v13306_v33 = vpop.f32.mrf.mxu2  ;;  %v5137_v41 = vadd.f32 %v13256_v30, %v12833_v27 }
 0x5df   : > { %8542 = vmatmul.msk.bf16.gmra.mxu1 %vm4711_vm6, %v13096_v54  ;;  %v5281_v0 = vadd.f32 %v13296_v50, %v5177_v5  ;;  %v5265_v19 = vadd.f32 %v13302_v42, %v5161_v8  ;;  %v5240_v5 = vadd.f32 %v13345_v37, %v5136_v48  ;;  %v5440_v35 = vpack.c.bf16 %v5336_v58, %v5328_v57 }
 0x5e0   : > { %8557 = vmatmul.msk.bf16.gmra.mxu3 %vm4711_vm6, %v13067_v62  ;;  %v5184_v62 = vadd.f32 %v4762_v36, %v12902_v28  ;;  %v13328_v36 = vpop.permute.xlu0 %5209  ;;  %v5249_v8 = vadd.f32 %v13312_v1, %v5145_v51  ;;  %v5241_v48 = vadd.f32 %v13345_v37, %v5137_v41 }
 0x5e1   : > { %v5256_v3 = vadd.f32 %v13328_v36, %v5152_v26  ;;  %v5345_v49 = vmax.f32 %v5281_v0, 0.0  ;;  %v5257_v7 = vadd.f32 %v13328_v36, %v5153_v17  ;;  %v5329_v27 = vmax.f32 %v5265_v19, 0.0 }
 0x5e2   : > { %v5288_v44 = vadd.f32 %v13292_v47, %v5184_v62  ;;  %v5304_v30 = vmax.f32 %v5240_v5, 0.0  ;;  %v5162_v19 = vadd.f32 %v13306_v33, %v12894_v2 }
 0x5e3   : > { %v13310_v15 = vpop.f32.mrf.mxu3  ;;  %v5320_v26 = vmax.f32 %v5256_v3, 0.0 }
 0x5e4   : > { %v5352_v11 = vmax.f32 %v5288_v44, 0.0  ;;  %v4811_v28 = vpop.f32.mrf.mxu1  ;;  %v5337_v44 = vmax.f32 %v5273_v23, 0.0  ;;  %v5163_v2 = vadd.f32 %v13310_v15, %v12898_v18  ;;  %v5155_v18 = vadd.f32 %v13294_v24, %v12884_v59 }
 0x5e5   : > { %v5185_v14 = vadd.f32 %v4811_v28, %v12906_v21  ;;  %v13338_v62 = vpop.f32.mrf.mxu0  ;;  %v5248_v21 = vadd.f32 %v13312_v1, %v5144_v32  ;;  %v13353_v32 = vpop.permute.xlu1 %5194  ;;  %v5129_v28 = vadd.f32 %v13248_v16, %v12826_v4  ;;  %v5313_v16 = vmax.f32 %v5249_v8, 0.0 }
 0x5e6   : > { %v4855_v29 = vpop.f32.mrf.mxu2  ;;  %v5448_v61 = vpack.c.bf16 %v5352_v11, %v5344_v52  ;;  %v5232_v31 = vadd.f32 %v13353_v32, %v5128_v56  ;;  %v5441_v3 = vpack.c.bf16 %v5337_v44, %v5329_v27  ;;  %v5305_v56 = vmax.f32 %v5241_v48, 0.0 }
 0x5e7   : > { %v5289_v22 = vadd.f32 %v13292_v47, %v5185_v14  ;;  %v5312_v52 = vmax.f32 %v5248_v21, 0.0  ;;  %v5233_v4 = vadd.f32 %v13353_v32, %v5129_v28  ;;  %v5170_v23 = vadd.f32 %v4855_v29, %v12904_v12 }
 0x5e8   : > { %5551 = vmatpush.bf16.msra.mxu0 %v5448_v61  ;;  %v5296_v61 = vmax.f32 %v5232_v31, 0.0  ;;  %v5154_v29 = vadd.f32 %v13290_v10, %v12880_v40  ;;  %v5266_v40 = vadd.f32 %v13302_v42, %v5162_v19  ;;  %v16792_v31 = vld [vmem:[#allocation100_spill] sm:$0xff]  ;;  %v5267_v59 = vadd.f32 %v13302_v42, %v5163_v2 }
 0x5e9   : > { %v5353_v39 = vmax.f32 %v5289_v22, 0.0  ;;  %8535 = vmatmul.msk.bf16.gmra.mxu0 %vm4711_vm6, %v13125_v53  ;;  %v5432_v14 = vpack.c.bf16 %v5320_v26, %v5312_v52  ;;  %v5297_v5 = vmax.f32 %v5233_v4, 0.0  ;;  %v5274_v12 = vadd.f32 %v13319_v25, %v5170_v23  ;;  %v16793_v52 = vld [vmem:[#allocation206_spill] sm:$0xff]  ;;  %v16798_v4 = vld [vmem:[#allocation205_spill] sm:$0xff]  ;;  %v16801_v19 = vld [vmem:[#allocation84_spill] sm:$0xff] }
 0x5ea   : > { %v5424_v22 = vpack.c.bf16 %v5304_v30, %v5296_v61  ;;  %v5147_v28 = vadd.f32 %v16793_v52, %v16792_v31 }
 0x5eb   : > { %v4904_v6 = vpop.f32.mrf.mxu3  ;;  %8550 = vmatmul.msk.bf16.gmra.mxu2 %vm4711_vm6, %v13096_v54  ;;  %v5449_v45 = vpack.c.bf16 %v5353_v39, %v5345_v49  ;;  %v5425_v41 = vpack.c.bf16 %v5305_v56, %v5297_v5 }
 0x5ec   : > { %v13361_v11 = vpop.f32.mrf.mxu1  ;;  %5552 = vmatpush.bf16.msra.mxu0 %v5440_v35  ;;  %v5171_v26 = vadd.f32 %v4904_v6, %v12908_v13  ;;  %v5146_v13 = vadd.f32 %v13284_v60, %v12870_v55  ;;  %v5258_v55 = vadd.f32 %v13328_v36, %v5154_v29  ;;  %v5338_v60 = vmax.f32 %v5274_v12, 0.0 }
 0x5ed   : > { %5585 = vmatpush.bf16.msra.mxu1 %v5449_v45  ;;  %v13369_v58 = vpop.f32.mrf.mxu0 }
 0x5ee   : > { %v4858_v20 = vpop.f32.mrf.mxu2  ;;  %v5275_v15 = vadd.f32 %v13319_v25, %v5171_v26  ;;  %v5322_v23 = vmax.f32 %v5258_v55, 0.0  ;;  %v16807_v55 = vld [vmem:[#allocation181_spill] sm:$0xff] }
 0x5ef   : > { %8543 = vmatmul.msk.bf16.gmra.mxu1 %vm4711_vm6, %v13125_v53  ;;  %v5178_v17 = vadd.f32 %v4858_v20, %v12918_v34  ;;  %v16791_v20 = vld [vmem:[#allocation164_spill] sm:$0xff] }
 0x5f0   : > { %8558 = vmatmul.msk.bf16.gmra.mxu3 %vm4711_vm6, %v13096_v54  ;;  %v5321_v54 = vmax.f32 %v5257_v7, 0.0  ;;  %5553 = vmatpush.bf16.msra.mxu0 %v5432_v14  ;;  %v16796_v14 = vld [vmem:[#allocation203_spill] sm:$0xff] }
 0x5f1   : > { %5586 = vmatpush.bf16.msra.mxu1 %v5441_v3  ;;  %v5282_v34 = vadd.f32 %v13296_v50, %v5178_v17  ;;  %v5339_v3 = vmax.f32 %v5275_v15, 0.0  ;;  %v16797_v17 = vld [vmem:[#allocation106_spill] sm:$0xff] }
 0x5f2   : > { %v5433_v57 = vpack.c.bf16 %v5321_v54, %v5313_v16  ;;  %v5259_v54 = vadd.f32 %v13328_v36, %v5155_v18  ;;  %v5139_v16 = vadd.f32 %v16798_v4, %v16797_v17  ;;  %v13491_v17 = vld [vmem:[%s15502_s15] sm:$0xff] }
 0x5f3   : > { %v4907_v0 = vpop.f32.mrf.mxu3  ;;  %v5346_v10 = vmax.f32 %v5282_v34, 0.0  ;;  %v16802_v34 = vld [vmem:[#allocation204_spill] sm:$0xff] }
 0x5f4   : > { %v5179_v21 = vadd.f32 %v4907_v0, %v12922_v46  ;;  %v13377_v49 = vpop.f32.mrf.mxu1  ;;  %5554 = vmatpush.bf16.msra.mxu0 %v5424_v22  ;;  %v16795_v0 = vld [vmem:[#allocation94_spill] sm:$0xff]  ;;  %v5323_v29 = vmax.f32 %v5259_v54, 0.0 }
 0x5f5   : > { %5587 = vmatpush.bf16.msra.mxu1 %v5433_v57  ;;  %v13389_v7 = vpop.f32.mrf.mxu0  ;;  %v5130_v48 = vadd.f32 %v16796_v14, %v16795_v0  ;;  %v5331_v57 = vmax.f32 %v5267_v59, 0.0 }
 0x5f6   : > { %v4860_v51 = vpop.f32.mrf.mxu2  ;;  %v5283_v33 = vadd.f32 %v13296_v50, %v5179_v21  ;;  %v5251_v21 = vadd.f32 %v13312_v1, %v5147_v28 }
 0x5f7   : > { %v5186_v39 = vadd.f32 %v4860_v51, %v12928_v63  ;;  %v5234_v26 = vadd.f32 %v13353_v32, %v5130_v48  ;;  %v5443_v12 = vpack.c.bf16 %v5339_v3, %v5331_v57 }
 0x5f8   : > { %v5347_v24 = vmax.f32 %v5283_v33, 0.0  ;;  %v5315_v33 = vmax.f32 %v5251_v21, 0.0 }
 0x5f9   : > { %v5290_v46 = vadd.f32 %v13292_v47, %v5186_v39  ;;  %5588 = vmatpush.bf16.msra.mxu1 %v5425_v41  ;;  %8536 = vmatmul.msk.bf16.gmra.mxu0 %vm4711_vm6, %v16791_v20  ;;  %v5131_v39 = vadd.f32 %v16802_v34, %v16801_v19  ;;  %v13518_v34 = vld [vmem:[%s15502_s15 + $0x8] sm:$0xff] }
 0x5fb   : > { %v4909_v35 = vpop.f32.mrf.mxu3  ;;  %v5354_v6 = vmax.f32 %v5290_v46, 0.0  ;;  %8551 = vmatmul.msk.bf16.gmra.mxu2 %vm4711_vm6, %v13125_v53  ;;  %v5243_v46 = vadd.f32 %v13345_v37, %v5139_v16 }
 0x5fc   : > { %v5187_v63 = vadd.f32 %v4909_v35, %v12932_v9  ;;  %v5138_v9 = vadd.f32 %v13274_v38, %v12856_v43  ;;  %v5250_v43 = vadd.f32 %v13312_v1, %v5146_v13  ;;  %v5330_v38 = vmax.f32 %v5266_v40, 0.0  ;;  %v13414_v30 = vpop.f32.mrf.mxu1 }
 0x5fd   : > { %v5450_v45 = vpack.c.bf16 %v5354_v6, %v5346_v10  ;;  %16794 = vst [vmem:[#allocation164_spill] sm:$0xff] %v13414_v30  ;;  %v13427_v51 = vpop.f32.mrf.mxu0  ;;  %v5298_v40 = vmax.f32 %v5234_v26, 0.0  ;;  %v5435_v10 = vpack.c.bf16 %v5323_v29, %v5315_v33  ;;  %v5307_v6 = vmax.f32 %v5243_v46, 0.0  ;;  %v13541_v33 = vld [vmem:[%s15502_s15 + $0x10] sm:$0xff] }
 0x5fe   : > { %v5291_v44 = vadd.f32 %v13292_v47, %v5187_v63  ;;  %v13411_v27 = vpop.f32.mrf.mxu2  ;;  %v5442_v22 = vpack.c.bf16 %v5338_v60, %v5330_v38  ;;  %v5242_v56 = vadd.f32 %v13345_v37, %v5138_v9  ;;  %16800 = vst [vmem:[#allocation206_spill] sm:$0xff] %v13427_v51  ;;  %v5314_v5 = vmax.f32 %v5250_v43, 0.0 }
 0x5ff   : > { %5619 = vmatpush.bf16.msra.mxu2 %v5450_v45  ;;  %8544 = vmatmul.msk.bf16.gmra.mxu1 %vm4711_vm6, %v16791_v20  ;;  %v5235_v63 = vadd.f32 %v13353_v32, %v5131_v39 }
 0x600   : > { %v5355_v8 = vmax.f32 %v5291_v44, 0.0  ;;  %8559 = vmatmul.msk.bf16.gmra.mxu3 %vm4711_vm6, %v13125_v53  ;;  %v5434_v35 = vpack.c.bf16 %v5322_v23, %v5314_v5  ;;  %v5306_v2 = vmax.f32 %v5242_v56, 0.0 }
 0x601   : > { %v5299_v9 = vmax.f32 %v5235_v63, 0.0 }
 0x602   : > { %v5451_v61 = vpack.c.bf16 %v5355_v8, %v5347_v24  ;;  %v5426_v44 = vpack.c.bf16 %v5306_v2, %v5298_v40 }
 0x603   : > { %v13421_v53 = vpop.f32.mrf.mxu3  ;;  %5620 = vmatpush.bf16.msra.mxu2 %v5442_v22  ;;  %v5427_v60 = vpack.c.bf16 %v5307_v6, %v5299_v9 }
 0x604   : > { %16799 = vst [vmem:[#allocation100_spill] sm:$0xff] %v13421_v53  ;;  %5653 = vmatpush.bf16.msra.mxu3 %v5451_v61  ;;  %v13436_v13 = vpop.f32.mrf.mxu1 }
 0x605   : > { %16804 = vst [vmem:[#allocation203_spill] sm:$0xff] %v13436_v13  ;;  %v13440_v15 = vpop.f32.mrf.mxu0 }
 0x606   : > { %v13433_v41 = vpop.f32.mrf.mxu2  ;;  %16806 = vst [vmem:[#allocation205_spill] sm:$0xff] %v13440_v15  ;;  %v8581_v15 = vld [vmem:[%s15502_s15 + $0x20] sm:$0xf] }
 0x607   : > { %16803 = vst [vmem:[#allocation94_spill] sm:$0xff] %v13433_v41  ;;  %5621 = vmatpush.bf16.msra.mxu2 %v5434_v35 }
 0x608   : > { %5654 = vmatpush.bf16.msra.mxu3 %v5443_v12 }
 0x609   : > { %8537 = vmatmul.msk.bf16.gmra.mxu0 %vm4711_vm6, %v16807_v55 }
 0x60b   : > { %v13438_v18 = vpop.f32.mrf.mxu3  ;;  %8552 = vmatmul.msk.bf16.gmra.mxu2 %vm4711_vm6, %v16791_v20 }
 0x60c   : > { %16805 = vst [vmem:[#allocation106_spill] sm:$0xff] %v13438_v18  ;;  %5655 = vmatpush.bf16.msra.mxu3 %v5435_v10  ;;  %5622 = vmatpush.bf16.msra.mxu2 %v5426_v44  ;;  %v13450_v31 = vpop.f32.mrf.mxu1 }
 0x60d   : > { %16809 = vst [vmem:[#allocation204_spill] sm:$0xff] %v13450_v31  ;;  %v13456_v28 = vpop.f32.mrf.mxu0 }
 0x60e   : > { %v13448_v45 = vpop.f32.mrf.mxu2  ;;  %16811 = vst [vmem:[#allocation207_spill] sm:$0xff] %v13456_v28 }
 0x60f   : > { %16808 = vst [vmem:[#allocation84_spill] sm:$0xff] %v13448_v45  ;;  %8545 = vmatmul.msk.bf16.gmra.mxu1 %vm4711_vm6, %v16807_v55 }
 0x610   : > { %8560 = vmatmul.msk.bf16.gmra.mxu3 %vm4711_vm6, %v16791_v20  ;;  %v16816_v20 = vld [vmem:[#allocation190_spill] sm:$0xff] }
 0x611   : > { %5656 = vmatpush.bf16.msra.mxu3 %v5427_v60 }
 0x613   : > { %v13452_v52 = vpop.f32.mrf.mxu3 }
 0x614   : > { %16810 = vst [vmem:[#allocation181_spill] sm:$0xff] %v13452_v52  ;;  %v13460_v24 = vpop.f32.mrf.mxu1  ;;  %v16833_v52 = vld [vmem:[#allocation112_spill] sm:$0xff] }
 0x615   : > { %16813 = vst [vmem:[#allocation209_spill] sm:$0xff] %v13460_v24  ;;  %v13464_v43 = vpop.f32.mrf.mxu0 }
 0x616   : > { %v13458_v59 = vpop.f32.mrf.mxu2  ;;  %16815 = vst [vmem:[#allocation211_spill] sm:$0xff] %v13464_v43 }
 0x617   : > { %16812 = vst [vmem:[#allocation208_spill] sm:$0xff] %v13458_v59  ;;  %v16832_v59 = vld [vmem:[#allocation105_spill] sm:$0xff] }
 0x619   : > { %8538 = vmatmul.msk.bf16.gmra.mxu0 %vm4711_vm6, %v16816_v20 }
 0x61b   : > { %v13462_v8 = vpop.f32.mrf.mxu3  ;;  %8553 = vmatmul.msk.bf16.gmra.mxu2 %vm4711_vm6, %v16807_v55 }
 0x61c   : > { %16814 = vst [vmem:[#allocation210_spill] sm:$0xff] %v13462_v8  ;;  %v13474_v0 = vpop.f32.mrf.mxu1  ;;  %v16831_v8 = vld [vmem:[#allocation93_spill] sm:$0xff] }
 0x61d   : > { %16818 = vst [vmem:[#allocation212_spill] sm:$0xff] %v13474_v0  ;;  %v13480_v48 = vpop.f32.mrf.mxu0  ;;  %v16830_v0 = vld [vmem:[#allocation114_spill] sm:$0xff] }
 0x61e   : > { %v13472_v38 = vpop.f32.mrf.mxu2  ;;  %16820 = vst [vmem:[#allocation214_spill] sm:$0xff] %v13480_v48 }
 0x61f   : > { %16817 = vst [vmem:[#allocation190_spill] sm:$0xff] %v13472_v38  ;;  %8546 = vmatmul.msk.bf16.gmra.mxu1 %vm4711_vm6, %v16816_v20 }
 0x620   : > { %8561 = vmatmul.msk.bf16.gmra.mxu3 %vm4711_vm6, %v16807_v55 }
 0x623   : > { %v13476_v14 = vpop.f32.mrf.mxu3 }
 0x624   : > { %16819 = vst [vmem:[#allocation213_spill] sm:$0xff] %v13476_v14  ;;  %v13484_v3 = vpop.f32.mrf.mxu1 }
 0x625   : > { %16822 = vst [vmem:[#allocation216_spill] sm:$0xff] %v13484_v3  ;;  %v13493_v4 = vpop.f32.mrf.mxu0 }
 0x626   : > { %v13482_v54 = vpop.f32.mrf.mxu2 }
 0x627   : > { %16821 = vst [vmem:[#allocation215_spill] sm:$0xff] %v13482_v54  ;;  %v16829_v54 = vld [vmem:[#allocation168_spill] sm:$0xff] }
 0x629   : > { %8583 = vmatmul.msk.bf16.vlgmr.msra.gmra.mxu0 %vm5531_vm7, %v13491_v17 }
 0x62b   : > { %v13486_v61 = vpop.f32.mrf.mxu3  ;;  %8554 = vmatmul.msk.bf16.gmra.mxu2 %vm4711_vm6, %v16816_v20 }
 0x62c   : > { %16823 = vst [vmem:[#allocation217_spill] sm:$0xff] %v13486_v61  ;;  %v13503_v23 = vpop.f32.mrf.mxu1 }
 0x62d   : > { %v4943_v56 = vpop.f32.mrf.mxu0 }
 0x62e   : > { %v13501_v16 = vpop.f32.mrf.mxu2 }
 0x62f   : > { %16824 = vst [vmem:[#allocation218_spill] sm:$0xff] %v13501_v16  ;;  %8588 = vmatmul.msk.bf16.vlgmr.msra.gmra.mxu1 %vm5531_vm7, %v13491_v17 }
 0x630   : > { %8562 = vmatmul.msk.bf16.gmra.mxu3 %vm4711_vm6, %v16816_v20  ;;  %v13562_v20 = vld [vmem:[%s15502_s15 + $0x18] sm:$0xff] }
 0x633   : > { %v13505_v22 = vpop.f32.mrf.mxu3 }
 0x634   : > { %16825 = vst [vmem:[#allocation219_spill] sm:$0xff] %v13505_v22  ;;  %v13511_v57 = vpop.f32.mrf.mxu1  ;;  %v16828_v22 = vld [vmem:[#allocation133_spill] sm:$0xff] }
 0x635   : > { %v4946_v39 = vpop.f32.mrf.mxu0 }
 0x636   : > { %v13509_v21 = vpop.f32.mrf.mxu2 }
 0x637   : > { %16826 = vst [vmem:[#allocation220_spill] sm:$0xff] %v13509_v21 }
 0x639   : > { %8584 = vmatmul.msk.bf16.gmra.mxu0 %vm5531_vm7, %v13518_v34 }
 0x63b   : > { %v13513_v19 = vpop.f32.mrf.mxu3  ;;  %8593 = vmatmul.msk.bf16.vlgmr.msra.gmra.mxu2 %vm5531_vm7, %v13491_v17 }
 0x63c   : > { %16827 = vst [vmem:[#allocation221_spill] sm:$0xff] %v13513_v19  ;;  %v13528_v26 = vpop.f32.mrf.mxu1 }
 0x63d   : > { %v4948_v12 = vpop.f32.mrf.mxu0 }
 0x63e   : > { %v13526_v5 = vpop.f32.mrf.mxu2  ;;  %v5156_v31 = vadd.f32 %v4948_v12, %v16833_v52  ;;  %v16837_v12 = vld [vmem:[#allocation139_spill] sm:$0xff] }
 0x63f   : > { %8589 = vmatmul.msk.bf16.gmra.mxu1 %vm5531_vm7, %v13518_v34 }
 0x640   : > { %8598 = vmatmul.msk.bf16.vlgmr.msra.gmra.mxu3 %vm5531_vm7, %v13491_v17  ;;  %v5260_v13 = vadd.f32 %v13328_v36, %v5156_v31 }
 0x643   : > { %v13530_v29 = vpop.f32.mrf.mxu3 }
 0x644   : > { %v4997_v35 = vpop.f32.mrf.mxu1 }
 0x645   : > { %v4951_v63 = vpop.f32.mrf.mxu0 }
 0x646   : > { %v13534_v46 = vpop.f32.mrf.mxu2  ;;  %v5164_v38 = vadd.f32 %v4951_v63, %v16830_v0  ;;  %v8797_v0 = vld [vmem:[%s15502_s15 + $0x20] sm:$0x10] }
 0x647   : > { %v13599_v30 = vor.u32 %v8797_v0, %v8581_v15  ;;  %v16841_v15 = vld [vmem:[#allocation77_spill] sm:$0xff]  ;;  %v5324_v0 = vmax.f32 %v5260_v13, 0.0  ;;  %v16843_v13 = vld [vmem:[#allocation72_spill] sm:$0xff] }
 0x648   : > { %v5149_v31 = vadd.f32 %v13528_v26, %v16841_v15 }
 0x649   : > { %8585 = vmatmul.msk.bf16.gmra.mxu0 %vm5531_vm7, %v13541_v33 }
 0x64b   : > { %v13536_v2 = vpop.f32.mrf.mxu3  ;;  %8594 = vmatmul.msk.bf16.gmra.mxu2 %vm5531_vm7, %v13518_v34 }
 0x64c   : > { %v5000_v10 = vpop.f32.mrf.mxu1 }
 0x64d   : > { %v4953_v44 = vpop.f32.mrf.mxu0  ;;  %v5165_v63 = vadd.f32 %v5000_v10, %v16837_v12  ;;  %v16840_v10 = vld [vmem:[#allocation138_spill] sm:$0xff] }
 0x64e   : > { %v13549_v40 = vpop.f32.mrf.mxu2  ;;  %v5172_v3 = vadd.f32 %v4953_v44, %v16829_v54 }
 0x64f   : > { %8590 = vmatmul.msk.bf16.gmra.mxu1 %vm5531_vm7, %v13541_v33 }
 0x650   : > { %8599 = vmatmul.msk.bf16.gmra.mxu3 %vm5531_vm7, %v13518_v34 }
 0x653   : > { %v13551_v6 = vpop.f32.mrf.mxu3 }
 0x654   : > { %v5002_v55 = vpop.f32.mrf.mxu1 }
 0x655   : > { %v4956_v19 = vpop.f32.mrf.mxu0 }
 0x656   : > { %v13555_v9 = vpop.f32.mrf.mxu2  ;;  %v5180_v16 = vadd.f32 %v4956_v19, %v16828_v22  ;;  %v5276_v22 = vadd.f32 %v13319_v25, %v5172_v3  ;;  %v16834_v19 = vld [vmem:[#allocation115_spill] sm:$0xff] }
 0x657   : > { %v5173_v44 = vadd.f32 %v5002_v55, %v16834_v19  ;;  %v16838_v19 = vld [vmem:[#allocation163_spill] sm:$0xff] }
 0x658   : > { %v5284_v43 = vadd.f32 %v13296_v50, %v5180_v16  ;;  %v16836_v16 = vld [vmem:[#allocation107_spill] sm:$0xff]  ;;  %v5340_v41 = vmax.f32 %v5276_v22, 0.0 }
 0x659   : > { %8586 = vmatmul.msk.bf16.gmra.mxu0 %vm5531_vm7, %v13562_v20 }
 0x65a   : > { %v5348_v52 = vmax.f32 %v5284_v43, 0.0  ;;  %v5277_v43 = vadd.f32 %v13319_v25, %v5173_v44 }
 0x65b   : > { %v13557_v60 = vpop.f32.mrf.mxu3  ;;  %8595 = vmatmul.msk.bf16.gmra.mxu2 %vm5531_vm7, %v13541_v33 }
 0x65c   : > { %v5005_v61 = vpop.f32.mrf.mxu1 }
 0x65d   : > { %v4958_v14 = vpop.f32.mrf.mxu0  ;;  %v5181_v28 = vadd.f32 %v5005_v61, %v16832_v59  ;;  %v5268_v59 = vadd.f32 %v13302_v42, %v5164_v38 }
 0x65e   : > { %v13570_v21 = vpop.f32.mrf.mxu2  ;;  %v5188_v24 = vadd.f32 %v4958_v14, %v16831_v8  ;;  %v16835_v8 = vld [vmem:[#allocation175_spill] sm:$0xff] }
 0x65f   : > { %8591 = vmatmul.msk.bf16.gmra.mxu1 %vm5531_vm7, %v13562_v20  ;;  %v5148_v14 = vadd.f32 %v4946_v39, %v16835_v8  ;;  %v5285_v55 = vadd.f32 %v13296_v50, %v5181_v28  ;;  %v16839_v39 = vld [vmem:[#allocation174_spill] sm:$0xff]  ;;  %v5132_v28 = vadd.f32 %v13493_v4, %v16840_v10 }
 0x660   : > { %8600 = vmatmul.msk.bf16.gmra.mxu3 %vm5531_vm7, %v13541_v33  ;;  %v5292_v54 = vadd.f32 %v13292_v47, %v5188_v24  ;;  %v5140_v24 = vadd.f32 %v4943_v56, %v16836_v16  ;;  %v5157_v38 = vadd.f32 %v4997_v35, %v16839_v39  ;;  %v5269_v35 = vadd.f32 %v13302_v42, %v5165_v63 }
 0x661   : > { %v5252_v8 = vadd.f32 %v13312_v1, %v5148_v14  ;;  %v5349_v22 = vmax.f32 %v5285_v55, 0.0  ;;  %v16842_v14 = vld [vmem:[#allocation140_spill] sm:$0xff]  ;;  %v5236_v16 = vadd.f32 %v13353_v32, %v5132_v28  ;;  %v5253_v63 = vadd.f32 %v13312_v1, %v5149_v31  ;;  %v16845_v31 = vld [vmem:[#allocation155_spill] sm:$0xff] }
 0x662   : > { %v5356_v61 = vmax.f32 %v5292_v54, 0.0 }
 0x663   : > { %v13574_v48 = vpop.f32.mrf.mxu3  ;;  %v5316_v12 = vmax.f32 %v5252_v8, 0.0  ;;  %v5300_v28 = vmax.f32 %v5236_v16, 0.0  ;;  %v16844_v8 = vld [vmem:[#allocation99_spill] sm:$0xff]  ;;  %v5317_v15 = vmax.f32 %v5253_v63, 0.0 }
 0x664   : > { %v5007_v3 = vpop.f32.mrf.mxu1  ;;  %v5452_v51 = vpack.c.bf16 %v5356_v61, %v5348_v52  ;;  %v5341_v52 = vmax.f32 %v5277_v43, 0.0  ;;  %v16851_v63 = vld [vmem:[#allocation79_spill] sm:$0xff] }
 0x665   : > { %v5189_v18 = vadd.f32 %v5007_v3, %v16838_v19  ;;  %v5332_v3 = vmax.f32 %v5268_v59, 0.0  ;;  %v5261_v59 = vadd.f32 %v13328_v36, %v5157_v38  ;;  %v5436_v39 = vpack.c.bf16 %v5324_v0, %v5316_v12 }
 0x666   : > { %v5051_v45 = vpop.f32.mrf.mxu2  ;;  %v13604_v56 = vpop.f32.mrf.mxu0  ;;  %5687 = vmatpush.bf16.msrb.mxu0 %v5452_v51  ;;  %v5141_v51 = vadd.f32 %v13511_v57, %v16842_v14  ;;  %v5333_v57 = vmax.f32 %v5269_v35, 0.0 }
 0x667   : > { %v5293_v54 = vadd.f32 %v13292_v47, %v5189_v18  ;;  %v5244_v18 = vadd.f32 %v13345_v37, %v5140_v24  ;;  %v5444_v4 = vpack.c.bf16 %v5340_v41, %v5332_v3  ;;  %v5133_v41 = vadd.f32 %v13503_v23, %v16843_v13  ;;  %v16849_v13 = vld [vmem:[#allocation171_spill] sm:$0xff] }
 0x668   : > { %v5245_v38 = vadd.f32 %v13345_v37, %v5141_v51  ;;  %v5325_v43 = vmax.f32 %v5261_v59, 0.0  ;;  %v5174_v35 = vadd.f32 %v5051_v45, %v16845_v31  ;;  %v16847_v51 = vld [vmem:[#allocation127_spill] sm:$0xff]  ;;  %v16850_v45 = vld [vmem:[#allocation16_spill] sm:$0xff] }
 0x669   : > { %v5357_v44 = vmax.f32 %v5293_v54, 0.0  ;;  %8587 = vmatmul.msk.bf16.gmra.mxu0 %vm5531_vm7, %v13599_v30  ;;  %v5308_v55 = vmax.f32 %v5244_v18, 0.0  ;;  %v5445_v54 = vpack.c.bf16 %v5341_v52, %v5333_v57  ;;  %v5237_v23 = vadd.f32 %v13353_v32, %v5133_v41  ;;  %v16846_v18 = vld [vmem:[#allocation135_spill] sm:$0xff] }
 0x66a   : > { %5688 = vmatpush.bf16.msrb.mxu0 %v5444_v4  ;;  %v5437_v4 = vpack.c.bf16 %v5325_v43, %v5317_v15  ;;  %v5166_v59 = vadd.f32 %v13570_v21, %v16847_v51  ;;  %v5158_v57 = vadd.f32 %v13555_v9, %v16851_v63  ;;  %v16859_v51 = vld [vmem:[#allocation17_spill] sm:$0xff] }
 0x66b   : > { %v5100_v53 = vpop.f32.mrf.mxu3  ;;  %8596 = vmatmul.msk.bf16.gmra.mxu2 %vm5531_vm7, %v13562_v20  ;;  %v5453_v61 = vpack.c.bf16 %v5357_v44, %v5349_v22  ;;  %v5428_v22 = vpack.c.bf16 %v5308_v55, %v5300_v28  ;;  %v5309_v44 = vmax.f32 %v5245_v38, 0.0  ;;  %v5301_v12 = vmax.f32 %v5237_v23, 0.0 }
 0x66c   : > { %v13623_v24 = vpop.f32.mrf.mxu1  ;;  %v5175_v41 = vadd.f32 %v5100_v53, %v16849_v13  ;;  %v5278_v55 = vadd.f32 %v13319_v25, %v5174_v35  ;;  %v16854_v53 = vld [vmem:[#allocation128_spill] sm:$0xff]  ;;  %v5270_v9 = vadd.f32 %v13302_v42, %v5166_v59 }
 0x66d   : > { %5721 = vmatpush.bf16.msrb.mxu1 %v5453_v61  ;;  %v16856_v35 = vld [vmem:[#allocation152_spill] sm:$0xff] }
 0x66e   : > { %v5054_v26 = vpop.f32.mrf.mxu2  ;;  %v13631_v10 = vpop.f32.mrf.mxu0  ;;  %5689 = vmatpush.bf16.msrb.mxu0 %v5436_v39  ;;  %v16852_v39 = vld [vmem:[#allocation109_spill] sm:$0xff] }
 0x66f   : > { %8592 = vmatmul.msk.bf16.gmra.mxu1 %vm5531_vm7, %v13599_v30  ;;  %v5182_v3 = vadd.f32 %v5054_v26, %v16844_v8  ;;  %v16848_v26 = vld [vmem:[#allocation102_spill] sm:$0xff]  ;;  %v5167_v38 = vadd.f32 %v13574_v48, %v16852_v39  ;;  %v5159_v48 = vadd.f32 %v13557_v60, %v16856_v35  ;;  %v16860_v60 = vld [vmem:[#allocation169_spill] sm:$0xff] }
 0x670   : > { %8601 = vmatmul.msk.bf16.gmra.mxu3 %vm5531_vm7, %v13562_v20 }
 0x671   : > { %5722 = vmatpush.bf16.msrb.mxu1 %v5445_v54  ;;  %v5286_v61 = vadd.f32 %v13296_v50, %v5182_v3  ;;  %v5429_v54 = vpack.c.bf16 %v5309_v44, %v5301_v12  ;;  %v16855_v3 = vld [vmem:[#allocation131_spill] sm:$0xff]  ;;  %v16857_v44 = vld [vmem:[#allocation20_spill] sm:$0xff]  ;;  %v5271_v59 = vadd.f32 %v13302_v42, %v5167_v38  ;;  %v5263_v63 = vadd.f32 %v13328_v36, %v5159_v48 }
 0x672   : > { %5690 = vmatpush.bf16.msrb.mxu0 %v5428_v22  ;;  %v5150_v23 = vadd.f32 %v13549_v40, %v16855_v3 }
 0x673   : > { %v5103_v19 = vpop.f32.mrf.mxu3  ;;  %v5350_v15 = vmax.f32 %v5286_v61, 0.0 }
 0x674   : > { %v5183_v0 = vadd.f32 %v5103_v19, %v16846_v18  ;;  %v13639_v52 = vpop.f32.mrf.mxu1  ;;  %v16858_v18 = vld [vmem:[#allocation165_spill] sm:$0xff]  ;;  %v5254_v13 = vadd.f32 %v13312_v1, %v5150_v23 }
 0x675   : > { %5723 = vmatpush.bf16.msrb.mxu1 %v5437_v4  ;;  %v5142_v40 = vadd.f32 %v13534_v46, %v16858_v18  ;;  %v5342_v4 = vmax.f32 %v5278_v55, 0.0  ;;  %v16867_v23 = vld [vmem:[#allocation25_spill] sm:$0xff] }
 0x676   : > { %v5056_v14 = vpop.f32.mrf.mxu2  ;;  %6041 = vmatpush.bf16.msra.mxu0 %v16850_v45  ;;  %v5287_v43 = vadd.f32 %v13296_v50, %v5183_v0  ;;  %v13652_v28 = vpop.f32.mrf.mxu0  ;;  %v5279_v50 = vadd.f32 %v13319_v25, %v5175_v41  ;;  %v5262_v0 = vadd.f32 %v13328_v36, %v5158_v57  ;;  %v5151_v25 = vadd.f32 %v13551_v6, %v16860_v60  ;;  %v16864_v6 = vld [vmem:[#allocation74_spill] sm:$0xff] }
 0x677   : > { %v5190_v16 = vadd.f32 %v5056_v14, %v16848_v26  ;;  %16853 = vst [vmem:[#allocation133_spill] sm:$0xff] %v13652_v28  ;;  %v16861_v26 = vld [vmem:[#allocation24_spill] sm:$0xff]  ;;  %v5334_v41 = vmax.f32 %v5270_v9, 0.0  ;;  %v5143_v42 = vadd.f32 %v13536_v2, %v16864_v6  ;;  %v5318_v3 = vmax.f32 %v5254_v13, 0.0  ;;  %v16877_v13 = vld [vmem:[#allocation26_spill] sm:$0xff]  ;;  %v16878_v6 = vld [vmem:[#allocation23_spill] sm:$0xff] }
 0x678   : > { %v5343_v57 = vmax.f32 %v5279_v50, 0.0 }
 0x679   : > { %v5294_v21 = vadd.f32 %v13292_v47, %v5190_v16  ;;  %5724 = vmatpush.bf16.msrb.mxu1 %v5429_v54  ;;  %8603 = vmatmul.msk.bf16.vlgmr.msrb.gmra.mxu0 %vm5531_vm7, %v13491_v17  ;;  %v16862_v16 = vld [vmem:[#allocation162_spill] sm:$0xff]  ;;  %v5446_v38 = vpack.c.bf16 %v5342_v4, %v5334_v41  ;;  %v5247_v9 = vadd.f32 %v13345_v37, %v5143_v42  ;;  %v16879_v42 = vld [vmem:[#allocation27_spill] sm:$0xff] }
 0x67a   : > { %6042 = vmatpush.bf16.msra.mxu0 %v16857_v44  ;;  %v5134_v12 = vadd.f32 %v13526_v5, %v16862_v16  ;;  %v16865_v5 = vld [vmem:[#allocation21_spill] sm:$0xff]  ;;  %v16875_v16 = vld [vmem:[#allocation22_spill] sm:$0xff] }
 0x67b   : > { %v5105_v19 = vpop.f32.mrf.mxu3  ;;  %v5358_v31 = vmax.f32 %v5294_v21, 0.0  ;;  %8597 = vmatmul.msk.bf16.gmra.mxu2 %vm5531_vm7, %v13599_v30  ;;  %v5246_v21 = vadd.f32 %v13345_v37, %v5142_v40  ;;  %v16869_v40 = vld [vmem:[#allocation28_spill] sm:$0xff] }
 0x67c   : > { %v5191_v8 = vadd.f32 %v5105_v19, %v16854_v53  ;;  %v13682_v45 = vpop.f32.mrf.mxu1  ;;  %v5326_v19 = vmax.f32 %v5262_v0, 0.0  ;;  %v5255_v53 = vadd.f32 %v13312_v1, %v5151_v25  ;;  %v5238_v2 = vadd.f32 %v13353_v32, %v5134_v12 }
 0x67d   : > { %v5454_v14 = vpack.c.bf16 %v5358_v31, %v5350_v15  ;;  %6070 = vmatpush.bf16.msra.mxu1 %v16859_v51  ;;  %16863 = vst [vmem:[#allocation168_spill] sm:$0xff] %v13682_v45  ;;  %v5327_v15 = vmax.f32 %v5263_v63, 0.0  ;;  %v5310_v1 = vmax.f32 %v5246_v21, 0.0  ;;  %v5311_v0 = vmax.f32 %v5247_v9, 0.0  ;;  %v16880_v63 = vld [vmem:[#allocation30_spill] sm:$0xff]  ;;  %v16926_v45 = vld [vmem:[#allocation204_spill] sm:$0xff] }
 0x67e   : > { %v5295_v22 = vadd.f32 %v13292_v47, %v5191_v8  ;;  %v5351_v47 = vmax.f32 %v5287_v43, 0.0  ;;  %v13676_v46 = vpop.f32.mrf.mxu2  ;;  %6157 = vmatpush.bf16.msrb.mxu0 %v16861_v26  ;;  %v16866_v43 = vld [vmem:[#allocation141_spill] sm:$0xff]  ;;  %v5335_v8 = vmax.f32 %v5271_v59, 0.0  ;;  %v13696_v36 = vpop.f32.mrf.mxu0  ;;  %v5438_v35 = vpack.c.bf16 %v5326_v19, %v5318_v3  ;;  %v16871_v59 = vld [vmem:[#allocation18_spill] sm:$0xff]  ;;  %v16874_v26 = vld [vmem:[#allocation19_spill] sm:$0xff] }
 0x67f   : > { %5755 = vmatpush.bf16.msrb.mxu2 %v5454_v14  ;;  %v5135_v54 = vadd.f32 %v13530_v29, %v16866_v43  ;;  %8608 = vmatmul.msk.bf16.vlgmr.msrb.gmra.mxu1 %vm5531_vm7, %v13491_v17  ;;  %v16868_v29 = vld [vmem:[#allocation29_spill] sm:$0xff]  ;;  %v5319_v50 = vmax.f32 %v5255_v53, 0.0  ;;  %v5302_v44 = vmax.f32 %v5238_v2, 0.0 }
 0x680   : > { %v5359_v61 = vmax.f32 %v5295_v22, 0.0  ;;  %8602 = vmatmul.msk.bf16.gmra.mxu3 %vm5531_vm7, %v13599_v30  ;;  %v5447_v31 = vpack.c.bf16 %v5343_v57, %v5335_v8 }
 0x681   : > { %6071 = vmatpush.bf16.msra.mxu1 %v16865_v5  ;;  %v5239_v48 = vadd.f32 %v13353_v32, %v5135_v54  ;;  %v5439_v37 = vpack.c.bf16 %v5327_v15, %v5319_v50  ;;  %v5430_v14 = vpack.c.bf16 %v5310_v1, %v5302_v44  ;;  %v13712_v32 = vpop.permute.xlu1 %5498  ;;  %v13750_v5 = vpop.permute.xlu0 %5493 }
 0x682   : > { %v5455_v55 = vpack.c.bf16 %v5359_v61, %v5351_v47  ;;  %6158 = vmatpush.bf16.msrb.mxu0 %v16868_v29  ;;  %16884 = vst [vmem:[#allocation107_spill] sm:$0xff] %v13750_v5 }
 0x683   : > { %v13688_v39 = vpop.f32.mrf.mxu3  ;;  %5756 = vmatpush.bf16.msrb.mxu2 %v5446_v38  ;;  %v5303_v51 = vmax.f32 %v5239_v48, 0.0 }
 0x684   : > { %5789 = vmatpush.bf16.msrb.mxu3 %v5455_v55  ;;  %v13705_v18 = vpop.f32.mrf.mxu1 }
 0x685   : > { %6186 = vmatpush.bf16.msrb.mxu1 %v16867_v23  ;;  %v5431_v25 = vpack.c.bf16 %v5311_v0, %v5303_v51 }
 0x686   : > { %v13703_v22 = vpop.f32.mrf.mxu2  ;;  %v13710_v60 = vpop.f32.mrf.mxu0 }
 0x687   : > { %5757 = vmatpush.bf16.msrb.mxu2 %v5438_v35  ;;  %16870 = vst [vmem:[#allocation114_spill] sm:$0xff] %v13710_v60 }
 0x688   : > { %5790 = vmatpush.bf16.msrb.mxu3 %v5447_v31 }
 0x689   : > { %6187 = vmatpush.bf16.msrb.mxu1 %v16869_v40  ;;  %8604 = vmatmul.msk.bf16.gmra.mxu0 %vm5531_vm7, %v13518_v34  ;;  %v13737_v57 = vpop.permute.xlu1 %5473  ;;  %v13772_v9 = vpop.permute.xlu0 %5488 }
 0x68a   : > { %16881 = vst [vmem:[#allocation115_spill] sm:$0xff] %v13737_v57 }
 0x68b   : > { %v13708_v4 = vpop.f32.mrf.mxu3  ;;  %5758 = vmatpush.bf16.msrb.mxu2 %v5430_v14  ;;  %v16890_v14 = vld [vmem:[#allocation159_spill] sm:$0xff] }
 0x68c   : > { %5791 = vmatpush.bf16.msrb.mxu3 %v5439_v37  ;;  %v13721_v61 = vpop.f32.mrf.mxu1  ;;  %v5360_v51 = vadd.f32 %v13338_v62, %v16890_v14 }
 0x68d   : > { %16873 = vst [vmem:[#allocation105_spill] sm:$0xff] %v13721_v61 }
 0x68e   : > { %v13717_v47 = vpop.f32.mrf.mxu2  ;;  %8613 = vmatmul.msk.bf16.vlgmr.msrb.gmra.mxu2 %vm5531_vm7, %v13491_v17  ;;  %v13732_v41 = vpop.f32.mrf.mxu0 }
 0x68f   : > { %6099 = vmatpush.bf16.msra.mxu2 %v16871_v59  ;;  %16872 = vst [vmem:[#allocation93_spill] sm:$0xff] %v13717_v47  ;;  %8609 = vmatmul.msk.bf16.gmra.mxu1 %vm5531_vm7, %v13518_v34  ;;  %v16918_v47 = vld [vmem:[#allocation106_spill] sm:$0xff] }
 0x690   : > { %5792 = vmatpush.bf16.msrb.mxu3 %v5431_v25 }
 0x691   : > { %v13758_v53 = vpop.permute.xlu1 %5468  ;;  %v13794_v40 = vpop.permute.xlu0 %5463 }
 0x693   : > { %6100 = vmatpush.bf16.msra.mxu2 %v16875_v16  ;;  %v13725_v12 = vpop.f32.mrf.mxu3  ;;  %8618 = vmatmul.msk.bf16.vlgmr.msrb.gmra.mxu3 %vm5531_vm7, %v13491_v17  ;;  %v16882_v17 = vld [vmem:[#allocation31_spill] sm:$0xff] }
 0x694   : > { %6128 = vmatpush.bf16.msra.mxu3 %v16874_v26  ;;  %16876 = vst [vmem:[#allocation112_spill] sm:$0xff] %v13725_v12  ;;  %v13741_v21 = vpop.f32.mrf.mxu1 }
 0x696   : > { %v13739_v55 = vpop.f32.mrf.mxu2  ;;  %v13746_v38 = vpop.f32.mrf.mxu0 }
 0x697   : > { %6215 = vmatpush.bf16.msrb.mxu2 %v16877_v13  ;;  %16883 = vst [vmem:[#allocation175_spill] sm:$0xff] %v13746_v38  ;;  %v16892_v13 = vld [vmem:[#allocation87_spill] sm:$0xff] }
 0x698   : > { %6129 = vmatpush.bf16.msra.mxu3 %v16878_v6 }
 0x699   : > { %8605 = vmatmul.msk.bf16.gmra.mxu0 %vm5531_vm7, %v13541_v33  ;;  %v13777_v31 = vpop.permute.xlu1 %5458 }
 0x69b   : > { %6216 = vmatpush.bf16.msrb.mxu2 %v16880_v63  ;;  %v13744_v19 = vpop.f32.mrf.mxu3 }
 0x69c   : > { %6244 = vmatpush.bf16.msrb.mxu3 %v16879_v42  ;;  %v13756_v54 = vpop.f32.mrf.mxu1 }
 0x69d   : > { %16886 = vst [vmem:[#allocation163_spill] sm:$0xff] %v13756_v54 }
 0x69e   : > { %v13752_v43 = vpop.f32.mrf.mxu2  ;;  %8614 = vmatmul.msk.bf16.gmra.mxu2 %vm5531_vm7, %v13518_v34  ;;  %v13766_v2 = vpop.f32.mrf.mxu0 }
 0x69f   : > { %16885 = vst [vmem:[#allocation139_spill] sm:$0xff] %v13752_v43  ;;  %8610 = vmatmul.msk.bf16.gmra.mxu1 %vm5531_vm7, %v13541_v33 }
 0x6a0   : > { %6245 = vmatpush.bf16.msrb.mxu3 %v16882_v17 }
 0x6a3   : > { %v13760_v8 = vpop.f32.mrf.mxu3  ;;  %8619 = vmatmul.msk.bf16.gmra.mxu3 %vm5531_vm7, %v13518_v34 }
 0x6a4   : > { %16887 = vst [vmem:[#allocation174_spill] sm:$0xff] %v13760_v8  ;;  %v13770_v23 = vpop.f32.mrf.mxu1 }
 0x6a6   : > { %v13768_v3 = vpop.f32.mrf.mxu2  ;;  %v5556_v29 = vpop.f32.mrf.mxu0 }
 0x6a7   : > { %v5557_v1 = vadd.f32 %v5556_v29, %v13777_v31  ;;  %v16894_v29 = vld [vmem:[#allocation110_spill] sm:$0xff] }
 0x6a8   : > { %v5368_v62 = vadd.f32 %v13369_v58, %v16894_v29 }
 0x6a9   : > { %v5819_v34 = vmax.f32 %v5557_v1, 0.0  ;;  %8606 = vmatmul.msk.bf16.gmra.mxu0 %vm5531_vm7, %v13562_v20 }
 0x6ab   : > { %v13774_v15 = vpop.f32.mrf.mxu3  ;;  %7748 = vst [vmem:[%s13786_s0] sm:$0xff] %v5819_v34 }
 0x6ac   : > { %v5590_v48 = vpop.f32.mrf.mxu1 }
 0x6ad   : > { %v5591_v50 = vadd.f32 %v5590_v48, %v13777_v31 }
 0x6ae   : > { %v13782_v35 = vpop.f32.mrf.mxu2  ;;  %8615 = vmatmul.msk.bf16.gmra.mxu2 %vm5531_vm7, %v13541_v33  ;;  %v5558_v37 = vpop.f32.mrf.mxu0 }
 0x6af   : > { %16888 = vst [vmem:[#allocation138_spill] sm:$0xff] %v13782_v35  ;;  %v5820_v0 = vmax.f32 %v5591_v50, 0.0  ;;  %8611 = vmatmul.msk.bf16.gmra.mxu1 %vm5531_vm7, %v13562_v20  ;;  %v5559_v25 = vadd.f32 %v5558_v37, %v13794_v40  ;;  %v16897_v37 = vld [vmem:[#allocation129_spill] sm:$0xff]  ;;  %v16925_v35 = vld [vmem:[#allocation154_spill] sm:$0xff] }
 0x6b0   : > { %v5369_v58 = vadd.f32 %v13377_v49, %v16897_v37  ;;  %v16902_v37 = vld [vmem:[#allocation90_spill] sm:$0xff]  ;;  %v5393_v61 = vadd.f32 %v16926_v45, %v16925_v35  ;;  %v16932_v45 = vld [vmem:[#allocation207_spill] sm:$0xff] }
 0x6b1   : > { %7749 = vst [vmem:[%s13786_s0 + $0x8] sm:$0xff] %v5820_v0  ;;  %v13802_v59 = vadd.f32 %v5559_v25, %v5360_v51  ;;  %v13823_v0 = vpop.permute.xlu2 %5483 }
 0x6b2   : > { %16896 = vst [vmem:[#allocation155_spill] sm:$0xff] %v13823_v0 }
 0x6b3   : > { %v13790_v44 = vpop.f32.mrf.mxu3  ;;  %8620 = vmatmul.msk.bf16.gmra.mxu3 %vm5531_vm7, %v13541_v33  ;;  %16891 = vst [vmem:[#allocation140_spill] sm:$0xff] %v13802_v59  ;;  %v5361_v33 = vadd.f32 %v13361_v11, %v16892_v13 }
 0x6b4   : > { %16889 = vst [vmem:[#allocation77_spill] sm:$0xff] %v13790_v44  ;;  %v5592_v16 = vpop.f32.mrf.mxu1  ;;  %v16923_v44 = vld [vmem:[#allocation130_spill] sm:$0xff] }
 0x6b5   : > { %v5593_v6 = vadd.f32 %v5592_v16, %v13794_v40 }
 0x6b6   : > { %v13804_v26 = vpop.f32.mrf.mxu2  ;;  %v5561_v17 = vpop.f32.mrf.mxu0 }
 0x6b7   : > { %v13811_v63 = vadd.f32 %v5593_v6, %v5361_v33  ;;  %v5562_v1 = vadd.f32 %v5561_v17, %v13758_v53  ;;  %v16899_v6 = vld [vmem:[#allocation136_spill] sm:$0xff] }
 0x6b8   : > { %v5376_v17 = vadd.f32 %v13389_v7, %v16899_v6  ;;  %v16905_v6 = vld [vmem:[#allocation137_spill] sm:$0xff] }
 0x6b9   : > { %16893 = vst [vmem:[#allocation72_spill] sm:$0xff] %v13811_v63  ;;  %v13816_v34 = vadd.f32 %v5562_v1, %v5368_v62  ;;  %8607 = vmatmul.msk.bf16.gmra.mxu0 %vm5531_vm7, %v13599_v30 }
 0x6bb   : > { %v13809_v42 = vpop.f32.mrf.mxu3  ;;  %16895 = vst [vmem:[#allocation99_spill] sm:$0xff] %v13816_v34 }
 0x6bc   : > { %v5595_v11 = vpop.f32.mrf.mxu1 }
 0x6bd   : > { %v5596_v14 = vadd.f32 %v5595_v11, %v13758_v53 }
 0x6be   : > { %v5624_v48 = vpop.f32.mrf.mxu2  ;;  %8616 = vmatmul.msk.bf16.gmra.mxu2 %vm5531_vm7, %v13562_v20  ;;  %v5563_v13 = vpop.f32.mrf.mxu0 }
 0x6bf   : > { %v5625_v50 = vadd.f32 %v5624_v48, %v13777_v31  ;;  %v13830_v16 = vadd.f32 %v5596_v14, %v5369_v58  ;;  %8612 = vmatmul.msk.bf16.gmra.mxu1 %vm5531_vm7, %v13599_v30  ;;  %v5564_v49 = vadd.f32 %v5563_v13, %v13737_v57  ;;  %v16903_v58 = vld [vmem:[#allocation164_spill] sm:$0xff] }
 0x6c0   : > { %v5377_v14 = vadd.f32 %v16903_v58, %v16902_v37 }
 0x6c1   : > { %v5821_v51 = vmax.f32 %v5625_v50, 0.0  ;;  %16898 = vst [vmem:[#allocation135_spill] sm:$0xff] %v13830_v16  ;;  %v13839_v62 = vadd.f32 %v5564_v49, %v5376_v17 }
 0x6c3   : > { %v5658_v25 = vpop.f32.mrf.mxu3  ;;  %8621 = vmatmul.msk.bf16.gmra.mxu3 %vm5531_vm7, %v13562_v20  ;;  %7750 = vst [vmem:[%s13786_s0 + $0x10] sm:$0xff] %v5821_v51  ;;  %v16901_v20 = vld [vmem:[#allocation157_spill] sm:$0xff]  ;;  %v13853_v51 = vld [vmem:[%s15504_s17] sm:$0xff] }
 0x6c4   : > { %v5659_v33 = vadd.f32 %v5658_v25, %v13777_v31  ;;  %16900 = vst [vmem:[#allocation127_spill] sm:$0xff] %v13839_v62  ;;  %v5362_v48 = vadd.f32 %v13411_v27, %v16901_v20  ;;  %v5597_v11 = vpop.f32.mrf.mxu1  ;;  %v16906_v27 = vld [vmem:[#allocation100_spill] sm:$0xff] }
 0x6c5   : > { %v5598_v25 = vadd.f32 %v5597_v11, %v13737_v57  ;;  %v5363_v17 = vadd.f32 %v16906_v27, %v16905_v6  ;;  %v16908_v20 = vld [vmem:[#allocation88_spill] sm:$0xff]  ;;  %v16909_v11 = vld [vmem:[#allocation206_spill] sm:$0xff] }
 0x6c6   : > { %v5822_v29 = vmax.f32 %v5659_v33, 0.0  ;;  %v5626_v1 = vpop.f32.mrf.mxu2  ;;  %v13855_v33 = vpop.permute.xlu2 %5478 }
 0x6c7   : > { %v5627_v50 = vadd.f32 %v5626_v1, %v13794_v40  ;;  %v13859_v49 = vadd.f32 %v5598_v25, %v5377_v14  ;;  %v16912_v14 = vld [vmem:[#allocation153_spill] sm:$0xff]  ;;  %v16913_v25 = vld [vmem:[#allocation94_spill] sm:$0xff] }
 0x6c8   : > { %7751 = vst [vmem:[%s13786_s0 + $0x18] sm:$0xff] %v5822_v29  ;;  %v5566_v29 = vpop.f32.mrf.mxu0  ;;  %v5370_v6 = vadd.f32 %v16913_v25, %v16912_v14  ;;  %v16920_v25 = vld [vmem:[#allocation117_spill] sm:$0xff] }
 0x6c9   : > { %v13848_v7 = vadd.f32 %v5627_v50, %v5362_v48  ;;  %16907 = vst [vmem:[#allocation171_spill] sm:$0xff] %v13859_v49  ;;  %v5384_v48 = vadd.f32 %v16909_v11, %v16908_v20  ;;  %v5567_v50 = vadd.f32 %v5566_v29, %v13855_v33  ;;  %8639 = vmatmul.msk.bf16.vlgmr.msra.gmra.mxu0 %vm896_vm0, %v13853_v51  ;;  %v16914_v20 = vld [vmem:[#allocation122_spill] sm:$0xff]  ;;  %v16915_v11 = vld [vmem:[#allocation203_spill] sm:$0xff] }
 0x6ca   : > { %v5385_v29 = vadd.f32 %v16915_v11, %v16914_v20  ;;  %v16921_v20 = vld [vmem:[#allocation205_spill] sm:$0xff] }
 0x6cb   : > { %16904 = vst [vmem:[#allocation102_spill] sm:$0xff] %v13848_v7  ;;  %v5660_v13 = vpop.f32.mrf.mxu3  ;;  %v13867_v58 = vadd.f32 %v5567_v50, %v5384_v48  ;;  %v16917_v50 = vld [vmem:[#allocation80_spill] sm:$0xff]  ;;  %v16947_v7 = vld [vmem:[#allocation81_spill] sm:$0xff] }
 0x6cc   : > { %v5661_v1 = vadd.f32 %v5660_v13, %v13794_v40  ;;  %v5600_v13 = vpop.f32.mrf.mxu1  ;;  %v5371_v8 = vadd.f32 %v16918_v47, %v16917_v50  ;;  %v16924_v47 = vld [vmem:[#allocation84_spill] sm:$0xff] }
 0x6cd   : > { %16911 = vst [vmem:[#allocation79_spill] sm:$0xff] %v13867_v58 }
 0x6ce   : > { %v13865_v37 = vadd.f32 %v5661_v1, %v5363_v17  ;;  %v5629_v12 = vpop.f32.mrf.mxu2  ;;  %8617 = vmatmul.msk.bf16.gmra.mxu2 %vm5531_vm7, %v13599_v30  ;;  %v5601_v17 = vadd.f32 %v5600_v13, %v13855_v33  ;;  %v5392_v13 = vadd.f32 %v16921_v20, %v16920_v25 }
 0x6cf   : > { %v5630_v27 = vadd.f32 %v5629_v12, %v13758_v53  ;;  %8643 = vmatmul.msk.bf16.vlgmr.msra.gmra.mxu1 %vm896_vm0, %v13853_v51 }
 0x6d0   : > { %16910 = vst [vmem:[#allocation16_spill] sm:$0xff] %v13865_v37  ;;  %v13885_v43 = vadd.f32 %v5601_v17, %v5385_v29  ;;  %v5568_v12 = vpop.f32.mrf.mxu0  ;;  %v5378_v29 = vadd.f32 %v16924_v47, %v16923_v44  ;;  %v16945_v37 = vld [vmem:[#allocation120_spill] sm:$0xff] }
 0x6d1   : > { %v13879_v1 = vadd.f32 %v5630_v27, %v5370_v6  ;;  %v5569_v6 = vadd.f32 %v5568_v12, %v13823_v0  ;;  %v16928_v12 = vld [vmem:[#allocation118_spill] sm:$0xff] }
 0x6d2   : > { %16919 = vst [vmem:[#allocation128_spill] sm:$0xff] %v13885_v43 }
 0x6d3   : > { %16916 = vst [vmem:[#allocation109_spill] sm:$0xff] %v13879_v1  ;;  %v5663_v48 = vpop.f32.mrf.mxu3  ;;  %8622 = vmatmul.msk.bf16.gmra.mxu3 %vm5531_vm7, %v13599_v30  ;;  %v13895_v11 = vadd.f32 %v5569_v6, %v5392_v13 }
 0x6d4   : > { %v5664_v14 = vadd.f32 %v5663_v48, %v13758_v53  ;;  %v5602_v17 = vpop.f32.mrf.mxu1 }
 0x6d5   : > { %v5603_v48 = vadd.f32 %v5602_v17, %v13823_v0 }
 0x6d6   : > { %v13893_v27 = vadd.f32 %v5664_v14, %v5371_v8  ;;  %v5631_v30 = vpop.f32.mrf.mxu2  ;;  %v13908_v8 = vld [vmem:[%s15504_s17 + $0x8] sm:$0xff] }
 0x6d7   : > { %v5632_v50 = vadd.f32 %v5631_v30, %v13737_v57  ;;  %v16929_v14 = vld [vmem:[#allocation181_spill] sm:$0xff]  ;;  %v13912_v44 = vadd.f32 %v5603_v48, %v5393_v61  ;;  %v16931_v30 = vld [vmem:[#allocation82_spill] sm:$0xff]  ;;  %v16934_v61 = vld [vmem:[#allocation144_spill] sm:$0xff] }
 0x6d8   : > { %16922 = vst [vmem:[#allocation131_spill] sm:$0xff] %v13893_v27  ;;  %v5379_v20 = vadd.f32 %v16929_v14, %v16928_v12  ;;  %v5571_v13 = vpop.f32.mrf.mxu0  ;;  %v5400_v35 = vadd.f32 %v16932_v45, %v16931_v30  ;;  %v16935_v48 = vld [vmem:[#allocation208_spill] sm:$0xff]  ;;  %v16936_v30 = vld [vmem:[#allocation142_spill] sm:$0xff]  ;;  %v16937_v45 = vld [vmem:[#allocation209_spill] sm:$0xff] }
 0x6d9   : > { %v13903_v28 = vadd.f32 %v5632_v50, %v5378_v29  ;;  %16930 = vst [vmem:[#allocation20_spill] sm:$0xff] %v13912_v44  ;;  %v5572_v47 = vadd.f32 %v5571_v13, %v13772_v9  ;;  %8640 = vmatmul.msk.bf16.gmra.mxu0 %vm896_vm0, %v13908_v8  ;;  %v5386_v12 = vadd.f32 %v16935_v48, %v16934_v61  ;;  %v16941_v48 = vld [vmem:[#allocation95_spill] sm:$0xff]  ;;  %v16948_v27 = vld [vmem:[#allocation212_spill] sm:$0xff] }
 0x6da   : > { %v5401_v13 = vadd.f32 %v16937_v45, %v16936_v30  ;;  %v16942_v30 = vld [vmem:[#allocation211_spill] sm:$0xff]  ;;  %v5409_v1 = vadd.f32 %v16948_v27, %v16947_v7  ;;  %v16954_v7 = vld [vmem:[#allocation214_spill] sm:$0xff] }
 0x6db   : > { %16927 = vst [vmem:[#allocation152_spill] sm:$0xff] %v13903_v28  ;;  %v5665_v25 = vpop.f32.mrf.mxu3  ;;  %v13920_v17 = vadd.f32 %v5572_v47, %v5400_v35  ;;  %v16939_v47 = vld [vmem:[#allocation91_spill] sm:$0xff] }
 0x6dc   : > { %v5666_v6 = vadd.f32 %v5665_v25, %v13737_v57  ;;  %v5605_v25 = vpop.f32.mrf.mxu1  ;;  %v16940_v57 = vld [vmem:[#allocation210_spill] sm:$0xff] }
 0x6dd   : > { %v5387_v54 = vadd.f32 %v16940_v57, %v16939_v47  ;;  %v16946_v57 = vld [vmem:[#allocation190_spill] sm:$0xff] }
 0x6de   : > { %v13918_v29 = vadd.f32 %v5666_v6, %v5379_v20  ;;  %v5634_v50 = vpop.f32.mrf.mxu2  ;;  %8647 = vmatmul.msk.bf16.vlgmr.msra.gmra.mxu2 %vm896_vm0, %v13853_v51  ;;  %v5606_v20 = vadd.f32 %v5605_v25, %v13772_v9  ;;  %v5408_v25 = vadd.f32 %v16942_v30, %v16941_v48 }
 0x6df   : > { %v5635_v14 = vadd.f32 %v5634_v50, %v13855_v33  ;;  %8644 = vmatmul.msk.bf16.gmra.mxu1 %vm896_vm0, %v13908_v8 }
 0x6e0   : > { %16933 = vst [vmem:[#allocation165_spill] sm:$0xff] %v13918_v29  ;;  %v13938_v60 = vadd.f32 %v5606_v20, %v5401_v13  ;;  %v5573_v50 = vpop.f32.mrf.mxu0  ;;  %v5394_v13 = vadd.f32 %v16946_v57, %v16945_v37 }
 0x6e1   : > { %v13932_v6 = vadd.f32 %v5635_v14, %v5386_v12  ;;  %v5574_v12 = vadd.f32 %v5573_v50, %v13750_v5  ;;  %v16950_v50 = vld [vmem:[#allocation151_spill] sm:$0xff] }
 0x6e3   : > { %16938 = vst [vmem:[#allocation17_spill] sm:$0xff] %v13932_v6  ;;  %v5668_v35 = vpop.f32.mrf.mxu3  ;;  %8651 = vmatmul.msk.bf16.vlgmr.msra.gmra.mxu3 %vm896_vm0, %v13853_v51  ;;  %v13948_v45 = vadd.f32 %v5574_v12, %v5408_v25  ;;  %v16953_v12 = vld [vmem:[#allocation149_spill] sm:$0xff] }
 0x6e4   : > { %v5669_v61 = vadd.f32 %v5668_v35, %v13855_v33  ;;  %v5607_v20 = vpop.f32.mrf.mxu1  ;;  %v5416_v27 = vadd.f32 %v16954_v7, %v16953_v12  ;;  %v16959_v12 = vld [vmem:[#allocation97_spill] sm:$0xff]  ;;  %v16960_v7 = vld [vmem:[#allocation215_spill] sm:$0xff] }
 0x6e5   : > { %16944 = vst [vmem:[#allocation24_spill] sm:$0xff] %v13948_v45  ;;  %v5608_v35 = vadd.f32 %v5607_v20, %v13750_v5 }
 0x6e6   : > { %v13946_v14 = vadd.f32 %v5669_v61, %v5387_v54  ;;  %v5636_v38 = vpop.f32.mrf.mxu2  ;;  %v13961_v54 = vld [vmem:[%s15504_s17 + $0x10] sm:$0xff] }
 0x6e7   : > { %v5637_v47 = vadd.f32 %v5636_v38, %v13823_v0  ;;  %v16951_v61 = vld [vmem:[#allocation213_spill] sm:$0xff]  ;;  %v13965_v37 = vadd.f32 %v5608_v35, %v5409_v1  ;;  %v16958_v35 = vld [vmem:[#allocation216_spill] sm:$0xff] }
 0x6e8   : > { %16943 = vst [vmem:[#allocation169_spill] sm:$0xff] %v13946_v14  ;;  %v5395_v30 = vadd.f32 %v16951_v61, %v16950_v50  ;;  %v5576_v25 = vpop.f32.mrf.mxu0  ;;  %v13984_v61 = vpop.permute.xlu0 %5503 }
 0x6e9   : > { %v13956_v29 = vadd.f32 %v5637_v47, %v5394_v13  ;;  %16952 = vst [vmem:[#allocation74_spill] sm:$0xff] %v13965_v37  ;;  %v5577_v57 = vadd.f32 %v5576_v25, %v13712_v32  ;;  %8641 = vmatmul.msk.bf16.gmra.mxu0 %vm896_vm0, %v13961_v54  ;;  %v16957_v47 = vld [vmem:[#allocation73_spill] sm:$0xff] }
 0x6ea   : > { %v5417_v50 = vadd.f32 %v16958_v35, %v16957_v47  ;;  %v16962_v35 = vld [vmem:[#allocation217_spill] sm:$0xff] }
 0x6eb   : > { %16949 = vst [vmem:[#allocation162_spill] sm:$0xff] %v13956_v29  ;;  %v5670_v48 = vpop.f32.mrf.mxu3  ;;  %v13973_v20 = vadd.f32 %v5577_v57, %v5416_v27  ;;  %v5402_v27 = vadd.f32 %v16960_v7, %v16959_v12  ;;  %v14010_v12 = vld [vmem:[%s15504_s17 + $0x18] sm:$0xff] }
 0x6ec   : > { %v5671_v38 = vadd.f32 %v5670_v48, %v13823_v0  ;;  %v5610_v1 = vpop.f32.mrf.mxu1 }
 0x6ed   : > { %16956 = vst [vmem:[#allocation141_spill] sm:$0xff] %v13973_v20  ;;  %v5611_v48 = vadd.f32 %v5610_v1, %v13712_v32  ;;  %v16961_v1 = vld [vmem:[#allocation121_spill] sm:$0xff] }
 0x6ee   : > { %v13971_v13 = vadd.f32 %v5671_v38, %v5395_v30  ;;  %8648 = vmatmul.msk.bf16.gmra.mxu2 %vm896_vm0, %v13908_v8  ;;  %v5639_v57 = vpop.f32.mrf.mxu2  ;;  %v5403_v0 = vadd.f32 %v16962_v35, %v16961_v1 }
 0x6ef   : > { %v13986_v30 = vadd.f32 %v5611_v48, %v5417_v50  ;;  %8645 = vmatmul.msk.bf16.gmra.mxu1 %vm896_vm0, %v13961_v54  ;;  %v5640_v50 = vadd.f32 %v5639_v57, %v13772_v9 }
 0x6f0   : > { %16955 = vst [vmem:[#allocation21_spill] sm:$0xff] %v13971_v13  ;;  %v5578_v25 = vpop.f32.mrf.mxu0 }
 0x6f1   : > { %v13991_v38 = vadd.f32 %v5578_v25, %v13984_v61  ;;  %v14000_v13 = vadd.f32 %v5640_v50, %v5402_v27  ;;  %v16966_v27 = vld [vmem:[#allocation218_spill] sm:$0xff] }
 0x6f3   : > { %8652 = vmatmul.msk.bf16.gmra.mxu3 %vm896_vm0, %v13908_v8  ;;  %v5673_v47 = vpop.f32.mrf.mxu3  ;;  %v5899_v28 = vmin.f32 %v13991_v38, 20.0  ;;  %16963 = vst [vmem:[#allocation25_spill] sm:$0xff] %v14000_v13  ;;  %vm5891_vm11 = vcmp.gt.f32.partialorder %v13991_v38, 20.0 }
 0x6f4   : > { %v5674_v48 = vadd.f32 %v5673_v47, %v13772_v9  ;;  %v5612_v6 = vpop.f32.mrf.mxu1  ;;  %v16965_v47 = vld [vmem:[#allocation172_spill] sm:$0xff] }
 0x6f5   : > { %v5907_v14 = vmul.f32 1.442695, %v5899_v28  ;;  %v14005_v29 = vadd.f32 %v5612_v6, %v13984_v61  ;;  %v5410_v1 = vadd.f32 %v16966_v27, %v16965_v47  ;;  %v16967_v6 = vld [vmem:[#allocation124_spill] sm:$0xff] }
 0x6f6   : > { %v14002_v25 = vadd.f32 %v5674_v48, %v5403_v0  ;;  %v5641_v35 = vpop.f32.mrf.mxu2  ;;  %v16968_v48 = vld [vmem:[#allocation219_spill] sm:$0xff] }
 0x6f7   : > { %8975 = vpow2.f32 %v5907_v14  ;;  %v5900_v7 = vmin.f32 %v14005_v29, 20.0  ;;  %v5411_v14 = vadd.f32 %v16968_v48, %v16967_v6  ;;  %vm5892_vm10 = vcmp.gt.f32.partialorder %v14005_v29, 20.0 }
 0x6f8   : > { %16964 = vst [vmem:[#allocation29_spill] sm:$0xff] %v14002_v25  ;;  %v5692_v57 = vpop.f32.mrf.mxu0  ;;  %v5642_v25 = vadd.f32 %v5641_v35, %v13750_v5 }
 0x6f9   : > { %v5693_v28 = vadd.f32 %v5692_v57, %v13777_v31  ;;  %v5909_v0 = vmul.f32 1.442695, %v5900_v7  ;;  %8642 = vmatmul.msk.bf16.gmra.mxu0 %vm896_vm0, %v14010_v12 }
 0x6fa   : > { %v14024_v7 = vadd.f32 %v5642_v25, %v5410_v1  ;;  %v16971_v1 = vld [vmem:[#allocation86_spill] sm:$0xff] }
 0x6fb   : > { %v5675_v50 = vpop.f32.mrf.mxu3  ;;  %v5823_v63 = vmax.f32 %v5693_v28, 0.0  ;;  %8977 = vpow2.f32 %v5909_v0 }
 0x6fc   : > { %v5676_v13 = vadd.f32 %v5675_v50, %v13750_v5  ;;  %16969 = vst [vmem:[#allocation28_spill] sm:$0xff] %v14024_v7  ;;  %v5726_v27 = vpop.f32.mrf.mxu1  ;;  %v16975_v7 = vld [vmem:[#allocation221_spill] sm:$0xff] }
 0x6fd   : > { %v8976_v57 = vpop.eup %8975  ;;  %7752 = vst [vmem:[%s13786_s0 + $0x20] sm:$0xff] %v5823_v63  ;;  %v5727_v35 = vadd.f32 %v5726_v27, %v13777_v31  ;;  %v16973_v27 = vld [vmem:[#allocation220_spill] sm:$0xff] }
 0x6fe   : > { %8649 = vmatmul.msk.bf16.gmra.mxu2 %vm896_vm0, %v13961_v54  ;;  %v14026_v47 = vadd.f32 %v5676_v13, %v5411_v14  ;;  %v5923_v6 = vadd.f32 1.0, %v8976_v57  ;;  %v5364_v13 = vadd.f32 %v13604_v56, %v16971_v1  ;;  %v5644_v63 = vpop.f32.mrf.mxu2  ;;  %v16972_v14 = vld [vmem:[#allocation103_spill] sm:$0xff]  ;;  %v5926_v59 = vmul.f32 -0.5, %v8976_v57  ;;  %v16978_v1 = vld [vmem:[#allocation156_spill] sm:$0xff] }
 0x6ff   : > { %v5824_v28 = vmax.f32 %v5727_v35, 0.0  ;;  %8646 = vmatmul.msk.bf16.gmra.mxu1 %vm896_vm0, %v14010_v12  ;;  %v5418_v5 = vadd.f32 %v16973_v27, %v16972_v14  ;;  %v5645_v49 = vadd.f32 %v5644_v63, %v13712_v32  ;;  %v5365_v34 = vadd.f32 %v13623_v24, %v16978_v1 }
 0x700   : > { %16970 = vst [vmem:[#allocation18_spill] sm:$0xff] %v14026_v47  ;;  %v5694_v0 = vpop.f32.mrf.mxu0  ;;  %8979 = vlog2.f32 %v5923_v6  ;;  %v16974_v47 = vld [vmem:[#allocation173_spill] sm:$0xff]  ;;  %v5927_v27 = vadd.f32 1.0, %v5926_v59  ;;  %v5929_v62 = vand.u32 2147483647, %v8976_v57 }
 0x701   : > { %v5695_v50 = vadd.f32 %v5694_v0, %v13794_v40  ;;  %v8978_v25 = vpop.eup %8977  ;;  %7753 = vst [vmem:[%s13786_s0 + $0x28] sm:$0xff] %v5824_v28  ;;  %v5419_v35 = vadd.f32 %v16975_v7, %v16974_v47  ;;  %v14046_v56 = vadd.f32 %v5645_v49, %v5418_v5 }
 0x702   : > { %v5932_v16 = vadd.f32 1.0, %v8978_v25  ;;  %v5935_v6 = vmul.f32 -0.5, %v8978_v25  ;;  %vm14072_vm8 = vcmp.lt.f32.partialorder %v5929_v62, 0.0004427343 }
 0x703   : > { %8653 = vmatmul.msk.bf16.gmra.mxu3 %vm896_vm0, %v13961_v54  ;;  %v5678_v48 = vpop.f32.mrf.mxu3  ;;  %v14044_v43 = vadd.f32 %v5695_v50, %v5364_v13  ;;  %16977 = vst [vmem:[#allocation22_spill] sm:$0xff] %v14046_v56  ;;  %v16981_v13 = vld [vmem:[#allocation161_spill] sm:$0xff] }
 0x704   : > { %v5679_v0 = vadd.f32 %v5678_v48, %v13712_v32  ;;  %8981 = vlog2.f32 %v5932_v16  ;;  %v5728_v28 = vpop.f32.mrf.mxu1  ;;  %v5936_v63 = vadd.f32 1.0, %v5935_v6  ;;  %v5938_v48 = vand.u32 2147483647, %v8978_v25 }
 0x705   : > { %16976 = vst [vmem:[#allocation19_spill] sm:$0xff] %v14044_v43  ;;  %v5729_v7 = vadd.f32 %v5728_v28, %v13794_v40  ;;  %v5372_v5 = vadd.f32 %v13631_v10, %v16981_v13  ;;  %v5928_v6 = vmul.f32 %v8976_v57, %v5927_v27 }
 0x706   : > { %v14050_v14 = vadd.f32 %v5679_v0, %v5419_v35  ;;  %v8980_v47 = vpop.eup %8979  ;;  %v5646_v49 = vpop.f32.mrf.mxu2  ;;  %v16982_v0 = vld [vmem:[#allocation167_spill] sm:$0xff]  ;;  %v5937_v1 = vmul.f32 %v8978_v25, %v5936_v63  ;;  %vm5939_vm9 = vcmp.lt.f32.partialorder %v5938_v48, 0.0004427343 }
 0x707   : > { %v14053_v44 = vadd.f32 %v5729_v7, %v5365_v34  ;;  %v5925_v16 = vmul.f32 0.6931472, %v8980_v47  ;;  %v5373_v28 = vadd.f32 %v13639_v52, %v16982_v0  ;;  %v14061_v59 = vadd.f32 %v5646_v49, %v13984_v61 }
 0x708   : > { %16979 = vst [vmem:[#allocation26_spill] sm:$0xff] %v14050_v14  ;;  %v5697_v50 = vpop.f32.mrf.mxu0 }
 0x709   : > { %16980 = vst [vmem:[#allocation23_spill] sm:$0xff] %v14053_v44  ;;  %v5698_v24 = vadd.f32 %v5697_v50, %v13758_v53  ;;  %8655 = vmatmul.msk.bf16.vlgmr.msrb.gmra.mxu0 %vm896_vm0, %v13853_v51  ;;  %v5901_v52 = vmin.f32 %v14061_v59, 20.0  ;;  %v5931_v57 = vsel %vm14072_vm8, %v5928_v6, %v5925_v16  ;;  %vm5893_vm12 = vcmp.gt.f32.partialorder %v14061_v59, 20.0 }
 0x70a   : > { %v8982_v35 = vpop.eup %8981  ;;  %v5995_v16 = vsel %vm5891_vm11, %v13991_v38, %v5931_v57 }
 0x70b   : > { %v5680_v43 = vpop.f32.mrf.mxu3  ;;  %v5934_v10 = vmul.f32 0.6931472, %v8982_v35  ;;  %v14068_v7 = vadd.f32 %v5698_v24, %v5372_v5  ;;  %v5911_v62 = vmul.f32 1.442695, %v5901_v52 }
 0x70c   : > { %v14064_v34 = vadd.f32 %v5680_v43, %v13984_v61  ;;  %v5731_v50 = vpop.f32.mrf.mxu1 }
 0x70d   : > { %16983 = vst [vmem:[#allocation27_spill] sm:$0xff] %v14068_v7  ;;  %v5940_v25 = vsel %vm5939_vm9, %v5937_v1, %v5934_v10  ;;  %v5732_v27 = vadd.f32 %v5731_v50, %v13758_v53  ;;  %8983 = vpow2.f32 %v5911_v62 }
 0x70e   : > { %8650 = vmatmul.msk.bf16.gmra.mxu2 %vm896_vm0, %v14010_v12  ;;  %v5902_v43 = vmin.f32 %v14064_v34, 20.0  ;;  %v5996_v63 = vsel %vm5892_vm10, %v14005_v29, %v5940_v25  ;;  %v16987_v25 = vld [vmem:[#allocation177_spill] sm:$0xff]  ;;  %vm5894_vm15 = vcmp.gt.f32.partialorder %v14064_v34, 20.0 }
 0x70f   : > { %v7820_v48 = vrot.slane %v5996_v63, 7  ;;  %v14086_v5 = vadd.f32 %v5732_v27, %v5373_v28  ;;  %8659 = vmatmul.msk.bf16.vlgmr.msrb.gmra.mxu1 %vm896_vm0, %v13853_v51  ;;  %v5388_v27 = vadd.f32 %v13696_v36, %v16987_v25 }
 0x710   : > { %v5913_v13 = vmul.f32 1.442695, %v5902_v43  ;;  %v14091_v49 = vpop.f32.mrf.mxu0 }
 0x711   : > { %16986 = vst [vmem:[#allocation30_spill] sm:$0xff] %v14086_v5  ;;  %v14094_v29 = vsel %vm2130_vm1, %v5995_v16, %v7820_v48  ;;  %v5760_v24 = vpop.f32.mrf.mxu2  ;;  %v16988_v48 = vld [vmem:[#allocation145_spill] sm:$0xff]  ;;  %vm7828_vm1 = vcmask 1042434  }
 0x712   : > { %8985 = vpow2.f32 %v5913_v13  ;;  %v5761_v0 = vadd.f32 %v5760_v24, %v13777_v31  ;;  %v5366_v16 = vadd.f32 %v13676_v46, %v16988_v48 }
 0x713   : > { %8654 = vmatmul.msk.bf16.gmra.mxu3 %vm896_vm0, %v14010_v12  ;;  %v8984_v47 = vpop.eup %8983 }
 0x714   : > { %v14098_v6 = vpop.f32.mrf.mxu1  ;;  %v5825_v10 = vmax.f32 %v5761_v0, 0.0  ;;  %v5941_v52 = vadd.f32 1.0, %v8984_v47  ;;  %v5944_v43 = vmul.f32 -0.5, %v8984_v47 }
 0x716   : > { %v5794_v35 = vpop.f32.mrf.mxu3  ;;  %7754 = vst [vmem:[%s13786_s0 + $0x30] sm:$0xff] %v5825_v10  ;;  %8987 = vlog2.f32 %v5941_v52  ;;  %v16990_v10 = vld [vmem:[#allocation179_spill] sm:$0xff]  ;;  %v5945_v46 = vadd.f32 1.0, %v5944_v43  ;;  %v16994_v43 = vld [vmem:[#allocation178_spill] sm:$0xff] }
 0x717   : > { %v5795_v28 = vadd.f32 %v5794_v35, %v13777_v31  ;;  %v16989_v35 = vld [vmem:[#allocation147_spill] sm:$0xff] }
 0x718   : > { %v8986_v38 = vpop.eup %8985  ;;  %v5702_v57 = vpop.f32.mrf.mxu0  ;;  %v5367_v0 = vadd.f32 %v13688_v39, %v16989_v35 }
 0x719   : > { %v5826_v1 = vmax.f32 %v5795_v28, 0.0  ;;  %v5950_v50 = vadd.f32 1.0, %v8986_v38  ;;  %v5953_v63 = vmul.f32 -0.5, %v8986_v38  ;;  %v5703_v62 = vadd.f32 %v5702_v57, %v13855_v33  ;;  %v5762_v31 = vpop.f32.mrf.mxu2  ;;  %8656 = vmatmul.msk.bf16.gmra.mxu0 %vm896_vm0, %v13908_v8 }
 0x71a   : > { %v5763_v24 = vadd.f32 %v5762_v31, %v13794_v40  ;;  %v5947_v57 = vand.u32 2147483647, %v8984_v47  ;;  %v5956_v39 = vand.u32 2147483647, %v8986_v38 }
 0x71b   : > { %7755 = vst [vmem:[%s13786_s0 + $0x38] sm:$0xff] %v5826_v1  ;;  %8989 = vlog2.f32 %v5950_v50  ;;  %v14112_v28 = vadd.f32 %v5703_v62, %v5388_v27  ;;  %v5389_v1 = vadd.f32 %v13705_v18, %v16990_v10  ;;  %v5954_v25 = vadd.f32 1.0, %v5953_v63 }
 0x71c   : > { %v5736_v52 = vpop.f32.mrf.mxu1  ;;  %v14119_v50 = vadd.f32 %v5763_v24, %v5366_v16  ;;  %v5374_v62 = vadd.f32 %v13703_v22, %v16994_v43  ;;  %v5946_v24 = vmul.f32 %v8984_v47, %v5945_v46  ;;  %vm5948_vm13 = vcmp.lt.f32.partialorder %v5947_v57, 0.0004427343 }
 0x71d   : > { %v5737_v31 = vadd.f32 %v5736_v52, %v13855_v33  ;;  %vm5957_vm14 = vcmp.lt.f32.partialorder %v5956_v39, 0.0004427343 }
 0x71e   : > { %v5796_v13 = vpop.f32.mrf.mxu3  ;;  %8663 = vmatmul.msk.bf16.vlgmr.msrb.gmra.mxu2 %vm896_vm0, %v13853_v51  ;;  %16991 = vst [vmem:[#allocation31_spill] sm:$0xff] %v14119_v50 }
 0x71f   : > { %v5797_v36 = vadd.f32 %v5796_v13, %v13794_v40  ;;  %v8988_v40 = vpop.eup %8987  ;;  %v14126_v27 = vadd.f32 %v5737_v31, %v5389_v1  ;;  %8660 = vmatmul.msk.bf16.gmra.mxu1 %vm896_vm0, %v13908_v8  ;;  %v16995_v13 = vld [vmem:[#allocation180_spill] sm:$0xff] }
 0x720   : > { %v5375_v63 = vadd.f32 %v13708_v4, %v16995_v13  ;;  %v5943_v16 = vmul.f32 0.6931472, %v8988_v40  ;;  %v14134_v35 = vpop.f32.mrf.mxu0 }
 0x721   : > { %v14122_v48 = vadd.f32 %v5797_v36, %v5367_v0  ;;  %16993 = vst [vmem:[#allocation87_spill] sm:$0xff] %v14126_v27  ;;  %v8990_v18 = vpop.eup %8989  ;;  %v5955_v0 = vmul.f32 %v8986_v38, %v5954_v25  ;;  %v5765_v36 = vpop.f32.mrf.mxu2 }
 0x722   : > { %v5949_v1 = vsel %vm5948_vm13, %v5946_v24, %v5943_v16  ;;  %v5766_v52 = vadd.f32 %v5765_v36, %v13758_v53  ;;  %vm7833_vm13 = vcmask 1046534  }
 0x723   : > { %16992 = vst [vmem:[#allocation159_spill] sm:$0xff] %v14122_v48  ;;  %8667 = vmatmul.msk.bf16.vlgmr.msrb.gmra.mxu3 %vm896_vm0, %v13853_v51  ;;  %v5952_v51 = vmul.f32 0.6931472, %v8990_v18  ;;  %v5997_v31 = vsel %vm5893_vm12, %v14061_v59, %v5949_v1  ;;  %v16998_v18 = vld [vmem:[#allocation186_spill] sm:$0xff]  ;;  %v17003_v1 = vld [vmem:[#allocation187_spill] sm:$0xff]  ;;  %vm7831_vm12 = vcmask 1044484  }
 0x724   : > { %v7821_v47 = vrot.slane %v5997_v31, 6  ;;  %v14142_v57 = vpop.f32.mrf.mxu1  ;;  %v14144_v38 = vadd.f32 %v5766_v52, %v5374_v62  ;;  %v5404_v43 = vadd.f32 %v13732_v41, %v16998_v18  ;;  %v5390_v52 = vadd.f32 %v13739_v55, %v17003_v1 }
 0x725   : > { %v5958_v4 = vsel %vm5957_vm14, %v5955_v0, %v5952_v51  ;;  %vm7835_vm14 = vcmask 1045508  }
 0x726   : > { %v5799_v10 = vpop.f32.mrf.mxu3  ;;  %v5998_v46 = vsel %vm5894_vm15, %v14064_v34, %v5958_v4  ;;  %16996 = vst [vmem:[#allocation110_spill] sm:$0xff] %v14144_v38 }
 0x727   : > { %v5800_v22 = vadd.f32 %v5799_v10, %v13758_v53  ;;  %v7822_v39 = vrot.slane %v5998_v46, 5 }
 0x728   : > { %v5707_v59 = vpop.f32.mrf.mxu0 }
 0x729   : > { %v14146_v25 = vadd.f32 %v5800_v22, %v5375_v63  ;;  %v7829_v40 = vsel %vm7828_vm1, %v7821_v47, %v7822_v39  ;;  %v5708_v13 = vadd.f32 %v5707_v59, %v13772_v9  ;;  %v14155_v16 = vpop.f32.mrf.mxu2  ;;  %8657 = vmatmul.msk.bf16.gmra.mxu0 %vm896_vm0, %v13961_v54  ;;  %v17001_v63 = vld [vmem:[#allocation188_spill] sm:$0xff]  ;;  %v17004_v22 = vld [vmem:[#allocation189_spill] sm:$0xff] }
 0x72a   : > { %v14150_v53 = vsel %vm2131_vm2, %v14094_v29, %v7829_v40  ;;  %16999 = vst [vmem:[#allocation136_spill] sm:$0xff] %v14155_v16  ;;  %v5405_v24 = vadd.f32 %v13741_v21, %v17001_v63  ;;  %v5391_v21 = vadd.f32 %v13744_v19, %v17004_v22  ;;  %v17007_v40 = vld [vmem:[#allocation195_spill] sm:$0xff] }
 0x72b   : > { %16997 = vst [vmem:[#allocation129_spill] sm:$0xff] %v14146_v25  ;;  %v14161_v62 = vadd.f32 %v5708_v13, %v5404_v43  ;;  %v5420_v59 = vadd.f32 %v13766_v2, %v17007_v40  ;;  %v17011_v13 = vld [vmem:[#allocation197_spill] sm:$0xff] }
 0x72c   : > { %v5741_v29 = vpop.f32.mrf.mxu1 }
 0x72d   : > { %v5742_v41 = vadd.f32 %v5741_v29, %v13772_v9  ;;  %v5421_v29 = vadd.f32 %v13770_v23, %v17011_v13 }
 0x72e   : > { %v14157_v34 = vpop.f32.mrf.mxu3  ;;  %8664 = vmatmul.msk.bf16.gmra.mxu2 %vm896_vm0, %v13908_v8 }
 0x72f   : > { %17000 = vst [vmem:[#allocation157_spill] sm:$0xff] %v14157_v34  ;;  %v14170_v51 = vadd.f32 %v5742_v41, %v5405_v24  ;;  %8661 = vmatmul.msk.bf16.gmra.mxu1 %vm896_vm0, %v13961_v54 }
 0x730   : > { %v14174_v0 = vpop.f32.mrf.mxu0 }
 0x731   : > { %17002 = vst [vmem:[#allocation90_spill] sm:$0xff] %v14170_v51  ;;  %v5770_v36 = vpop.f32.mrf.mxu2 }
 0x732   : > { %v5771_v31 = vadd.f32 %v5770_v36, %v13855_v33 }
 0x733   : > { %8668 = vmatmul.msk.bf16.gmra.mxu3 %vm896_vm0, %v13908_v8 }
 0x734   : > { %v14182_v8 = vpop.f32.mrf.mxu1  ;;  %v14184_v47 = vadd.f32 %v5771_v31, %v5390_v52  ;;  %v17014_v52 = vld [vmem:[#allocation198_spill] sm:$0xff] }
 0x735   : > { %v5407_v22 = vadd.f32 %v13774_v15, %v17014_v52 }
 0x736   : > { %v5804_v10 = vpop.f32.mrf.mxu3  ;;  %17005 = vst [vmem:[#allocation164_spill] sm:$0xff] %v14184_v47 }
 0x737   : > { %v5805_v4 = vadd.f32 %v5804_v10, %v13855_v33  ;;  %v17013_v10 = vld [vmem:[#allocation196_spill] sm:$0xff] }
 0x738   : > { %v5712_v39 = vpop.f32.mrf.mxu0  ;;  %v5406_v1 = vadd.f32 %v13768_v3, %v17013_v10 }
 0x739   : > { %v14186_v46 = vadd.f32 %v5805_v4, %v5391_v21  ;;  %v5713_v18 = vadd.f32 %v5712_v39, %v13712_v32  ;;  %v14191_v55 = vpop.f32.mrf.mxu2  ;;  %8658 = vmatmul.msk.bf16.gmra.mxu0 %vm896_vm0, %v14010_v12 }
 0x73a   : > { %17008 = vst [vmem:[#allocation100_spill] sm:$0xff] %v14191_v55 }
 0x73b   : > { %17006 = vst [vmem:[#allocation137_spill] sm:$0xff] %v14186_v46  ;;  %v14197_v19 = vadd.f32 %v5713_v18, %v5420_v59 }
 0x73c   : > { %v5746_v33 = vpop.f32.mrf.mxu1 }
 0x73d   : > { %17010 = vst [vmem:[#allocation206_spill] sm:$0xff] %v14197_v19  ;;  %v5747_v2 = vadd.f32 %v5746_v33, %v13712_v32 }
 0x73e   : > { %v14193_v43 = vpop.f32.mrf.mxu3  ;;  %8665 = vmatmul.msk.bf16.gmra.mxu2 %vm896_vm0, %v13961_v54 }
 0x73f   : > { %17009 = vst [vmem:[#allocation88_spill] sm:$0xff] %v14193_v43  ;;  %v14206_v63 = vadd.f32 %v5747_v2, %v5421_v29  ;;  %8662 = vmatmul.msk.bf16.gmra.mxu1 %vm896_vm0, %v14010_v12 }
 0x740   : > { %v5714_v24 = vpop.f32.mrf.mxu0 }
 0x741   : > { %17012 = vst [vmem:[#allocation153_spill] sm:$0xff] %v14206_v63  ;;  %v5775_v41 = vpop.f32.mrf.mxu2  ;;  %v14221_v39 = vadd.f32 %v5714_v24, %v13984_v61 }
 0x742   : > { %v5776_v23 = vadd.f32 %v5775_v41, %v13772_v9 }
 0x743   : > { %8669 = vmatmul.msk.bf16.gmra.mxu3 %vm896_vm0, %v13961_v54  ;;  %v5903_v3 = vmin.f32 %v14221_v39, 20.0  ;;  %vm5895_vm5 = vcmp.gt.f32.partialorder %v14221_v39, 20.0 }
 0x744   : > { %v5748_v31 = vpop.f32.mrf.mxu1  ;;  %v14216_v54 = vadd.f32 %v5776_v23, %v5406_v1  ;;  %v17020_v1 = vld [vmem:[#allocation202_spill] sm:$0xff] }
 0x745   : > { %v14224_v40 = vadd.f32 %v5748_v31, %v13984_v61  ;;  %v5915_v13 = vmul.f32 1.442695, %v5903_v3  ;;  %v5423_v52 = vadd.f32 %v13809_v42, %v17020_v1 }
 0x746   : > { %v5809_v36 = vpop.f32.mrf.mxu3  ;;  %17015 = vst [vmem:[#allocation94_spill] sm:$0xff] %v14216_v54 }
 0x747   : > { %v5810_v21 = vadd.f32 %v5809_v36, %v13772_v9  ;;  %v5904_v9 = vmin.f32 %v14224_v40, 20.0  ;;  %8991 = vpow2.f32 %v5915_v13  ;;  %v17019_v36 = vld [vmem:[#allocation201_spill] sm:$0xff]  ;;  %vm5896_vm6 = vcmp.gt.f32.partialorder %v14224_v40, 20.0 }
 0x748   : > { %v14226_v59 = vpop.f32.mrf.mxu0  ;;  %v5422_v10 = vadd.f32 %v13804_v26, %v17019_v36 }
 0x749   : > { %v14218_v4 = vadd.f32 %v5810_v21, %v5407_v22  ;;  %v14229_v15 = vpop.f32.mrf.mxu2  ;;  %v5917_v29 = vmul.f32 1.442695, %v5904_v9 }
 0x74a   : > { %17017 = vst [vmem:[#allocation203_spill] sm:$0xff] %v14229_v15 }
 0x74b   : > { %17016 = vst [vmem:[#allocation122_spill] sm:$0xff] %v14218_v4  ;;  %8993 = vpow2.f32 %v5917_v29 }
 0x74c   : > { %v14236_v33 = vpop.f32.mrf.mxu1 }
 0x74d   : > { %v8992_v3 = vpop.eup %8991 }
 0x74e   : > { %v14231_v18 = vpop.f32.mrf.mxu3  ;;  %8666 = vmatmul.msk.bf16.gmra.mxu2 %vm896_vm0, %v14010_v12  ;;  %v5959_v26 = vadd.f32 1.0, %v8992_v3 }
 0x74f   : > { %17018 = vst [vmem:[#allocation80_spill] sm:$0xff] %v14231_v18 }
 0x750   : > { %v14240_v2 = vpop.f32.mrf.mxu0  ;;  %8995 = vlog2.f32 %v5959_v26 }
 0x751   : > { %v5780_v24 = vpop.f32.mrf.mxu2  ;;  %v8994_v9 = vpop.eup %8993 }
 0x752   : > { %v5781_v22 = vadd.f32 %v5780_v24, %v13712_v32 }
 0x753   : > { %8670 = vmatmul.msk.bf16.gmra.mxu3 %vm896_vm0, %v14010_v12 }
 0x754   : > { %v14248_v21 = vpop.f32.mrf.mxu1  ;;  %v14250_v31 = vadd.f32 %v5781_v22, %v5422_v10 }
 0x756   : > { %v5814_v41 = vpop.f32.mrf.mxu3  ;;  %17021 = vst [vmem:[#allocation106_spill] sm:$0xff] %v14250_v31  ;;  %v8996_v50 = vpop.eup %8995 }
 0x757   : > { %v5815_v23 = vadd.f32 %v5814_v41, %v13712_v32  ;;  %v5968_v32 = vadd.f32 1.0, %v8994_v9 }
 0x758   : > { %v14254_v13 = vpop.f32.mrf.mxu0 }
 0x759   : > { %v14252_v12 = vadd.f32 %v5815_v23, %v5423_v52  ;;  %v5782_v29 = vpop.f32.mrf.mxu2  ;;  %8997 = vlog2.f32 %v5968_v32 }
 0x75a   : > { %v14257_v36 = vadd.f32 %v5782_v29, %v13984_v61 }
 0x75b   : > { %17022 = vst [vmem:[#allocation117_spill] sm:$0xff] %v14252_v12  ;;  %v5974_v12 = vand.u32 2147483647, %v8994_v9 }
 0x75c   : > { %v14262_v24 = vpop.f32.mrf.mxu1  ;;  %v5905_v41 = vmin.f32 %v14257_v36, 20.0  ;;  %vm5897_vm9 = vcmp.gt.f32.partialorder %v14257_v36, 20.0 }
 0x75d   : > { %vm5975_vm3 = vcmp.lt.f32.partialorder %v5974_v12, 0.0004427343 }
 0x75e   : > { %v5816_v48 = vpop.f32.mrf.mxu3  ;;  %v5919_v1 = vmul.f32 1.442695, %v5905_v41  ;;  %v5965_v41 = vand.u32 2147483647, %v8992_v3 }
 0x75f   : > { %v14260_v42 = vadd.f32 %v5816_v48, %v13984_v61  ;;  %v5962_v61 = vmul.f32 -0.5, %v8992_v3  ;;  %v5971_v48 = vmul.f32 -0.5, %v8994_v9  ;;  %v8998_v38 = vpop.eup %8997 }
 0x760   : > { %8999 = vpow2.f32 %v5919_v1  ;;  %v14266_v22 = vpop.f32.mrf.mxu0  ;;  %v5961_v1 = vmul.f32 0.6931472, %v8996_v50  ;;  %v5970_v54 = vmul.f32 0.6931472, %v8998_v38  ;;  %vm5966_vm2 = vcmp.lt.f32.partialorder %v5965_v41, 0.0004427343 }
 0x761   : > { %v5906_v10 = vmin.f32 %v14260_v42, 20.0  ;;  %v14268_v23 = vpop.f32.mrf.mxu2  ;;  %v5963_v47 = vadd.f32 1.0, %v5962_v61  ;;  %vm5898_vm11 = vcmp.gt.f32.partialorder %v14260_v42, 20.0 }
 0x763   : > { %v5921_v52 = vmul.f32 1.442695, %v5906_v10  ;;  %v5972_v10 = vadd.f32 1.0, %v5971_v48  ;;  %v5964_v55 = vmul.f32 %v8992_v3, %v5963_v47 }
 0x764   : > { %v14272_v25 = vpop.f32.mrf.mxu1 }
 0x765   : > { %9001 = vpow2.f32 %v5921_v52  ;;  %v5973_v61 = vmul.f32 %v8994_v9, %v5972_v10  ;;  %v5967_v18 = vsel %vm5966_vm2, %v5964_v55, %v5961_v1 }
 0x766   : > { %v14270_v29 = vpop.f32.mrf.mxu3  ;;  %v9000_v46 = vpop.eup %8999  ;;  %v5999_v27 = vsel %vm5895_vm5, %v14221_v39, %v5967_v18 }
 0x767   : > { %v5977_v32 = vadd.f32 1.0, %v9000_v46  ;;  %v5980_v31 = vmul.f32 -0.5, %v9000_v46  ;;  %v5976_v15 = vsel %vm5975_vm3, %v5973_v61, %v5970_v54  ;;  %v5983_v44 = vand.u32 2147483647, %v9000_v46 }
 0x768   : > { %v14274_v4 = vpop.f32.mrf.mxu0  ;;  %v6000_v47 = vsel %vm5896_vm6, %v14224_v40, %v5976_v15  ;;  %v7823_v41 = vrot.slane %v5999_v27, 4 }
 0x769   : > { %9003 = vlog2.f32 %v5977_v32  ;;  %v14276_v16 = vpop.f32.mrf.mxu2  ;;  %v5981_v48 = vadd.f32 1.0, %v5980_v31  ;;  %vm5984_vm8 = vcmp.lt.f32.partialorder %v5983_v44, 0.0004427343  ;;  %v7824_v39 = vrot.slane %v6000_v47, 3 }
 0x76b   : > { %v9002_v26 = vpop.eup %9001  ;;  %v5982_v9 = vmul.f32 %v9000_v46, %v5981_v48  ;;  %v7832_v27 = vsel %vm7831_vm12, %v7823_v41, %v7824_v39 }
 0x76c   : > { %v5986_v52 = vadd.f32 1.0, %v9002_v26  ;;  %v5989_v34 = vmul.f32 -0.5, %v9002_v26  ;;  %v6083_v50 = vpop.f32.mrf.mxu1  ;;  %v5992_v38 = vand.u32 2147483647, %v9002_v26 }
 0x76e   : > { %v14278_v43 = vpop.f32.mrf.mxu3  ;;  %9005 = vlog2.f32 %v5986_v52  ;;  %v5990_v5 = vadd.f32 1.0, %v5989_v34  ;;  %vm5993_vm10 = vcmp.lt.f32.partialorder %v5992_v38, 0.0004427343 }
 0x76f   : > { %v9004_v32 = vpop.eup %9003 }
 0x770   : > { %v5979_v3 = vmul.f32 0.6931472, %v9004_v32  ;;  %v6056_v55 = vpop.f32.mrf.mxu0  ;;  %v5991_v12 = vmul.f32 %v9002_v26, %v5990_v5 }
 0x771   : > { %v14284_v54 = vpop.f32.mrf.mxu2  ;;  %v6057_v32 = vadd.f32 %v6056_v55, %v13920_v17 }
 0x772   : > { %v5985_v10 = vsel %vm5984_vm8, %v5982_v9, %v5979_v3 }
 0x773   : > { %v6001_v18 = vsel %vm5897_vm9, %v14257_v36, %v5985_v10  ;;  %v6052_v10 = vadd.f32 %v14266_v22, %v13867_v58 }
 0x774   : > { %v9006_v7 = vpop.eup %9005  ;;  %v7825_v44 = vrot.slane %v6001_v18, 2  ;;  %v6085_v5 = vpop.f32.mrf.mxu1  ;;  %v6307_v18 = vmax.f32 %v6057_v32, 0.0 }
 0x775   : > { %v5988_v31 = vmul.f32 0.6931472, %v9006_v7  ;;  %v6086_v55 = vadd.f32 %v6085_v5, %v13938_v60  ;;  %v6291_v22 = vmax.f32 %v6052_v10, 0.0 }
 0x776   : > { %v14286_v34 = vpop.f32.mrf.mxu3 }
 0x777   : > { %v5994_v46 = vsel %vm5993_vm10, %v5991_v12, %v5988_v31  ;;  %v6308_v32 = vmax.f32 %v6086_v55, 0.0 }
 0x778   : > { %v6002_v7 = vsel %vm5898_vm11, %v14260_v42, %v5994_v46  ;;  %v6059_v1 = vpop.f32.mrf.mxu0 }
 0x779   : > { %v7826_v40 = vrot.slane %v6002_v7, 1  ;;  %v14294_v52 = vpop.f32.mrf.mxu2  ;;  %v6060_v42 = vadd.f32 %v6059_v1, %v13948_v45  ;;  %v17023_v7 = vld [vmem:[#allocation127_spill] sm:$0xff] }
 0x77b   : > { %v7834_v15 = vsel %vm7833_vm13, %v7825_v44, %v7826_v40  ;;  %v6315_v31 = vmax.f32 %v6060_v42, 0.0  ;;  %v6050_v40 = vadd.f32 %v14254_v13, %v17023_v7 }
 0x77c   : > { %v7836_v26 = vsel %vm7835_vm14, %v7832_v27, %v7834_v15  ;;  %v6088_v48 = vpop.f32.mrf.mxu1  ;;  %v17024_v15 = vld [vmem:[#allocation20_spill] sm:$0xff] }
 0x77d   : > { %v7837_v36 = vsel %vm4246_vm4, %v14150_v53, %v7836_v26  ;;  %v6055_v53 = vadd.f32 %v14274_v4, %v13895_v11  ;;  %v6089_v12 = vadd.f32 %v6088_v48, %v13965_v37  ;;  %v6084_v4 = vadd.f32 %v6083_v50, %v17024_v15 }
 0x77e   : > { %v14296_v61 = vpop.f32.mrf.mxu3  ;;  %8759 = vst [vmem:[%s13786_s0 + $0xc6] ss:$8 sm:$0xf] %v7837_v36 }
 0x77f   : > { %8760 = vst [vmem:[%s13786_s0 + $0xc6] ss:$8 sm:$0xf0] %v7837_v36  ;;  %v6299_v27 = vmax.f32 %v6055_v53, 0.0  ;;  %v6316_v26 = vmax.f32 %v6089_v12, 0.0  ;;  %v17025_v36 = vld [vmem:[#allocation99_spill] sm:$0xff] }
 0x780   : > { %v6061_v38 = vpop.f32.mrf.mxu0  ;;  %v6047_v48 = vadd.f32 %v14240_v2, %v17025_v36  ;;  %v17027_v53 = vld [vmem:[#allocation140_spill] sm:$0xff]  ;;  %v6283_v12 = vmax.f32 %v6050_v40, 0.0  ;;  %v17029_v36 = vld [vmem:[#allocation135_spill] sm:$0xff] }
 0x781   : > { %v6062_v47 = vadd.f32 %v6061_v38, %v13973_v20  ;;  %v14303_v3 = vpop.f32.mrf.mxu2  ;;  %v17026_v38 = vld [vmem:[#allocation128_spill] sm:$0xff]  ;;  %v6347_v13 = vpack.c.bf16 %v6307_v18, %v6299_v27  ;;  %v6045_v50 = vadd.f32 %v14226_v59, %v17027_v53 }
 0x782   : > { %v6081_v5 = vadd.f32 %v14272_v25, %v17026_v38  ;;  %v6275_v2 = vmax.f32 %v6047_v48, 0.0  ;;  %v6076_v25 = vadd.f32 %v14248_v21, %v17029_v36  ;;  %v17030_v27 = vld [vmem:[#allocation72_spill] sm:$0xff]  ;;  %v14338_v21 = vld [vmem:[%s17031_s28] sm:$0x1] }
 0x783   : > { %v6323_v41 = vmax.f32 %v6062_v47, 0.0  ;;  %v6267_v18 = vmax.f32 %v6045_v50, 0.0  ;;  %v6074_v59 = vadd.f32 %v14236_v33, %v17030_v27  ;;  %v17033_v50 = vld [vmem:[#allocation18_spill] sm:$0xff] }
 0x784   : > { %v6090_v39 = vpop.f32.mrf.mxu1  ;;  %v6292_v55 = vmax.f32 %v6081_v5, 0.0  ;;  %v17032_v5 = vld [vmem:[#allocation28_spill] sm:$0xff] }
 0x785   : > { %v6355_v46 = vpack.c.bf16 %v6323_v41, %v6315_v31  ;;  %v6091_v44 = vadd.f32 %v6090_v39, %v13986_v30  ;;  %v17028_v39 = vld [vmem:[#allocation171_spill] sm:$0xff]  ;;  %v6268_v53 = vmax.f32 %v6074_v59, 0.0 }
 0x786   : > { %v14305_v9 = vpop.f32.mrf.mxu3 }
 0x787   : > { %v6324_v1 = vmax.f32 %v6091_v44, 0.0  ;;  %6376 = vmatpush.bf16.msra.mxu0 %v6355_v46  ;;  %v6079_v46 = vadd.f32 %v14262_v24, %v17028_v39  ;;  %v6300_v44 = vmax.f32 %v6084_v4, 0.0  ;;  %v6276_v4 = vmax.f32 %v6076_v25, 0.0 }
 0x788   : > { %v14319_v42 = vpop.f32.mrf.mxu0  ;;  %v6331_v39 = vpack.c.bf16 %v6275_v2, %v6267_v18  ;;  %v17034_v2 = vld [vmem:[#allocation25_spill] sm:$0xff]  ;;  %v17036_v18 = vld [vmem:[#allocation162_spill] sm:$0xff] }
 0x789   : > { %v6356_v47 = vpack.c.bf16 %v6324_v1, %v6316_v26  ;;  %v6114_v31 = vpop.f32.mrf.mxu2  ;;  %v6348_v26 = vpack.c.bf16 %v6308_v32, %v6300_v44  ;;  %v6339_v1 = vpack.c.bf16 %v6291_v22, %v6283_v12  ;;  %v6284_v40 = vmax.f32 %v6079_v46, 0.0 }
 0x78a   : > { %v6332_v33 = vpack.c.bf16 %v6276_v4, %v6268_v53  ;;  %v6115_v25 = vadd.f32 %v6114_v31, %v17034_v2  ;;  %v6113_v59 = vadd.f32 %v14303_v3, %v17036_v18  ;;  %v17039_v2 = vld [vmem:[#allocation169_spill] sm:$0xff]  ;;  %v17040_v3 = vld [vmem:[#allocation152_spill] sm:$0xff] }
 0x78b   : > { %6389 = vmatpush.bf16.msra.mxu1 %v6356_v47  ;;  %6377 = vmatpush.bf16.msra.mxu0 %v6347_v13  ;;  %v6340_v47 = vpack.c.bf16 %v6292_v55, %v6284_v40  ;;  %v17035_v55 = vld [vmem:[#allocation29_spill] sm:$0xff]  ;;  %v6108_v18 = vadd.f32 %v14284_v54, %v17040_v3 }
 0x78c   : > { %v14327_v10 = vpop.f32.mrf.mxu1  ;;  %v17037_v40 = vld [vmem:[#allocation21_spill] sm:$0xff] }
 0x78d   : > { %v6142_v4 = vadd.f32 %v14305_v9, %v17037_v40  ;;  %v17041_v9 = vld [vmem:[#allocation165_spill] sm:$0xff] }
 0x78e   : > { %v6143_v41 = vpop.f32.mrf.mxu3 }
 0x78f   : > { %6390 = vmatpush.bf16.msra.mxu1 %v6348_v26  ;;  %6378 = vmatpush.bf16.msra.mxu0 %v6339_v1  ;;  %v6144_v26 = vadd.f32 %v6143_v41, %v17035_v55  ;;  %v17038_v41 = vld [vmem:[#allocation17_spill] sm:$0xff]  ;;  %v6302_v40 = vmax.f32 %v6142_v4, 0.0 }
 0x790   : > { %v14333_v24 = vpop.f32.mrf.mxu0  ;;  %v6110_v55 = vadd.f32 %v14294_v52, %v17038_v41  ;;  %v17042_v52 = vld [vmem:[#allocation109_spill] sm:$0xff]  ;;  %v17055_v41 = vld [vmem:[#allocation115_spill] sm:$0xff] }
 0x791   : > { %v6117_v48 = vpop.f32.mrf.mxu2 }
 0x792   : > { %v6118_v32 = vadd.f32 %v6117_v48, %v17032_v5  ;;  %v6293_v54 = vmax.f32 %v6110_v55, 0.0  ;;  %v17060_v5 = vld [vmem:[#allocation105_spill] sm:$0xff] }
 0x793   : > { %6391 = vmatpush.bf16.msra.mxu1 %v6340_v47  ;;  %6379 = vmatpush.bf16.msra.mxu0 %v6331_v39 }
 0x794   : > { %v14340_v22 = vpop.f32.mrf.mxu1  ;;  %v6317_v47 = vmax.f32 %v6118_v32, 0.0  ;;  %v6137_v32 = vadd.f32 %v14286_v34, %v17041_v9 }
 0x796   : > { %v6146_v13 = vpop.f32.mrf.mxu3  ;;  %8671 = vmatmul.msk.bf16.vlgmr.msra.gmra.mxu0 %vm5531_vm7, %v14338_v21  ;;  %v6286_v9 = vmax.f32 %v6137_v32, 0.0 }
 0x797   : > { %6392 = vmatpush.bf16.msra.mxu1 %v6332_v33  ;;  %v6147_v12 = vadd.f32 %v6146_v13, %v17033_v50 }
 0x798   : > { %v14346_v46 = vpop.f32.mrf.mxu0 }
 0x799   : > { %v6119_v44 = vpop.f32.mrf.mxu2  ;;  %v6318_v48 = vmax.f32 %v6147_v12, 0.0  ;;  %v6301_v12 = vmax.f32 %v6113_v59, 0.0  ;;  %v17044_v59 = vld [vmem:[#allocation102_spill] sm:$0xff] }
 0x79a   : > { %8672 = vmatmul.msk.bf16.vlgmr.msra.gmra.mxu1 %vm5531_vm7, %v14338_v21  ;;  %v6120_v53 = vadd.f32 %v6119_v44, %v14046_v56  ;;  %v6139_v44 = vadd.f32 %v14296_v61, %v17039_v2  ;;  %v6309_v56 = vmax.f32 %v6115_v25, 0.0  ;;  %v17043_v61 = vld [vmem:[#allocation131_spill] sm:$0xff]  ;;  %v6103_v4 = vadd.f32 %v14268_v23, %v17044_v59 }
 0x79b   : > { %v6134_v25 = vadd.f32 %v14278_v43, %v17043_v61 }
 0x79c   : > { %v14358_v13 = vpop.f32.mrf.mxu1  ;;  %v6325_v31 = vmax.f32 %v6120_v53, 0.0  ;;  %v6269_v55 = vmax.f32 %v6103_v4, 0.0 }
 0x79d   : > { %v6278_v61 = vmax.f32 %v6134_v25, 0.0 }
 0x79e   : > { %v6148_v39 = vpop.f32.mrf.mxu3 }
 0x79f   : > { %v6149_v1 = vadd.f32 %v6148_v39, %v14050_v14  ;;  %v6310_v39 = vmax.f32 %v6144_v26, 0.0  ;;  %v6357_v14 = vpack.c.bf16 %v6325_v31, %v6317_v47  ;;  %v6349_v31 = vpack.c.bf16 %v6309_v56, %v6301_v12 }
 0x7a0   : > { %v14368_v53 = vpop.f32.mrf.mxu0 }
 0x7a1   : > { %v6326_v33 = vmax.f32 %v6149_v1, 0.0  ;;  %6402 = vmatpush.bf16.msra.mxu2 %v6357_v14  ;;  %v6105_v1 = vadd.f32 %v14276_v16, %v17042_v52  ;;  %v14374_v26 = vpop.f32.mrf.mxu2  ;;  %v6350_v34 = vpack.c.bf16 %v6310_v39, %v6302_v40 }
 0x7a3   : > { %v6358_v50 = vpack.c.bf16 %v6326_v33, %v6318_v48  ;;  %v6294_v48 = vmax.f32 %v6139_v44, 0.0  ;;  %v17045_v33 = vld [vmem:[#allocation16_spill] sm:$0xff]  ;;  %v6277_v43 = vmax.f32 %v6105_v1, 0.0  ;;  %v17046_v1 = vld [vmem:[#allocation107_spill] sm:$0xff] }
 0x7a4   : > { %v6132_v14 = vadd.f32 %v14270_v29, %v17045_v33  ;;  %v14382_v16 = vpop.f32.mrf.mxu1  ;;  %v5710_v25 = vadd.f32 %v14174_v0, %v17046_v1  ;;  %v17053_v0 = vld [vmem:[#allocation193_spill] sm:$0xff]  ;;  %v17054_v33 = vld [vmem:[#allocation163_spill] sm:$0xff] }
 0x7a5   : > { %6415 = vmatpush.bf16.msra.mxu3 %v6358_v50  ;;  %v6285_v50 = vmax.f32 %v6108_v18, 0.0  ;;  %6403 = vmatpush.bf16.msra.mxu2 %v6349_v31  ;;  %v6342_v3 = vpack.c.bf16 %v6294_v48, %v6286_v9  ;;  %v6333_v29 = vpack.c.bf16 %v6277_v43, %v6269_v55  ;;  %v17047_v48 = vld [vmem:[#allocation191_spill] sm:$0xff]  ;;  %v5744_v55 = vadd.f32 %v14182_v8, %v17046_v1 }
 0x7a6   : > { %v14376_v47 = vpop.f32.mrf.mxu3  ;;  %v6270_v44 = vmax.f32 %v6132_v14, 0.0  ;;  %v17048_v31 = vld [vmem:[#allocation175_spill] sm:$0xff]  ;;  %v5413_v59 = vadd.f32 %v17054_v33, %v17053_v0  ;;  %v17058_v0 = vld [vmem:[#allocation133_spill] sm:$0xff] }
 0x7a7   : > { %v6341_v52 = vpack.c.bf16 %v6293_v54, %v6285_v50  ;;  %v17049_v14 = vld [vmem:[#allocation155_spill] sm:$0xff] }
 0x7a8   : > { %v6170_v56 = vpop.f32.mrf.mxu0  ;;  %v6334_v18 = vpack.c.bf16 %v6278_v61, %v6270_v44  ;;  %v5705_v50 = vadd.f32 %v14134_v35, %v17049_v14  ;;  %v17051_v44 = vld [vmem:[#allocation182_spill] sm:$0xff] }
 0x7a9   : > { %6416 = vmatpush.bf16.msra.mxu3 %v6350_v34  ;;  %6404 = vmatpush.bf16.msra.mxu2 %v6341_v52  ;;  %v14384_v40 = vpop.f32.mrf.mxu2  ;;  %v5412_v34 = vadd.f32 %v17048_v31, %v17047_v48  ;;  %v5700_v48 = vadd.f32 %v14091_v49, %v17055_v41  ;;  %v5739_v31 = vadd.f32 %v14142_v57, %v17049_v14  ;;  %v17059_v49 = vld [vmem:[#allocation184_spill] sm:$0xff] }
 0x7aa   : > { %v5397_v27 = vadd.f32 %v17060_v5, %v17059_v49 }
 0x7ab   : > { %v14406_v43 = vadd.f32 %v5710_v25, %v5412_v34  ;;  %v14421_v34 = vadd.f32 %v5744_v55, %v5413_v59 }
 0x7ac   : > { %v6199_v39 = vpop.f32.mrf.mxu1 }
 0x7ad   : > { %6417 = vmatpush.bf16.msra.mxu3 %v6342_v3  ;;  %6405 = vmatpush.bf16.msra.mxu2 %v6333_v29  ;;  %17050 = vst [vmem:[#allocation205_spill] sm:$0xff] %v14406_v43  ;;  %v17052_v29 = vld [vmem:[#allocation114_spill] sm:$0xff] }
 0x7ae   : > { %v14386_v23 = vpop.f32.mrf.mxu3 }
 0x7b0   : > { %8673 = vmatmul.msk.bf16.vlgmr.msra.gmra.mxu2 %vm5531_vm7, %v14338_v21  ;;  %v6172_v9 = vpop.f32.mrf.mxu0 }
 0x7b1   : > { %6418 = vmatpush.bf16.msra.mxu3 %v6334_v18  ;;  %v14392_v32 = vpop.f32.mrf.mxu2  ;;  %v5396_v18 = vadd.f32 %v17052_v29, %v17051_v44  ;;  %v6173_v8 = vadd.f32 %v6172_v9, %v14161_v62  ;;  %v5734_v9 = vadd.f32 %v14098_v6, %v17055_v41 }
 0x7b3   : > { %v14419_v25 = vadd.f32 %v5705_v50, %v5396_v18 }
 0x7b4   : > { %8674 = vmatmul.msk.bf16.vlgmr.msra.gmra.mxu3 %vm5531_vm7, %v14338_v21  ;;  %v6201_v3 = vpop.f32.mrf.mxu1 }
 0x7b5   : > { %17056 = vst [vmem:[#allocation130_spill] sm:$0xff] %v14419_v25  ;;  %v6171_v57 = vadd.f32 %v6170_v56, %v14419_v25  ;;  %v6202_v5 = vadd.f32 %v6201_v3, %v14170_v51  ;;  %v17061_v56 = vld [vmem:[#allocation176_spill] sm:$0xff] }
 0x7b6   : > { %v14394_v12 = vpop.f32.mrf.mxu3 }
 0x7b8   : > { %v6175_v52 = vpop.f32.mrf.mxu0 }
 0x7b9   : > { %v14398_v61 = vpop.f32.mrf.mxu2  ;;  %v6176_v2 = vadd.f32 %v6175_v52, %v14406_v43  ;;  %v17057_v52 = vld [vmem:[#allocation146_spill] sm:$0xff] }
 0x7ba   : > { %v5380_v43 = vadd.f32 %v17058_v0, %v17057_v52  ;;  %v6311_v0 = vmax.f32 %v6173_v8, 0.0  ;;  %v17063_v8 = vld [vmem:[#allocation27_spill] sm:$0xff] }
 0x7bb   : > { %v6319_v50 = vmax.f32 %v6176_v2, 0.0  ;;  %v6163_v3 = vadd.f32 %v14333_v24, %v17063_v8 }
 0x7bc   : > { %v6204_v4 = vpop.f32.mrf.mxu1  ;;  %v14435_v18 = vadd.f32 %v5700_v48, %v5380_v43  ;;  %v6303_v48 = vmax.f32 %v6171_v57, 0.0  ;;  %v17065_v57 = vld [vmem:[#allocation19_spill] sm:$0xff] }
 0x7bd   : > { %v6205_v59 = vadd.f32 %v6204_v4, %v14421_v34  ;;  %v17062_v4 = vld [vmem:[#allocation168_spill] sm:$0xff]  ;;  %v6279_v24 = vmax.f32 %v6163_v3, 0.0  ;;  %v17068_v3 = vld [vmem:[#allocation203_spill] sm:$0xff] }
 0x7be   : > { %v14400_v54 = vpop.f32.mrf.mxu3  ;;  %v6166_v43 = vadd.f32 %v14346_v46, %v14435_v18  ;;  %v6351_v46 = vpack.c.bf16 %v6311_v0, %v6303_v48 }
 0x7c0   : > { %v6177_v35 = vpop.f32.mrf.mxu0 }
 0x7c1   : > { %v6178_v44 = vadd.f32 %v6177_v35, %v14197_v19  ;;  %v14425_v29 = vpop.f32.mrf.mxu2  ;;  %v14439_v35 = vadd.f32 %v5739_v31, %v5397_v27  ;;  %v6168_v19 = vadd.f32 %v14368_v53, %v14112_v28  ;;  %v6320_v27 = vmax.f32 %v6205_v59, 0.0 }
 0x7c2   : > { %v6287_v59 = vmax.f32 %v6166_v43, 0.0 }
 0x7c3   : > { %v6327_v55 = vmax.f32 %v6178_v44, 0.0  ;;  %v5381_v44 = vadd.f32 %v17062_v4, %v17061_v56  ;;  %v6200_v6 = vadd.f32 %v6199_v39, %v14439_v35  ;;  %v6161_v39 = vadd.f32 %v14319_v42, %v17065_v57 }
 0x7c4   : > { %v6206_v52 = vpop.f32.mrf.mxu1 }
 0x7c5   : > { %v6359_v49 = vpack.c.bf16 %v6327_v55, %v6319_v50  ;;  %v6207_v2 = vadd.f32 %v6206_v52, %v14206_v63  ;;  %v14450_v53 = vadd.f32 %v5734_v9, %v5381_v44  ;;  %v6295_v50 = vmax.f32 %v6168_v19, 0.0  ;;  %v17064_v55 = vld [vmem:[#allocation87_spill] sm:$0xff]  ;;  %v17066_v19 = vld [vmem:[#allocation30_spill] sm:$0xff] }
 0x7c6   : > { %v14427_v33 = vpop.f32.mrf.mxu3  ;;  %v6197_v52 = vadd.f32 %v14382_v16, %v17064_v55  ;;  %v6312_v63 = vmax.f32 %v6202_v5, 0.0 }
 0x7c7   : > { %v6328_v31 = vmax.f32 %v6207_v2, 0.0  ;;  %6428 = vmatpush.bf16.msrb.mxu0 %v6359_v49  ;;  %v6195_v9 = vadd.f32 %v14358_v13, %v14450_v53  ;;  %v6304_v49 = vmax.f32 %v6200_v6, 0.0  ;;  %v6192_v2 = vadd.f32 %v14340_v22, %v17066_v19  ;;  %v17069_v22 = vld [vmem:[#allocation80_spill] sm:$0xff] }
 0x7c8   : > { %v6296_v16 = vmax.f32 %v6197_v52, 0.0  ;;  %v6343_v44 = vpack.c.bf16 %v6295_v50, %v6287_v59  ;;  %v5812_v52 = vadd.f32 %v17069_v22, %v17046_v1  ;;  %v17070_v50 = vld [vmem:[#allocation199_spill] sm:$0xff]  ;;  %v17072_v59 = vld [vmem:[#allocation200_spill] sm:$0xff]  ;;  %v17080_v22 = vld [vmem:[#allocation174_spill] sm:$0xff] }
 0x7c9   : > { %v6360_v56 = vpack.c.bf16 %v6328_v31, %v6320_v27  ;;  %v6230_v4 = vpop.f32.mrf.mxu2  ;;  %v6352_v5 = vpack.c.bf16 %v6312_v63, %v6304_v49  ;;  %v6271_v27 = vmax.f32 %v6161_v39, 0.0  ;;  %v17067_v31 = vld [vmem:[#allocation23_spill] sm:$0xff]  ;;  %v6288_v48 = vmax.f32 %v6195_v9, 0.0  ;;  %v17071_v39 = vld [vmem:[#allocation138_spill] sm:$0xff]  ;;  %v17073_v9 = vld [vmem:[#allocation77_spill] sm:$0xff] }
 0x7ca   : > { %v6190_v0 = vadd.f32 %v14327_v10, %v17067_v31  ;;  %v6280_v42 = vmax.f32 %v6192_v2, 0.0  ;;  %v5414_v10 = vadd.f32 %v17071_v39, %v17070_v50  ;;  %v5415_v49 = vadd.f32 %v17073_v9, %v17072_v59  ;;  %v17074_v2 = vld [vmem:[#allocation32_spill] sm:$0xff] }
 0x7cb   : > { %6441 = vmatpush.bf16.msrb.mxu1 %v6360_v56  ;;  %6429 = vmatpush.bf16.msrb.mxu0 %v6351_v46  ;;  %v6344_v43 = vpack.c.bf16 %v6296_v16, %v6288_v48  ;;  %v6335_v56 = vpack.c.bf16 %v6279_v24, %v6271_v27  ;;  %v5778_v46 = vadd.f32 %v17068_v3, %v17046_v1  ;;  %v17075_v16 = vld [vmem:[#allocation100_spill] sm:$0xff]  ;;  %v17079_v3 = vld [vmem:[#allocation194_spill] sm:$0xff] }
 0x7cc   : > { %v6272_v63 = vmax.f32 %v6190_v0, 0.0  ;;  %v5773_v24 = vadd.f32 %v17075_v16, %v17049_v14  ;;  %v14479_v1 = vadd.f32 %v5812_v52, %v5415_v49  ;;  %v17077_v0 = vld [vmem:[#allocation192_spill] sm:$0xff]  ;;  %v5399_v50 = vadd.f32 %v17080_v22, %v17079_v3  ;;  %v17086_v49 = vld [vmem:[#allocation157_spill] sm:$0xff]  ;;  %v17091_v3 = vld [vmem:[#allocation122_spill] sm:$0xff] }
 0x7cd   : > { %v14477_v48 = vadd.f32 %v5778_v46, %v5414_v10  ;;  %v17081_v39 = vld [vmem:[#allocation136_spill] sm:$0xff]  ;;  %v17082_v46 = vld [vmem:[#allocation33_spill] sm:$0xff] }
 0x7ce   : > { %v6259_v51 = vpop.f32.mrf.mxu3  ;;  %v6336_v27 = vpack.c.bf16 %v6280_v42, %v6272_v63  ;;  %v5768_v59 = vadd.f32 %v17081_v39, %v17055_v41  ;;  %v17083_v52 = vld [vmem:[#allocation36_spill] sm:$0xff]  ;;  %v17084_v63 = vld [vmem:[#allocation183_spill] sm:$0xff]  ;;  %v17085_v10 = vld [vmem:[#allocation93_spill] sm:$0xff] }
 0x7cf   : > { %6442 = vmatpush.bf16.msrb.mxu1 %v6352_v5  ;;  %6430 = vmatpush.bf16.msrb.mxu0 %v6343_v44  ;;  %v17076_v5 = vld [vmem:[#allocation88_spill] sm:$0xff]  ;;  %v5382_v9 = vadd.f32 %v17085_v10, %v17084_v63  ;;  %v6260_v22 = vadd.f32 %v6259_v51, %v17091_v3  ;;  %v17092_v39 = vld [vmem:[#allocation106_spill] sm:$0xff]  ;;  %v17097_v3 = vld [vmem:[#allocation37_spill] sm:$0xff] }
 0x7d0   : > { %v5807_v44 = vadd.f32 %v17076_v5, %v17049_v14 }
 0x7d1   : > { %v6233_v13 = vpop.f32.mrf.mxu2 }
 0x7d2   : > { %v6234_v14 = vadd.f32 %v6233_v13, %v14477_v48  ;;  %v14499_v5 = vadd.f32 %v5807_v44, %v5399_v50  ;;  %v17090_v13 = vld [vmem:[#allocation94_spill] sm:$0xff]  ;;  %v14510_v44 = vadd.f32 %v5768_v59, %v5382_v9  ;;  %v17101_v9 = vld [vmem:[#allocation41_spill] sm:$0xff] }
 0x7d3   : > { %6443 = vmatpush.bf16.msrb.mxu1 %v6344_v43  ;;  %6431 = vmatpush.bf16.msrb.mxu0 %v6335_v56  ;;  %v17078_v43 = vld [vmem:[#allocation139_spill] sm:$0xff] }
 0x7d4   : > { %v5398_v56 = vadd.f32 %v17078_v43, %v17077_v0  ;;  %17088 = vst [vmem:[#allocation154_spill] sm:$0xff] %v14499_v5  ;;  %v17089_v43 = vld [vmem:[#allocation40_spill] sm:$0xff]  ;;  %v6321_v10 = vmax.f32 %v6234_v14, 0.0 }
 0x7d5   : > { %17096 = vst [vmem:[#allocation204_spill] sm:$0xff] %v14510_v44 }
 0x7d6   : > { %v6262_v6 = vpop.f32.mrf.mxu3  ;;  %8675 = vmatmul.msk.bf16.vlgmr.msrb.gmra.mxu0 %vm5531_vm7, %v14338_v21  ;;  %v14497_v16 = vadd.f32 %v5773_v24, %v5398_v56  ;;  %v17095_v24 = vld [vmem:[#allocation112_spill] sm:$0xff] }
 0x7d7   : > { %6490 = vmatpush.bf16.msra.mxu0 %v17074_v2  ;;  %6444 = vmatpush.bf16.msrb.mxu1 %v6336_v27  ;;  %v6263_v42 = vadd.f32 %v6262_v6, %v14479_v1  ;;  %v5802_v2 = vadd.f32 %v17086_v49, %v17055_v41  ;;  %v6231_v6 = vadd.f32 %v6230_v4, %v17090_v13  ;;  %v17094_v41 = vld [vmem:[#allocation185_spill] sm:$0xff] }
 0x7d8   : > { %17087 = vst [vmem:[#allocation84_spill] sm:$0xff] %v14497_v16  ;;  %v5383_v56 = vadd.f32 %v17095_v24, %v17094_v41  ;;  %v6229_v50 = vadd.f32 %v14425_v29, %v14497_v16  ;;  %v6258_v4 = vadd.f32 %v14427_v33, %v14499_v5  ;;  %v17100_v41 = vld [vmem:[#allocation137_spill] sm:$0xff]  ;;  %v17102_v29 = vld [vmem:[#allocation44_spill] sm:$0xff]  ;;  %v6314_v33 = vmax.f32 %v6260_v22, 0.0 }
 0x7d9   : > { %v6235_v0 = vpop.f32.mrf.mxu2  ;;  %v6322_v51 = vmax.f32 %v6263_v42, 0.0  ;;  %v6255_v59 = vadd.f32 %v14400_v54, %v17100_v41  ;;  %v6313_v24 = vmax.f32 %v6231_v6, 0.0  ;;  %v17105_v6 = vld [vmem:[#allocation45_spill] sm:$0xff] }
 0x7da   : > { %8676 = vmatmul.msk.bf16.vlgmr.msrb.gmra.mxu1 %vm5531_vm7, %v14338_v21 }
 0x7db   : > { %6519 = vmatpush.bf16.msra.mxu1 %v17082_v46  ;;  %6491 = vmatpush.bf16.msra.mxu0 %v17083_v52  ;;  %v6236_v46 = vadd.f32 %v6235_v0, %v17092_v39  ;;  %v17093_v52 = vld [vmem:[#allocation117_spill] sm:$0xff]  ;;  %v14517_v0 = vadd.f32 %v5802_v2, %v5383_v56 }
 0x7dc   : > { %v17104_v56 = vld [vmem:[#allocation129_spill] sm:$0xff] }
 0x7dd   : > { %v6329_v49 = vmax.f32 %v6236_v46, 0.0  ;;  %17098 = vst [vmem:[#allocation118_spill] sm:$0xff] %v14517_v0  ;;  %v6224_v46 = vadd.f32 %v14392_v32, %v14510_v44  ;;  %v6253_v2 = vadd.f32 %v14394_v12, %v14517_v0  ;;  %v17106_v32 = vld [vmem:[#allocation31_spill] sm:$0xff] }
 0x7de   : > { %v6264_v27 = vpop.f32.mrf.mxu3  ;;  %v17107_v12 = vld [vmem:[#allocation159_spill] sm:$0xff] }
 0x7df   : > { %6606 = vmatpush.bf16.msrb.mxu0 %v17089_v43  ;;  %v6265_v63 = vadd.f32 %v6264_v27, %v17093_v52  ;;  %6520 = vmatpush.bf16.msra.mxu1 %v17097_v3  ;;  %v17099_v27 = vld [vmem:[#allocation164_spill] sm:$0xff]  ;;  %v6361_v14 = vpack.c.bf16 %v6329_v49, %v6321_v10  ;;  %v6305_v3 = vmax.f32 %v6229_v50, 0.0  ;;  %v6298_v10 = vmax.f32 %v6255_v59, 0.0 }
 0x7e0   : > { %v6226_v52 = vadd.f32 %v14398_v61, %v17099_v27  ;;  %v17103_v61 = vld [vmem:[#allocation110_spill] sm:$0xff]  ;;  %v6248_v50 = vadd.f32 %v14376_v47, %v17107_v12 }
 0x7e1   : > { %v6330_v43 = vmax.f32 %v6265_v63, 0.0  ;;  %v6306_v63 = vmax.f32 %v6258_v4, 0.0  ;;  %6454 = vmatpush.bf16.msrb.mxu2 %v6361_v14  ;;  %v6221_v54 = vadd.f32 %v14384_v40, %v17103_v61  ;;  %v6289_v4 = vmax.f32 %v6224_v46, 0.0  ;;  %v17110_v46 = vld [vmem:[#allocation35_spill] sm:$0xff] }
 0x7e2   : > { %v6297_v22 = vmax.f32 %v6226_v52, 0.0 }
 0x7e3   : > { %6635 = vmatpush.bf16.msrb.mxu1 %v17101_v9  ;;  %6607 = vmatpush.bf16.msrb.mxu0 %v17102_v29  ;;  %v6362_v42 = vpack.c.bf16 %v6330_v43, %v6322_v51  ;;  %v6250_v9 = vadd.f32 %v14386_v23, %v17104_v56  ;;  %v6353_v51 = vpack.c.bf16 %v6313_v24, %v6305_v3  ;;  %v6290_v29 = vmax.f32 %v6253_v2, 0.0  ;;  %v14541_v23 = vld [vmem:[%s15504_s17] sm:$0xff]  ;;  %v17111_v2 = vld [vmem:[#allocation38_spill] sm:$0xff] }
 0x7e4   : > { %v6354_v49 = vpack.c.bf16 %v6314_v33, %v6306_v63  ;;  %v6219_v43 = vadd.f32 %v14374_v26, %v17106_v32  ;;  %v6281_v40 = vmax.f32 %v6221_v54, 0.0  ;;  %17108 = vst [vmem:[#allocation181_spill] sm:$0xff] %v14541_v23  ;;  %v6345_v52 = vpack.c.bf16 %v6297_v22, %v6289_v4  ;;  %v17112_v3 = vld [vmem:[#allocation39_spill] sm:$0xff]  ;;  %v17113_v63 = vld [vmem:[#allocation42_spill] sm:$0xff] }
 0x7e5   : > { %6467 = vmatpush.bf16.msrb.mxu3 %v6362_v42  ;;  %6455 = vmatpush.bf16.msrb.mxu2 %v6353_v51  ;;  %v6282_v14 = vmax.f32 %v6250_v9, 0.0  ;;  %v6346_v59 = vpack.c.bf16 %v6298_v10, %v6290_v29  ;;  %v6274_v24 = vmax.f32 %v6248_v50, 0.0  ;;  %v17109_v42 = vld [vmem:[#allocation34_spill] sm:$0xff]  ;;  %v17114_v54 = vld [vmem:[#allocation43_spill] sm:$0xff]  ;;  %v14560_v9 = vld [vmem:[%s15504_s17 + $0x8] sm:$0xff] }
 0x7e6   : > { %8679 = vmatmul.msk.bf16.vlgmr.msra.gmra.mxu0 %vm896_vm0, %v14541_v23  ;;  %v6273_v26 = vmax.f32 %v6219_v43, 0.0  ;;  %17115 = vst [vmem:[#allocation82_spill] sm:$0xff] %v14560_v9  ;;  %v17117_v22 = vld [vmem:[#allocation47_spill] sm:$0xff]  ;;  %v14575_v10 = vld [vmem:[%s15504_s17 + $0x10] sm:$0xff] }
 0x7e7   : > { %6636 = vmatpush.bf16.msrb.mxu1 %v17105_v6  ;;  %v6338_v33 = vpack.c.bf16 %v6282_v14, %v6274_v24  ;;  %v17116_v6 = vld [vmem:[#allocation46_spill] sm:$0xff]  ;;  %17118 = vst [vmem:[#allocation207_spill] sm:$0xff] %v14575_v10 }
 0x7e8   : > { %v6337_v47 = vpack.c.bf16 %v6281_v40, %v6273_v26 }
 0x7e9   : > { %6468 = vmatpush.bf16.msrb.mxu3 %v6354_v49  ;;  %6456 = vmatpush.bf16.msrb.mxu2 %v6345_v52  ;;  %v14590_v49 = vld [vmem:[%s15504_s17 + $0x18] sm:$0xff] }
 0x7ea   : > { %8683 = vmatmul.msk.bf16.vlgmr.msra.gmra.mxu1 %vm896_vm0, %v14541_v23  ;;  %17120 = vst [vmem:[#allocation208_spill] sm:$0xff] %v14590_v49 }
 0x7ed   : > { %6469 = vmatpush.bf16.msrb.mxu3 %v6346_v59  ;;  %6457 = vmatpush.bf16.msrb.mxu2 %v6337_v47 }
 0x7f0   : > { %8677 = vmatmul.msk.bf16.vlgmr.msrb.gmra.mxu2 %vm5531_vm7, %v14338_v21 }
 0x7f1   : > { %6470 = vmatpush.bf16.msrb.mxu3 %v6338_v33  ;;  %6548 = vmatpush.bf16.msra.mxu2 %v17109_v42 }
 0x7f4   : > { %8678 = vmatmul.msk.bf16.vlgmr.msrb.gmra.mxu3 %vm5531_vm7, %v14338_v21 }
 0x7f5   : > { %6577 = vmatpush.bf16.msra.mxu3 %v17110_v46  ;;  %6549 = vmatpush.bf16.msra.mxu2 %v17111_v2 }
 0x7f6   : > { %8680 = vmatmul.msk.bf16.gmra.mxu0 %vm896_vm0, %v14560_v9 }
 0x7f9   : > { %6578 = vmatpush.bf16.msra.mxu3 %v17112_v3  ;;  %6664 = vmatpush.bf16.msrb.mxu2 %v17113_v63 }
 0x7fa   : > { %8684 = vmatmul.msk.bf16.gmra.mxu1 %vm896_vm0, %v14560_v9 }
 0x7fd   : > { %6693 = vmatpush.bf16.msrb.mxu3 %v17114_v54  ;;  %6665 = vmatpush.bf16.msrb.mxu2 %v17116_v6 }
 0x800   : > { %8687 = vmatmul.msk.bf16.vlgmr.msra.gmra.mxu2 %vm896_vm0, %v14541_v23 }
 0x801   : > { %6694 = vmatpush.bf16.msrb.mxu3 %v17117_v22 }
 0x804   : > { %8691 = vmatmul.msk.bf16.vlgmr.msra.gmra.mxu3 %vm896_vm0, %v14541_v23 }
 0x806   : > { %8681 = vmatmul.msk.bf16.gmra.mxu0 %vm896_vm0, %v14575_v10 }
 0x80a   : > { %8685 = vmatmul.msk.bf16.gmra.mxu1 %vm896_vm0, %v14575_v10 }
 0x810   : > { %8688 = vmatmul.msk.bf16.gmra.mxu2 %vm896_vm0, %v14560_v9 }
 0x813   : > { %v14585_v51 = vpop.f32.mrf.mxu0 }
 0x814   : > { %8692 = vmatmul.msk.bf16.gmra.mxu3 %vm896_vm0, %v14560_v9  ;;  %17119 = vst [vmem:[#allocation144_spill] sm:$0xff] %v14585_v51 }
 0x816   : > { %8682 = vmatmul.msk.bf16.gmra.mxu0 %vm896_vm0, %v14590_v49 }
 0x817   : > { %v14594_v43 = vpop.f32.mrf.mxu1 }
 0x818   : > { %17121 = vst [vmem:[#allocation142_spill] sm:$0xff] %v14594_v43 }
 0x81a   : > { %8686 = vmatmul.msk.bf16.gmra.mxu1 %vm896_vm0, %v14590_v49 }
 0x81b   : > { %v6383_v50 = vpop.f32.mrf.mxu0 }
 0x81f   : > { %v6396_v4 = vpop.f32.mrf.mxu1 }
 0x820   : > { %8689 = vmatmul.msk.bf16.gmra.mxu2 %vm896_vm0, %v14575_v10 }
 0x824   : > { %8693 = vmatmul.msk.bf16.gmra.mxu3 %vm896_vm0, %v14575_v10 }
 0x826   : > { %8695 = vmatmul.msk.bf16.vlgmr.msrb.gmra.mxu0 %vm896_vm0, %v14541_v23 }
 0x82a   : > { %8699 = vmatmul.msk.bf16.vlgmr.msrb.gmra.mxu1 %vm896_vm0, %v14541_v23 }
 0x830   : > { %8690 = vmatmul.msk.bf16.gmra.mxu2 %vm896_vm0, %v14590_v49 }
 0x833   : > { %v14610_v29 = vpop.f32.mrf.mxu2 }
 0x834   : > { %8694 = vmatmul.msk.bf16.gmra.mxu3 %vm896_vm0, %v14590_v49  ;;  %17122 = vst [vmem:[#allocation209_spill] sm:$0xff] %v14610_v29 }
 0x836   : > { %8696 = vmatmul.msk.bf16.gmra.mxu0 %vm896_vm0, %v14560_v9 }
 0x837   : > { %v14612_v40 = vpop.f32.mrf.mxu3 }
 0x838   : > { %17123 = vst [vmem:[#allocation91_spill] sm:$0xff] %v14612_v40 }
 0x83a   : > { %8700 = vmatmul.msk.bf16.gmra.mxu1 %vm896_vm0, %v14560_v9 }
 0x83b   : > { %v6409_v14 = vpop.f32.mrf.mxu2 }
 0x83f   : > { %v6422_v52 = vpop.f32.mrf.mxu3 }
 0x840   : > { %8703 = vmatmul.msk.bf16.vlgmr.msrb.gmra.mxu2 %vm896_vm0, %v14541_v23 }
 0x844   : > { %8707 = vmatmul.msk.bf16.vlgmr.msrb.gmra.mxu3 %vm896_vm0, %v14541_v23 }
 0x846   : > { %8697 = vmatmul.msk.bf16.gmra.mxu0 %vm896_vm0, %v14575_v10 }
 0x84a   : > { %8701 = vmatmul.msk.bf16.gmra.mxu1 %vm896_vm0, %v14575_v10 }
 0x850   : > { %8704 = vmatmul.msk.bf16.gmra.mxu2 %vm896_vm0, %v14560_v9 }
 0x853   : > { %v14630_v59 = vpop.f32.mrf.mxu0 }
 0x854   : > { %8708 = vmatmul.msk.bf16.gmra.mxu3 %vm896_vm0, %v14560_v9  ;;  %17124 = vst [vmem:[#allocation210_spill] sm:$0xff] %v14630_v59 }
 0x856   : > { %8698 = vmatmul.msk.bf16.gmra.mxu0 %vm896_vm0, %v14590_v49 }
 0x857   : > { %v14634_v26 = vpop.f32.mrf.mxu1 }
 0x858   : > { %17125 = vst [vmem:[#allocation95_spill] sm:$0xff] %v14634_v26 }
 0x85a   : > { %8702 = vmatmul.msk.bf16.gmra.mxu1 %vm896_vm0, %v14590_v49 }
 0x85b   : > { %v6435_v24 = vpop.f32.mrf.mxu0 }
 0x85f   : > { %v6448_v47 = vpop.f32.mrf.mxu1 }
 0x860   : > { %8705 = vmatmul.msk.bf16.gmra.mxu2 %vm896_vm0, %v14575_v10 }
 0x863   : > { %v6493_v33 = vpop.f32.mrf.mxu0 }
 0x864   : > { %8709 = vmatmul.msk.bf16.gmra.mxu3 %vm896_vm0, %v14575_v10 }
 0x867   : > { %v14642_v42 = vpop.f32.mrf.mxu1 }
 0x86b   : > { %v6495_v46 = vpop.f32.mrf.mxu0 }
 0x86f   : > { %v6524_v2 = vpop.f32.mrf.mxu1 }
 0x870   : > { %8706 = vmatmul.msk.bf16.gmra.mxu2 %vm896_vm0, %v14590_v49 }
 0x873   : > { %v14648_v3 = vpop.f32.mrf.mxu2  ;;  %v6498_v54 = vpop.f32.mrf.mxu0 }
 0x874   : > { %8710 = vmatmul.msk.bf16.gmra.mxu3 %vm896_vm0, %v14590_v49  ;;  %17126 = vst [vmem:[#allocation211_spill] sm:$0xff] %v14648_v3  ;;  %v6499_v16 = vadd.f32 %v6498_v54, %v17023_v7  ;;  %v17130_v7 = vld [vmem:[#allocation171_spill] sm:$0xff] }
 0x877   : > { %v14650_v63 = vpop.f32.mrf.mxu3  ;;  %v6527_v6 = vpop.f32.mrf.mxu1 }
 0x878   : > { %17127 = vst [vmem:[#allocation120_spill] sm:$0xff] %v14650_v63 }
 0x87b   : > { %v6461_v22 = vpop.f32.mrf.mxu2  ;;  %v6500_v4 = vpop.f32.mrf.mxu0 }
 0x87c   : > { %v6501_v44 = vadd.f32 %v6500_v4, %v13867_v58 }
 0x87e   : > { %v6740_v4 = vmax.f32 %v6501_v44, 0.0  ;;  %v6525_v44 = vadd.f32 %v6524_v2, %v17029_v36 }
 0x87f   : > { %v6474_v50 = vpop.f32.mrf.mxu3  ;;  %v6529_v14 = vpop.f32.mrf.mxu1 }
 0x883   : > { %v14652_v52 = vpop.f32.mrf.mxu2  ;;  %v6503_v47 = vpop.f32.mrf.mxu0 }
 0x884   : > { %v6504_v56 = vadd.f32 %v6503_v47, %v13895_v11 }
 0x887   : > { %v14654_v24 = vpop.f32.mrf.mxu3  ;;  %v6532_v26 = vpop.f32.mrf.mxu1 }
 0x88b   : > { %v14656_v59 = vpop.f32.mrf.mxu2  ;;  %v6505_v29 = vpop.f32.mrf.mxu0 }
 0x88c   : > { %v6506_v12 = vadd.f32 %v6505_v29, %v13920_v17  ;;  %v6748_v29 = vmax.f32 %v6504_v56, 0.0  ;;  %v6732_v56 = vmax.f32 %v6499_v16, 0.0 }
 0x88e   : > { %v6756_v27 = vmax.f32 %v6506_v12, 0.0  ;;  %v6530_v12 = vadd.f32 %v6529_v14, %v17026_v38 }
 0x88f   : > { %v14658_v40 = vpop.f32.mrf.mxu3  ;;  %v6534_v3 = vpop.f32.mrf.mxu1 }
 0x893   : > { %v14660_v49 = vpop.f32.mrf.mxu2  ;;  %v6508_v22 = vpop.f32.mrf.mxu0 }
 0x894   : > { %v6509_v43 = vadd.f32 %v6508_v22, %v13948_v45  ;;  %v6535_v22 = vadd.f32 %v6534_v3, %v13938_v60  ;;  %v17129_v3 = vld [vmem:[#allocation140_spill] sm:$0xff] }
 0x895   : > { %v6494_v54 = vadd.f32 %v6493_v33, %v17129_v3 }
 0x896   : > { %v6764_v61 = vmax.f32 %v6509_v43, 0.0 }
 0x897   : > { %v14662_v63 = vpop.f32.mrf.mxu3  ;;  %v6537_v50 = vpop.f32.mrf.mxu1  ;;  %v6716_v14 = vmax.f32 %v6494_v54, 0.0 }
 0x898   : > { %v6538_v0 = vadd.f32 %v6537_v50, %v13965_v37 }
 0x89b   : > { %v14665_v51 = vpop.f32.mrf.mxu2  ;;  %v6510_v9 = vpop.f32.mrf.mxu0 }
 0x89c   : > { %v6511_v32 = vadd.f32 %v6510_v9, %v13973_v20  ;;  %v6533_v9 = vadd.f32 %v6532_v26, %v17024_v15  ;;  %v6765_v20 = vmax.f32 %v6538_v0, 0.0  ;;  %v6528_v26 = vadd.f32 %v6527_v6, %v17130_v7 }
 0x89d   : > { %v6788_v15 = vpack.c.bf16 %v6740_v4, %v6732_v56 }
 0x89e   : > { %v6772_v23 = vmax.f32 %v6511_v32, 0.0  ;;  %v17128_v32 = vld [vmem:[#allocation99_spill] sm:$0xff]  ;;  %v6749_v0 = vmax.f32 %v6533_v9, 0.0 }
 0x89f   : > { %v14667_v10 = vpop.f32.mrf.mxu3  ;;  %v6539_v41 = vpop.f32.mrf.mxu1  ;;  %v6496_v37 = vadd.f32 %v6495_v46, %v17128_v32  ;;  %v6741_v46 = vmax.f32 %v6530_v12, 0.0 }
 0x8a0   : > { %v6804_v45 = vpack.c.bf16 %v6772_v23, %v6764_v61  ;;  %v6540_v5 = vadd.f32 %v6539_v41, %v13986_v30  ;;  %v6757_v61 = vmax.f32 %v6535_v22, 0.0  ;;  %v6796_v41 = vpack.c.bf16 %v6756_v27, %v6748_v29  ;;  %v17131_v22 = vld [vmem:[#allocation72_spill] sm:$0xff] }
 0x8a1   : > { %v6733_v27 = vmax.f32 %v6528_v26, 0.0  ;;  %v6725_v29 = vmax.f32 %v6525_v44, 0.0  ;;  %v17135_v44 = vld [vmem:[#allocation29_spill] sm:$0xff] }
 0x8a2   : > { %v6773_v47 = vmax.f32 %v6540_v5, 0.0  ;;  %6816 = vmatpush.bf16.msra.mxu0 %v6804_v45  ;;  %v6724_v45 = vmax.f32 %v6496_v37, 0.0  ;;  %v6797_v32 = vpack.c.bf16 %v6757_v61, %v6749_v0  ;;  %v17132_v61 = vld [vmem:[#allocation28_spill] sm:$0xff]  ;;  %v17134_v0 = vld [vmem:[#allocation25_spill] sm:$0xff] }
 0x8a3   : > { %v6561_v43 = vpop.f32.mrf.mxu2  ;;  %v14679_v58 = vpop.f32.mrf.mxu0  ;;  %v6789_v37 = vpack.c.bf16 %v6741_v46, %v6733_v27 }
 0x8a4   : > { %v6805_v23 = vpack.c.bf16 %v6773_v47, %v6765_v20  ;;  %v6523_v20 = vadd.f32 %v14642_v42, %v17131_v22  ;;  %v6780_v9 = vpack.c.bf16 %v6724_v45, %v6716_v14 }
 0x8a6   : > { %6829 = vmatpush.bf16.msra.mxu1 %v6805_v23  ;;  %6817 = vmatpush.bf16.msra.mxu0 %v6796_v41  ;;  %v6717_v47 = vmax.f32 %v6523_v20, 0.0  ;;  %v17133_v41 = vld [vmem:[#allocation18_spill] sm:$0xff] }
 0x8a7   : > { %v6590_v50 = vpop.f32.mrf.mxu3  ;;  %v14684_v5 = vpop.f32.mrf.mxu1  ;;  %v17136_v20 = vld [vmem:[#allocation22_spill] sm:$0xff] }
 0x8a8   : > { %v6781_v4 = vpack.c.bf16 %v6725_v29, %v6717_v47  ;;  %v17137_v29 = vld [vmem:[#allocation26_spill] sm:$0xff] }
 0x8aa   : > { %6830 = vmatpush.bf16.msra.mxu1 %v6797_v32  ;;  %6818 = vmatpush.bf16.msra.mxu0 %v6788_v15 }
 0x8ab   : > { %v6563_v16 = vpop.f32.mrf.mxu2  ;;  %v14689_v6 = vpop.f32.mrf.mxu0 }
 0x8ac   : > { %v6564_v45 = vadd.f32 %v6563_v16, %v17134_v0  ;;  %v17141_v16 = vld [vmem:[#allocation169_spill] sm:$0xff] }
 0x8ae   : > { %6831 = vmatpush.bf16.msra.mxu1 %v6789_v37  ;;  %6819 = vmatpush.bf16.msra.mxu0 %v6780_v9  ;;  %v17138_v9 = vld [vmem:[#allocation162_spill] sm:$0xff] }
 0x8af   : > { %v6592_v33 = vpop.f32.mrf.mxu3  ;;  %v14691_v2 = vpop.f32.mrf.mxu1  ;;  %v6562_v47 = vadd.f32 %v6561_v43, %v17138_v9 }
 0x8b0   : > { %v6593_v46 = vadd.f32 %v6592_v33, %v17135_v44  ;;  %v6588_v33 = vadd.f32 %v14667_v10, %v17141_v16  ;;  %v6758_v44 = vmax.f32 %v6564_v45, 0.0  ;;  %v17145_v10 = vld [vmem:[#allocation131_spill] sm:$0xff] }
 0x8b1   : > { %8711 = vmatmul.msk.bf16.vlgmr.msra.gmra.mxu0 %vm5531_vm7, %v14338_v21  ;;  %v6583_v45 = vadd.f32 %v14658_v40, %v17145_v10 }
 0x8b2   : > { %6832 = vmatpush.bf16.msra.mxu1 %v6781_v4  ;;  %v17139_v4 = vld [vmem:[#allocation21_spill] sm:$0xff]  ;;  %v6759_v0 = vmax.f32 %v6593_v46, 0.0 }
 0x8b3   : > { %v6566_v42 = vpop.f32.mrf.mxu2  ;;  %v14695_v15 = vpop.f32.mrf.mxu0  ;;  %v6591_v22 = vadd.f32 %v6590_v50, %v17139_v4  ;;  %v17143_v50 = vld [vmem:[#allocation165_spill] sm:$0xff]  ;;  %v6727_v10 = vmax.f32 %v6583_v45, 0.0 }
 0x8b4   : > { %v6567_v23 = vadd.f32 %v6566_v42, %v17132_v61 }
 0x8b5   : > { %8712 = vmatmul.msk.bf16.vlgmr.msra.gmra.mxu1 %vm5531_vm7, %v14338_v21 }
 0x8b6   : > { %v6766_v36 = vmax.f32 %v6567_v23, 0.0  ;;  %v6586_v23 = vadd.f32 %v14662_v63, %v17143_v50  ;;  %v17146_v63 = vld [vmem:[#allocation102_spill] sm:$0xff] }
 0x8b7   : > { %v6595_v32 = vpop.f32.mrf.mxu3  ;;  %v14699_v12 = vpop.f32.mrf.mxu1 }
 0x8b8   : > { %v6596_v54 = vadd.f32 %v6595_v32, %v17133_v41  ;;  %v17140_v41 = vld [vmem:[#allocation17_spill] sm:$0xff] }
 0x8b9   : > { %v6559_v7 = vadd.f32 %v14665_v51, %v17140_v41  ;;  %v17144_v51 = vld [vmem:[#allocation109_spill] sm:$0xff] }
 0x8ba   : > { %v6767_v42 = vmax.f32 %v6596_v54, 0.0  ;;  %v6750_v54 = vmax.f32 %v6562_v47, 0.0  ;;  %v17147_v47 = vld [vmem:[#allocation16_spill] sm:$0xff] }
 0x8bb   : > { %v6568_v56 = vpop.f32.mrf.mxu2  ;;  %v14705_v14 = vpop.f32.mrf.mxu0 }
 0x8bc   : > { %v6569_v27 = vadd.f32 %v6568_v56, %v17136_v20 }
 0x8be   : > { %v6774_v61 = vmax.f32 %v6569_v27, 0.0  ;;  %v6751_v27 = vmax.f32 %v6591_v22, 0.0  ;;  %v6552_v22 = vadd.f32 %v14652_v52, %v17146_v63 }
 0x8bf   : > { %v6597_v26 = vpop.f32.mrf.mxu3  ;;  %v14715_v3 = vpop.f32.mrf.mxu1 }
 0x8c0   : > { %v6598_v37 = vadd.f32 %v6597_v26, %v17137_v29  ;;  %v6806_v56 = vpack.c.bf16 %v6774_v61, %v6766_v36  ;;  %v17142_v29 = vld [vmem:[#allocation152_spill] sm:$0xff]  ;;  %v6742_v61 = vmax.f32 %v6559_v7, 0.0  ;;  %v6718_v7 = vmax.f32 %v6552_v22, 0.0 }
 0x8c1   : > { %v6557_v43 = vadd.f32 %v14660_v49, %v17142_v29  ;;  %v6799_v29 = vpack.c.bf16 %v6759_v0, %v6751_v27  ;;  %v17148_v27 = vld [vmem:[#allocation205_spill] sm:$0xff] }
 0x8c2   : > { %v6775_v32 = vmax.f32 %v6598_v37, 0.0  ;;  %6842 = vmatpush.bf16.msra.mxu2 %v6806_v56  ;;  %v6554_v37 = vadd.f32 %v14656_v59, %v17144_v51  ;;  %v6581_v56 = vadd.f32 %v14654_v24, %v17147_v47  ;;  %v6735_v59 = vmax.f32 %v6586_v23, 0.0  ;;  %v17151_v47 = vld [vmem:[#allocation153_spill] sm:$0xff] }
 0x8c3   : > { %v14725_v46 = vpop.f32.mrf.mxu2  ;;  %v6619_v49 = vpop.f32.mrf.mxu0 }
 0x8c4   : > { %v6807_v26 = vpack.c.bf16 %v6775_v32, %v6767_v42  ;;  %v6743_v42 = vmax.f32 %v6588_v33, 0.0  ;;  %v6798_v32 = vpack.c.bf16 %v6758_v44, %v6750_v54  ;;  %v6726_v40 = vmax.f32 %v6554_v37, 0.0 }
 0x8c5   : > { %v6719_v33 = vmax.f32 %v6581_v56, 0.0  ;;  %v6620_v56 = vadd.f32 %v6619_v49, %v14419_v25 }
 0x8c6   : > { %6855 = vmatpush.bf16.msra.mxu3 %v6807_v26  ;;  %v6734_v26 = vmax.f32 %v6557_v43, 0.0  ;;  %6843 = vmatpush.bf16.msra.mxu2 %v6798_v32  ;;  %v6791_v16 = vpack.c.bf16 %v6743_v42, %v6735_v59  ;;  %v6782_v54 = vpack.c.bf16 %v6726_v40, %v6718_v7  ;;  %v17149_v32 = vld [vmem:[#allocation206_spill] sm:$0xff]  ;;  %v6617_v7 = vadd.f32 %v14705_v14, %v14112_v28 }
 0x8c7   : > { %v14727_v36 = vpop.f32.mrf.mxu3  ;;  %v6648_v51 = vpop.f32.mrf.mxu1  ;;  %v6783_v24 = vpack.c.bf16 %v6727_v10, %v6719_v33  ;;  %v6612_v14 = vadd.f32 %v14689_v6, %v17063_v8  ;;  %v6641_v6 = vadd.f32 %v14691_v2, %v17066_v19 }
 0x8c8   : > { %v6790_v50 = vpack.c.bf16 %v6742_v61, %v6734_v26  ;;  %v6649_v49 = vadd.f32 %v6648_v51, %v14439_v35  ;;  %v6644_v51 = vadd.f32 %v14699_v12, %v14450_v53 }
 0x8c9   : > { %v6729_v12 = vmax.f32 %v6641_v6, 0.0 }
 0x8ca   : > { %6856 = vmatpush.bf16.msra.mxu3 %v6799_v29  ;;  %6844 = vmatpush.bf16.msra.mxu2 %v6790_v50 }
 0x8cb   : > { %v14733_v0 = vpop.f32.mrf.mxu2  ;;  %v6621_v52 = vpop.f32.mrf.mxu0 }
 0x8cc   : > { %v6622_v42 = vadd.f32 %v6621_v52, %v14161_v62  ;;  %v6615_v52 = vadd.f32 %v14695_v15, %v14435_v18  ;;  %v6610_v15 = vadd.f32 %v14679_v58, %v17065_v57 }
 0x8ce   : > { %6857 = vmatpush.bf16.msra.mxu3 %v6791_v16  ;;  %6845 = vmatpush.bf16.msra.mxu2 %v6782_v54  ;;  %v6760_v54 = vmax.f32 %v6622_v42, 0.0  ;;  %v6744_v42 = vmax.f32 %v6617_v7, 0.0 }
 0x8cf   : > { %v14735_v44 = vpop.f32.mrf.mxu3  ;;  %v6650_v43 = vpop.f32.mrf.mxu1 }
 0x8d1   : > { %8713 = vmatmul.msk.bf16.vlgmr.msra.gmra.mxu2 %vm5531_vm7, %v14338_v21 }
 0x8d2   : > { %6858 = vmatpush.bf16.msra.mxu3 %v6783_v24  ;;  %v17150_v24 = vld [vmem:[#allocation90_spill] sm:$0xff] }
 0x8d3   : > { %v14741_v29 = vpop.f32.mrf.mxu2  ;;  %v6624_v16 = vpop.f32.mrf.mxu0 }
 0x8d4   : > { %v6625_v37 = vadd.f32 %v6624_v16, %v17148_v27  ;;  %v6651_v16 = vadd.f32 %v6650_v43, %v17150_v24  ;;  %v6646_v43 = vadd.f32 %v14715_v3, %v17064_v55 }
 0x8d5   : > { %8714 = vmatmul.msk.bf16.vlgmr.msra.gmra.mxu3 %vm5531_vm7, %v14338_v21 }
 0x8d6   : > { %v6768_v26 = vmax.f32 %v6625_v37, 0.0 }
 0x8d7   : > { %v14743_v50 = vpop.f32.mrf.mxu3  ;;  %v6653_v23 = vpop.f32.mrf.mxu1 }
 0x8d8   : > { %v6654_v59 = vadd.f32 %v6653_v23, %v14421_v34 }
 0x8da   : > { %v6769_v37 = vmax.f32 %v6654_v59, 0.0  ;;  %v6745_v59 = vmax.f32 %v6646_v43, 0.0  ;;  %v17153_v43 = vld [vmem:[#allocation49_spill] sm:$0xff] }
 0x8db   : > { %v14746_v45 = vpop.f32.mrf.mxu2  ;;  %v6626_v61 = vpop.f32.mrf.mxu0 }
 0x8dc   : > { %v6627_v22 = vadd.f32 %v6626_v61, %v17149_v32  ;;  %v6752_v61 = vmax.f32 %v6620_v56, 0.0  ;;  %v6736_v56 = vmax.f32 %v6615_v52, 0.0 }
 0x8de   : > { %v6776_v40 = vmax.f32 %v6627_v22, 0.0  ;;  %v6792_v3 = vpack.c.bf16 %v6744_v42, %v6736_v56  ;;  %v17158_v56 = vld [vmem:[#allocation60_spill] sm:$0xff] }
 0x8df   : > { %v14748_v10 = vpop.f32.mrf.mxu3  ;;  %v6655_v33 = vpop.f32.mrf.mxu1 }
 0x8e0   : > { %v6808_v27 = vpack.c.bf16 %v6776_v40, %v6768_v26  ;;  %v6656_v63 = vadd.f32 %v6655_v33, %v17151_v47  ;;  %v6761_v26 = vmax.f32 %v6651_v16, 0.0  ;;  %v6800_v33 = vpack.c.bf16 %v6760_v54, %v6752_v61 }
 0x8e1   : > { %v6720_v16 = vmax.f32 %v6610_v15, 0.0  ;;  %v6737_v54 = vmax.f32 %v6644_v51, 0.0  ;;  %v17157_v15 = vld [vmem:[#allocation57_spill] sm:$0xff] }
 0x8e2   : > { %v6777_v25 = vmax.f32 %v6656_v63, 0.0  ;;  %6868 = vmatpush.bf16.msrb.mxu0 %v6808_v27  ;;  %v6753_v63 = vmax.f32 %v6649_v49, 0.0  ;;  %v6728_v27 = vmax.f32 %v6612_v14, 0.0  ;;  %v17152_v14 = vld [vmem:[#allocation48_spill] sm:$0xff] }
 0x8e3   : > { %v6677_v23 = vpop.f32.mrf.mxu2  ;;  %v6793_v61 = vpack.c.bf16 %v6745_v59, %v6737_v54  ;;  %v17161_v54 = vld [vmem:[#allocation122_spill] sm:$0xff] }
 0x8e4   : > { %v6809_v40 = vpack.c.bf16 %v6777_v25, %v6769_v37  ;;  %v6801_v7 = vpack.c.bf16 %v6761_v26, %v6753_v63  ;;  %v6639_v25 = vadd.f32 %v14684_v5, %v17067_v31  ;;  %v6784_v49 = vpack.c.bf16 %v6728_v27, %v6720_v16  ;;  %v17154_v26 = vld [vmem:[#allocation52_spill] sm:$0xff] }
 0x8e6   : > { %6881 = vmatpush.bf16.msrb.mxu1 %v6809_v40  ;;  %6869 = vmatpush.bf16.msrb.mxu0 %v6800_v33  ;;  %v6721_v37 = vmax.f32 %v6639_v25, 0.0  ;;  %v17155_v40 = vld [vmem:[#allocation56_spill] sm:$0xff]  ;;  %v17156_v33 = vld [vmem:[#allocation53_spill] sm:$0xff] }
 0x8e7   : > { %v6706_v22 = vpop.f32.mrf.mxu3  ;;  %v17160_v25 = vld [vmem:[#allocation84_spill] sm:$0xff] }
 0x8e8   : > { %v6785_v2 = vpack.c.bf16 %v6729_v12, %v6721_v37 }
 0x8ea   : > { %6882 = vmatpush.bf16.msrb.mxu1 %v6801_v7  ;;  %6870 = vmatpush.bf16.msrb.mxu0 %v6792_v3  ;;  %v17159_v3 = vld [vmem:[#allocation117_spill] sm:$0xff] }
 0x8eb   : > { %v6679_v58 = vpop.f32.mrf.mxu2 }
 0x8ec   : > { %v6680_v59 = vadd.f32 %v6679_v58, %v17090_v13 }
 0x8ee   : > { %6883 = vmatpush.bf16.msrb.mxu1 %v6793_v61  ;;  %6871 = vmatpush.bf16.msrb.mxu0 %v6784_v49  ;;  %v17162_v61 = vld [vmem:[#allocation61_spill] sm:$0xff]  ;;  %v6762_v58 = vmax.f32 %v6680_v59, 0.0 }
 0x8ef   : > { %v6708_v52 = vpop.f32.mrf.mxu3 }
 0x8f0   : > { %v6709_v12 = vadd.f32 %v6708_v52, %v17161_v54 }
 0x8f1   : > { %8715 = vmatmul.msk.bf16.vlgmr.msrb.gmra.mxu0 %vm5531_vm7, %v14338_v21 }
 0x8f2   : > { %6930 = vmatpush.bf16.msra.mxu0 %v17152_v14  ;;  %6884 = vmatpush.bf16.msrb.mxu1 %v6785_v2 }
 0x8f3   : > { %v6682_v42 = vpop.f32.mrf.mxu2 }
 0x8f4   : > { %v6683_v51 = vadd.f32 %v6682_v42, %v14477_v48  ;;  %v17163_v42 = vld [vmem:[#allocation154_spill] sm:$0xff] }
 0x8f5   : > { %8716 = vmatmul.msk.bf16.vlgmr.msrb.gmra.mxu1 %vm5531_vm7, %v14338_v21  ;;  %v6678_v21 = vadd.f32 %v6677_v23, %v17160_v25  ;;  %v6763_v23 = vmax.f32 %v6709_v12, 0.0 }
 0x8f6   : > { %6959 = vmatpush.bf16.msra.mxu1 %v17153_v43  ;;  %6931 = vmatpush.bf16.msra.mxu0 %v17154_v26  ;;  %v6770_v49 = vmax.f32 %v6683_v51, 0.0  ;;  %v17164_v43 = vld [vmem:[#allocation164_spill] sm:$0xff]  ;;  %v17167_v51 = vld [vmem:[#allocation181_spill] sm:$0xff] }
 0x8f7   : > { %v6711_v5 = vpop.f32.mrf.mxu3  ;;  %v6675_v26 = vadd.f32 %v14746_v45, %v17164_v43  ;;  %v17169_v45 = vld [vmem:[#allocation110_spill] sm:$0xff]  ;;  %v17220_v43 = vld [vmem:[#allocation79_spill] sm:$0xff] }
 0x8f8   : > { %v6712_v63 = vadd.f32 %v6711_v5, %v14479_v1  ;;  %v6707_v5 = vadd.f32 %v6706_v22, %v17163_v42  ;;  %v6670_v59 = vadd.f32 %v14733_v0, %v17169_v45 }
 0x8fa   : > { %7046 = vmatpush.bf16.msrb.mxu0 %v17155_v40  ;;  %6960 = vmatpush.bf16.msra.mxu1 %v17156_v33  ;;  %v6771_v37 = vmax.f32 %v6712_v63, 0.0  ;;  %v17168_v63 = vld [vmem:[#allocation118_spill] sm:$0xff]  ;;  %v6730_v0 = vmax.f32 %v6670_v59, 0.0 }
 0x8fb   : > { %v6684_v27 = vpop.f32.mrf.mxu2  ;;  %v6702_v22 = vadd.f32 %v14743_v50, %v17168_v63  ;;  %v17172_v50 = vld [vmem:[#allocation159_spill] sm:$0xff]  ;;  %v17178_v59 = vld [vmem:[#allocation58_spill] sm:$0xff] }
 0x8fc   : > { %v6685_v7 = vadd.f32 %v6684_v27, %v17092_v39  ;;  %v17166_v27 = vld [vmem:[#allocation204_spill] sm:$0xff]  ;;  %v17219_v63 = vld [vmem:[#allocation74_spill] sm:$0xff] }
 0x8fd   : > { %v6673_v52 = vadd.f32 %v14741_v29, %v17166_v27 }
 0x8fe   : > { %7075 = vmatpush.bf16.msrb.mxu1 %v17157_v15  ;;  %7047 = vmatpush.bf16.msrb.mxu0 %v17158_v56  ;;  %v6778_v14 = vmax.f32 %v6685_v7, 0.0  ;;  %v17165_v15 = vld [vmem:[#allocation137_spill] sm:$0xff]  ;;  %v6755_v7 = vmax.f32 %v6707_v5, 0.0  ;;  %v6739_v5 = vmax.f32 %v6702_v22, 0.0  ;;  %v17176_v22 = vld [vmem:[#allocation54_spill] sm:$0xff] }
 0x8ff   : > { %v6713_v6 = vpop.f32.mrf.mxu3  ;;  %v6704_v56 = vadd.f32 %v14748_v10, %v17165_v15  ;;  %v17170_v10 = vld [vmem:[#allocation129_spill] sm:$0xff] }
 0x900   : > { %v6714_v16 = vadd.f32 %v6713_v6, %v17159_v3  ;;  %v6810_v40 = vpack.c.bf16 %v6778_v14, %v6770_v49  ;;  %v6754_v6 = vmax.f32 %v6678_v21, 0.0  ;;  %v6699_v12 = vadd.f32 %v14735_v44, %v17170_v10  ;;  %v17171_v21 = vld [vmem:[#allocation31_spill] sm:$0xff] }
 0x901   : > { %8719 = vmatmul.msk.bf16.vlgmr.msra.gmra.mxu0 %vm896_vm0, %v17167_v51  ;;  %v6747_v49 = vmax.f32 %v6704_v56, 0.0  ;;  %v6803_v29 = vpack.c.bf16 %v6763_v23, %v6755_v7  ;;  %v6738_v14 = vmax.f32 %v6673_v52, 0.0  ;;  %v17173_v23 = vld [vmem:[#allocation50_spill] sm:$0xff]  ;;  %v17174_v52 = vld [vmem:[#allocation51_spill] sm:$0xff] }
 0x902   : > { %7076 = vmatpush.bf16.msrb.mxu1 %v17162_v61  ;;  %v6779_v2 = vmax.f32 %v6714_v16, 0.0  ;;  %6894 = vmatpush.bf16.msrb.mxu2 %v6810_v40  ;;  %v6746_v16 = vmax.f32 %v6675_v26, 0.0  ;;  %v6802_v61 = vpack.c.bf16 %v6762_v58, %v6754_v6  ;;  %v6731_v58 = vmax.f32 %v6699_v12, 0.0  ;;  %v17175_v6 = vld [vmem:[#allocation82_spill] sm:$0xff]  ;;  %v17177_v7 = vld [vmem:[#allocation55_spill] sm:$0xff] }
 0x903   : > { %v6795_v40 = vpack.c.bf16 %v6747_v49, %v6739_v5  ;;  %v17181_v12 = vld [vmem:[#allocation63_spill] sm:$0xff] }
 0x904   : > { %v6811_v33 = vpack.c.bf16 %v6779_v2, %v6771_v37  ;;  %v6668_v37 = vadd.f32 %v14725_v46, %v17171_v21  ;;  %v6697_v2 = vadd.f32 %v14727_v36, %v17172_v50  ;;  %v6794_v26 = vpack.c.bf16 %v6746_v16, %v6738_v14  ;;  %v14818_v36 = vld [vmem:[%s17031_s28] sm:$0x1]  ;;  %v17184_v14 = vld [vmem:[#allocation144_spill] sm:$0xff] }
 0x905   : > { %8723 = vmatmul.msk.bf16.vlgmr.msra.gmra.mxu1 %vm896_vm0, %v17167_v51  ;;  %v17179_v16 = vld [vmem:[#allocation59_spill] sm:$0xff] }
 0x906   : > { %6907 = vmatpush.bf16.msrb.mxu3 %v6811_v33  ;;  %6895 = vmatpush.bf16.msrb.mxu2 %v6802_v61  ;;  %v6722_v44 = vmax.f32 %v6668_v37, 0.0  ;;  %v6723_v33 = vmax.f32 %v6697_v2, 0.0  ;;  %v17180_v61 = vld [vmem:[#allocation62_spill] sm:$0xff]  ;;  %v17182_v49 = vld [vmem:[#allocation207_spill] sm:$0xff] }
 0x908   : > { %v6786_v56 = vpack.c.bf16 %v6730_v0, %v6722_v44  ;;  %v6787_v46 = vpack.c.bf16 %v6731_v58, %v6723_v33  ;;  %v17187_v58 = vld [vmem:[#allocation142_spill] sm:$0xff]  ;;  %v17189_v33 = vld [vmem:[#allocation208_spill] sm:$0xff] }
 0x90a   : > { %6908 = vmatpush.bf16.msrb.mxu3 %v6803_v29  ;;  %6896 = vmatpush.bf16.msrb.mxu2 %v6794_v26  ;;  %v6366_v29 = vpop.permute.xlu2 %6365 }
 0x90b   : > { %v14842_v37 = vperm.slane %v6366_v29, 0  ;;  %v17195_v29 = vld [vmem:[#allocation91_spill] sm:$0xff] }
 0x90d   : > { %17183 = vst [vmem:[#allocation190_spill] sm:$0xff] %v14842_v37  ;;  %v14846_v2 = vadd.f32 %v17184_v14, %v14842_v37  ;;  %v14902_v14 = vadd.f32 %v17195_v29, %v14842_v37 }
 0x90e   : > { %6909 = vmatpush.bf16.msrb.mxu3 %v6795_v40  ;;  %6897 = vmatpush.bf16.msrb.mxu2 %v6786_v56  ;;  %v14856_v40 = vadd.f32 %v17187_v58, %v14842_v37 }
 0x90f   : > { %17185 = vst [vmem:[#allocation81_spill] sm:$0xff] %v14846_v2  ;;  %v16022_v26 = vmax.f32 %v14846_v2, 0.0 }
 0x910   : > { %17188 = vst [vmem:[#allocation151_spill] sm:$0xff] %v14856_v40 }
 0x911   : > { %8717 = vmatmul.msk.bf16.vlgmr.msrb.gmra.mxu2 %vm5531_vm7, %v14818_v36  ;;  %8720 = vmatmul.msk.bf16.gmra.mxu0 %vm896_vm0, %v17175_v6  ;;  %17196 = vst [vmem:[#allocation216_spill] sm:$0xff] %v14902_v14 }
 0x912   : > { %6910 = vmatpush.bf16.msrb.mxu3 %v6787_v46  ;;  %6988 = vmatpush.bf16.msra.mxu2 %v17173_v23 }
 0x915   : > { %8718 = vmatmul.msk.bf16.vlgmr.msrb.gmra.mxu3 %vm5531_vm7, %v14818_v36  ;;  %8724 = vmatmul.msk.bf16.gmra.mxu1 %vm896_vm0, %v17175_v6 }
 0x916   : > { %7017 = vmatpush.bf16.msra.mxu3 %v17174_v52  ;;  %6989 = vmatpush.bf16.msra.mxu2 %v17176_v22  ;;  %v16016_v52 = vmax.f32 %v14856_v40, 0.0 }
 0x91a   : > { %7018 = vmatpush.bf16.msra.mxu3 %v17177_v7  ;;  %7104 = vmatpush.bf16.msrb.mxu2 %v17178_v59 }
 0x91e   : > { %7133 = vmatpush.bf16.msrb.mxu3 %v17179_v16  ;;  %7105 = vmatpush.bf16.msrb.mxu2 %v17180_v61  ;;  %v17193_v61 = vld [vmem:[#allocation209_spill] sm:$0xff] }
 0x921   : > { %8727 = vmatmul.msk.bf16.vlgmr.msra.gmra.mxu2 %vm896_vm0, %v17167_v51  ;;  %8721 = vmatmul.msk.bf16.gmra.mxu0 %vm896_vm0, %v17182_v49 }
 0x922   : > { %7134 = vmatpush.bf16.msrb.mxu3 %v17181_v12  ;;  %v14898_v12 = vadd.f32 %v17193_v61, %v14842_v37  ;;  %v16021_v61 = vmax.f32 %v14902_v14, 0.0 }
 0x924   : > { %17194 = vst [vmem:[#allocation73_spill] sm:$0xff] %v14898_v12 }
 0x925   : > { %8731 = vmatmul.msk.bf16.vlgmr.msra.gmra.mxu3 %vm896_vm0, %v17167_v51  ;;  %8725 = vmatmul.msk.bf16.gmra.mxu1 %vm896_vm0, %v17182_v49 }
 0x92e   : > { %v6821_v5 = vpop.f32.mrf.mxu0 }
 0x92f   : > { %v14849_v0 = vadd.f32 %v6821_v5, %v14842_v37 }
 0x931   : > { %17186 = vst [vmem:[#allocation212_spill] sm:$0xff] %v14849_v0  ;;  %8728 = vmatmul.msk.bf16.gmra.mxu2 %vm896_vm0, %v17175_v6  ;;  %v16017_v44 = vmax.f32 %v14849_v0, 0.0  ;;  %8722 = vmatmul.msk.bf16.gmra.mxu0 %vm896_vm0, %v17189_v33 }
 0x932   : > { %v6834_v56 = vpop.f32.mrf.mxu1 }
 0x933   : > { %v14867_v46 = vmax.f32 %v16022_v26, %v16017_v44  ;;  %v14870_v23 = vadd.f32 %v6834_v56, %v14842_v37 }
 0x935   : > { %8732 = vmatmul.msk.bf16.gmra.mxu3 %vm896_vm0, %v17175_v6  ;;  %17190 = vst [vmem:[#allocation213_spill] sm:$0xff] %v14867_v46  ;;  %v16015_v22 = vmax.f32 %v14870_v23, 0.0  ;;  %8726 = vmatmul.msk.bf16.gmra.mxu1 %vm896_vm0, %v17189_v33 }
 0x936   : > { %17191 = vst [vmem:[#allocation149_spill] sm:$0xff] %v14870_v23  ;;  %v6823_v7 = vpop.f32.mrf.mxu0 }
 0x937   : > { %v14880_v59 = vmax.f32 %v16016_v52, %v16015_v22 }
 0x939   : > { %17192 = vst [vmem:[#allocation214_spill] sm:$0xff] %v14880_v59 }
 0x93a   : > { %v6836_v16 = vpop.f32.mrf.mxu1 }
 0x93b   : > { %v16019_v16 = vmax.f32 %v14898_v12, 0.0 }
 0x941   : > { %8729 = vmatmul.msk.bf16.gmra.mxu2 %vm896_vm0, %v17182_v49  ;;  %8735 = vmatmul.msk.bf16.vlgmr.msrb.gmra.mxu0 %vm896_vm0, %v17167_v51 }
 0x945   : > { %8733 = vmatmul.msk.bf16.gmra.mxu3 %vm896_vm0, %v17182_v49  ;;  %8739 = vmatmul.msk.bf16.vlgmr.msrb.gmra.mxu1 %vm896_vm0, %v17167_v51 }
 0x951   : > { %8730 = vmatmul.msk.bf16.gmra.mxu2 %vm896_vm0, %v17189_v33  ;;  %8736 = vmatmul.msk.bf16.gmra.mxu0 %vm896_vm0, %v17175_v6 }
 0x954   : > { %v6847_v5 = vpop.f32.mrf.mxu2 }
 0x955   : > { %8734 = vmatmul.msk.bf16.gmra.mxu3 %vm896_vm0, %v17189_v33  ;;  %v14905_v56 = vadd.f32 %v6847_v5, %v14842_v37  ;;  %8740 = vmatmul.msk.bf16.gmra.mxu1 %vm896_vm0, %v17175_v6 }
 0x957   : > { %17197 = vst [vmem:[#allocation97_spill] sm:$0xff] %v14905_v56  ;;  %v16018_v22 = vmax.f32 %v14905_v56, 0.0 }
 0x958   : > { %v6860_v58 = vpop.f32.mrf.mxu3 }
 0x959   : > { %v14908_v7 = vadd.f32 %v6860_v58, %v14842_v37  ;;  %v14920_v5 = vmax.f32 %v16019_v16, %v16018_v22  ;;  %v17201_v22 = vld [vmem:[#allocation210_spill] sm:$0xff] }
 0x95a   : > { %v14938_v16 = vadd.f32 %v17201_v22, %v14842_v37 }
 0x95b   : > { %17198 = vst [vmem:[#allocation215_spill] sm:$0xff] %v14908_v7  ;;  %v16020_v29 = vmax.f32 %v14908_v7, 0.0 }
 0x95c   : > { %17199 = vst [vmem:[#allocation121_spill] sm:$0xff] %v14920_v5  ;;  %v6849_v52 = vpop.f32.mrf.mxu2 }
 0x95d   : > { %v14926_v58 = vmax.f32 %v16021_v61, %v16020_v29  ;;  %17202 = vst [vmem:[#allocation172_spill] sm:$0xff] %v14938_v16  ;;  %v17204_v61 = vld [vmem:[#allocation95_spill] sm:$0xff] }
 0x95e   : > { %v14948_v26 = vadd.f32 %v17204_v61, %v14842_v37 }
 0x95f   : > { %17200 = vst [vmem:[#allocation217_spill] sm:$0xff] %v14926_v58 }
 0x960   : > { %v6862_v44 = vpop.f32.mrf.mxu3  ;;  %17205 = vst [vmem:[#allocation124_spill] sm:$0xff] %v14948_v26  ;;  %v16030_v61 = vmax.f32 %v14948_v26, 0.0 }
 0x961   : > { %8743 = vmatmul.msk.bf16.vlgmr.msrb.gmra.mxu2 %vm896_vm0, %v17167_v51  ;;  %8737 = vmatmul.msk.bf16.gmra.mxu0 %vm896_vm0, %v17182_v49  ;;  %v16027_v44 = vmax.f32 %v14938_v16, 0.0 }
 0x965   : > { %8747 = vmatmul.msk.bf16.vlgmr.msrb.gmra.mxu3 %vm896_vm0, %v17167_v51  ;;  %8741 = vmatmul.msk.bf16.gmra.mxu1 %vm896_vm0, %v17182_v49 }
 0x96e   : > { %v6873_v29 = vpop.f32.mrf.mxu0 }
 0x96f   : > { %v14941_v52 = vadd.f32 %v6873_v29, %v14842_v37 }
 0x971   : > { %17203 = vst [vmem:[#allocation218_spill] sm:$0xff] %v14941_v52  ;;  %8744 = vmatmul.msk.bf16.gmra.mxu2 %vm896_vm0, %v17175_v6  ;;  %v16026_v51 = vmax.f32 %v14941_v52, 0.0  ;;  %8738 = vmatmul.msk.bf16.gmra.mxu0 %vm896_vm0, %v17189_v33 }
 0x972   : > { %v6886_v22 = vpop.f32.mrf.mxu1 }
 0x973   : > { %v14959_v29 = vmax.f32 %v16027_v44, %v16026_v51  ;;  %v14962_v7 = vadd.f32 %v6886_v22, %v14842_v37 }
 0x975   : > { %8748 = vmatmul.msk.bf16.gmra.mxu3 %vm896_vm0, %v17175_v6  ;;  %17206 = vst [vmem:[#allocation219_spill] sm:$0xff] %v14959_v29  ;;  %v16029_v14 = vmax.f32 %v14962_v7, 0.0  ;;  %8742 = vmatmul.msk.bf16.gmra.mxu1 %vm896_vm0, %v17189_v33 }
 0x976   : > { %17207 = vst [vmem:[#allocation86_spill] sm:$0xff] %v14962_v7  ;;  %v6875_v58 = vpop.f32.mrf.mxu0  ;;  %v17211_v7 = vld [vmem:[#allocation120_spill] sm:$0xff] }
 0x977   : > { %v14972_v6 = vmax.f32 %v16030_v61, %v16029_v14 }
 0x979   : > { %17208 = vst [vmem:[#allocation103_spill] sm:$0xff] %v14972_v6 }
 0x97a   : > { %v6888_v52 = vpop.f32.mrf.mxu1 }
 0x97b   : > { %v17209_v52 = vld [vmem:[#allocation211_spill] sm:$0xff] }
 0x97c   : > { %v14990_v14 = vadd.f32 %v17209_v52, %v14842_v37 }
 0x97e   : > { %v14974_v51 = vpop.f32.mrf.mxu0  ;;  %17210 = vst [vmem:[#allocation220_spill] sm:$0xff] %v14990_v14  ;;  %v16044_v12 = vmax.f32 %v14990_v14, 0.0 }
 0x981   : > { %8745 = vmatmul.msk.bf16.gmra.mxu2 %vm896_vm0, %v17182_v49 }
 0x982   : > { %v14980_v22 = vpop.f32.mrf.mxu1 }
 0x985   : > { %8749 = vmatmul.msk.bf16.gmra.mxu3 %vm896_vm0, %v17182_v49  ;;  %v14994_v49 = vadd.f32 %v17211_v7, %v14842_v37 }
 0x986   : > { %v6935_v44 = vpop.f32.mrf.mxu0 }
 0x987   : > { %17212 = vst [vmem:[#allocation173_spill] sm:$0xff] %v14994_v49  ;;  %v16048_v52 = vmax.f32 %v14994_v49, 0.0 }
 0x98a   : > { %v14982_v16 = vpop.f32.mrf.mxu1 }
 0x98e   : > { %v6938_v58 = vpop.f32.mrf.mxu0 }
 0x991   : > { %8746 = vmatmul.msk.bf16.gmra.mxu2 %vm896_vm0, %v17189_v33 }
 0x992   : > { %v6967_v61 = vpop.f32.mrf.mxu1 }
 0x994   : > { %v6899_v26 = vpop.f32.mrf.mxu2 }
 0x995   : > { %8750 = vmatmul.msk.bf16.gmra.mxu3 %vm896_vm0, %v17189_v33  ;;  %v14997_v6 = vadd.f32 %v6899_v26, %v14842_v37 }
 0x996   : > { %v6940_v5 = vpop.f32.mrf.mxu0 }
 0x997   : > { %17213 = vst [vmem:[#allocation221_spill] sm:$0xff] %v14997_v6  ;;  %v16043_v33 = vmax.f32 %v14997_v6, 0.0  ;;  %v6941_v42 = vadd.f32 %v6940_v5, %v17220_v43  ;;  %v17223_v43 = vld [vmem:[#allocation99_spill] sm:$0xff] }
 0x998   : > { %v6912_v29 = vpop.f32.mrf.mxu3 }
 0x999   : > { %v15000_v56 = vadd.f32 %v6912_v29, %v14842_v37  ;;  %v15010_v7 = vmax.f32 %v16044_v12, %v16043_v33  ;;  %v7180_v5 = vmax.f32 %v6941_v42, 0.0  ;;  %v17226_v42 = vld [vmem:[#allocation135_spill] sm:$0xff] }
 0x99a   : > { %v6969_v29 = vpop.f32.mrf.mxu1 }
 0x99b   : > { %17214 = vst [vmem:[#allocation156_spill] sm:$0xff] %v15000_v56  ;;  %v16047_v23 = vmax.f32 %v15000_v56, 0.0 }
 0x99c   : > { %17215 = vst [vmem:[#allocation161_spill] sm:$0xff] %v15010_v7  ;;  %v6901_v40 = vpop.f32.mrf.mxu2  ;;  %v17218_v7 = vld [vmem:[#allocation141_spill] sm:$0xff] }
 0x99d   : > { %v15016_v26 = vmax.f32 %v16048_v52, %v16047_v23  ;;  %v17217_v40 = vld [vmem:[#allocation24_spill] sm:$0xff] }
 0x99e   : > { %v6943_v0 = vpop.f32.mrf.mxu0 }
 0x99f   : > { %17216 = vst [vmem:[#allocation167_spill] sm:$0xff] %v15016_v26  ;;  %v6944_v10 = vadd.f32 %v6943_v0, %v13895_v11  ;;  %v17222_v0 = vld [vmem:[#allocation20_spill] sm:$0xff] }
 0x9a0   : > { %v6914_v59 = vpop.f32.mrf.mxu3 }
 0x9a1   : > { %v7188_v11 = vmax.f32 %v6944_v10, 0.0  ;;  %v17225_v10 = vld [vmem:[#allocation171_spill] sm:$0xff] }
 0x9a2   : > { %v6972_v2 = vpop.f32.mrf.mxu1 }
 0x9a4   : > { %v15018_v46 = vpop.f32.mrf.mxu2 }
 0x9a6   : > { %v6945_v6 = vpop.f32.mrf.mxu0 }
 0x9a7   : > { %v6946_v26 = vadd.f32 %v6945_v6, %v13920_v17  ;;  %v17221_v17 = vld [vmem:[#allocation127_spill] sm:$0xff] }
 0x9a8   : > { %v15020_v37 = vpop.f32.mrf.mxu3  ;;  %v6939_v6 = vadd.f32 %v6938_v58, %v17221_v17 }
 0x9a9   : > { %v7196_v3 = vmax.f32 %v6946_v26, 0.0 }
 0x9aa   : > { %v6974_v50 = vpop.f32.mrf.mxu1  ;;  %v7172_v58 = vmax.f32 %v6939_v6, 0.0 }
 0x9ab   : > { %v6975_v54 = vadd.f32 %v6974_v50, %v13938_v60  ;;  %v6970_v60 = vadd.f32 %v6969_v29, %v17026_v38 }
 0x9ac   : > { %v15022_v14 = vpop.f32.mrf.mxu2 }
 0x9ad   : > { %v7181_v38 = vmax.f32 %v6970_v60, 0.0 }
 0x9ae   : > { %v6948_v12 = vpop.f32.mrf.mxu0 }
 0x9af   : > { %v6949_v59 = vadd.f32 %v6948_v12, %v17217_v40 }
 0x9b0   : > { %v15024_v33 = vpop.f32.mrf.mxu3 }
 0x9b1   : > { %v7204_v45 = vmax.f32 %v6949_v59, 0.0  ;;  %v6968_v59 = vadd.f32 %v6967_v61, %v17225_v10  ;;  %v17229_v10 = vld [vmem:[#allocation18_spill] sm:$0xff] }
 0x9b2   : > { %v6977_v56 = vpop.f32.mrf.mxu1 }
 0x9b3   : > { %v6978_v27 = vadd.f32 %v6977_v56, %v17219_v63  ;;  %v6936_v56 = vadd.f32 %v6935_v44, %v17223_v43  ;;  %v6965_v44 = vadd.f32 %v14982_v16, %v17226_v42  ;;  %v7173_v6 = vmax.f32 %v6968_v59, 0.0 }
 0x9b4   : > { %v15026_v49 = vpop.f32.mrf.mxu2 }
 0x9b5   : > { %v7205_v63 = vmax.f32 %v6978_v27, 0.0 }
 0x9b6   : > { %v6950_v52 = vpop.f32.mrf.mxu0 }
 0x9b7   : > { %v6951_v21 = vadd.f32 %v6950_v52, %v17218_v7  ;;  %v6973_v7 = vadd.f32 %v6972_v2, %v17222_v0 }
 0x9b8   : > { %v15028_v23 = vpop.f32.mrf.mxu3 }
 0x9b9   : > { %v7212_v15 = vmax.f32 %v6951_v21, 0.0  ;;  %v7189_v2 = vmax.f32 %v6973_v7, 0.0  ;;  %v7165_v7 = vmax.f32 %v6965_v44, 0.0 }
 0x9ba   : > { %v6979_v25 = vpop.f32.mrf.mxu1 }
 0x9bb   : > { %v7244_v39 = vpack.c.bf16 %v7212_v15, %v7204_v45  ;;  %v6980_v12 = vadd.f32 %v6979_v25, %v13986_v30  ;;  %v7236_v30 = vpack.c.bf16 %v7196_v3, %v7188_v11  ;;  %v7197_v25 = vmax.f32 %v6975_v54, 0.0  ;;  %v17224_v45 = vld [vmem:[#allocation140_spill] sm:$0xff] }
 0x9bc   : > { %v15038_v40 = vpop.f32.mrf.mxu2  ;;  %v6934_v50 = vadd.f32 %v14974_v51, %v17224_v45  ;;  %v17227_v11 = vld [vmem:[#allocation72_spill] sm:$0xff] }
 0x9bd   : > { %v7213_v21 = vmax.f32 %v6980_v12, 0.0  ;;  %7256 = vmatpush.bf16.msra.mxu0 %v7244_v39  ;;  %v7164_v39 = vmax.f32 %v6936_v56, 0.0  ;;  %v7228_v12 = vpack.c.bf16 %v7180_v5, %v7172_v58  ;;  %v7237_v3 = vpack.c.bf16 %v7197_v25, %v7189_v2  ;;  %v17228_v45 = vld [vmem:[#allocation28_spill] sm:$0xff] }
 0x9be   : > { %v15045_v26 = vpop.f32.mrf.mxu0  ;;  %v7156_v17 = vmax.f32 %v6934_v50, 0.0  ;;  %v6963_v51 = vadd.f32 %v14980_v22, %v17227_v11 }
 0x9bf   : > { %v7245_v15 = vpack.c.bf16 %v7213_v21, %v7205_v63  ;;  %v7229_v63 = vpack.c.bf16 %v7181_v38, %v7173_v6  ;;  %v17231_v38 = vld [vmem:[#allocation29_spill] sm:$0xff] }
 0x9c0   : > { %v15041_v52 = vpop.f32.mrf.mxu3  ;;  %v7220_v0 = vpack.c.bf16 %v7164_v39, %v7156_v17  ;;  %v7157_v21 = vmax.f32 %v6963_v51, 0.0  ;;  %v17230_v39 = vld [vmem:[#allocation25_spill] sm:$0xff]  ;;  %v17232_v17 = vld [vmem:[#allocation26_spill] sm:$0xff] }
 0x9c1   : > { %7269 = vmatpush.bf16.msra.mxu1 %v7245_v15  ;;  %7257 = vmatpush.bf16.msra.mxu0 %v7236_v30 }
 0x9c2   : > { %v15051_v27 = vpop.f32.mrf.mxu1  ;;  %v7221_v43 = vpack.c.bf16 %v7165_v7, %v7157_v21 }
 0x9c4   : > { %v7001_v54 = vpop.f32.mrf.mxu2 }
 0x9c5   : > { %7270 = vmatpush.bf16.msra.mxu1 %v7237_v3  ;;  %7258 = vmatpush.bf16.msra.mxu0 %v7228_v12  ;;  %v7002_v51 = vadd.f32 %v7001_v54, %v17138_v9 }
 0x9c6   : > { %v15057_v61 = vpop.f32.mrf.mxu0 }
 0x9c7   : > { %v7190_v54 = vmax.f32 %v7002_v51, 0.0 }
 0x9c8   : > { %v7030_v29 = vpop.f32.mrf.mxu3 }
 0x9c9   : > { %7271 = vmatpush.bf16.msra.mxu1 %v7229_v63  ;;  %7259 = vmatpush.bf16.msra.mxu0 %v7220_v0  ;;  %v7031_v63 = vadd.f32 %v7030_v29, %v17139_v4 }
 0x9ca   : > { %v15059_v16 = vpop.f32.mrf.mxu1 }
 0x9cb   : > { %v7191_v29 = vmax.f32 %v7031_v63, 0.0 }
 0x9cc   : > { %v7003_v56 = vpop.f32.mrf.mxu2  ;;  %8751 = vmatmul.msk.bf16.vlgmr.msra.gmra.mxu0 %vm5531_vm7, %v14818_v36 }
 0x9cd   : > { %7272 = vmatpush.bf16.msra.mxu1 %v7221_v43  ;;  %v7004_v42 = vadd.f32 %v7003_v56, %v17230_v39  ;;  %v17235_v39 = vld [vmem:[#allocation165_spill] sm:$0xff] }
 0x9ce   : > { %v15063_v22 = vpop.f32.mrf.mxu0  ;;  %v7026_v4 = vadd.f32 %v15028_v23, %v17235_v39 }
 0x9cf   : > { %v7198_v56 = vmax.f32 %v7004_v42, 0.0 }
 0x9d0   : > { %v7032_v5 = vpop.f32.mrf.mxu3  ;;  %8752 = vmatmul.msk.bf16.vlgmr.msra.gmra.mxu1 %vm5531_vm7, %v14818_v36  ;;  %v7175_v63 = vmax.f32 %v7026_v4, 0.0 }
 0x9d1   : > { %v7033_v3 = vadd.f32 %v7032_v5, %v17231_v38 }
 0x9d2   : > { %v15067_v60 = vpop.f32.mrf.mxu1 }
 0x9d3   : > { %v7199_v5 = vmax.f32 %v7033_v3, 0.0 }
 0x9d4   : > { %v7006_v30 = vpop.f32.mrf.mxu2 }
 0x9d5   : > { %v7007_v50 = vadd.f32 %v7006_v30, %v17228_v45  ;;  %v6999_v30 = vadd.f32 %v15038_v40, %v17140_v41  ;;  %v17236_v41 = vld [vmem:[#allocation109_spill] sm:$0xff]  ;;  %v7239_v3 = vpack.c.bf16 %v7199_v5, %v7191_v29 }
 0x9d6   : > { %v15069_v15 = vpop.f32.mrf.mxu0  ;;  %v6994_v40 = vadd.f32 %v15022_v14, %v17236_v41 }
 0x9d7   : > { %v7206_v6 = vmax.f32 %v7007_v50, 0.0  ;;  %v7182_v42 = vmax.f32 %v6999_v30, 0.0 }
 0x9d8   : > { %v7035_v25 = vpop.f32.mrf.mxu3  ;;  %v7166_v14 = vmax.f32 %v6994_v40, 0.0  ;;  %v17241_v40 = vld [vmem:[#allocation130_spill] sm:$0xff] }
 0x9d9   : > { %v7036_v59 = vadd.f32 %v7035_v25, %v17229_v10 }
 0x9da   : > { %v15072_v58 = vpop.f32.mrf.mxu1 }
 0x9db   : > { %v7207_v21 = vmax.f32 %v7036_v59, 0.0 }
 0x9dc   : > { %v7008_v2 = vpop.f32.mrf.mxu2 }
 0x9dd   : > { %v7009_v44 = vadd.f32 %v7008_v2, %v17136_v20  ;;  %v17233_v20 = vld [vmem:[#allocation169_spill] sm:$0xff]  ;;  %v17234_v2 = vld [vmem:[#allocation152_spill] sm:$0xff] }
 0x9de   : > { %v7059_v7 = vpop.f32.mrf.mxu0  ;;  %v7028_v45 = vadd.f32 %v15041_v52, %v17233_v20  ;;  %v6997_v9 = vadd.f32 %v15026_v49, %v17234_v2  ;;  %v7238_v52 = vpack.c.bf16 %v7198_v56, %v7190_v54  ;;  %v17240_v54 = vld [vmem:[#allocation205_spill] sm:$0xff] }
 0x9df   : > { %v7214_v0 = vmax.f32 %v7009_v44, 0.0 }
 0x9e0   : > { %v7037_v12 = vpop.f32.mrf.mxu3  ;;  %v7183_v38 = vmax.f32 %v7028_v45, 0.0  ;;  %v7174_v23 = vmax.f32 %v6997_v9, 0.0 }
 0x9e1   : > { %v7038_v11 = vadd.f32 %v7037_v12, %v17232_v17  ;;  %v7246_v25 = vpack.c.bf16 %v7214_v0, %v7206_v6  ;;  %v17237_v12 = vld [vmem:[#allocation131_spill] sm:$0xff]  ;;  %v17238_v17 = vld [vmem:[#allocation102_spill] sm:$0xff]  ;;  %v17239_v6 = vld [vmem:[#allocation16_spill] sm:$0xff] }
 0x9e2   : > { %v7088_v50 = vpop.f32.mrf.mxu1  ;;  %v7023_v49 = vadd.f32 %v15024_v33, %v17237_v12  ;;  %v7021_v0 = vadd.f32 %v15020_v37, %v17239_v6  ;;  %v7231_v30 = vpack.c.bf16 %v7183_v38, %v7175_v63  ;;  %v7057_v38 = vadd.f32 %v15069_v15, %v14112_v28 }
 0x9e3   : > { %v7215_v43 = vmax.f32 %v7038_v11, 0.0  ;;  %7282 = vmatpush.bf16.msra.mxu2 %v7246_v25  ;;  %v6992_v11 = vadd.f32 %v15018_v46, %v17238_v17  ;;  %v7052_v28 = vadd.f32 %v15057_v61, %v17063_v8  ;;  %v7081_v8 = vadd.f32 %v15059_v16, %v17066_v19 }
 0x9e4   : > { %v15089_v59 = vpop.f32.mrf.mxu2  ;;  %v7159_v33 = vmax.f32 %v7021_v0, 0.0  ;;  %v7184_v15 = vmax.f32 %v7057_v38, 0.0 }
 0x9e5   : > { %v7247_v10 = vpack.c.bf16 %v7215_v43, %v7207_v21  ;;  %v7230_v21 = vpack.c.bf16 %v7182_v42, %v7174_v23  ;;  %v7167_v43 = vmax.f32 %v7023_v49, 0.0  ;;  %v7158_v56 = vmax.f32 %v6992_v11, 0.0 }
 0x9e6   : > { %v7061_v51 = vpop.f32.mrf.mxu0  ;;  %v7060_v42 = vadd.f32 %v7059_v7, %v17241_v40  ;;  %v17243_v40 = vld [vmem:[#allocation122_spill] sm:$0xff] }
 0x9e7   : > { %7295 = vmatpush.bf16.msra.mxu3 %v7247_v10  ;;  %7283 = vmatpush.bf16.msra.mxu2 %v7238_v52  ;;  %v7222_v46 = vpack.c.bf16 %v7166_v14, %v7158_v56  ;;  %v7223_v5 = vpack.c.bf16 %v7167_v43, %v7159_v33  ;;  %v7062_v29 = vadd.f32 %v7061_v51, %v14161_v62  ;;  %v7168_v43 = vmax.f32 %v7052_v28, 0.0 }
 0x9e8   : > { %v15093_v44 = vpop.f32.mrf.mxu3  ;;  %v7055_v62 = vadd.f32 %v15063_v22, %v14435_v18  ;;  %v7192_v7 = vmax.f32 %v7060_v42, 0.0  ;;  %v7089_v51 = vadd.f32 %v7088_v50, %v14439_v35  ;;  %v7050_v18 = vadd.f32 %v15045_v26, %v17065_v57 }
 0x9e9   : > { %v7200_v17 = vmax.f32 %v7062_v29, 0.0  ;;  %v7084_v35 = vadd.f32 %v15067_v60, %v14450_v53  ;;  %v7079_v57 = vadd.f32 %v15051_v27, %v17067_v31  ;;  %v7169_v60 = vmax.f32 %v7081_v8, 0.0 }
 0x9ea   : > { %v7090_v25 = vpop.f32.mrf.mxu1  ;;  %v7176_v22 = vmax.f32 %v7055_v62, 0.0  ;;  %v7193_v50 = vmax.f32 %v7089_v51, 0.0  ;;  %v17247_v62 = vld [vmem:[#allocation164_spill] sm:$0xff] }
 0x9eb   : > { %7296 = vmatpush.bf16.msra.mxu3 %v7239_v3  ;;  %7284 = vmatpush.bf16.msra.mxu2 %v7230_v21  ;;  %v7091_v11 = vadd.f32 %v7090_v25, %v17150_v24  ;;  %v7086_v24 = vadd.f32 %v15072_v58, %v17064_v55  ;;  %v7240_v14 = vpack.c.bf16 %v7200_v17, %v7192_v7  ;;  %v7160_v25 = vmax.f32 %v7050_v18, 0.0 }
 0x9ec   : > { %v15101_v20 = vpop.f32.mrf.mxu2  ;;  %v7232_v61 = vpack.c.bf16 %v7184_v15, %v7176_v22  ;;  %v7177_v26 = vmax.f32 %v7084_v35, 0.0  ;;  %v17249_v15 = vld [vmem:[#allocation204_spill] sm:$0xff]  ;;  %v17251_v22 = vld [vmem:[#allocation110_spill] sm:$0xff] }
 0x9ed   : > { %v7224_v53 = vpack.c.bf16 %v7168_v43, %v7160_v25  ;;  %v7110_v35 = vadd.f32 %v15101_v20, %v17251_v22  ;;  %v17252_v43 = vld [vmem:[#allocation129_spill] sm:$0xff]  ;;  %v15186_v22 = vld [vmem:[%s9376_s22 + $0x160] sm:$0xff] }
 0x9ee   : > { %v7064_v10 = vpop.f32.mrf.mxu0 }
 0x9ef   : > { %7297 = vmatpush.bf16.msra.mxu3 %v7231_v30  ;;  %7285 = vmatpush.bf16.msra.mxu2 %v7222_v46  ;;  %v7065_v39 = vadd.f32 %v7064_v10, %v17240_v54  ;;  %v7185_v30 = vmax.f32 %v7086_v24, 0.0  ;;  %v7161_v46 = vmax.f32 %v7079_v57, 0.0  ;;  %v7170_v25 = vmax.f32 %v7110_v35, 0.0 }
 0x9f0   : > { %v15103_v45 = vpop.f32.mrf.mxu3 }
 0x9f1   : > { %v7208_v52 = vmax.f32 %v7065_v39, 0.0  ;;  %v7233_v33 = vpack.c.bf16 %v7185_v30, %v7177_v26  ;;  %v17253_v30 = vld [vmem:[#allocation31_spill] sm:$0xff] }
 0x9f2   : > { %8753 = vmatmul.msk.bf16.vlgmr.msra.gmra.mxu2 %vm5531_vm7, %v14818_v36  ;;  %v7093_v37 = vpop.f32.mrf.mxu1 }
 0x9f3   : > { %7298 = vmatpush.bf16.msra.mxu3 %v7223_v5  ;;  %v7094_v12 = vadd.f32 %v7093_v37, %v14421_v34  ;;  %v7225_v5 = vpack.c.bf16 %v7169_v60, %v7161_v46 }
 0x9f4   : > { %v15109_v2 = vpop.f32.mrf.mxu2 }
 0x9f5   : > { %v7209_v34 = vmax.f32 %v7094_v12, 0.0  ;;  %v7113_v24 = vadd.f32 %v15109_v2, %v17249_v15  ;;  %v7108_v2 = vadd.f32 %v15089_v59, %v17253_v30 }
 0x9f6   : > { %8754 = vmatmul.msk.bf16.vlgmr.msra.gmra.mxu3 %vm5531_vm7, %v14818_v36  ;;  %v7066_v4 = vpop.f32.mrf.mxu0 }
 0x9f7   : > { %v7067_v41 = vadd.f32 %v7066_v4, %v17149_v32  ;;  %v17242_v4 = vld [vmem:[#allocation106_spill] sm:$0xff] }
 0x9f8   : > { %v15111_v9 = vpop.f32.mrf.mxu3 }
 0x9f9   : > { %v7216_v49 = vmax.f32 %v7067_v41, 0.0 }
 0x9fa   : > { %v7095_v3 = vpop.f32.mrf.mxu1 }
 0x9fb   : > { %v7248_v23 = vpack.c.bf16 %v7216_v49, %v7208_v52  ;;  %v7096_v6 = vadd.f32 %v7095_v3, %v17151_v47  ;;  %v7201_v47 = vmax.f32 %v7091_v11, 0.0  ;;  %v17244_v52 = vld [vmem:[#allocation117_spill] sm:$0xff]  ;;  %v17245_v49 = vld [vmem:[#allocation84_spill] sm:$0xff]  ;;  %v17246_v11 = vld [vmem:[#allocation154_spill] sm:$0xff] }
 0x9fc   : > { %v7114_v0 = vpop.f32.mrf.mxu2 }
 0x9fd   : > { %v7217_v63 = vmax.f32 %v7096_v6, 0.0  ;;  %7308 = vmatpush.bf16.msrb.mxu0 %v7248_v23  ;;  %v7241_v55 = vpack.c.bf16 %v7201_v47, %v7193_v50  ;;  %v17250_v47 = vld [vmem:[#allocation118_spill] sm:$0xff] }
 0x9ff   : > { %v7249_v21 = vpack.c.bf16 %v7217_v63, %v7209_v34 }
 0xa00   : > { %v7143_v32 = vpop.f32.mrf.mxu3 }
 0xa01   : > { %7321 = vmatpush.bf16.msrb.mxu1 %v7249_v21  ;;  %7309 = vmatpush.bf16.msrb.mxu0 %v7240_v14  ;;  %v7142_v21 = vadd.f32 %v15111_v9, %v17250_v47  ;;  %v15183_v47 = vld [vmem:[%s9376_s22 + $0xe0] sm:$0xff] }
 0xa04   : > { %v7117_v58 = vpop.f32.mrf.mxu2 }
 0xa05   : > { %7322 = vmatpush.bf16.msrb.mxu1 %v7241_v55  ;;  %7310 = vmatpush.bf16.msrb.mxu0 %v7232_v61  ;;  %v7118_v38 = vadd.f32 %v7117_v58, %v17245_v49  ;;  %v7178_v55 = vmax.f32 %v7113_v24, 0.0  ;;  %v17254_v58 = vld [vmem:[#allocation159_spill] sm:$0xff] }
 0xa06   : > { %v7137_v9 = vadd.f32 %v15093_v44, %v17254_v58  ;;  %v17255_v44 = vld [vmem:[#allocation190_spill] sm:$0xff]  ;;  %v7724_v58 = vunpack.c.l.bf16 %v15186_v22 }
 0xa07   : > { %v7194_v14 = vmax.f32 %v7118_v38, 0.0  ;;  %v17261_v38 = vld [vmem:[#allocation214_spill] sm:$0xff] }
 0xa08   : > { %v7146_v56 = vpop.f32.mrf.mxu3  ;;  %v7163_v60 = vmax.f32 %v7137_v9, 0.0  ;;  %v17266_v9 = vld [vmem:[#allocation70_spill] sm:$0xff] }
 0xa09   : > { %7323 = vmatpush.bf16.msrb.mxu1 %v7233_v33  ;;  %7311 = vmatpush.bf16.msrb.mxu0 %v7224_v53  ;;  %v7147_v23 = vadd.f32 %v7146_v56, %v17246_v11  ;;  %v7179_v56 = vmax.f32 %v7142_v21, 0.0  ;;  %v7162_v53 = vmax.f32 %v7108_v2, 0.0 }
 0xa0b   : > { %v7195_v18 = vmax.f32 %v7147_v23, 0.0  ;;  %v17262_v23 = vld [vmem:[#allocation151_spill] sm:$0xff] }
 0xa0c   : > { %v7119_v19 = vpop.f32.mrf.mxu2  ;;  %8755 = vmatmul.msk.bf16.vlgmr.msrb.gmra.mxu0 %vm5531_vm7, %v14818_v36 }
 0xa0d   : > { %7324 = vmatpush.bf16.msrb.mxu1 %v7225_v5  ;;  %v7120_v39 = vadd.f32 %v7119_v19, %v17090_v13  ;;  %v17248_v13 = vld [vmem:[#allocation137_spill] sm:$0xff] }
 0xa0e   : > { %v7144_v34 = vadd.f32 %v7143_v32, %v17248_v13  ;;  %v7139_v32 = vadd.f32 %v15103_v45, %v17252_v43  ;;  %v7226_v45 = vpack.c.bf16 %v7170_v25, %v7162_v53  ;;  %v17256_v19 = vld [vmem:[#allocation213_spill] sm:$0xff]  ;;  %v17270_v53 = vld [vmem:[#allocation66_spill] sm:$0xff] }
 0xa0f   : > { %v7202_v7 = vmax.f32 %v7120_v39, 0.0 }
 0xa10   : > { %v7148_v16 = vpop.f32.mrf.mxu3  ;;  %8756 = vmatmul.msk.bf16.vlgmr.msrb.gmra.mxu1 %vm5531_vm7, %v14818_v36  ;;  %v7187_v8 = vmax.f32 %v7144_v34, 0.0  ;;  %v7171_v20 = vmax.f32 %v7139_v32, 0.0 }
 0xa11   : > { %v7149_v42 = vadd.f32 %v7148_v16, %v17243_v40  ;;  %v7242_v50 = vpack.c.bf16 %v7202_v7, %v7194_v14  ;;  %v15180_v14 = vld [vmem:[%s9376_s22 + $0x60] sm:$0xff] }
 0xa12   : > { %v7235_v26 = vpack.c.bf16 %v7187_v8, %v7179_v56  ;;  %v7227_v33 = vpack.c.bf16 %v7171_v20, %v7163_v60  ;;  %v7676_v32 = vunpack.c.l.bf16 %v15180_v14  ;;  %v7700_v8 = vunpack.c.l.bf16 %v15183_v47 }
 0xa13   : > { %v7203_v63 = vmax.f32 %v7149_v42, 0.0  ;;  %v17267_v56 = vunpack.c.l.bf16 %v17266_v9  ;;  %v17271_v60 = vunpack.c.l.bf16 %v17270_v53 }
 0xa14   : > { %v7122_v31 = vpop.f32.mrf.mxu2 }
 0xa15   : > { %v7123_v10 = vadd.f32 %v7122_v31, %v14477_v48  ;;  %v7243_v61 = vpack.c.bf16 %v7203_v63, %v7195_v18  ;;  %v17257_v31 = vld [vmem:[#allocation81_spill] sm:$0xff] }
 0xa17   : > { %v7210_v3 = vmax.f32 %v7123_v10, 0.0 }
 0xa18   : > { %v7151_v27 = vpop.f32.mrf.mxu3 }
 0xa19   : > { %v7152_v37 = vadd.f32 %v7151_v27, %v14479_v1  ;;  %v7115_v1 = vadd.f32 %v7114_v0, %v17247_v62  ;;  %v17258_v27 = vmax.f32 %v17257_v31, 0.0  ;;  %v17264_v62 = vld [vmem:[#allocation149_spill] sm:$0xff]  ;;  %v17276_v31 = vld [vmem:[#allocation98_spill] sm:$0xff] }
 0xa1b   : > { %v7211_v6 = vmax.f32 %v7152_v37, 0.0  ;;  %v7186_v0 = vmax.f32 %v7115_v1, 0.0  ;;  %v17259_v37 = vld [vmem:[#allocation212_spill] sm:$0xff]  ;;  %v17265_v1 = vmax.f32 %v17264_v62, 0.0 }
 0xa1c   : > { %v7124_v54 = vpop.f32.mrf.mxu2 }
 0xa1d   : > { %v7125_v29 = vadd.f32 %v7124_v54, %v17242_v4  ;;  %v7234_v57 = vpack.c.bf16 %v7186_v0, %v7178_v55  ;;  %v17260_v54 = vmax.f32 %v17259_v37, 0.0  ;;  %v17278_v37 = vld [vmem:[#allocation123_spill] sm:$0xff] }
 0xa1f   : > { %v7218_v17 = vmax.f32 %v7125_v29, 0.0 }
 0xa20   : > { %v7153_v41 = vpop.f32.mrf.mxu3 }
 0xa21   : > { %v7154_v12 = vadd.f32 %v7153_v41, %v17244_v52  ;;  %v7250_v51 = vpack.c.bf16 %v7218_v17, %v7210_v3 }
 0xa23   : > { %v7219_v48 = vmax.f32 %v7154_v12, 0.0  ;;  %7334 = vmatpush.bf16.msrb.mxu2 %v7250_v51 }
 0xa25   : > { %v7251_v28 = vpack.c.bf16 %v7219_v48, %v7211_v6  ;;  %v17263_v6 = vmax.f32 %v17262_v23, 0.0 }
 0xa27   : > { %7347 = vmatpush.bf16.msrb.mxu3 %v7251_v28  ;;  %7335 = vmatpush.bf16.msrb.mxu2 %v7242_v50 }
 0xa2b   : > { %7348 = vmatpush.bf16.msrb.mxu3 %v7243_v61  ;;  %7336 = vmatpush.bf16.msrb.mxu2 %v7234_v57  ;;  %v17268_v57 = vld [vmem:[#allocation76_spill] sm:$0xff] }
 0xa2c   : > { %v17269_v20 = vunpack.c.l.bf16 %v17268_v57 }
 0xa2f   : > { %7349 = vmatpush.bf16.msrb.mxu3 %v7235_v26  ;;  %7337 = vmatpush.bf16.msrb.mxu2 %v7226_v45 }
 0xa32   : > { %8757 = vmatmul.msk.bf16.vlgmr.msrb.gmra.mxu2 %vm5531_vm7, %v14818_v36 }
 0xa33   : > { %7350 = vmatpush.bf16.msrb.mxu3 %v7227_v33  ;;  %v17272_v33 = vld [vmem:[#allocation85_spill] sm:$0xff] }
 0xa36   : > { %8758 = vmatmul.msk.bf16.vlgmr.msrb.gmra.mxu3 %vm5531_vm7, %v14818_v36 }
 0xa49   : > { %v7261_v59 = vpop.f32.mrf.mxu0 }
 0xa4a   : > { %v7262_v46 = vadd.f32 %v7261_v59, %v17255_v44  ;;  %v17273_v59 = vunpack.c.l.bf16 %v17272_v33 }
 0xa4c   : > { %v7356_v5 = vmax.f32 %v7262_v46, 0.0 }
 0xa4d   : > { %v7274_v36 = vpop.f32.mrf.mxu1 }
 0xa4e   : > { %v7372_v16 = vmax.f32 %v17256_v19, %v7356_v5  ;;  %v7275_v52 = vadd.f32 %v7274_v36, %v17255_v44 }
 0xa50   : > { %v7380_v10 = vsub.f32 %v17258_v27, %v7372_v16  ;;  %v7404_v39 = vsub.f32 %v17260_v54, %v7372_v16  ;;  %v7428_v4 = vsub.f32 %v7356_v5, %v7372_v16  ;;  %v7357_v12 = vmax.f32 %v7275_v52, 0.0  ;;  %v17274_v5 = vld [vmem:[#allocation92_spill] sm:$0xff] }
 0xa51   : > { %v7263_v29 = vpop.f32.mrf.mxu0  ;;  %v17275_v19 = vunpack.c.l.bf16 %v17274_v5  ;;  %v17277_v27 = vunpack.c.l.bf16 %v17276_v31  ;;  %v17279_v54 = vunpack.c.l.bf16 %v17278_v37 }
 0xa52   : > { %v7388_v41 = vmul.f32 1.442695, %v7380_v10  ;;  %v7412_v40 = vmul.f32 1.442695, %v7404_v39  ;;  %v7436_v42 = vmul.f32 1.442695, %v7428_v4  ;;  %v7373_v3 = vmax.f32 %v17261_v38, %v7357_v12 }
 0xa53   : > { %v17282_v38 = vld [vmem:[#allocation134_spill] sm:$0xff] }
 0xa54   : > { %9007 = vpow2.f32 %v7388_v41  ;;  %v7381_v48 = vsub.f32 %v17263_v6, %v7373_v3  ;;  %v7405_v7 = vsub.f32 %v17265_v1, %v7373_v3  ;;  %v7429_v15 = vsub.f32 %v7357_v12, %v7373_v3  ;;  %v17280_v41 = vld [vmem:[#allocation126_spill] sm:$0xff] }
 0xa55   : > { %9009 = vpow2.f32 %v7412_v40  ;;  %v7276_v13 = vpop.f32.mrf.mxu1  ;;  %v17281_v40 = vunpack.c.l.bf16 %v17280_v41  ;;  %v17283_v3 = vunpack.c.l.bf16 %v17282_v38 }
 0xa56   : > { %9011 = vpow2.f32 %v7436_v42  ;;  %v7390_v63 = vmul.f32 1.442695, %v7381_v48  ;;  %v7414_v28 = vmul.f32 1.442695, %v7405_v7  ;;  %v7438_v24 = vmul.f32 1.442695, %v7429_v15 }
 0xa5a   : > { %v9008_v49 = vpop.eup %9007 }
 0xa5b   : > { %v9010_v17 = vpop.eup %9009 }
 0xa5c   : > { %v7460_v11 = vadd.f32 %v9010_v17, %v9008_v49  ;;  %v9012_v51 = vpop.eup %9011 }
 0xa5e   : > { %v7468_v34 = vadd.f32 %v9012_v51, %v7460_v11 }
 0xa60   : > { %9013 = vrcp.f32 %v7468_v34 }
 0xa61   : > { %9015 = vpow2.f32 %v7390_v63 }
 0xa62   : > { %9017 = vpow2.f32 %v7414_v28 }
 0xa63   : > { %9019 = vpow2.f32 %v7438_v24 }
 0xa66   : > { %v9014_v21 = vpop.eup %9013 }
 0xa67   : > { %v9016_v18 = vpop.eup %9015  ;;  %v7484_v35 = vmul.f32 %v9014_v21, %v9008_v49  ;;  %v7492_v0 = vmul.f32 %v9014_v21, %v9010_v17  ;;  %v7500_v50 = vmul.f32 %v9014_v21, %v9012_v51 }
 0xa68   : > { %v9018_v43 = vpop.eup %9017 }
 0xa69   : > { %v7508_v61 = vperm.slane %v7484_v35, 0  ;;  %v7564_v30 = vperm.slane %v7492_v0, 0  ;;  %v7620_v2 = vperm.slane %v7500_v50, 0  ;;  %v7461_v55 = vadd.f32 %v9018_v43, %v9016_v18  ;;  %v9020_v4 = vpop.eup %9019 }
 0xa6a   : > { %v7677_v35 = vunpack.c.h.bf16 %v15180_v14  ;;  %v17288_v14 = vunpack.c.h.bf16 %v17272_v33 }
 0xa6b   : > { %v7516_v25 = vmul.f32 %v7508_v61, %v17267_v56  ;;  %v7524_v26 = vmul.f32 %v7508_v61, %v17269_v20  ;;  %v7532_v45 = vmul.f32 %v7508_v61, %v17271_v60  ;;  %v7572_v46 = vmul.f32 %v7564_v30, %v17273_v59 }
 0xa6c   : > { %v7580_v16 = vmul.f32 %v7564_v30, %v17275_v19  ;;  %v7588_v10 = vmul.f32 %v7564_v30, %v17277_v27  ;;  %v7628_v39 = vmul.f32 %v7620_v2, %v17279_v54  ;;  %v7636_v42 = vmul.f32 %v7620_v2, %v17281_v40  ;;  %v17294_v54 = vld [vmem:[#allocation73_spill] sm:$0xff] }
 0xa6d   : > { %v7596_v29 = vadd.f32 %v7572_v46, %v7516_v25  ;;  %v7684_v36 = vmul.f32 %v7676_v32, %v7508_v61  ;;  %v7708_v52 = vmul.f32 %v7700_v8, %v7564_v30  ;;  %v7644_v17 = vmul.f32 %v7620_v2, %v17283_v3  ;;  %v17284_v30 = vld [vmem:[#allocation121_spill] sm:$0xff] }
 0xa6e   : > { %v7604_v12 = vadd.f32 %v7580_v16, %v7524_v26  ;;  %v7612_v49 = vadd.f32 %v7588_v10, %v7532_v45  ;;  %v7469_v11 = vadd.f32 %v9020_v4, %v7461_v55  ;;  %v7732_v48 = vmul.f32 %v7724_v58, %v7620_v2 }
 0xa6f   : > { %v7652_v23 = vadd.f32 %v7628_v39, %v7596_v29  ;;  %v7716_v6 = vadd.f32 %v7708_v52, %v7684_v36  ;;  %v7701_v8 = vunpack.c.h.bf16 %v15183_v47  ;;  %v7725_v61 = vunpack.c.h.bf16 %v15186_v22 }
 0xa70   : > { %v7660_v62 = vadd.f32 %v7636_v42, %v7604_v12  ;;  %v7668_v1 = vadd.f32 %v7644_v17, %v7612_v49  ;;  %9021 = vrcp.f32 %v7469_v11  ;;  %v17285_v55 = vunpack.c.h.bf16 %v17266_v9 }
 0xa71   : > { %v7740_v7 = vadd.f32 %v7732_v48, %v7716_v6  ;;  %7756 = vst [vmem:[%s13786_s0 + $0x40] sm:$0xff] %v7652_v23  ;;  %v17286_v56 = vunpack.c.h.bf16 %v17268_v57  ;;  %v17289_v26 = vunpack.c.h.bf16 %v17274_v5  ;;  %v17290_v47 = vunpack.c.h.bf16 %v17276_v31 }
 0xa72   : > { %7764 = vst [vmem:[%s13786_s0 + $0x80] sm:$0xff] %v7660_v62  ;;  %v17291_v45 = vunpack.c.h.bf16 %v17278_v37  ;;  %v17292_v9 = vunpack.c.h.bf16 %v17280_v41  ;;  %v17295_v39 = vmax.f32 %v17294_v54, 0.0  ;;  %v17296_v41 = vld [vmem:[#allocation97_spill] sm:$0xff] }
 0xa73   : > { %7772 = vst [vmem:[%s13786_s0 + $0xc0] sm:$0x7] %v7668_v1  ;;  %v7788_v51 = vrot.slane %v7740_v7, 5  ;;  %v17297_v40 = vmax.f32 %v17296_v41, 0.0  ;;  %v17298_v1 = vld [vmem:[#allocation217_spill] sm:$0xff] }
 0xa75   : > { %v7287_v13 = vpop.f32.mrf.mxu2  ;;  %7804 = vst [vmem:[%s13786_s0 + $0xc0] sm:$0x38] %v7788_v51 }
 0xa76   : > { %v7288_v34 = vadd.f32 %v7287_v13, %v17255_v44  ;;  %v9022_v63 = vpop.eup %9021 }
 0xa77   : > { %v7485_v28 = vmul.f32 %v9022_v63, %v9016_v18  ;;  %v7493_v15 = vmul.f32 %v9022_v63, %v9018_v43  ;;  %v7501_v24 = vmul.f32 %v9022_v63, %v9020_v4  ;;  %v17287_v43 = vunpack.c.h.bf16 %v17270_v53 }
 0xa78   : > { %v7358_v21 = vmax.f32 %v7288_v34, 0.0  ;;  %v17293_v53 = vunpack.c.h.bf16 %v17282_v38  ;;  %v17299_v34 = vld [vmem:[#allocation216_spill] sm:$0xff] }
 0xa79   : > { %v7509_v0 = vperm.slane %v7485_v28, 0  ;;  %v7565_v50 = vperm.slane %v7493_v15, 0  ;;  %v7621_v32 = vperm.slane %v7501_v24, 0  ;;  %v7300_v23 = vpop.f32.mrf.mxu3  ;;  %v17300_v63 = vmax.f32 %v17299_v34, 0.0  ;;  %v17301_v15 = vld [vmem:[#allocation215_spill] sm:$0xff] }
 0xa7a   : > { %v7374_v2 = vmax.f32 %v17284_v30, %v7358_v21  ;;  %v7301_v6 = vadd.f32 %v7300_v23, %v17255_v44  ;;  %v17302_v24 = vmax.f32 %v17301_v15, 0.0  ;;  %v17318_v23 = vld [vmem:[#allocation132_spill] sm:$0xff] }
 0xa7b   : > { %v7517_v58 = vmul.f32 %v7509_v0, %v17285_v55  ;;  %v7525_v18 = vmul.f32 %v7509_v0, %v17286_v56  ;;  %v7533_v25 = vmul.f32 %v7509_v0, %v17287_v43  ;;  %v7573_v20 = vmul.f32 %v7565_v50, %v17288_v14  ;;  %v15254_v55 = vld [vmem:[%s9376_s22 + $0xe8] sm:$0xff] }
 0xa7c   : > { %v7581_v60 = vmul.f32 %v7565_v50, %v17289_v26  ;;  %v7589_v22 = vmul.f32 %v7565_v50, %v17290_v47  ;;  %v7629_v59 = vmul.f32 %v7621_v32, %v17291_v45  ;;  %v7637_v46 = vmul.f32 %v7621_v32, %v17292_v9 }
 0xa7d   : > { %v7289_v57 = vpop.f32.mrf.mxu2  ;;  %v7597_v19 = vadd.f32 %v7573_v20, %v7517_v58  ;;  %v7645_v16 = vmul.f32 %v7621_v32, %v17293_v53  ;;  %v7685_v33 = vmul.f32 %v7677_v35, %v7509_v0  ;;  %v7709_v27 = vmul.f32 %v7701_v8, %v7565_v50  ;;  %v17303_v53 = vld [vmem:[#allocation219_spill] sm:$0xff] }
 0xa7e   : > { %v7605_v5 = vadd.f32 %v7581_v60, %v7525_v18  ;;  %v7613_v10 = vadd.f32 %v7589_v22, %v7533_v25  ;;  %v7733_v31 = vmul.f32 %v7725_v61, %v7621_v32  ;;  %v7382_v37 = vsub.f32 %v17295_v39, %v7374_v2  ;;  %v15258_v25 = vld [vmem:[%s9376_s22 + $0x168] sm:$0xff]  ;;  %v17308_v39 = vld [vmem:[#allocation67_spill] sm:$0xff] }
 0xa7f   : > { %v7653_v4 = vadd.f32 %v7629_v59, %v7597_v19  ;;  %v7717_v29 = vadd.f32 %v7709_v27, %v7685_v33  ;;  %v7406_v42 = vsub.f32 %v17297_v40, %v7374_v2  ;;  %v7430_v36 = vsub.f32 %v7358_v21, %v7374_v2  ;;  %v15251_v2 = vld [vmem:[%s9376_s22 + $0x68] sm:$0xff]  ;;  %v17304_v33 = vld [vmem:[#allocation64_spill] sm:$0xff] }
 0xa80   : > { %v7661_v52 = vadd.f32 %v7637_v46, %v7605_v5  ;;  %v7669_v12 = vadd.f32 %v7645_v16, %v7613_v10  ;;  %v7392_v49 = vmul.f32 1.442695, %v7382_v37  ;;  %v7359_v48 = vmax.f32 %v7301_v6, 0.0  ;;  %v17306_v10 = vld [vmem:[#allocation65_spill] sm:$0xff] }
 0xa81   : > { %v7741_v38 = vadd.f32 %v7733_v31, %v7717_v29  ;;  %7757 = vst [vmem:[%s13786_s0 + $0x48] sm:$0xff] %v7653_v4  ;;  %v7416_v3 = vmul.f32 1.442695, %v7406_v42  ;;  %v7440_v17 = vmul.f32 1.442695, %v7430_v36  ;;  %v7302_v0 = vpop.f32.mrf.mxu3  ;;  %v7678_v47 = vunpack.c.l.bf16 %v15251_v2  ;;  %v17310_v29 = vld [vmem:[#allocation89_spill] sm:$0xff] }
 0xa82   : > { %7765 = vst [vmem:[%s13786_s0 + $0x88] sm:$0xff] %v7661_v52  ;;  %9023 = vpow2.f32 %v7392_v49  ;;  %v7375_v7 = vmax.f32 %v17298_v1, %v7359_v48  ;;  %v7702_v22 = vunpack.c.l.bf16 %v15254_v55  ;;  %v7726_v19 = vunpack.c.l.bf16 %v15258_v25  ;;  %v17312_v42 = vld [vmem:[#allocation96_spill] sm:$0xff] }
 0xa83   : > { %7773 = vst [vmem:[%s13786_s0 + $0xc8] sm:$0x7] %v7669_v12  ;;  %v7789_v11 = vrot.slane %v7741_v38, 5  ;;  %9025 = vpow2.f32 %v7416_v3  ;;  %v17305_v27 = vunpack.c.l.bf16 %v17304_v33  ;;  %v17307_v31 = vunpack.c.l.bf16 %v17306_v10  ;;  %v17314_v12 = vld [vmem:[#allocation101_spill] sm:$0xff] }
 0xa84   : > { %9027 = vpow2.f32 %v7440_v17  ;;  %v7383_v28 = vsub.f32 %v17300_v63, %v7375_v7  ;;  %v7407_v21 = vsub.f32 %v17302_v24, %v7375_v7  ;;  %v7431_v61 = vsub.f32 %v7359_v48, %v7375_v7  ;;  %v17316_v3 = vld [vmem:[#allocation125_spill] sm:$0xff]  ;;  %v17320_v7 = vld [vmem:[#allocation143_spill] sm:$0xff] }
 0xa85   : > { %7805 = vst [vmem:[%s13786_s0 + $0xc8] sm:$0x38] %v7789_v11  ;;  %v17309_v37 = vunpack.c.l.bf16 %v17308_v39  ;;  %v17311_v41 = vunpack.c.l.bf16 %v17310_v29  ;;  %v17313_v36 = vunpack.c.l.bf16 %v17312_v42  ;;  %v17315_v49 = vunpack.c.l.bf16 %v17314_v12 }
 0xa86   : > { %v7394_v32 = vmul.f32 1.442695, %v7383_v28  ;;  %v7418_v8 = vmul.f32 1.442695, %v7407_v21  ;;  %v7442_v30 = vmul.f32 1.442695, %v7431_v61  ;;  %v17317_v17 = vunpack.c.l.bf16 %v17316_v3 }
 0xa87   : > { %v17319_v6 = vunpack.c.l.bf16 %v17318_v23 }
 0xa88   : > { %v9024_v62 = vpop.eup %9023 }
 0xa89   : > { %v9026_v51 = vpop.eup %9025  ;;  %v7313_v58 = vpop.f32.mrf.mxu0 }
 0xa8a   : > { %v7462_v13 = vadd.f32 %v9026_v51, %v9024_v62  ;;  %v9028_v35 = vpop.eup %9027  ;;  %v7314_v18 = vadd.f32 %v7313_v58, %v17255_v44 }
 0xa8c   : > { %v7470_v50 = vadd.f32 %v9028_v35, %v7462_v13  ;;  %v7360_v45 = vmax.f32 %v7314_v18, 0.0 }
 0xa8e   : > { %9029 = vrcp.f32 %v7470_v50  ;;  %v7376_v16 = vmax.f32 %v17303_v53, %v7360_v45 }
 0xa8f   : > { %9031 = vpow2.f32 %v7394_v32  ;;  %v17322_v32 = vld [vmem:[#allocation172_spill] sm:$0xff] }
 0xa90   : > { %9033 = vpow2.f32 %v7418_v8  ;;  %v17323_v8 = vmax.f32 %v17322_v32, 0.0 }
 0xa91   : > { %9035 = vpow2.f32 %v7442_v30  ;;  %v7315_v28 = vpop.f32.mrf.mxu0  ;;  %v17324_v30 = vld [vmem:[#allocation218_spill] sm:$0xff] }
 0xa92   : > { %v7384_v61 = vsub.f32 %v17323_v8, %v7376_v16  ;;  %v17325_v58 = vmax.f32 %v17324_v30, 0.0 }
 0xa94   : > { %v9030_v56 = vpop.eup %9029 }
 0xa95   : > { %v9032_v43 = vpop.eup %9031  ;;  %v7486_v14 = vmul.f32 %v9030_v56, %v9024_v62  ;;  %v7494_v20 = vmul.f32 %v9030_v56, %v9026_v51  ;;  %v7502_v26 = vmul.f32 %v9030_v56, %v9028_v35  ;;  %v17321_v51 = vunpack.c.l.bf16 %v17320_v7 }
 0xa96   : > { %v9034_v60 = vpop.eup %9033  ;;  %v7408_v56 = vsub.f32 %v17325_v58, %v7376_v16  ;;  %v17338_v58 = vld [vmem:[#allocation86_spill] sm:$0xff] }
 0xa97   : > { %v7510_v59 = vperm.slane %v7486_v14, 0  ;;  %v7566_v9 = vperm.slane %v7494_v20, 0  ;;  %v7622_v46 = vperm.slane %v7502_v26, 0  ;;  %v7463_v57 = vadd.f32 %v9034_v60, %v9032_v43  ;;  %v9036_v62 = vpop.eup %9035 }
 0xa98   : > { %v7396_v26 = vmul.f32 1.442695, %v7384_v61 }
 0xa99   : > { %v7518_v5 = vmul.f32 %v7510_v59, %v17305_v27  ;;  %v7526_v54 = vmul.f32 %v7510_v59, %v17307_v31  ;;  %v7534_v4 = vmul.f32 %v7510_v59, %v17309_v37  ;;  %v7574_v40 = vmul.f32 %v7566_v9, %v17311_v41  ;;  %v7326_v27 = vpop.f32.mrf.mxu1 }
 0xa9a   : > { %v7582_v52 = vmul.f32 %v7566_v9, %v17313_v36  ;;  %v7590_v38 = vmul.f32 %v7566_v9, %v17315_v49  ;;  %v7630_v11 = vmul.f32 %v7622_v46, %v17317_v17  ;;  %v7638_v48 = vmul.f32 %v7622_v46, %v17319_v6 }
 0xa9b   : > { %v7598_v1 = vadd.f32 %v7574_v40, %v7518_v5  ;;  %v7646_v13 = vmul.f32 %v7622_v46, %v17321_v51  ;;  %v7686_v34 = vmul.f32 %v7678_v47, %v7510_v59  ;;  %v7710_v63 = vmul.f32 %v7702_v22, %v7566_v9 }
 0xa9c   : > { %v7606_v15 = vadd.f32 %v7582_v52, %v7526_v54  ;;  %v7614_v24 = vadd.f32 %v7590_v38, %v7534_v4  ;;  %v7734_v21 = vmul.f32 %v7726_v19, %v7622_v46  ;;  %v7471_v35 = vadd.f32 %v9036_v62, %v7463_v57 }
 0xa9d   : > { %v7654_v0 = vadd.f32 %v7630_v11, %v7598_v1  ;;  %v7718_v50 = vadd.f32 %v7710_v63, %v7686_v34  ;;  %v7420_v47 = vmul.f32 1.442695, %v7408_v56  ;;  %v7432_v22 = vsub.f32 %v7360_v45, %v7376_v16 }
 0xa9e   : > { %v7662_v18 = vadd.f32 %v7638_v48, %v7606_v15  ;;  %v7670_v14 = vadd.f32 %v7646_v13, %v7614_v24  ;;  %9037 = vrcp.f32 %v7471_v35  ;;  %v7679_v5 = vunpack.c.h.bf16 %v15251_v2 }
 0xa9f   : > { %v7742_v20 = vadd.f32 %v7734_v21, %v7718_v50  ;;  %7758 = vst [vmem:[%s13786_s0 + $0x50] sm:$0xff] %v7654_v0  ;;  %9039 = vpow2.f32 %v7396_v26  ;;  %v7444_v9 = vmul.f32 1.442695, %v7432_v22  ;;  %v7703_v31 = vunpack.c.h.bf16 %v15254_v55  ;;  %v17335_v21 = vld [vmem:[#allocation103_spill] sm:$0xff]  ;;  %v15322_v22 = vld [vmem:[%s9376_s22 + $0x70] sm:$0xff] }
 0xaa0   : > { %7766 = vst [vmem:[%s13786_s0 + $0x90] sm:$0xff] %v7662_v18  ;;  %9041 = vpow2.f32 %v7420_v47  ;;  %v7327_v54 = vadd.f32 %v7326_v27, %v17255_v44  ;;  %v7727_v41 = vunpack.c.h.bf16 %v15258_v25  ;;  %v17327_v52 = vunpack.c.h.bf16 %v17306_v10 }
 0xaa1   : > { %7774 = vst [vmem:[%s13786_s0 + $0xd0] sm:$0x7] %v7670_v14  ;;  %v7790_v59 = vrot.slane %v7742_v20, 5  ;;  %9043 = vpow2.f32 %v7444_v9  ;;  %v17328_v2 = vunpack.c.h.bf16 %v17308_v39  ;;  %v17329_v38 = vunpack.c.h.bf16 %v17310_v29 }
 0xaa2   : > { %v7361_v40 = vmax.f32 %v7327_v54, 0.0  ;;  %v17330_v11 = vunpack.c.h.bf16 %v17312_v42  ;;  %v17331_v48 = vunpack.c.h.bf16 %v17314_v12  ;;  %v17333_v51 = vunpack.c.h.bf16 %v17318_v23  ;;  %v7328_v23 = vpop.f32.mrf.mxu1 }
 0xaa3   : > { %7806 = vst [vmem:[%s13786_s0 + $0xd0] sm:$0x38] %v7790_v59  ;;  %v17334_v29 = vunpack.c.h.bf16 %v17320_v7  ;;  %v17336_v7 = vld [vmem:[#allocation124_spill] sm:$0xff]  ;;  %v17339_v56 = vmax.f32 %v17338_v58, 0.0  ;;  %v15325_v59 = vld [vmem:[%s9376_s22 + $0xf0] sm:$0xff]  ;;  %v17358_v58 = vld [vmem:[#allocation161_spill] sm:$0xff] }
 0xaa4   : > { %v9038_v46 = vpop.eup %9037  ;;  %v7377_v35 = vmax.f32 %v17335_v21, %v7361_v40  ;;  %v17337_v61 = vmax.f32 %v17336_v7, 0.0  ;;  %v7704_v54 = vunpack.c.l.bf16 %v15325_v59  ;;  %v17356_v23 = vld [vmem:[#allocation166_spill] sm:$0xff] }
 0xaa5   : > { %v7487_v57 = vmul.f32 %v9038_v46, %v9032_v43  ;;  %v7495_v19 = vmul.f32 %v9038_v46, %v9034_v60  ;;  %v7503_v53 = vmul.f32 %v9038_v46, %v9036_v62  ;;  %v9040_v4 = vpop.eup %9039  ;;  %v17326_v43 = vunpack.c.h.bf16 %v17304_v33 }
 0xaa6   : > { %v9042_v36 = vpop.eup %9041  ;;  %v17332_v62 = vunpack.c.h.bf16 %v17316_v3  ;;  %v7385_v30 = vsub.f32 %v17337_v61, %v7377_v35  ;;  %v7409_v18 = vsub.f32 %v17339_v56, %v7377_v35  ;;  %v7433_v26 = vsub.f32 %v7361_v40, %v7377_v35 }
 0xaa7   : > { %v7511_v37 = vperm.slane %v7487_v57, 0  ;;  %v7567_v45 = vperm.slane %v7495_v19, 0  ;;  %v7623_v16 = vperm.slane %v7503_v53, 0  ;;  %v7464_v28 = vadd.f32 %v9042_v36, %v9040_v4  ;;  %v9044_v12 = vpop.eup %9043  ;;  %v15328_v57 = vld [vmem:[%s9376_s22 + $0x170] sm:$0xff] }
 0xaa8   : > { %v7398_v20 = vmul.f32 1.442695, %v7385_v30  ;;  %v7422_v47 = vmul.f32 1.442695, %v7409_v18  ;;  %v7446_v9 = vmul.f32 1.442695, %v7433_v26 }
 0xaa9   : > { %v7519_v60 = vmul.f32 %v7511_v37, %v17326_v43  ;;  %v7527_v49 = vmul.f32 %v7511_v37, %v17327_v52  ;;  %v7535_v55 = vmul.f32 %v7511_v37, %v17328_v2  ;;  %v7575_v17 = vmul.f32 %v7567_v45, %v17329_v38  ;;  %v17342_v2 = vld [vmem:[#allocation71_spill] sm:$0xff] }
 0xaaa   : > { %v7583_v6 = vmul.f32 %v7567_v45, %v17330_v11  ;;  %v7591_v25 = vmul.f32 %v7567_v45, %v17331_v48  ;;  %v7631_v1 = vmul.f32 %v7623_v16, %v17332_v62  ;;  %v7639_v10 = vmul.f32 %v7623_v16, %v17333_v51  ;;  %v17346_v48 = vld [vmem:[#allocation104_spill] sm:$0xff] }
 0xaab   : > { %v7599_v33 = vadd.f32 %v7575_v17, %v7519_v60  ;;  %v7687_v13 = vmul.f32 %v7679_v5, %v7511_v37  ;;  %v7711_v39 = vmul.f32 %v7703_v31, %v7567_v45  ;;  %v7647_v42 = vmul.f32 %v7623_v16, %v17334_v29  ;;  %v17344_v17 = vld [vmem:[#allocation78_spill] sm:$0xff] }
 0xaac   : > { %v7607_v34 = vadd.f32 %v7583_v6, %v7527_v49  ;;  %v7615_v63 = vadd.f32 %v7591_v25, %v7535_v55  ;;  %v7735_v3 = vmul.f32 %v7727_v41, %v7623_v16  ;;  %v7472_v32 = vadd.f32 %v9044_v12, %v7464_v28  ;;  %v17340_v49 = vld [vmem:[#allocation68_spill] sm:$0xff]  ;;  %v17354_v28 = vld [vmem:[#allocation158_spill] sm:$0xff] }
 0xaad   : > { %v7655_v15 = vadd.f32 %v7631_v1, %v7599_v33  ;;  %v7719_v24 = vadd.f32 %v7711_v39, %v7687_v13  ;;  %v7680_v31 = vunpack.c.l.bf16 %v15322_v22  ;;  %v7728_v43 = vunpack.c.l.bf16 %v15328_v57  ;;  %v17348_v1 = vld [vmem:[#allocation111_spill] sm:$0xff] }
 0xaae   : > { %v7663_v0 = vadd.f32 %v7639_v10, %v7607_v34  ;;  %v7671_v50 = vadd.f32 %v7647_v42, %v7615_v63  ;;  %9045 = vrcp.f32 %v7472_v32  ;;  %v17343_v55 = vunpack.c.l.bf16 %v17342_v2  ;;  %v17350_v10 = vld [vmem:[#allocation116_spill] sm:$0xff] }
 0xaaf   : > { %v7743_v8 = vadd.f32 %v7735_v3, %v7719_v24  ;;  %7759 = vst [vmem:[%s13786_s0 + $0x58] sm:$0xff] %v7655_v15  ;;  %9047 = vpow2.f32 %v7398_v20  ;;  %v17345_v11 = vunpack.c.l.bf16 %v17344_v17  ;;  %v17347_v25 = vunpack.c.l.bf16 %v17346_v48  ;;  %v17352_v34 = vld [vmem:[#allocation148_spill] sm:$0xff] }
 0xab0   : > { %7767 = vst [vmem:[%s13786_s0 + $0x98] sm:$0xff] %v7663_v0  ;;  %9049 = vpow2.f32 %v7422_v47  ;;  %v17349_v33 = vunpack.c.l.bf16 %v17348_v1  ;;  %v17351_v13 = vunpack.c.l.bf16 %v17350_v10  ;;  %v17353_v63 = vunpack.c.l.bf16 %v17352_v34 }
 0xab1   : > { %7775 = vst [vmem:[%s13786_s0 + $0xd8] sm:$0x7] %v7671_v50  ;;  %v7791_v14 = vrot.slane %v7743_v8, 5  ;;  %9051 = vpow2.f32 %v7446_v9  ;;  %v17357_v0 = vunpack.c.l.bf16 %v17356_v23  ;;  %v17359_v9 = vld [vmem:[#allocation220_spill] sm:$0xff] }
 0xab3   : > { %7807 = vst [vmem:[%s13786_s0 + $0xd8] sm:$0x38] %v7791_v14 }
 0xab4   : > { %v9046_v46 = vpop.eup %9045 }
 0xab5   : > { %v7488_v19 = vmul.f32 %v9046_v46, %v9040_v4  ;;  %v7496_v53 = vmul.f32 %v9046_v46, %v9042_v36  ;;  %v7504_v27 = vmul.f32 %v9046_v46, %v9044_v12  ;;  %v7339_v5 = vpop.f32.mrf.mxu2  ;;  %v9048_v40 = vpop.eup %9047  ;;  %v17341_v4 = vunpack.c.l.bf16 %v17340_v49 }
 0xab6   : > { %v7340_v37 = vadd.f32 %v7339_v5, %v17255_v44  ;;  %v9050_v52 = vpop.eup %9049  ;;  %v17355_v12 = vunpack.c.l.bf16 %v17354_v28  ;;  %v17360_v46 = vmax.f32 %v17359_v9, 0.0  ;;  %v17375_v9 = vld [vmem:[#allocation156_spill] sm:$0xff] }
 0xab7   : > { %v7512_v45 = vperm.slane %v7488_v19, 0  ;;  %v7568_v16 = vperm.slane %v7496_v53, 0  ;;  %v7624_v41 = vperm.slane %v7504_v27, 0  ;;  %v7465_v32 = vadd.f32 %v9050_v52, %v9048_v40  ;;  %v9052_v8 = vpop.eup %9051  ;;  %v17361_v53 = vld [vmem:[#allocation221_spill] sm:$0xff] }
 0xab8   : > { %v7362_v60 = vmax.f32 %v7340_v37, 0.0  ;;  %v17362_v27 = vmax.f32 %v17361_v53, 0.0 }
 0xab9   : > { %v7520_v36 = vmul.f32 %v7512_v45, %v17341_v4  ;;  %v7528_v38 = vmul.f32 %v7512_v45, %v17343_v55  ;;  %v7536_v6 = vmul.f32 %v7512_v45, %v17345_v11  ;;  %v7576_v62 = vmul.f32 %v7568_v16, %v17347_v25  ;;  %v7352_v55 = vpop.f32.mrf.mxu3 }
 0xaba   : > { %v7584_v51 = vmul.f32 %v7568_v16, %v17349_v33  ;;  %v7592_v39 = vmul.f32 %v7568_v16, %v17351_v13  ;;  %v7632_v29 = vmul.f32 %v7624_v41, %v17353_v63  ;;  %v7640_v15 = vmul.f32 %v7624_v41, %v17355_v12 }
 0xabb   : > { %v7600_v42 = vadd.f32 %v7576_v62, %v7520_v36  ;;  %v7688_v24 = vmul.f32 %v7680_v31, %v7512_v45  ;;  %v7712_v3 = vmul.f32 %v7704_v54, %v7568_v16  ;;  %v7648_v50 = vmul.f32 %v7624_v41, %v17357_v0 }
 0xabc   : > { %v7608_v21 = vadd.f32 %v7584_v51, %v7528_v38  ;;  %v7616_v35 = vadd.f32 %v7592_v39, %v7536_v6  ;;  %v7736_v30 = vmul.f32 %v7728_v43, %v7624_v41  ;;  %v7378_v56 = vmax.f32 %v17358_v58, %v7362_v60 }
 0xabd   : > { %v7656_v7 = vadd.f32 %v7632_v29, %v7600_v42  ;;  %v7720_v61 = vadd.f32 %v7712_v3, %v7688_v24  ;;  %v7341_v18 = vpop.f32.mrf.mxu2  ;;  %v7473_v26 = vadd.f32 %v9052_v8, %v7465_v32  ;;  %v7681_v38 = vunpack.c.h.bf16 %v15322_v22 }
 0xabe   : > { %v7664_v14 = vadd.f32 %v7640_v15, %v7608_v21  ;;  %v7672_v20 = vadd.f32 %v7648_v50, %v7616_v35  ;;  %v7386_v19 = vsub.f32 %v17360_v46, %v7378_v56  ;;  %v7410_v5 = vsub.f32 %v17362_v27, %v7378_v56 }
 0xabf   : > { %v7744_v47 = vadd.f32 %v7736_v30, %v7720_v61  ;;  %7760 = vst [vmem:[%s13786_s0 + $0x60] sm:$0xff] %v7656_v7  ;;  %9053 = vrcp.f32 %v7473_v26  ;;  %v7434_v37 = vsub.f32 %v7362_v60, %v7378_v56  ;;  %v7705_v11 = vunpack.c.h.bf16 %v15325_v59  ;;  %v17372_v30 = vld [vmem:[#allocation167_spill] sm:$0xff] }
 0xac0   : > { %7768 = vst [vmem:[%s13786_s0 + $0xa0] sm:$0xff] %v7664_v14  ;;  %v7400_v54 = vmul.f32 1.442695, %v7386_v19  ;;  %v7424_v45 = vmul.f32 1.442695, %v7410_v5  ;;  %v7353_v6 = vadd.f32 %v7352_v55, %v17255_v44  ;;  %v7729_v51 = vunpack.c.h.bf16 %v15328_v57 }
 0xac1   : > { %7776 = vst [vmem:[%s13786_s0 + $0xe0] sm:$0x7] %v7672_v20  ;;  %v7792_v31 = vrot.slane %v7744_v47, 5  ;;  %v7448_v16 = vmul.f32 1.442695, %v7434_v37  ;;  %v17364_v63 = vunpack.c.h.bf16 %v17342_v2  ;;  %v17365_v22 = vunpack.c.h.bf16 %v17344_v17  ;;  %v15396_v37 = vld [vmem:[%s9376_s22 + $0xf8] sm:$0xff] }
 0xac2   : > { %9055 = vpow2.f32 %v7400_v54  ;;  %v7363_v13 = vmax.f32 %v7353_v6, 0.0  ;;  %v17366_v44 = vunpack.c.h.bf16 %v17346_v48  ;;  %v17367_v12 = vunpack.c.h.bf16 %v17348_v1  ;;  %v15393_v54 = vld [vmem:[%s9376_s22 + $0x78] sm:$0xff] }
 0xac3   : > { %7808 = vst [vmem:[%s13786_s0 + $0xe0] sm:$0x38] %v7792_v31  ;;  %9057 = vpow2.f32 %v7424_v45  ;;  %v17368_v24 = vunpack.c.h.bf16 %v17350_v10  ;;  %v17369_v3 = vunpack.c.h.bf16 %v17352_v34  ;;  %v17370_v35 = vunpack.c.h.bf16 %v17354_v28  ;;  %v7354_v28 = vpop.f32.mrf.mxu3 }
 0xac4   : > { %9059 = vpow2.f32 %v7448_v16  ;;  %v17371_v48 = vunpack.c.h.bf16 %v17356_v23  ;;  %v7379_v58 = vmax.f32 %v17372_v30, %v7363_v13  ;;  %v17373_v23 = vld [vmem:[#allocation173_spill] sm:$0xff]  ;;  %v17376_v46 = vmax.f32 %v17375_v9, 0.0 }
 0xac5   : > { %v9054_v41 = vpop.eup %9053  ;;  %v17374_v26 = vmax.f32 %v17373_v23, 0.0  ;;  %v7682_v55 = vunpack.c.l.bf16 %v15393_v54 }
 0xac6   : > { %v7489_v43 = vmul.f32 %v9054_v41, %v9048_v40  ;;  %v7497_v4 = vmul.f32 %v9054_v41, %v9050_v52  ;;  %v7505_v36 = vmul.f32 %v9054_v41, %v9052_v8  ;;  %v17363_v40 = vunpack.c.h.bf16 %v17340_v49  ;;  %v15399_v41 = vld [vmem:[%s9376_s22 + $0x178] sm:$0xff]  ;;  %s8850_s22 = sshll.u32 %s9315_s9, 6 }
 0xac7   : > { %v7387_v47 = vsub.f32 %v17374_v26, %v7379_v58  ;;  %v7411_v19 = vsub.f32 %v17376_v46, %v7379_v58  ;;  %v7435_v5 = vsub.f32 %v7363_v13, %v7379_v58  ;;  %s7857_s3 = scalar_lea.hbm %s17401_s23, %s8850_s22 }
 0xac8   : > { %v7513_v25 = vperm.slane %v7489_v43, 0  ;;  %v7569_v62 = vperm.slane %v7497_v4, 0  ;;  %v7625_v33 = vperm.slane %v7505_v36, 0  ;;  %v9056_v60 = vpop.eup %9055  ;;  %s7860_s20 = sshll.u32 %s7857_s3, 4  ;;  %s9126_s3 = scalar_lea.hbm %s17401_s23, 512  ;;  %s7861_s20 = int_to_ptr.hbm [resolvable:$true] %s7860_s20 }
 0xac9   : > { %v9058_v39 = vpop.eup %9057  ;;  %v7402_v27 = vmul.f32 1.442695, %v7387_v47  ;;  %v7426_v31 = vmul.f32 1.442695, %v7411_v19  ;;  %v7450_v45 = vmul.f32 1.442695, %v7435_v5 }
 0xaca   : > { %v7521_v52 = vmul.f32 %v7513_v25, %v17363_v40  ;;  %v7529_v29 = vmul.f32 %v7513_v25, %v17364_v63  ;;  %v7537_v59 = vmul.f32 %v7513_v25, %v17365_v22  ;;  %v7577_v42 = vmul.f32 %v7569_v62, %v17366_v44  ;;  %v9060_v10 = vpop.eup %9059  ;;  %v17377_v40 = vld [vmem:[#allocation69_spill] sm:$0xff]  ;;  %v17381_v22 = vld [vmem:[#allocation83_spill] sm:$0xff]  ;;  %s9120_s1 = sshra.s32 %s7861_s20, 4  ;;  %s9121_s1 = int_to_ptr.hbm [resolvable:$true] %s9120_s1 }
 0xacb   : > { %v7585_v15 = vmul.f32 %v7569_v62, %v17367_v12  ;;  %v7593_v57 = vmul.f32 %v7569_v62, %v17368_v24  ;;  %v7633_v21 = vmul.f32 %v7625_v33, %v17369_v3  ;;  %v7641_v2 = vmul.f32 %v7625_v33, %v17370_v35  ;;  %v17385_v24 = vld [vmem:[#allocation113_spill] sm:$0xff]  ;;  %s9122_s22 = scalar_lea.hbm %s9121_s1, 256  ;;  %p9127_p4 = scmp.lt.s32.totalorder %s9121_s1, %s17401_s23 }
 0xacc   : > { %v7601_v49 = vadd.f32 %v7577_v42, %v7521_v52  ;;  %v7689_v0 = vmul.f32 %v7681_v38, %v7513_v25  ;;  %v7713_v17 = vmul.f32 %v7705_v11, %v7569_v62  ;;  %v7649_v1 = vmul.f32 %v7625_v33, %v17371_v48  ;;  %v17383_v42 = vld [vmem:[#allocation108_spill] sm:$0xff]  ;;  %p9123_p13 = scmp.ne.s32.totalorder %s9121_s1, %s9122_s22  ;;  %p9128_p5 = scmp.lt.s32.totalorder %s9126_s3, %s9122_s22 }
 0xacd   : > { %v7609_v50 = vadd.f32 %v7585_v15, %v7529_v29  ;;  %v7617_v32 = vadd.f32 %v7593_v57, %v7537_v59  ;;  %v7466_v8 = vadd.f32 %v9058_v39, %v9056_v60  ;;  %v7737_v34 = vmul.f32 %v7729_v51, %v7625_v33 }
 0xace   : > { %v7657_v7 = vadd.f32 %v7633_v21, %v7601_v49  ;;  %v7721_v61 = vadd.f32 %v7713_v17, %v7689_v0  ;;  %v7706_v38 = vunpack.c.l.bf16 %v15396_v37  ;;  %v9179_v11 = vmov 0.0   ;;  %v17387_v21 = vld [vmem:[#allocation119_spill] sm:$0xff]  ;;  %p9124_p0 = pnand %p9123_p13, %p9340_p11  ;;  %p9129_p7 = por %p9128_p5, %p9127_p4 }
 0xacf   : > { %v7665_v56 = vadd.f32 %v7641_v2, %v7609_v50  ;;  %v7673_v18 = vadd.f32 %v7649_v1, %v7617_v32  ;;  %v7474_v14 = vadd.f32 %v9060_v10, %v7466_v8  ;;  %8761 = vst [vmem:[%s13786_s0 + $0xc7] ss:$8 sm:$0xf] %v9179_v11  ;;  %v7730_v51 = vunpack.c.l.bf16 %v15399_v41  ;;  %v17389_v2 = vld [vmem:[#allocation150_spill] sm:$0xff]  ;;  %v17391_v32 = vld [vmem:[#allocation160_spill] sm:$0xff] }
 0xad0   : > { %v7745_v20 = vadd.f32 %v7737_v34, %v7721_v61  ;;  %7761 = vst [vmem:[%s13786_s0 + $0x68] sm:$0xff] %v7657_v7  ;;  %v17378_v52 = vunpack.c.l.bf16 %v17377_v40  ;;  %v17382_v59 = vunpack.c.l.bf16 %v17381_v22  ;;  %v17384_v12 = vunpack.c.l.bf16 %v17383_v42  ;;  %v17393_v34 = vld [vmem:[#allocation170_spill] sm:$0xff]  ;;  %p9125_p3 = pneg %p9124_p0 }
 0xad1   : > { %7769 = vst [vmem:[%s13786_s0 + $0xa8] sm:$0xff] %v7665_v56  ;;  %9061 = vrcp.f32 %v7474_v14  ;;  %v17386_v57 = vunpack.c.l.bf16 %v17385_v24  ;;  %v17388_v49 = vunpack.c.l.bf16 %v17387_v21  ;;  %v17390_v0 = vunpack.c.l.bf16 %v17389_v2 }
 0xad2   : > { %7777 = vst [vmem:[%s13786_s0 + $0xe8] sm:$0x7] %v7673_v18  ;;  %v7793_v53 = vrot.slane %v7745_v20, 5  ;;  %9063 = vpow2.f32 %v7402_v27  ;;  %v17392_v48 = vunpack.c.l.bf16 %v17391_v32  ;;  %v17394_v30 = vunpack.c.l.bf16 %v17393_v34  ;;  %p9130_p8 = pnand %p9129_p7, %p9125_p3 }
 0xad3   : > { %9065 = vpow2.f32 %v7426_v31  ;;  %8762 = vst [vmem:[%s13786_s0 + $0xc7] ss:$8 sm:$0xf0] %v9179_v11  ;;  %v7683_v31 = vunpack.c.h.bf16 %v15393_v54  ;;  %v17398_v54 = vunpack.c.h.bf16 %v17383_v42  ;;  %v17404_v42 = vunpack.c.h.bf16 %v17393_v34 }
 0xad4   : > { %7809 = vst [vmem:[%s13786_s0 + $0xe8] sm:$0x38] %v7793_v53  ;;  %9067 = vpow2.f32 %v7450_v45 }
 0xad7   : > { %v9062_v16 = vpop.eup %9061 }
 0xad8   : > { %v7490_v43 = vmul.f32 %v9062_v16, %v9056_v60  ;;  %v7498_v4 = vmul.f32 %v9062_v16, %v9058_v39  ;;  %v7506_v36 = vmul.f32 %v9062_v16, %v9060_v10  ;;  %v9064_v33 = vpop.eup %9063  ;;  %v17379_v39 = vld [vmem:[#allocation75_spill] sm:$0xff] }
 0xad9   : > { %v9066_v13 = vpop.eup %9065  ;;  %v17380_v63 = vunpack.c.l.bf16 %v17379_v39  ;;  %v17396_v11 = vunpack.c.h.bf16 %v17379_v39 }
 0xada   : > { %v7514_v6 = vperm.slane %v7490_v43, 0  ;;  %v7570_v25 = vperm.slane %v7498_v4, 0  ;;  %v7626_v62 = vperm.slane %v7506_v36, 0  ;;  %v7467_v28 = vadd.f32 %v9066_v13, %v9064_v33  ;;  %v9068_v56 = vpop.eup %9067 }
 0xadb   : > { %v7707_v4 = vunpack.c.h.bf16 %v15396_v37  ;;  %v7731_v36 = vunpack.c.h.bf16 %v15399_v41  ;;  %v17400_v37 = vunpack.c.h.bf16 %v17387_v21 }
 0xadc   : > { %v7522_v60 = vmul.f32 %v7514_v6, %v17378_v52  ;;  %v7530_v29 = vmul.f32 %v7514_v6, %v17380_v63  ;;  %v7538_v44 = vmul.f32 %v7514_v6, %v17382_v59  ;;  %v7578_v15 = vmul.f32 %v7570_v25, %v17384_v12 }
 0xadd   : > { %v7586_v3 = vmul.f32 %v7570_v25, %v17386_v57  ;;  %v7594_v35 = vmul.f32 %v7570_v25, %v17388_v49  ;;  %v7634_v17 = vmul.f32 %v7626_v62, %v17390_v0  ;;  %v7642_v1 = vmul.f32 %v7626_v62, %v17392_v48 }
 0xade   : > { %v7602_v50 = vadd.f32 %v7578_v15, %v7522_v60  ;;  %v7690_v8 = vmul.f32 %v7682_v55, %v7514_v6  ;;  %v7714_v10 = vmul.f32 %v7706_v38, %v7570_v25  ;;  %v7650_v58 = vmul.f32 %v7626_v62, %v17394_v30 }
 0xadf   : > { %v7610_v7 = vadd.f32 %v7586_v3, %v7530_v29  ;;  %v7618_v61 = vadd.f32 %v7594_v35, %v7538_v44  ;;  %v7738_v20 = vmul.f32 %v7730_v51, %v7626_v62  ;;  %v7475_v47 = vadd.f32 %v9068_v56, %v7467_v28 }
 0xae0   : > { %v7658_v18 = vadd.f32 %v7634_v17, %v7602_v50  ;;  %v7722_v14 = vadd.f32 %v7714_v10, %v7690_v8  ;;  %v17395_v55 = vunpack.c.h.bf16 %v17377_v40  ;;  %v17397_v25 = vunpack.c.h.bf16 %v17381_v22 }
 0xae1   : > { %v7666_v23 = vadd.f32 %v7642_v1, %v7610_v7  ;;  %v7674_v26 = vadd.f32 %v7650_v58, %v7618_v61  ;;  %9069 = vrcp.f32 %v7475_v47  ;;  %v17399_v51 = vunpack.c.h.bf16 %v17385_v24 }
 0xae2   : > { %v7746_v9 = vadd.f32 %v7738_v20, %v7722_v14  ;;  %7762 = vst [vmem:[%s13786_s0 + $0x70] sm:$0xff] %v7658_v18  ;;  %v17402_v40 = vunpack.c.h.bf16 %v17389_v2  ;;  %v17403_v59 = vunpack.c.h.bf16 %v17391_v32 }
 0xae3   : > { %7770 = vst [vmem:[%s13786_s0 + $0xb0] sm:$0xff] %v7666_v23 }
 0xae4   : > { %7778 = vst [vmem:[%s13786_s0 + $0xf0] sm:$0x7] %v7674_v26  ;;  %v7794_v46 = vrot.slane %v7746_v9, 5 }
 0xae6   : > { %7810 = vst [vmem:[%s13786_s0 + $0xf0] sm:$0x38] %v7794_v46 }
 0xae7   : > { %v9070_v19 = vpop.eup %9069 }
 0xae8   : > { %v7491_v53 = vmul.f32 %v9070_v19, %v9064_v33  ;;  %v7499_v27 = vmul.f32 %v9070_v19, %v9066_v13  ;;  %v7507_v5 = vmul.f32 %v9070_v19, %v9068_v56 }
 0xaea   : > { %v7515_v45 = vperm.slane %v7491_v53, 0  ;;  %v7571_v16 = vperm.slane %v7499_v27, 0  ;;  %v7627_v43 = vperm.slane %v7507_v5, 0 }
 0xaec   : > { %v7523_v38 = vmul.f32 %v7515_v45, %v17395_v55  ;;  %v7531_v6 = vmul.f32 %v7515_v45, %v17396_v11  ;;  %v7539_v62 = vmul.f32 %v7515_v45, %v17397_v25  ;;  %v7579_v33 = vmul.f32 %v7571_v16, %v17398_v54 }
 0xaed   : > { %v7587_v13 = vmul.f32 %v7571_v16, %v17399_v51  ;;  %v7595_v52 = vmul.f32 %v7571_v16, %v17400_v37  ;;  %v7635_v60 = vmul.f32 %v7627_v43, %v17402_v40  ;;  %v7691_v39 = vmul.f32 %v7683_v31, %v7515_v45 }
 0xaee   : > { %v7603_v41 = vadd.f32 %v7579_v33, %v7523_v38  ;;  %v7715_v63 = vmul.f32 %v7707_v4, %v7571_v16  ;;  %v7643_v44 = vmul.f32 %v7627_v43, %v17403_v59  ;;  %v7651_v12 = vmul.f32 %v7627_v43, %v17404_v42 }
 0xaef   : > { %v7611_v29 = vadd.f32 %v7587_v13, %v7531_v6  ;;  %v7619_v22 = vadd.f32 %v7595_v52, %v7539_v62  ;;  %v7739_v57 = vmul.f32 %v7731_v36, %v7627_v43 }
 0xaf0   : > { %v7659_v15 = vadd.f32 %v7635_v60, %v7603_v41  ;;  %v7723_v24 = vadd.f32 %v7715_v63, %v7691_v39 }
 0xaf1   : > { %v7667_v3 = vadd.f32 %v7643_v44, %v7611_v29  ;;  %v7675_v21 = vadd.f32 %v7651_v12, %v7619_v22 }
 0xaf2   : > { %v7747_v49 = vadd.f32 %v7739_v57, %v7723_v24  ;;  %7763 = vst [vmem:[%s13786_s0 + $0x78] sm:$0xff] %v7659_v15 }
 0xaf3   : > { %7771 = vst [vmem:[%s13786_s0 + $0xb8] sm:$0xff] %v7667_v3 }
 0xaf4   : > { %7779 = vst [vmem:[%s13786_s0 + $0xf8] sm:$0x7] %v7675_v21  ;;  %v7795_v35 = vrot.slane %v7747_v49, 5 }
 0xaf6   : > { %7811 = vst [vmem:[%s13786_s0 + $0xf8] sm:$0x38] %v7795_v35 }
 0xaf7   : > { %9133 = shalt.err (!%p9130_p8)
}
 0xaf8   : > { %s9180_s18 = smov 1024   ;;  %s9181_s0 = smov 2048  }
 0xaf9   : > { %s9182_s6 = smov 64  }
 0xafa   : > { %8855 = dma.vmem_to_hbm [thread:$0]  (%p9340_p11), %s7859_s21, 4096, %s7861_s20, %s7846_s29, %s9180_s18, %s9181_s0, %s9182_s6  }
 0xafb PF: > { %s17406_s7 = sld [smem:[#allocation10_spill]]  ;;  %p8862_p10 = pnand %p7948_p9, %p9344_p12 }
 0xafd   : > { %p8863_p1 = pneg %p8862_p10 }
 0xb01   : > { %s7875_s9 = sand.u32 1, %s17406_s7  }
 0xb02   : > { %s7876_s5 = scalar_lea.sflag [#allocation6], %s7875_s9 }
 0xb03   : > { %9155 = dma.done.wait (%p8863_p1), %s7876_s5, 4096  }
 0xb04   : > { %9157 = vsyncadd (%p8863_p1), %s7876_s5, 4294963200  ;;  %s17408_s26 = sld [smem:[#allocation12_spill]]  ;;  %s17411_s2 = smov %s9164_s25 }
 0xb05   : > { %s17409_s4 = sld [smem:[#allocation11_spill]] }
 0xb06   : > { %s17410_s3 = sld [smem:[#allocation13_spill]] }
 0xb0a   : > { %p37_p2 = scmp.ge.s32.totalorder %s17408_s26, 4  }
 0xb0b   : > { %s17412_s25 = smov %s17409_s4 }
 0xb0c   :  { %39 = sbr.rel (!%p37_p2) target bundleno = 17 (0x11), region = 152 }
 0xb11   :  { %7882 = vsyncpa [#allocation5], 1 }
 0xb12   :  { %7884 = vsyncpa [#allocation5 + $0x1], 1 }
 0xb13   :  { %7885 = vsyncpa [#allocation6], 1 }
 0xb14   :  { %7887 = vsyncpa [#allocation6 + $0x1], 1 }

</bundles_post_ra>
